<compile_context>
chip_gen: v6e
topology: v6e:2x2x1
jax: 0.10.0
libtpu: 0.0.40
codegen_flags: <defaults>
</compile_context>

<pallas_src>
import functools

import jax
import jax.numpy as jnp
from jax import lax
from jax.experimental import pallas as pl
from jax.experimental.pallas import tpu as pltpu


def _round_up(x, m):
    return (x + m - 1) // m * m


def _approx_linear_kernel(scale_ref, xq_ref, wq_ref, lut_hi_ref, lut_lo_ref,
                          b_ref, o_ref, acc_ref, *, tm, tn, tk):
    k_id = pl.program_id(2)

    @pl.when(k_id == 0)
    def _init():
        acc_ref[...] = jnp.zeros_like(acc_ref)

    # --- Stage 1: LUT row-gather for the whole (tk, tm) x tile ---------------
    # one_hot(xq) @ LUT == LUT[xq, :] exactly (one 1 per row; padded entries use
    # the -1 sentinel -> all-zero row -> contribute nothing).  hi/lo bf16 planes
    # keep both matmuls on the bf16 MXU path while staying exact for integer LUTs.
    xq = xq_ref[...]                                              # (tk, tm) int32
    lane_ids = lax.broadcasted_iota(jnp.int32, (1, 1, 256), 2)    # (1, 1, 256)
    oh_x = (xq[:, :, None] == lane_ids).astype(jnp.bfloat16)      # (tk, tm, 256)
    oh_x = oh_x.reshape(tk * tm, 256)                             # collapse leading dims
    t_hi = jnp.dot(oh_x, lut_hi_ref[...],
                   preferred_element_type=jnp.float32).astype(jnp.bfloat16)
    t_lo = jnp.dot(oh_x, lut_lo_ref[...],
                   preferred_element_type=jnp.float32).astype(jnp.bfloat16)

    # --- Stage 2: contract against weight one-hots over the tile depth -------
    wq = wq_ref[...]                                              # (tk, tn) int32
    sub_ids = lax.broadcasted_iota(jnp.int32, (256, 1), 0)        # (256, 1)
    dn = (((1,), (0,)), ((), ()))                                 # canonical (tm,256)@(256,tn)

    acc = jnp.zeros((tm, tn), jnp.float32)                        # local accumulation
    for kk in range(tk):                                          # only the tile depth
        w_row = wq[kk:kk + 1, :]                                  # (1, tn), lane-dense
        oh_wT = (sub_ids == w_row).astype(jnp.bfloat16)           # (256, tn)
        t_hi_k = t_hi[kk * tm:(kk + 1) * tm, :]                   # (tm, 256), aligned view
        t_lo_k = t_lo[kk * tm:(kk + 1) * tm, :]
        acc = acc + lax.dot_general(t_hi_k, oh_wT, dn,
                                    preferred_element_type=jnp.float32)
        acc = acc + lax.dot_general(t_lo_k, oh_wT, dn,
                                    preferred_element_type=jnp.float32)
    acc_ref[...] += acc                                           # single RMW per grid step

    @pl.when(k_id == pl.num_programs(2) - 1)
    def _epilogue():
        scale = scale_ref[0, 0]                                   # SMEM scalar
        o_ref[...] = (acc_ref[...] * scale + b_ref[...]).astype(o_ref.dtype)


def approx_linear_int8(x, weight, lut, bias=None, *, tk=32, tn_max=256, tm_max=128):
    """x: (M, K) f32, weight: (N, K) f32, lut: (256, 256) f32, bias: (N,) f32."""
    M, K = x.shape
    N, K2 = weight.shape
    assert K == K2
    assert lut.shape == (256, 256)
    if bias is None:
        bias = jnp.zeros((N,), jnp.float32)

    # Global symmetric per-tensor scales — computed OUTSIDE the kernel so the
    # kernel can be tiled (clamped so all-zero tensors don't produce NaNs).
    sx = jnp.maximum(jnp.max(jnp.abs(x)) / 127.0, 1e-8)
    sw = jnp.maximum(jnp.max(jnp.abs(weight)) / 127.0, 1e-8)
    xq = jnp.clip(jnp.round(x / sx), -128, 127).astype(jnp.int32) + 128       # 0..255
    wq = jnp.clip(jnp.round(weight / sw), -128, 127).astype(jnp.int32) + 128  # 0..255

    # bf16 hi/lo LUT split: exact when LUT entries are integers with <= ~16
    # significant bits (true for int8*int8 approx-multiplier tables); otherwise
    # ~bf16x2 precision.
    lut_f32 = lut.astype(jnp.float32)
    lut_hi = lut_f32.astype(jnp.bfloat16)
    lut_lo = (lut_f32 - lut_hi.astype(jnp.float32)).astype(jnp.bfloat16)

    # Tiling: lane-dense output (tn multiple of 128, default 256 for the
    # 256-wide MXUs of v6e/v7x); M rounded to sublanes.
    tm = min(tm_max, _round_up(M, 8))
    tn = min(tn_max, _round_up(N, 128))
    Mp, Np, Kp = _round_up(M, tm), _round_up(N, tn), _round_up(K, tk)
    Mi, Nj, Kk = Mp // tm, Np // tn, Kp // tk

    # Padding.  x padding uses the -1 sentinel (never matches any LUT index, so
    # padded K columns / M rows contribute nothing); padded N/M slices are cut
    # off after the call.
    xq_p = jnp.pad(xq, ((0, Mp - M), (0, Kp - K)), constant_values=-1)
    wq_p = jnp.pad(wq, ((0, Np - N), (0, Kp - K)))
    b_p = jnp.pad(bias.astype(jnp.float32), (0, Np - N)).reshape(1, Np)
    scale = (sx * sw).astype(jnp.float32).reshape(1, 1)

    # Pre-tile with lane-dense trailing dims (contiguous DMA per block):
    #   x tiles: (Mi, Kk, tk, tm) -> kernel block (tk, tm)
    #   w tiles: (Nj, Kk, tk, tn) -> kernel block (tk, tn)
    xqr = xq_p.reshape(Mi, tm, Kk, tk).transpose(0, 2, 3, 1)
    wqr = wq_p.reshape(Nj, tn, Kk, tk).transpose(0, 2, 3, 1)

    kernel = functools.partial(_approx_linear_kernel, tm=tm, tn=tn, tk=tk)

    flops = 4 * Mi * Nj * Kk * tk * tm * 256 * (256 + tn)
    bytes_accessed = (xqr.size * 4 * Nj + wqr.size * 4 * Mi
                      + 2 * 256 * 256 * 2 + Mp * Np * 4 + Np * 4)

    out_p = pl.pallas_call(
        kernel,
        out_shape=jax.ShapeDtypeStruct((Mp, Np), jnp.float32),
        grid_spec=pltpu.PrefetchScalarGridSpec(
            num_scalar_prefetch=0,
            grid=(Mi, Nj, Kk),
            in_specs=[
                pl.BlockSpec(memory_space=pltpu.MemorySpace.SMEM),              # scale (scalar)
                pl.BlockSpec((None, None, tk, tm), lambda i, j, k: (i, k, 0, 0)),  # x tiles
                pl.BlockSpec((None, None, tk, tn), lambda i, j, k: (j, k, 0, 0)),  # w tiles
                pl.BlockSpec((256, 256), lambda i, j, k: (0, 0)),               # LUT hi (bf16)
                pl.BlockSpec((256, 256), lambda i, j, k: (0, 0)),               # LUT lo (bf16)
                pl.BlockSpec((1, tn), lambda i, j, k: (0, j)),                  # bias
            ],
            out_specs=pl.BlockSpec((tm, tn), lambda i, j, k: (i, j)),
            scratch_shapes=[pltpu.VMEM((tm, tn), jnp.float32)],
        ),
        compiler_params=pltpu.CompilerParams(
            dimension_semantics=("parallel", "parallel", "arbitrary"),
            vmem_limit_bytes=48 * 1024 * 1024),
        cost_estimate=pl.CostEstimate(
            flops=flops, transcendentals=0, bytes_accessed=bytes_accessed),
    )(scale, xqr, wqr, lut_hi, lut_lo, b_p)

    return out_p[:M, :N]


def ref_approx_linear(x, weight, lut, bias):
    """Pure-JAX reference (direct LUT gather)."""
    sx = jnp.maximum(jnp.max(jnp.abs(x)) / 127.0, 1e-8)
    sw = jnp.maximum(jnp.max(jnp.abs(weight)) / 127.0, 1e-8)
    xq = jnp.clip(jnp.round(x / sx), -128, 127).astype(jnp.int32) + 128
    wq = jnp.clip(jnp.round(weight / sw), -128, 127).astype(jnp.int32) + 128
    prods = lut[xq[:, None, :], wq[None, :, :]]                   # (M, N, K)
    return prods.sum(-1) * (sx * sw) + bias[None, :]


def make_lut():
    """Deterministic 256x256 'approximate multiplier' table: exact int8 product
    with the low 2 bits truncated."""
    a = jnp.arange(256, dtype=jnp.int32) - 128
    prod = a[:, None] * a[None, :]
    approx = (prod >> 2) << 2
    return approx.astype(jnp.float32)


if __name__ == "__main__":
    key = jax.random.PRNGKey(0)
    kx, kw, kb = jax.random.split(key, 3)

    batch, in_features, out_features = 8, 48, 32   # K=48 exercises K padding
    x = jax.random.normal(kx, (batch, in_features), jnp.float32)
    weight = 0.1 * jax.random.normal(kw, (out_features, in_features), jnp.float32)
    bias = 0.1 * jax.random.normal(kb, (out_features,), jnp.float32)
    lut = make_lut()

    out = jax.block_until_ready(approx_linear_int8(x, weight, lut, bias))

    ref = ref_approx_linear(x, weight, lut, bias)
    assert out.shape == (batch, out_features)
    assert jnp.allclose(out, ref, atol=1e-3, rtol=1e-3), float(jnp.max(jnp.abs(out - ref)))
    print("KERNEL_OK")
</pallas_src>

<mosaic_0001>
module attributes {stable_mosaic.version = 11 : i64} {
  func.func @_approx_linear_kernel(%arg0: i32, %arg1: i32, %arg2: i32, %arg3: memref<1x1xf32, #tpu.memory_space<smem>>, %arg4: memref<1x1x32x8xi32, #tpu.memory_space<vmem>>, %arg5: memref<1x1x32x128xi32, #tpu.memory_space<vmem>>, %arg6: memref<256x256xbf16, #tpu.memory_space<vmem>>, %arg7: memref<256x256xbf16, #tpu.memory_space<vmem>>, %arg8: memref<1x128xf32, #tpu.memory_space<vmem>>, %arg9: memref<8x128xf32, #tpu.memory_space<vmem>>, %arg10: memref<8x128xf32, #tpu.memory_space<vmem>>) attributes {dimension_semantics = [#tpu.dimension_semantics<parallel>, #tpu.dimension_semantics<parallel>, #tpu.dimension_semantics<arbitrary>], iteration_bounds = array<i64: 1, 1, 2>, scalar_prefetch = 0 : i64, scratch_operands = 1 : i64, tpu.core_type = #tpu.core_type<tc>, window_params = [{transform_indices = @transform_0, window_bounds = array<i64: 1, 1>}, {transform_indices = @transform_1, window_bounds = array<i64: 1, 1, 32, 8>}, {transform_indices = @transform_2, window_bounds = array<i64: 1, 1, 32, 128>}, {pipeline_mode = #tpu.pipeline_mode<synchronous>, transform_indices = @transform_3, window_bounds = array<i64: 256, 256>}, {pipeline_mode = #tpu.pipeline_mode<synchronous>, transform_indices = @transform_4, window_bounds = array<i64: 256, 256>}, {transform_indices = @transform_5, window_bounds = array<i64: 1, 128>}, {transform_indices = @transform_6, window_bounds = array<i64: 8, 128>}]} {
    %c0_i32 = arith.constant 0 : i32
    %0 = arith.cmpi eq, %arg2, %c0_i32 : i32
    %1 = arith.extui %0 : i1 to i32
    %c0_i32_0 = arith.constant 0 : i32
    %2 = arith.cmpi ne, %1, %c0_i32_0 : i32
    scf.if %2 {
      %cst_83 = arith.constant 0.000000e+00 : f32
      %446 = vector.broadcast %cst_83 : f32 to vector<8x128xf32>
      %c0_84 = arith.constant 0 : index
      %c0_85 = arith.constant 0 : index
      %447 = vector.load %arg10[%c0_84, %c0_85] : memref<8x128xf32, #tpu.memory_space<vmem>>, vector<8x128xf32>
      tpu.vector_store %arg10[%c0_84, %c0_85], %446 {strides = array<i32>} : memref<8x128xf32, #tpu.memory_space<vmem>>, vector<8x128xf32>,
    } else {
    }
    %c0 = arith.constant 0 : index
    %c0_1 = arith.constant 0 : index
    %c0_2 = arith.constant 0 : index
    %c0_3 = arith.constant 0 : index
    %3 = vector.load %arg4[%c0, %c0_1, %c0_2, %c0_3] : memref<1x1x32x8xi32, #tpu.memory_space<vmem>>, vector<1x1x32x8xi32>
    %4 = vector.shape_cast %3 : vector<1x1x32x8xi32> to vector<32x8xi32>
    %5 = tpu.iota {dimensions = array<i32: 2>} : vector<1x1x256xi32>
    %6 = vector.shape_cast %4 : vector<32x8xi32> to vector<32x8x1xi32>
    %7 = vector.broadcast %6 : vector<32x8x1xi32> to vector<32x8x256xi32>
    %8 = vector.broadcast %5 : vector<1x1x256xi32> to vector<32x8x256xi32>
    %9 = arith.cmpi eq, %7, %8 : vector<32x8x256xi32>
    %10 = arith.extui %9 : vector<32x8x256xi1> to vector<32x8x256xi32>
    %11 = arith.sitofp %10 : vector<32x8x256xi32> to vector<32x8x256xf32>
    %12 = arith.truncf %11 : vector<32x8x256xf32> to vector<32x8x256xbf16>
    %13 = vector.shape_cast %12 : vector<32x8x256xbf16> to vector<256x256xbf16>
    %c0_4 = arith.constant 0 : index
    %c0_5 = arith.constant 0 : index
    %14 = vector.load %arg6[%c0_4, %c0_5] : memref<256x256xbf16, #tpu.memory_space<vmem>>, vector<256x256xbf16>
    %cst = arith.constant dense<0.000000e+00> : vector<256x256xf32>
    %15 = tpu.matmul %13, %14, %cst {dimension_numbers = #tpu.dot_dimension_numbers<[1], [0], [0], [1], [0, 0, 1, 1], [], []>} : vector<256x256xbf16>, vector<256x256xbf16>, vector<256x256xf32> -> vector<256x256xf32>
    %16 = arith.truncf %15 : vector<256x256xf32> to vector<256x256xbf16>
    %c0_6 = arith.constant 0 : index
    %c0_7 = arith.constant 0 : index
    %17 = vector.load %arg7[%c0_6, %c0_7] : memref<256x256xbf16, #tpu.memory_space<vmem>>, vector<256x256xbf16>
    %cst_8 = arith.constant dense<0.000000e+00> : vector<256x256xf32>
    %18 = tpu.matmul %13, %17, %cst_8 {dimension_numbers = #tpu.dot_dimension_numbers<[1], [0], [0], [1], [0, 0, 1, 1], [], []>} : vector<256x256xbf16>, vector<256x256xbf16>, vector<256x256xf32> -> vector<256x256xf32>
    %19 = arith.truncf %18 : vector<256x256xf32> to vector<256x256xbf16>
    %c0_9 = arith.constant 0 : index
    %c0_10 = arith.constant 0 : index
    %c0_11 = arith.constant 0 : index
    %c0_12 = arith.constant 0 : index
    %20 = vector.load %arg5[%c0_9, %c0_10, %c0_11, %c0_12] : memref<1x1x32x128xi32, #tpu.memory_space<vmem>>, vector<1x1x32x128xi32>
    %21 = vector.shape_cast %20 : vector<1x1x32x128xi32> to vector<32x128xi32>
    %22 = tpu.iota {dimensions = array<i32: 0>} : vector<256x1xi32>
    %cst_13 = arith.constant 0.000000e+00 : f32
    %23 = vector.broadcast %cst_13 : f32 to vector<8x128xf32>
    %24 = vector.extract_strided_slice %21 {offsets = [0, 0], sizes = [1, 128], strides = [1, 1]} : vector<32x128xi32> to vector<1x128xi32>
    %25 = vector.broadcast %22 : vector<256x1xi32> to vector<256x128xi32>
    %26 = vector.broadcast %24 : vector<1x128xi32> to vector<256x128xi32>
    %27 = arith.cmpi eq, %25, %26 : vector<256x128xi32>
    %28 = arith.extui %27 : vector<256x128xi1> to vector<256x128xi32>
    %29 = arith.sitofp %28 : vector<256x128xi32> to vector<256x128xf32>
    %30 = arith.truncf %29 : vector<256x128xf32> to vector<256x128xbf16>
    %31 = vector.extract_strided_slice %16 {offsets = [0, 0], sizes = [8, 256], strides = [1, 1]} : vector<256x256xbf16> to vector<8x256xbf16>
    %32 = vector.extract_strided_slice %19 {offsets = [0, 0], sizes = [8, 256], strides = [1, 1]} : vector<256x256xbf16> to vector<8x256xbf16>
    %cst_14 = arith.constant dense<0.000000e+00> : vector<8x128xf32>
    %33 = tpu.matmul %31, %30, %cst_14 {dimension_numbers = #tpu.dot_dimension_numbers<[1], [0], [0], [1], [0, 0, 1, 1], [], []>} : vector<8x256xbf16>, vector<256x128xbf16>, vector<8x128xf32> -> vector<8x128xf32>
    %34 = arith.addf %23, %33 : vector<8x128xf32>
    %cst_15 = arith.constant dense<0.000000e+00> : vector<8x128xf32>
    %35 = tpu.matmul %32, %30, %cst_15 {dimension_numbers = #tpu.dot_dimension_numbers<[1], [0], [0], [1], [0, 0, 1, 1], [], []>} : vector<8x256xbf16>, vector<256x128xbf16>, vector<8x128xf32> -> vector<8x128xf32>
    %36 = arith.addf %34, %35 : vector<8x128xf32>
    %37 = vector.extract_strided_slice %21 {offsets = [1, 0], sizes = [1, 128], strides = [1, 1]} : vector<32x128xi32> to vector<1x128xi32>
    %38 = vector.broadcast %22 : vector<256x1xi32> to vector<256x128xi32>
    %39 = vector.broadcast %37 : vector<1x128xi32> to vector<256x128xi32>
    %40 = arith.cmpi eq, %38, %39 : vector<256x128xi32>
    %41 = arith.extui %40 : vector<256x128xi1> to vector<256x128xi32>
    %42 = arith.sitofp %41 : vector<256x128xi32> to vector<256x128xf32>
    %43 = arith.truncf %42 : vector<256x128xf32> to vector<256x128xbf16>
    %44 = vector.extract_strided_slice %16 {offsets = [8, 0], sizes = [8, 256], strides = [1, 1]} : vector<256x256xbf16> to vector<8x256xbf16>
    %45 = vector.extract_strided_slice %19 {offsets = [8, 0], sizes = [8, 256], strides = [1, 1]} : vector<256x256xbf16> to vector<8x256xbf16>
    %cst_16 = arith.constant dense<0.000000e+00> : vector<8x128xf32>
    %46 = tpu.matmul %44, %43, %cst_16 {dimension_numbers = #tpu.dot_dimension_numbers<[1], [0], [0], [1], [0, 0, 1, 1], [], []>} : vector<8x256xbf16>, vector<256x128xbf16>, vector<8x128xf32> -> vector<8x128xf32>
    %47 = arith.addf %36, %46 : vector<8x128xf32>
    %cst_17 = arith.constant dense<0.000000e+00> : vector<8x128xf32>
    %48 = tpu.matmul %45, %43, %cst_17 {dimension_numbers = #tpu.dot_dimension_numbers<[1], [0], [0], [1], [0, 0, 1, 1], [], []>} : vector<8x256xbf16>, vector<256x128xbf16>, vector<8x128xf32> -> vector<8x128xf32>
    %49 = arith.addf %47, %48 : vector<8x128xf32>
    %50 = vector.extract_strided_slice %21 {offsets = [2, 0], sizes = [1, 128], strides = [1, 1]} : vector<32x128xi32> to vector<1x128xi32>
    %51 = vector.broadcast %22 : vector<256x1xi32> to vector<256x128xi32>
    %52 = vector.broadcast %50 : vector<1x128xi32> to vector<256x128xi32>
    %53 = arith.cmpi eq, %51, %52 : vector<256x128xi32>
    %54 = arith.extui %53 : vector<256x128xi1> to vector<256x128xi32>
    %55 = arith.sitofp %54 : vector<256x128xi32> to vector<256x128xf32>
    %56 = arith.truncf %55 : vector<256x128xf32> to vector<256x128xbf16>
    %57 = vector.extract_strided_slice %16 {offsets = [16, 0], sizes = [8, 256], strides = [1, 1]} : vector<256x256xbf16> to vector<8x256xbf16>
    %58 = vector.extract_strided_slice %19 {offsets = [16, 0], sizes = [8, 256], strides = [1, 1]} : vector<256x256xbf16> to vector<8x256xbf16>
    %cst_18 = arith.constant dense<0.000000e+00> : vector<8x128xf32>
    %59 = tpu.matmul %57, %56, %cst_18 {dimension_numbers = #tpu.dot_dimension_numbers<[1], [0], [0], [1], [0, 0, 1, 1], [], []>} : vector<8x256xbf16>, vector<256x128xbf16>, vector<8x128xf32> -> vector<8x128xf32>
    %60 = arith.addf %49, %59 : vector<8x128xf32>
    %cst_19 = arith.constant dense<0.000000e+00> : vector<8x128xf32>
    %61 = tpu.matmul %58, %56, %cst_19 {dimension_numbers = #tpu.dot_dimension_numbers<[1], [0], [0], [1], [0, 0, 1, 1], [], []>} : vector<8x256xbf16>, vector<256x128xbf16>, vector<8x128xf32> -> vector<8x128xf32>
    %62 = arith.addf %60, %61 : vector<8x128xf32>
    %63 = vector.extract_strided_slice %21 {offsets = [3, 0], sizes = [1, 128], strides = [1, 1]} : vector<32x128xi32> to vector<1x128xi32>
    %64 = vector.broadcast %22 : vector<256x1xi32> to vector<256x128xi32>
    %65 = vector.broadcast %63 : vector<1x128xi32> to vector<256x128xi32>
    %66 = arith.cmpi eq, %64, %65 : vector<256x128xi32>
    %67 = arith.extui %66 : vector<256x128xi1> to vector<256x128xi32>
    %68 = arith.sitofp %67 : vector<256x128xi32> to vector<256x128xf32>
    %69 = arith.truncf %68 : vector<256x128xf32> to vector<256x128xbf16>
    %70 = vector.extract_strided_slice %16 {offsets = [24, 0], sizes = [8, 256], strides = [1, 1]} : vector<256x256xbf16> to vector<8x256xbf16>
    %71 = vector.extract_strided_slice %19 {offsets = [24, 0], sizes = [8, 256], strides = [1, 1]} : vector<256x256xbf16> to vector<8x256xbf16>
    %cst_20 = arith.constant dense<0.000000e+00> : vector<8x128xf32>
    %72 = tpu.matmul %70, %69, %cst_20 {dimension_numbers = #tpu.dot_dimension_numbers<[1], [0], [0], [1], [0, 0, 1, 1], [], []>} : vector<8x256xbf16>, vector<256x128xbf16>, vector<8x128xf32> -> vector<8x128xf32>
    %73 = arith.addf %62, %72 : vector<8x128xf32>
    %cst_21 = arith.constant dense<0.000000e+00> : vector<8x128xf32>
    %74 = tpu.matmul %71, %69, %cst_21 {dimension_numbers = #tpu.dot_dimension_numbers<[1], [0], [0], [1], [0, 0, 1, 1], [], []>} : vector<8x256xbf16>, vector<256x128xbf16>, vector<8x128xf32> -> vector<8x128xf32>
    %75 = arith.addf %73, %74 : vector<8x128xf32>
    %76 = vector.extract_strided_slice %21 {offsets = [4, 0], sizes = [1, 128], strides = [1, 1]} : vector<32x128xi32> to vector<1x128xi32>
    %77 = vector.broadcast %22 : vector<256x1xi32> to vector<256x128xi32>
    %78 = vector.broadcast %76 : vector<1x128xi32> to vector<256x128xi32>
    %79 = arith.cmpi eq, %77, %78 : vector<256x128xi32>
    %80 = arith.extui %79 : vector<256x128xi1> to vector<256x128xi32>
    %81 = arith.sitofp %80 : vector<256x128xi32> to vector<256x128xf32>
    %82 = arith.truncf %81 : vector<256x128xf32> to vector<256x128xbf16>
    %83 = vector.extract_strided_slice %16 {offsets = [32, 0], sizes = [8, 256], strides = [1, 1]} : vector<256x256xbf16> to vector<8x256xbf16>
    %84 = vector.extract_strided_slice %19 {offsets = [32, 0], sizes = [8, 256], strides = [1, 1]} : vector<256x256xbf16> to vector<8x256xbf16>
    %cst_22 = arith.constant dense<0.000000e+00> : vector<8x128xf32>
    %85 = tpu.matmul %83, %82, %cst_22 {dimension_numbers = #tpu.dot_dimension_numbers<[1], [0], [0], [1], [0, 0, 1, 1], [], []>} : vector<8x256xbf16>, vector<256x128xbf16>, vector<8x128xf32> -> vector<8x128xf32>
    %86 = arith.addf %75, %85 : vector<8x128xf32>
    %cst_23 = arith.constant dense<0.000000e+00> : vector<8x128xf32>
    %87 = tpu.matmul %84, %82, %cst_23 {dimension_numbers = #tpu.dot_dimension_numbers<[1], [0], [0], [1], [0, 0, 1, 1], [], []>} : vector<8x256xbf16>, vector<256x128xbf16>, vector<8x128xf32> -> vector<8x128xf32>
    %88 = arith.addf %86, %87 : vector<8x128xf32>
    %89 = vector.extract_strided_slice %21 {offsets = [5, 0], sizes = [1, 128], strides = [1, 1]} : vector<32x128xi32> to vector<1x128xi32>
    %90 = vector.broadcast %22 : vector<256x1xi32> to vector<256x128xi32>
    %91 = vector.broadcast %89 : vector<1x128xi32> to vector<256x128xi32>
    %92 = arith.cmpi eq, %90, %91 : vector<256x128xi32>
    %93 = arith.extui %92 : vector<256x128xi1> to vector<256x128xi32>
    %94 = arith.sitofp %93 : vector<256x128xi32> to vector<256x128xf32>
    %95 = arith.truncf %94 : vector<256x128xf32> to vector<256x128xbf16>
    %96 = vector.extract_strided_slice %16 {offsets = [40, 0], sizes = [8, 256], strides = [1, 1]} : vector<256x256xbf16> to vector<8x256xbf16>
    %97 = vector.extract_strided_slice %19 {offsets = [40, 0], sizes = [8, 256], strides = [1, 1]} : vector<256x256xbf16> to vector<8x256xbf16>
    %cst_24 = arith.constant dense<0.000000e+00> : vector<8x128xf32>
    %98 = tpu.matmul %96, %95, %cst_24 {dimension_numbers = #tpu.dot_dimension_numbers<[1], [0], [0], [1], [0, 0, 1, 1], [], []>} : vector<8x256xbf16>, vector<256x128xbf16>, vector<8x128xf32> -> vector<8x128xf32>
    %99 = arith.addf %88, %98 : vector<8x128xf32>
    %cst_25 = arith.constant dense<0.000000e+00> : vector<8x128xf32>
    %100 = tpu.matmul %97, %95, %cst_25 {dimension_numbers = #tpu.dot_dimension_numbers<[1], [0], [0], [1], [0, 0, 1, 1], [], []>} : vector<8x256xbf16>, vector<256x128xbf16>, vector<8x128xf32> -> vector<8x128xf32>
    %101 = arith.addf %99, %100 : vector<8x128xf32>
    %102 = vector.extract_strided_slice %21 {offsets = [6, 0], sizes = [1, 128], strides = [1, 1]} : vector<32x128xi32> to vector<1x128xi32>
    %103 = vector.broadcast %22 : vector<256x1xi32> to vector<256x128xi32>
    %104 = vector.broadcast %102 : vector<1x128xi32> to vector<256x128xi32>
    %105 = arith.cmpi eq, %103, %104 : vector<256x128xi32>
    %106 = arith.extui %105 : vector<256x128xi1> to vector<256x128xi32>
    %107 = arith.sitofp %106 : vector<256x128xi32> to vector<256x128xf32>
    %108 = arith.truncf %107 : vector<256x128xf32> to vector<256x128xbf16>
    %109 = vector.extract_strided_slice %16 {offsets = [48, 0], sizes = [8, 256], strides = [1, 1]} : vector<256x256xbf16> to vector<8x256xbf16>
    %110 = vector.extract_strided_slice %19 {offsets = [48, 0], sizes = [8, 256], strides = [1, 1]} : vector<256x256xbf16> to vector<8x256xbf16>
    %cst_26 = arith.constant dense<0.000000e+00> : vector<8x128xf32>
    %111 = tpu.matmul %109, %108, %cst_26 {dimension_numbers = #tpu.dot_dimension_numbers<[1], [0], [0], [1], [0, 0, 1, 1], [], []>} : vector<8x256xbf16>, vector<256x128xbf16>, vector<8x128xf32> -> vector<8x128xf32>
    %112 = arith.addf %101, %111 : vector<8x128xf32>
    %cst_27 = arith.constant dense<0.000000e+00> : vector<8x128xf32>
    %113 = tpu.matmul %110, %108, %cst_27 {dimension_numbers = #tpu.dot_dimension_numbers<[1], [0], [0], [1], [0, 0, 1, 1], [], []>} : vector<8x256xbf16>, vector<256x128xbf16>, vector<8x128xf32> -> vector<8x128xf32>
    %114 = arith.addf %112, %113 : vector<8x128xf32>
    %115 = vector.extract_strided_slice %21 {offsets = [7, 0], sizes = [1, 128], strides = [1, 1]} : vector<32x128xi32> to vector<1x128xi32>
    %116 = vector.broadcast %22 : vector<256x1xi32> to vector<256x128xi32>
    %117 = vector.broadcast %115 : vector<1x128xi32> to vector<256x128xi32>
    %118 = arith.cmpi eq, %116, %117 : vector<256x128xi32>
    %119 = arith.extui %118 : vector<256x128xi1> to vector<256x128xi32>
    %120 = arith.sitofp %119 : vector<256x128xi32> to vector<256x128xf32>
    %121 = arith.truncf %120 : vector<256x128xf32> to vector<256x128xbf16>
    %122 = vector.extract_strided_slice %16 {offsets = [56, 0], sizes = [8, 256], strides = [1, 1]} : vector<256x256xbf16> to vector<8x256xbf16>
    %123 = vector.extract_strided_slice %19 {offsets = [56, 0], sizes = [8, 256], strides = [1, 1]} : vector<256x256xbf16> to vector<8x256xbf16>
    %cst_28 = arith.constant dense<0.000000e+00> : vector<8x128xf32>
    %124 = tpu.matmul %122, %121, %cst_28 {dimension_numbers = #tpu.dot_dimension_numbers<[1], [0], [0], [1], [0, 0, 1, 1], [], []>} : vector<8x256xbf16>, vector<256x128xbf16>, vector<8x128xf32> -> vector<8x128xf32>
    %125 = arith.addf %114, %124 : vector<8x128xf32>
    %cst_29 = arith.constant dense<0.000000e+00> : vector<8x128xf32>
    %126 = tpu.matmul %123, %121, %cst_29 {dimension_numbers = #tpu.dot_dimension_numbers<[1], [0], [0], [1], [0, 0, 1, 1], [], []>} : vector<8x256xbf16>, vector<256x128xbf16>, vector<8x128xf32> -> vector<8x128xf32>
    %127 = arith.addf %125, %126 : vector<8x128xf32>
    %128 = vector.extract_strided_slice %21 {offsets = [8, 0], sizes = [1, 128], strides = [1, 1]} : vector<32x128xi32> to vector<1x128xi32>
    %129 = vector.broadcast %22 : vector<256x1xi32> to vector<256x128xi32>
    %130 = vector.broadcast %128 : vector<1x128xi32> to vector<256x128xi32>
    %131 = arith.cmpi eq, %129, %130 : vector<256x128xi32>
    %132 = arith.extui %131 : vector<256x128xi1> to vector<256x128xi32>
    %133 = arith.sitofp %132 : vector<256x128xi32> to vector<256x128xf32>
    %134 = arith.truncf %133 : vector<256x128xf32> to vector<256x128xbf16>
    %135 = vector.extract_strided_slice %16 {offsets = [64, 0], sizes = [8, 256], strides = [1, 1]} : vector<256x256xbf16> to vector<8x256xbf16>
    %136 = vector.extract_strided_slice %19 {offsets = [64, 0], sizes = [8, 256], strides = [1, 1]} : vector<256x256xbf16> to vector<8x256xbf16>
    %cst_30 = arith.constant dense<0.000000e+00> : vector<8x128xf32>
    %137 = tpu.matmul %135, %134, %cst_30 {dimension_numbers = #tpu.dot_dimension_numbers<[1], [0], [0], [1], [0, 0, 1, 1], [], []>} : vector<8x256xbf16>, vector<256x128xbf16>, vector<8x128xf32> -> vector<8x128xf32>
    %138 = arith.addf %127, %137 : vector<8x128xf32>
    %cst_31 = arith.constant dense<0.000000e+00> : vector<8x128xf32>
    %139 = tpu.matmul %136, %134, %cst_31 {dimension_numbers = #tpu.dot_dimension_numbers<[1], [0], [0], [1], [0, 0, 1, 1], [], []>} : vector<8x256xbf16>, vector<256x128xbf16>, vector<8x128xf32> -> vector<8x128xf32>
    %140 = arith.addf %138, %139 : vector<8x128xf32>
    %141 = vector.extract_strided_slice %21 {offsets = [9, 0], sizes = [1, 128], strides = [1, 1]} : vector<32x128xi32> to vector<1x128xi32>
    %142 = vector.broadcast %22 : vector<256x1xi32> to vector<256x128xi32>
    %143 = vector.broadcast %141 : vector<1x128xi32> to vector<256x128xi32>
    %144 = arith.cmpi eq, %142, %143 : vector<256x128xi32>
    %145 = arith.extui %144 : vector<256x128xi1> to vector<256x128xi32>
    %146 = arith.sitofp %145 : vector<256x128xi32> to vector<256x128xf32>
    %147 = arith.truncf %146 : vector<256x128xf32> to vector<256x128xbf16>
    %148 = vector.extract_strided_slice %16 {offsets = [72, 0], sizes = [8, 256], strides = [1, 1]} : vector<256x256xbf16> to vector<8x256xbf16>
    %149 = vector.extract_strided_slice %19 {offsets = [72, 0], sizes = [8, 256], strides = [1, 1]} : vector<256x256xbf16> to vector<8x256xbf16>
    %cst_32 = arith.constant dense<0.000000e+00> : vector<8x128xf32>
    %150 = tpu.matmul %148, %147, %cst_32 {dimension_numbers = #tpu.dot_dimension_numbers<[1], [0], [0], [1], [0, 0, 1, 1], [], []>} : vector<8x256xbf16>, vector<256x128xbf16>, vector<8x128xf32> -> vector<8x128xf32>
    %151 = arith.addf %140, %150 : vector<8x128xf32>
    %cst_33 = arith.constant dense<0.000000e+00> : vector<8x128xf32>
    %152 = tpu.matmul %149, %147, %cst_33 {dimension_numbers = #tpu.dot_dimension_numbers<[1], [0], [0], [1], [0, 0, 1, 1], [], []>} : vector<8x256xbf16>, vector<256x128xbf16>, vector<8x128xf32> -> vector<8x128xf32>
    %153 = arith.addf %151, %152 : vector<8x128xf32>
    %154 = vector.extract_strided_slice %21 {offsets = [10, 0], sizes = [1, 128], strides = [1, 1]} : vector<32x128xi32> to vector<1x128xi32>
    %155 = vector.broadcast %22 : vector<256x1xi32> to vector<256x128xi32>
    %156 = vector.broadcast %154 : vector<1x128xi32> to vector<256x128xi32>
    %157 = arith.cmpi eq, %155, %156 : vector<256x128xi32>
    %158 = arith.extui %157 : vector<256x128xi1> to vector<256x128xi32>
    %159 = arith.sitofp %158 : vector<256x128xi32> to vector<256x128xf32>
    %160 = arith.truncf %159 : vector<256x128xf32> to vector<256x128xbf16>
    %161 = vector.extract_strided_slice %16 {offsets = [80, 0], sizes = [8, 256], strides = [1, 1]} : vector<256x256xbf16> to vector<8x256xbf16>
    %162 = vector.extract_strided_slice %19 {offsets = [80, 0], sizes = [8, 256], strides = [1, 1]} : vector<256x256xbf16> to vector<8x256xbf16>
    %cst_34 = arith.constant dense<0.000000e+00> : vector<8x128xf32>
    %163 = tpu.matmul %161, %160, %cst_34 {dimension_numbers = #tpu.dot_dimension_numbers<[1], [0], [0], [1], [0, 0, 1, 1], [], []>} : vector<8x256xbf16>, vector<256x128xbf16>, vector<8x128xf32> -> vector<8x128xf32>
    %164 = arith.addf %153, %163 : vector<8x128xf32>
    %cst_35 = arith.constant dense<0.000000e+00> : vector<8x128xf32>
    %165 = tpu.matmul %162, %160, %cst_35 {dimension_numbers = #tpu.dot_dimension_numbers<[1], [0], [0], [1], [0, 0, 1, 1], [], []>} : vector<8x256xbf16>, vector<256x128xbf16>, vector<8x128xf32> -> vector<8x128xf32>
    %166 = arith.addf %164, %165 : vector<8x128xf32>
    %167 = vector.extract_strided_slice %21 {offsets = [11, 0], sizes = [1, 128], strides = [1, 1]} : vector<32x128xi32> to vector<1x128xi32>
    %168 = vector.broadcast %22 : vector<256x1xi32> to vector<256x128xi32>
    %169 = vector.broadcast %167 : vector<1x128xi32> to vector<256x128xi32>
    %170 = arith.cmpi eq, %168, %169 : vector<256x128xi32>
    %171 = arith.extui %170 : vector<256x128xi1> to vector<256x128xi32>
    %172 = arith.sitofp %171 : vector<256x128xi32> to vector<256x128xf32>
    %173 = arith.truncf %172 : vector<256x128xf32> to vector<256x128xbf16>
    %174 = vector.extract_strided_slice %16 {offsets = [88, 0], sizes = [8, 256], strides = [1, 1]} : vector<256x256xbf16> to vector<8x256xbf16>
    %175 = vector.extract_strided_slice %19 {offsets = [88, 0], sizes = [8, 256], strides = [1, 1]} : vector<256x256xbf16> to vector<8x256xbf16>
    %cst_36 = arith.constant dense<0.000000e+00> : vector<8x128xf32>
    %176 = tpu.matmul %174, %173, %cst_36 {dimension_numbers = #tpu.dot_dimension_numbers<[1], [0], [0], [1], [0, 0, 1, 1], [], []>} : vector<8x256xbf16>, vector<256x128xbf16>, vector<8x128xf32> -> vector<8x128xf32>
    %177 = arith.addf %166, %176 : vector<8x128xf32>
    %cst_37 = arith.constant dense<0.000000e+00> : vector<8x128xf32>
    %178 = tpu.matmul %175, %173, %cst_37 {dimension_numbers = #tpu.dot_dimension_numbers<[1], [0], [0], [1], [0, 0, 1, 1], [], []>} : vector<8x256xbf16>, vector<256x128xbf16>, vector<8x128xf32> -> vector<8x128xf32>
    %179 = arith.addf %177, %178 : vector<8x128xf32>
    %180 = vector.extract_strided_slice %21 {offsets = [12, 0], sizes = [1, 128], strides = [1, 1]} : vector<32x128xi32> to vector<1x128xi32>
    %181 = vector.broadcast %22 : vector<256x1xi32> to vector<256x128xi32>
    %182 = vector.broadcast %180 : vector<1x128xi32> to vector<256x128xi32>
    %183 = arith.cmpi eq, %181, %182 : vector<256x128xi32>
    %184 = arith.extui %183 : vector<256x128xi1> to vector<256x128xi32>
    %185 = arith.sitofp %184 : vector<256x128xi32> to vector<256x128xf32>
    %186 = arith.truncf %185 : vector<256x128xf32> to vector<256x128xbf16>
    %187 = vector.extract_strided_slice %16 {offsets = [96, 0], sizes = [8, 256], strides = [1, 1]} : vector<256x256xbf16> to vector<8x256xbf16>
    %188 = vector.extract_strided_slice %19 {offsets = [96, 0], sizes = [8, 256], strides = [1, 1]} : vector<256x256xbf16> to vector<8x256xbf16>
    %cst_38 = arith.constant dense<0.000000e+00> : vector<8x128xf32>
    %189 = tpu.matmul %187, %186, %cst_38 {dimension_numbers = #tpu.dot_dimension_numbers<[1], [0], [0], [1], [0, 0, 1, 1], [], []>} : vector<8x256xbf16>, vector<256x128xbf16>, vector<8x128xf32> -> vector<8x128xf32>
    %190 = arith.addf %179, %189 : vector<8x128xf32>
    %cst_39 = arith.constant dense<0.000000e+00> : vector<8x128xf32>
    %191 = tpu.matmul %188, %186, %cst_39 {dimension_numbers = #tpu.dot_dimension_numbers<[1], [0], [0], [1], [0, 0, 1, 1], [], []>} : vector<8x256xbf16>, vector<256x128xbf16>, vector<8x128xf32> -> vector<8x128xf32>
    %192 = arith.addf %190, %191 : vector<8x128xf32>
    %193 = vector.extract_strided_slice %21 {offsets = [13, 0], sizes = [1, 128], strides = [1, 1]} : vector<32x128xi32> to vector<1x128xi32>
    %194 = vector.broadcast %22 : vector<256x1xi32> to vector<256x128xi32>
    %195 = vector.broadcast %193 : vector<1x128xi32> to vector<256x128xi32>
    %196 = arith.cmpi eq, %194, %195 : vector<256x128xi32>
    %197 = arith.extui %196 : vector<256x128xi1> to vector<256x128xi32>
    %198 = arith.sitofp %197 : vector<256x128xi32> to vector<256x128xf32>
    %199 = arith.truncf %198 : vector<256x128xf32> to vector<256x128xbf16>
    %200 = vector.extract_strided_slice %16 {offsets = [104, 0], sizes = [8, 256], strides = [1, 1]} : vector<256x256xbf16> to vector<8x256xbf16>
    %201 = vector.extract_strided_slice %19 {offsets = [104, 0], sizes = [8, 256], strides = [1, 1]} : vector<256x256xbf16> to vector<8x256xbf16>
    %cst_40 = arith.constant dense<0.000000e+00> : vector<8x128xf32>
    %202 = tpu.matmul %200, %199, %cst_40 {dimension_numbers = #tpu.dot_dimension_numbers<[1], [0], [0], [1], [0, 0, 1, 1], [], []>} : vector<8x256xbf16>, vector<256x128xbf16>, vector<8x128xf32> -> vector<8x128xf32>
    %203 = arith.addf %192, %202 : vector<8x128xf32>
    %cst_41 = arith.constant dense<0.000000e+00> : vector<8x128xf32>
    %204 = tpu.matmul %201, %199, %cst_41 {dimension_numbers = #tpu.dot_dimension_numbers<[1], [0], [0], [1], [0, 0, 1, 1], [], []>} : vector<8x256xbf16>, vector<256x128xbf16>, vector<8x128xf32> -> vector<8x128xf32>
    %205 = arith.addf %203, %204 : vector<8x128xf32>
    %206 = vector.extract_strided_slice %21 {offsets = [14, 0], sizes = [1, 128], strides = [1, 1]} : vector<32x128xi32> to vector<1x128xi32>
    %207 = vector.broadcast %22 : vector<256x1xi32> to vector<256x128xi32>
    %208 = vector.broadcast %206 : vector<1x128xi32> to vector<256x128xi32>
    %209 = arith.cmpi eq, %207, %208 : vector<256x128xi32>
    %210 = arith.extui %209 : vector<256x128xi1> to vector<256x128xi32>
    %211 = arith.sitofp %210 : vector<256x128xi32> to vector<256x128xf32>
    %212 = arith.truncf %211 : vector<256x128xf32> to vector<256x128xbf16>
    %213 = vector.extract_strided_slice %16 {offsets = [112, 0], sizes = [8, 256], strides = [1, 1]} : vector<256x256xbf16> to vector<8x256xbf16>
    %214 = vector.extract_strided_slice %19 {offsets = [112, 0], sizes = [8, 256], strides = [1, 1]} : vector<256x256xbf16> to vector<8x256xbf16>
    %cst_42 = arith.constant dense<0.000000e+00> : vector<8x128xf32>
    %215 = tpu.matmul %213, %212, %cst_42 {dimension_numbers = #tpu.dot_dimension_numbers<[1], [0], [0], [1], [0, 0, 1, 1], [], []>} : vector<8x256xbf16>, vector<256x128xbf16>, vector<8x128xf32> -> vector<8x128xf32>
    %216 = arith.addf %205, %215 : vector<8x128xf32>
    %cst_43 = arith.constant dense<0.000000e+00> : vector<8x128xf32>
    %217 = tpu.matmul %214, %212, %cst_43 {dimension_numbers = #tpu.dot_dimension_numbers<[1], [0], [0], [1], [0, 0, 1, 1], [], []>} : vector<8x256xbf16>, vector<256x128xbf16>, vector<8x128xf32> -> vector<8x128xf32>
    %218 = arith.addf %216, %217 : vector<8x128xf32>
    %219 = vector.extract_strided_slice %21 {offsets = [15, 0], sizes = [1, 128], strides = [1, 1]} : vector<32x128xi32> to vector<1x128xi32>
    %220 = vector.broadcast %22 : vector<256x1xi32> to vector<256x128xi32>
    %221 = vector.broadcast %219 : vector<1x128xi32> to vector<256x128xi32>
    %222 = arith.cmpi eq, %220, %221 : vector<256x128xi32>
    %223 = arith.extui %222 : vector<256x128xi1> to vector<256x128xi32>
    %224 = arith.sitofp %223 : vector<256x128xi32> to vector<256x128xf32>
    %225 = arith.truncf %224 : vector<256x128xf32> to vector<256x128xbf16>
    %226 = vector.extract_strided_slice %16 {offsets = [120, 0], sizes = [8, 256], strides = [1, 1]} : vector<256x256xbf16> to vector<8x256xbf16>
    %227 = vector.extract_strided_slice %19 {offsets = [120, 0], sizes = [8, 256], strides = [1, 1]} : vector<256x256xbf16> to vector<8x256xbf16>
    %cst_44 = arith.constant dense<0.000000e+00> : vector<8x128xf32>
    %228 = tpu.matmul %226, %225, %cst_44 {dimension_numbers = #tpu.dot_dimension_numbers<[1], [0], [0], [1], [0, 0, 1, 1], [], []>} : vector<8x256xbf16>, vector<256x128xbf16>, vector<8x128xf32> -> vector<8x128xf32>
    %229 = arith.addf %218, %228 : vector<8x128xf32>
    %cst_45 = arith.constant dense<0.000000e+00> : vector<8x128xf32>
    %230 = tpu.matmul %227, %225, %cst_45 {dimension_numbers = #tpu.dot_dimension_numbers<[1], [0], [0], [1], [0, 0, 1, 1], [], []>} : vector<8x256xbf16>, vector<256x128xbf16>, vector<8x128xf32> -> vector<8x128xf32>
    %231 = arith.addf %229, %230 : vector<8x128xf32>
    %232 = vector.extract_strided_slice %21 {offsets = [16, 0], sizes = [1, 128], strides = [1, 1]} : vector<32x128xi32> to vector<1x128xi32>
    %233 = vector.broadcast %22 : vector<256x1xi32> to vector<256x128xi32>
    %234 = vector.broadcast %232 : vector<1x128xi32> to vector<256x128xi32>
    %235 = arith.cmpi eq, %233, %234 : vector<256x128xi32>
    %236 = arith.extui %235 : vector<256x128xi1> to vector<256x128xi32>
    %237 = arith.sitofp %236 : vector<256x128xi32> to vector<256x128xf32>
    %238 = arith.truncf %237 : vector<256x128xf32> to vector<256x128xbf16>
    %239 = vector.extract_strided_slice %16 {offsets = [128, 0], sizes = [8, 256], strides = [1, 1]} : vector<256x256xbf16> to vector<8x256xbf16>
    %240 = vector.extract_strided_slice %19 {offsets = [128, 0], sizes = [8, 256], strides = [1, 1]} : vector<256x256xbf16> to vector<8x256xbf16>
    %cst_46 = arith.constant dense<0.000000e+00> : vector<8x128xf32>
    %241 = tpu.matmul %239, %238, %cst_46 {dimension_numbers = #tpu.dot_dimension_numbers<[1], [0], [0], [1], [0, 0, 1, 1], [], []>} : vector<8x256xbf16>, vector<256x128xbf16>, vector<8x128xf32> -> vector<8x128xf32>
    %242 = arith.addf %231, %241 : vector<8x128xf32>
    %cst_47 = arith.constant dense<0.000000e+00> : vector<8x128xf32>
    %243 = tpu.matmul %240, %238, %cst_47 {dimension_numbers = #tpu.dot_dimension_numbers<[1], [0], [0], [1], [0, 0, 1, 1], [], []>} : vector<8x256xbf16>, vector<256x128xbf16>, vector<8x128xf32> -> vector<8x128xf32>
    %244 = arith.addf %242, %243 : vector<8x128xf32>
    %245 = vector.extract_strided_slice %21 {offsets = [17, 0], sizes = [1, 128], strides = [1, 1]} : vector<32x128xi32> to vector<1x128xi32>
    %246 = vector.broadcast %22 : vector<256x1xi32> to vector<256x128xi32>
    %247 = vector.broadcast %245 : vector<1x128xi32> to vector<256x128xi32>
    %248 = arith.cmpi eq, %246, %247 : vector<256x128xi32>
    %249 = arith.extui %248 : vector<256x128xi1> to vector<256x128xi32>
    %250 = arith.sitofp %249 : vector<256x128xi32> to vector<256x128xf32>
    %251 = arith.truncf %250 : vector<256x128xf32> to vector<256x128xbf16>
    %252 = vector.extract_strided_slice %16 {offsets = [136, 0], sizes = [8, 256], strides = [1, 1]} : vector<256x256xbf16> to vector<8x256xbf16>
    %253 = vector.extract_strided_slice %19 {offsets = [136, 0], sizes = [8, 256], strides = [1, 1]} : vector<256x256xbf16> to vector<8x256xbf16>
    %cst_48 = arith.constant dense<0.000000e+00> : vector<8x128xf32>
    %254 = tpu.matmul %252, %251, %cst_48 {dimension_numbers = #tpu.dot_dimension_numbers<[1], [0], [0], [1], [0, 0, 1, 1], [], []>} : vector<8x256xbf16>, vector<256x128xbf16>, vector<8x128xf32> -> vector<8x128xf32>
    %255 = arith.addf %244, %254 : vector<8x128xf32>
    %cst_49 = arith.constant dense<0.000000e+00> : vector<8x128xf32>
    %256 = tpu.matmul %253, %251, %cst_49 {dimension_numbers = #tpu.dot_dimension_numbers<[1], [0], [0], [1], [0, 0, 1, 1], [], []>} : vector<8x256xbf16>, vector<256x128xbf16>, vector<8x128xf32> -> vector<8x128xf32>
    %257 = arith.addf %255, %256 : vector<8x128xf32>
    %258 = vector.extract_strided_slice %21 {offsets = [18, 0], sizes = [1, 128], strides = [1, 1]} : vector<32x128xi32> to vector<1x128xi32>
    %259 = vector.broadcast %22 : vector<256x1xi32> to vector<256x128xi32>
    %260 = vector.broadcast %258 : vector<1x128xi32> to vector<256x128xi32>
    %261 = arith.cmpi eq, %259, %260 : vector<256x128xi32>
    %262 = arith.extui %261 : vector<256x128xi1> to vector<256x128xi32>
    %263 = arith.sitofp %262 : vector<256x128xi32> to vector<256x128xf32>
    %264 = arith.truncf %263 : vector<256x128xf32> to vector<256x128xbf16>
    %265 = vector.extract_strided_slice %16 {offsets = [144, 0], sizes = [8, 256], strides = [1, 1]} : vector<256x256xbf16> to vector<8x256xbf16>
    %266 = vector.extract_strided_slice %19 {offsets = [144, 0], sizes = [8, 256], strides = [1, 1]} : vector<256x256xbf16> to vector<8x256xbf16>
    %cst_50 = arith.constant dense<0.000000e+00> : vector<8x128xf32>
    %267 = tpu.matmul %265, %264, %cst_50 {dimension_numbers = #tpu.dot_dimension_numbers<[1], [0], [0], [1], [0, 0, 1, 1], [], []>} : vector<8x256xbf16>, vector<256x128xbf16>, vector<8x128xf32> -> vector<8x128xf32>
    %268 = arith.addf %257, %267 : vector<8x128xf32>
    %cst_51 = arith.constant dense<0.000000e+00> : vector<8x128xf32>
    %269 = tpu.matmul %266, %264, %cst_51 {dimension_numbers = #tpu.dot_dimension_numbers<[1], [0], [0], [1], [0, 0, 1, 1], [], []>} : vector<8x256xbf16>, vector<256x128xbf16>, vector<8x128xf32> -> vector<8x128xf32>
    %270 = arith.addf %268, %269 : vector<8x128xf32>
    %271 = vector.extract_strided_slice %21 {offsets = [19, 0], sizes = [1, 128], strides = [1, 1]} : vector<32x128xi32> to vector<1x128xi32>
    %272 = vector.broadcast %22 : vector<256x1xi32> to vector<256x128xi32>
    %273 = vector.broadcast %271 : vector<1x128xi32> to vector<256x128xi32>
    %274 = arith.cmpi eq, %272, %273 : vector<256x128xi32>
    %275 = arith.extui %274 : vector<256x128xi1> to vector<256x128xi32>
    %276 = arith.sitofp %275 : vector<256x128xi32> to vector<256x128xf32>
    %277 = arith.truncf %276 : vector<256x128xf32> to vector<256x128xbf16>
    %278 = vector.extract_strided_slice %16 {offsets = [152, 0], sizes = [8, 256], strides = [1, 1]} : vector<256x256xbf16> to vector<8x256xbf16>
    %279 = vector.extract_strided_slice %19 {offsets = [152, 0], sizes = [8, 256], strides = [1, 1]} : vector<256x256xbf16> to vector<8x256xbf16>
    %cst_52 = arith.constant dense<0.000000e+00> : vector<8x128xf32>
    %280 = tpu.matmul %278, %277, %cst_52 {dimension_numbers = #tpu.dot_dimension_numbers<[1], [0], [0], [1], [0, 0, 1, 1], [], []>} : vector<8x256xbf16>, vector<256x128xbf16>, vector<8x128xf32> -> vector<8x128xf32>
    %281 = arith.addf %270, %280 : vector<8x128xf32>
    %cst_53 = arith.constant dense<0.000000e+00> : vector<8x128xf32>
    %282 = tpu.matmul %279, %277, %cst_53 {dimension_numbers = #tpu.dot_dimension_numbers<[1], [0], [0], [1], [0, 0, 1, 1], [], []>} : vector<8x256xbf16>, vector<256x128xbf16>, vector<8x128xf32> -> vector<8x128xf32>
    %283 = arith.addf %281, %282 : vector<8x128xf32>
    %284 = vector.extract_strided_slice %21 {offsets = [20, 0], sizes = [1, 128], strides = [1, 1]} : vector<32x128xi32> to vector<1x128xi32>
    %285 = vector.broadcast %22 : vector<256x1xi32> to vector<256x128xi32>
    %286 = vector.broadcast %284 : vector<1x128xi32> to vector<256x128xi32>
    %287 = arith.cmpi eq, %285, %286 : vector<256x128xi32>
    %288 = arith.extui %287 : vector<256x128xi1> to vector<256x128xi32>
    %289 = arith.sitofp %288 : vector<256x128xi32> to vector<256x128xf32>
    %290 = arith.truncf %289 : vector<256x128xf32> to vector<256x128xbf16>
    %291 = vector.extract_strided_slice %16 {offsets = [160, 0], sizes = [8, 256], strides = [1, 1]} : vector<256x256xbf16> to vector<8x256xbf16>
    %292 = vector.extract_strided_slice %19 {offsets = [160, 0], sizes = [8, 256], strides = [1, 1]} : vector<256x256xbf16> to vector<8x256xbf16>
    %cst_54 = arith.constant dense<0.000000e+00> : vector<8x128xf32>
    %293 = tpu.matmul %291, %290, %cst_54 {dimension_numbers = #tpu.dot_dimension_numbers<[1], [0], [0], [1], [0, 0, 1, 1], [], []>} : vector<8x256xbf16>, vector<256x128xbf16>, vector<8x128xf32> -> vector<8x128xf32>
    %294 = arith.addf %283, %293 : vector<8x128xf32>
    %cst_55 = arith.constant dense<0.000000e+00> : vector<8x128xf32>
    %295 = tpu.matmul %292, %290, %cst_55 {dimension_numbers = #tpu.dot_dimension_numbers<[1], [0], [0], [1], [0, 0, 1, 1], [], []>} : vector<8x256xbf16>, vector<256x128xbf16>, vector<8x128xf32> -> vector<8x128xf32>
    %296 = arith.addf %294, %295 : vector<8x128xf32>
    %297 = vector.extract_strided_slice %21 {offsets = [21, 0], sizes = [1, 128], strides = [1, 1]} : vector<32x128xi32> to vector<1x128xi32>
    %298 = vector.broadcast %22 : vector<256x1xi32> to vector<256x128xi32>
    %299 = vector.broadcast %297 : vector<1x128xi32> to vector<256x128xi32>
    %300 = arith.cmpi eq, %298, %299 : vector<256x128xi32>
    %301 = arith.extui %300 : vector<256x128xi1> to vector<256x128xi32>
    %302 = arith.sitofp %301 : vector<256x128xi32> to vector<256x128xf32>
    %303 = arith.truncf %302 : vector<256x128xf32> to vector<256x128xbf16>
    %304 = vector.extract_strided_slice %16 {offsets = [168, 0], sizes = [8, 256], strides = [1, 1]} : vector<256x256xbf16> to vector<8x256xbf16>
    %305 = vector.extract_strided_slice %19 {offsets = [168, 0], sizes = [8, 256], strides = [1, 1]} : vector<256x256xbf16> to vector<8x256xbf16>
    %cst_56 = arith.constant dense<0.000000e+00> : vector<8x128xf32>
    %306 = tpu.matmul %304, %303, %cst_56 {dimension_numbers = #tpu.dot_dimension_numbers<[1], [0], [0], [1], [0, 0, 1, 1], [], []>} : vector<8x256xbf16>, vector<256x128xbf16>, vector<8x128xf32> -> vector<8x128xf32>
    %307 = arith.addf %296, %306 : vector<8x128xf32>
    %cst_57 = arith.constant dense<0.000000e+00> : vector<8x128xf32>
    %308 = tpu.matmul %305, %303, %cst_57 {dimension_numbers = #tpu.dot_dimension_numbers<[1], [0], [0], [1], [0, 0, 1, 1], [], []>} : vector<8x256xbf16>, vector<256x128xbf16>, vector<8x128xf32> -> vector<8x128xf32>
    %309 = arith.addf %307, %308 : vector<8x128xf32>
    %310 = vector.extract_strided_slice %21 {offsets = [22, 0], sizes = [1, 128], strides = [1, 1]} : vector<32x128xi32> to vector<1x128xi32>
    %311 = vector.broadcast %22 : vector<256x1xi32> to vector<256x128xi32>
    %312 = vector.broadcast %310 : vector<1x128xi32> to vector<256x128xi32>
    %313 = arith.cmpi eq, %311, %312 : vector<256x128xi32>
    %314 = arith.extui %313 : vector<256x128xi1> to vector<256x128xi32>
    %315 = arith.sitofp %314 : vector<256x128xi32> to vector<256x128xf32>
    %316 = arith.truncf %315 : vector<256x128xf32> to vector<256x128xbf16>
    %317 = vector.extract_strided_slice %16 {offsets = [176, 0], sizes = [8, 256], strides = [1, 1]} : vector<256x256xbf16> to vector<8x256xbf16>
    %318 = vector.extract_strided_slice %19 {offsets = [176, 0], sizes = [8, 256], strides = [1, 1]} : vector<256x256xbf16> to vector<8x256xbf16>
    %cst_58 = arith.constant dense<0.000000e+00> : vector<8x128xf32>
    %319 = tpu.matmul %317, %316, %cst_58 {dimension_numbers = #tpu.dot_dimension_numbers<[1], [0], [0], [1], [0, 0, 1, 1], [], []>} : vector<8x256xbf16>, vector<256x128xbf16>, vector<8x128xf32> -> vector<8x128xf32>
    %320 = arith.addf %309, %319 : vector<8x128xf32>
    %cst_59 = arith.constant dense<0.000000e+00> : vector<8x128xf32>
    %321 = tpu.matmul %318, %316, %cst_59 {dimension_numbers = #tpu.dot_dimension_numbers<[1], [0], [0], [1], [0, 0, 1, 1], [], []>} : vector<8x256xbf16>, vector<256x128xbf16>, vector<8x128xf32> -> vector<8x128xf32>
    %322 = arith.addf %320, %321 : vector<8x128xf32>
    %323 = vector.extract_strided_slice %21 {offsets = [23, 0], sizes = [1, 128], strides = [1, 1]} : vector<32x128xi32> to vector<1x128xi32>
    %324 = vector.broadcast %22 : vector<256x1xi32> to vector<256x128xi32>
    %325 = vector.broadcast %323 : vector<1x128xi32> to vector<256x128xi32>
    %326 = arith.cmpi eq, %324, %325 : vector<256x128xi32>
    %327 = arith.extui %326 : vector<256x128xi1> to vector<256x128xi32>
    %328 = arith.sitofp %327 : vector<256x128xi32> to vector<256x128xf32>
    %329 = arith.truncf %328 : vector<256x128xf32> to vector<256x128xbf16>
    %330 = vector.extract_strided_slice %16 {offsets = [184, 0], sizes = [8, 256], strides = [1, 1]} : vector<256x256xbf16> to vector<8x256xbf16>
    %331 = vector.extract_strided_slice %19 {offsets = [184, 0], sizes = [8, 256], strides = [1, 1]} : vector<256x256xbf16> to vector<8x256xbf16>
    %cst_60 = arith.constant dense<0.000000e+00> : vector<8x128xf32>
    %332 = tpu.matmul %330, %329, %cst_60 {dimension_numbers = #tpu.dot_dimension_numbers<[1], [0], [0], [1], [0, 0, 1, 1], [], []>} : vector<8x256xbf16>, vector<256x128xbf16>, vector<8x128xf32> -> vector<8x128xf32>
    %333 = arith.addf %322, %332 : vector<8x128xf32>
    %cst_61 = arith.constant dense<0.000000e+00> : vector<8x128xf32>
    %334 = tpu.matmul %331, %329, %cst_61 {dimension_numbers = #tpu.dot_dimension_numbers<[1], [0], [0], [1], [0, 0, 1, 1], [], []>} : vector<8x256xbf16>, vector<256x128xbf16>, vector<8x128xf32> -> vector<8x128xf32>
    %335 = arith.addf %333, %334 : vector<8x128xf32>
    %336 = vector.extract_strided_slice %21 {offsets = [24, 0], sizes = [1, 128], strides = [1, 1]} : vector<32x128xi32> to vector<1x128xi32>
    %337 = vector.broadcast %22 : vector<256x1xi32> to vector<256x128xi32>
    %338 = vector.broadcast %336 : vector<1x128xi32> to vector<256x128xi32>
    %339 = arith.cmpi eq, %337, %338 : vector<256x128xi32>
    %340 = arith.extui %339 : vector<256x128xi1> to vector<256x128xi32>
    %341 = arith.sitofp %340 : vector<256x128xi32> to vector<256x128xf32>
    %342 = arith.truncf %341 : vector<256x128xf32> to vector<256x128xbf16>
    %343 = vector.extract_strided_slice %16 {offsets = [192, 0], sizes = [8, 256], strides = [1, 1]} : vector<256x256xbf16> to vector<8x256xbf16>
    %344 = vector.extract_strided_slice %19 {offsets = [192, 0], sizes = [8, 256], strides = [1, 1]} : vector<256x256xbf16> to vector<8x256xbf16>
    %cst_62 = arith.constant dense<0.000000e+00> : vector<8x128xf32>
    %345 = tpu.matmul %343, %342, %cst_62 {dimension_numbers = #tpu.dot_dimension_numbers<[1], [0], [0], [1], [0, 0, 1, 1], [], []>} : vector<8x256xbf16>, vector<256x128xbf16>, vector<8x128xf32> -> vector<8x128xf32>
    %346 = arith.addf %335, %345 : vector<8x128xf32>
    %cst_63 = arith.constant dense<0.000000e+00> : vector<8x128xf32>
    %347 = tpu.matmul %344, %342, %cst_63 {dimension_numbers = #tpu.dot_dimension_numbers<[1], [0], [0], [1], [0, 0, 1, 1], [], []>} : vector<8x256xbf16>, vector<256x128xbf16>, vector<8x128xf32> -> vector<8x128xf32>
    %348 = arith.addf %346, %347 : vector<8x128xf32>
    %349 = vector.extract_strided_slice %21 {offsets = [25, 0], sizes = [1, 128], strides = [1, 1]} : vector<32x128xi32> to vector<1x128xi32>
    %350 = vector.broadcast %22 : vector<256x1xi32> to vector<256x128xi32>
    %351 = vector.broadcast %349 : vector<1x128xi32> to vector<256x128xi32>
    %352 = arith.cmpi eq, %350, %351 : vector<256x128xi32>
    %353 = arith.extui %352 : vector<256x128xi1> to vector<256x128xi32>
    %354 = arith.sitofp %353 : vector<256x128xi32> to vector<256x128xf32>
    %355 = arith.truncf %354 : vector<256x128xf32> to vector<256x128xbf16>
    %356 = vector.extract_strided_slice %16 {offsets = [200, 0], sizes = [8, 256], strides = [1, 1]} : vector<256x256xbf16> to vector<8x256xbf16>
    %357 = vector.extract_strided_slice %19 {offsets = [200, 0], sizes = [8, 256], strides = [1, 1]} : vector<256x256xbf16> to vector<8x256xbf16>
    %cst_64 = arith.constant dense<0.000000e+00> : vector<8x128xf32>
    %358 = tpu.matmul %356, %355, %cst_64 {dimension_numbers = #tpu.dot_dimension_numbers<[1], [0], [0], [1], [0, 0, 1, 1], [], []>} : vector<8x256xbf16>, vector<256x128xbf16>, vector<8x128xf32> -> vector<8x128xf32>
    %359 = arith.addf %348, %358 : vector<8x128xf32>
    %cst_65 = arith.constant dense<0.000000e+00> : vector<8x128xf32>
    %360 = tpu.matmul %357, %355, %cst_65 {dimension_numbers = #tpu.dot_dimension_numbers<[1], [0], [0], [1], [0, 0, 1, 1], [], []>} : vector<8x256xbf16>, vector<256x128xbf16>, vector<8x128xf32> -> vector<8x128xf32>
    %361 = arith.addf %359, %360 : vector<8x128xf32>
    %362 = vector.extract_strided_slice %21 {offsets = [26, 0], sizes = [1, 128], strides = [1, 1]} : vector<32x128xi32> to vector<1x128xi32>
    %363 = vector.broadcast %22 : vector<256x1xi32> to vector<256x128xi32>
    %364 = vector.broadcast %362 : vector<1x128xi32> to vector<256x128xi32>
    %365 = arith.cmpi eq, %363, %364 : vector<256x128xi32>
    %366 = arith.extui %365 : vector<256x128xi1> to vector<256x128xi32>
    %367 = arith.sitofp %366 : vector<256x128xi32> to vector<256x128xf32>
    %368 = arith.truncf %367 : vector<256x128xf32> to vector<256x128xbf16>
    %369 = vector.extract_strided_slice %16 {offsets = [208, 0], sizes = [8, 256], strides = [1, 1]} : vector<256x256xbf16> to vector<8x256xbf16>
    %370 = vector.extract_strided_slice %19 {offsets = [208, 0], sizes = [8, 256], strides = [1, 1]} : vector<256x256xbf16> to vector<8x256xbf16>
    %cst_66 = arith.constant dense<0.000000e+00> : vector<8x128xf32>
    %371 = tpu.matmul %369, %368, %cst_66 {dimension_numbers = #tpu.dot_dimension_numbers<[1], [0], [0], [1], [0, 0, 1, 1], [], []>} : vector<8x256xbf16>, vector<256x128xbf16>, vector<8x128xf32> -> vector<8x128xf32>
    %372 = arith.addf %361, %371 : vector<8x128xf32>
    %cst_67 = arith.constant dense<0.000000e+00> : vector<8x128xf32>
    %373 = tpu.matmul %370, %368, %cst_67 {dimension_numbers = #tpu.dot_dimension_numbers<[1], [0], [0], [1], [0, 0, 1, 1], [], []>} : vector<8x256xbf16>, vector<256x128xbf16>, vector<8x128xf32> -> vector<8x128xf32>
    %374 = arith.addf %372, %373 : vector<8x128xf32>
    %375 = vector.extract_strided_slice %21 {offsets = [27, 0], sizes = [1, 128], strides = [1, 1]} : vector<32x128xi32> to vector<1x128xi32>
    %376 = vector.broadcast %22 : vector<256x1xi32> to vector<256x128xi32>
    %377 = vector.broadcast %375 : vector<1x128xi32> to vector<256x128xi32>
    %378 = arith.cmpi eq, %376, %377 : vector<256x128xi32>
    %379 = arith.extui %378 : vector<256x128xi1> to vector<256x128xi32>
    %380 = arith.sitofp %379 : vector<256x128xi32> to vector<256x128xf32>
    %381 = arith.truncf %380 : vector<256x128xf32> to vector<256x128xbf16>
    %382 = vector.extract_strided_slice %16 {offsets = [216, 0], sizes = [8, 256], strides = [1, 1]} : vector<256x256xbf16> to vector<8x256xbf16>
    %383 = vector.extract_strided_slice %19 {offsets = [216, 0], sizes = [8, 256], strides = [1, 1]} : vector<256x256xbf16> to vector<8x256xbf16>
    %cst_68 = arith.constant dense<0.000000e+00> : vector<8x128xf32>
    %384 = tpu.matmul %382, %381, %cst_68 {dimension_numbers = #tpu.dot_dimension_numbers<[1], [0], [0], [1], [0, 0, 1, 1], [], []>} : vector<8x256xbf16>, vector<256x128xbf16>, vector<8x128xf32> -> vector<8x128xf32>
    %385 = arith.addf %374, %384 : vector<8x128xf32>
    %cst_69 = arith.constant dense<0.000000e+00> : vector<8x128xf32>
    %386 = tpu.matmul %383, %381, %cst_69 {dimension_numbers = #tpu.dot_dimension_numbers<[1], [0], [0], [1], [0, 0, 1, 1], [], []>} : vector<8x256xbf16>, vector<256x128xbf16>, vector<8x128xf32> -> vector<8x128xf32>
    %387 = arith.addf %385, %386 : vector<8x128xf32>
    %388 = vector.extract_strided_slice %21 {offsets = [28, 0], sizes = [1, 128], strides = [1, 1]} : vector<32x128xi32> to vector<1x128xi32>
    %389 = vector.broadcast %22 : vector<256x1xi32> to vector<256x128xi32>
    %390 = vector.broadcast %388 : vector<1x128xi32> to vector<256x128xi32>
    %391 = arith.cmpi eq, %389, %390 : vector<256x128xi32>
    %392 = arith.extui %391 : vector<256x128xi1> to vector<256x128xi32>
    %393 = arith.sitofp %392 : vector<256x128xi32> to vector<256x128xf32>
    %394 = arith.truncf %393 : vector<256x128xf32> to vector<256x128xbf16>
    %395 = vector.extract_strided_slice %16 {offsets = [224, 0], sizes = [8, 256], strides = [1, 1]} : vector<256x256xbf16> to vector<8x256xbf16>
    %396 = vector.extract_strided_slice %19 {offsets = [224, 0], sizes = [8, 256], strides = [1, 1]} : vector<256x256xbf16> to vector<8x256xbf16>
    %cst_70 = arith.constant dense<0.000000e+00> : vector<8x128xf32>
    %397 = tpu.matmul %395, %394, %cst_70 {dimension_numbers = #tpu.dot_dimension_numbers<[1], [0], [0], [1], [0, 0, 1, 1], [], []>} : vector<8x256xbf16>, vector<256x128xbf16>, vector<8x128xf32> -> vector<8x128xf32>
    %398 = arith.addf %387, %397 : vector<8x128xf32>
    %cst_71 = arith.constant dense<0.000000e+00> : vector<8x128xf32>
    %399 = tpu.matmul %396, %394, %cst_71 {dimension_numbers = #tpu.dot_dimension_numbers<[1], [0], [0], [1], [0, 0, 1, 1], [], []>} : vector<8x256xbf16>, vector<256x128xbf16>, vector<8x128xf32> -> vector<8x128xf32>
    %400 = arith.addf %398, %399 : vector<8x128xf32>
    %401 = vector.extract_strided_slice %21 {offsets = [29, 0], sizes = [1, 128], strides = [1, 1]} : vector<32x128xi32> to vector<1x128xi32>
    %402 = vector.broadcast %22 : vector<256x1xi32> to vector<256x128xi32>
    %403 = vector.broadcast %401 : vector<1x128xi32> to vector<256x128xi32>
    %404 = arith.cmpi eq, %402, %403 : vector<256x128xi32>
    %405 = arith.extui %404 : vector<256x128xi1> to vector<256x128xi32>
    %406 = arith.sitofp %405 : vector<256x128xi32> to vector<256x128xf32>
    %407 = arith.truncf %406 : vector<256x128xf32> to vector<256x128xbf16>
    %408 = vector.extract_strided_slice %16 {offsets = [232, 0], sizes = [8, 256], strides = [1, 1]} : vector<256x256xbf16> to vector<8x256xbf16>
    %409 = vector.extract_strided_slice %19 {offsets = [232, 0], sizes = [8, 256], strides = [1, 1]} : vector<256x256xbf16> to vector<8x256xbf16>
    %cst_72 = arith.constant dense<0.000000e+00> : vector<8x128xf32>
    %410 = tpu.matmul %408, %407, %cst_72 {dimension_numbers = #tpu.dot_dimension_numbers<[1], [0], [0], [1], [0, 0, 1, 1], [], []>} : vector<8x256xbf16>, vector<256x128xbf16>, vector<8x128xf32> -> vector<8x128xf32>
    %411 = arith.addf %400, %410 : vector<8x128xf32>
    %cst_73 = arith.constant dense<0.000000e+00> : vector<8x128xf32>
    %412 = tpu.matmul %409, %407, %cst_73 {dimension_numbers = #tpu.dot_dimension_numbers<[1], [0], [0], [1], [0, 0, 1, 1], [], []>} : vector<8x256xbf16>, vector<256x128xbf16>, vector<8x128xf32> -> vector<8x128xf32>
    %413 = arith.addf %411, %412 : vector<8x128xf32>
    %414 = vector.extract_strided_slice %21 {offsets = [30, 0], sizes = [1, 128], strides = [1, 1]} : vector<32x128xi32> to vector<1x128xi32>
    %415 = vector.broadcast %22 : vector<256x1xi32> to vector<256x128xi32>
    %416 = vector.broadcast %414 : vector<1x128xi32> to vector<256x128xi32>
    %417 = arith.cmpi eq, %415, %416 : vector<256x128xi32>
    %418 = arith.extui %417 : vector<256x128xi1> to vector<256x128xi32>
    %419 = arith.sitofp %418 : vector<256x128xi32> to vector<256x128xf32>
    %420 = arith.truncf %419 : vector<256x128xf32> to vector<256x128xbf16>
    %421 = vector.extract_strided_slice %16 {offsets = [240, 0], sizes = [8, 256], strides = [1, 1]} : vector<256x256xbf16> to vector<8x256xbf16>
    %422 = vector.extract_strided_slice %19 {offsets = [240, 0], sizes = [8, 256], strides = [1, 1]} : vector<256x256xbf16> to vector<8x256xbf16>
    %cst_74 = arith.constant dense<0.000000e+00> : vector<8x128xf32>
    %423 = tpu.matmul %421, %420, %cst_74 {dimension_numbers = #tpu.dot_dimension_numbers<[1], [0], [0], [1], [0, 0, 1, 1], [], []>} : vector<8x256xbf16>, vector<256x128xbf16>, vector<8x128xf32> -> vector<8x128xf32>
    %424 = arith.addf %413, %423 : vector<8x128xf32>
    %cst_75 = arith.constant dense<0.000000e+00> : vector<8x128xf32>
    %425 = tpu.matmul %422, %420, %cst_75 {dimension_numbers = #tpu.dot_dimension_numbers<[1], [0], [0], [1], [0, 0, 1, 1], [], []>} : vector<8x256xbf16>, vector<256x128xbf16>, vector<8x128xf32> -> vector<8x128xf32>
    %426 = arith.addf %424, %425 : vector<8x128xf32>
    %427 = vector.extract_strided_slice %21 {offsets = [31, 0], sizes = [1, 128], strides = [1, 1]} : vector<32x128xi32> to vector<1x128xi32>
    %428 = vector.broadcast %22 : vector<256x1xi32> to vector<256x128xi32>
    %429 = vector.broadcast %427 : vector<1x128xi32> to vector<256x128xi32>
    %430 = arith.cmpi eq, %428, %429 : vector<256x128xi32>
    %431 = arith.extui %430 : vector<256x128xi1> to vector<256x128xi32>
    %432 = arith.sitofp %431 : vector<256x128xi32> to vector<256x128xf32>
    %433 = arith.truncf %432 : vector<256x128xf32> to vector<256x128xbf16>
    %434 = vector.extract_strided_slice %16 {offsets = [248, 0], sizes = [8, 256], strides = [1, 1]} : vector<256x256xbf16> to vector<8x256xbf16>
    %435 = vector.extract_strided_slice %19 {offsets = [248, 0], sizes = [8, 256], strides = [1, 1]} : vector<256x256xbf16> to vector<8x256xbf16>
    %cst_76 = arith.constant dense<0.000000e+00> : vector<8x128xf32>
    %436 = tpu.matmul %434, %433, %cst_76 {dimension_numbers = #tpu.dot_dimension_numbers<[1], [0], [0], [1], [0, 0, 1, 1], [], []>} : vector<8x256xbf16>, vector<256x128xbf16>, vector<8x128xf32> -> vector<8x128xf32>
    %437 = arith.addf %426, %436 : vector<8x128xf32>
    %cst_77 = arith.constant dense<0.000000e+00> : vector<8x128xf32>
    %438 = tpu.matmul %435, %433, %cst_77 {dimension_numbers = #tpu.dot_dimension_numbers<[1], [0], [0], [1], [0, 0, 1, 1], [], []>} : vector<8x256xbf16>, vector<256x128xbf16>, vector<8x128xf32> -> vector<8x128xf32>
    %439 = arith.addf %437, %438 : vector<8x128xf32>
    %c0_78 = arith.constant 0 : index
    %c0_79 = arith.constant 0 : index
    %440 = vector.load %arg10[%c0_78, %c0_79] : memref<8x128xf32, #tpu.memory_space<vmem>>, vector<8x128xf32>
    %441 = arith.addf %440, %439 : vector<8x128xf32>
    %c0_80 = arith.constant 0 : index
    %c0_81 = arith.constant 0 : index
    %442 = vector.load %arg10[%c0_80, %c0_81] : memref<8x128xf32, #tpu.memory_space<vmem>>, vector<8x128xf32>
    tpu.vector_store %arg10[%c0_80, %c0_81], %441 {strides = array<i32>} : memref<8x128xf32, #tpu.memory_space<vmem>>, vector<8x128xf32>,
    %c1_i32 = arith.constant 1 : i32
    %443 = arith.cmpi eq, %arg2, %c1_i32 : i32
    %444 = arith.extui %443 : i1 to i32
    %c0_i32_82 = arith.constant 0 : i32
    %445 = arith.cmpi ne, %444, %c0_i32_82 : i32
    scf.if %445 {
      %c0_83 = arith.constant 0 : index
      %c0_84 = arith.constant 0 : index
      %446 = memref.load %arg3[%c0_83, %c0_84] : memref<1x1xf32, #tpu.memory_space<smem>>
      %c0_85 = arith.constant 0 : index
      %c0_86 = arith.constant 0 : index
      %447 = vector.load %arg10[%c0_85, %c0_86] : memref<8x128xf32, #tpu.memory_space<vmem>>, vector<8x128xf32>
      %448 = vector.broadcast %446 : f32 to vector<8x128xf32>
      %449 = arith.mulf %447, %448 : vector<8x128xf32>
      %c0_87 = arith.constant 0 : index
      %c0_88 = arith.constant 0 : index
      %450 = vector.load %arg8[%c0_87, %c0_88] : memref<1x128xf32, #tpu.memory_space<vmem>>, vector<1x128xf32>
      %451 = vector.broadcast %450 : vector<1x128xf32> to vector<8x128xf32>
      %452 = arith.addf %449, %451 : vector<8x128xf32>
      %c0_89 = arith.constant 0 : index
      %c0_90 = arith.constant 0 : index
      %453 = vector.load %arg9[%c0_89, %c0_90] : memref<8x128xf32, #tpu.memory_space<vmem>>, vector<8x128xf32>
      tpu.vector_store %arg9[%c0_89, %c0_90], %452 {strides = array<i32>} : memref<8x128xf32, #tpu.memory_space<vmem>>, vector<8x128xf32>,
    } else {
    }
    return
  }
  func.func @transform_0(%arg0: i32, %arg1: i32, %arg2: i32) -> (i32, i32) {
    %c0_i32 = arith.constant 0 : i32
    %c0_i32_0 = arith.constant 0 : i32
    %c0_i32_1 = arith.constant 0 : i32
    return %c0_i32, %c0_i32_0 : i32, i32
  }
  func.func @transform_1(%arg0: i32, %arg1: i32, %arg2: i32) -> (i32, i32, i32, i32) {
    %c0_i32 = arith.constant 0 : i32
    %c0_i32_0 = arith.constant 0 : i32
    %c0_i32_1 = arith.constant 0 : i32
    return %arg0, %arg2, %c0_i32, %c0_i32_0 : i32, i32, i32, i32
  }
  func.func @transform_2(%arg0: i32, %arg1: i32, %arg2: i32) -> (i32, i32, i32, i32) {
    %c0_i32 = arith.constant 0 : i32
    %c0_i32_0 = arith.constant 0 : i32
    %c0_i32_1 = arith.constant 0 : i32
    return %arg1, %arg2, %c0_i32, %c0_i32_0 : i32, i32, i32, i32
  }
  func.func @transform_3(%arg0: i32, %arg1: i32, %arg2: i32) -> (i32, i32) {
    %c0_i32 = arith.constant 0 : i32
    %c0_i32_0 = arith.constant 0 : i32
    %c0_i32_1 = arith.constant 0 : i32
    return %c0_i32, %c0_i32_0 : i32, i32
  }
  func.func @transform_4(%arg0: i32, %arg1: i32, %arg2: i32) -> (i32, i32) {
    %c0_i32 = arith.constant 0 : i32
    %c0_i32_0 = arith.constant 0 : i32
    %c0_i32_1 = arith.constant 0 : i32
    return %c0_i32, %c0_i32_0 : i32, i32
  }
  func.func @transform_5(%arg0: i32, %arg1: i32, %arg2: i32) -> (i32, i32) {
    %c0_i32 = arith.constant 0 : i32
    %c0_i32_0 = arith.constant 0 : i32
    return %c0_i32, %arg1 : i32, i32
  }
  func.func @transform_6(%arg0: i32, %arg1: i32, %arg2: i32) -> (i32, i32) {
    %c0_i32 = arith.constant 0 : i32
    return %arg0, %arg1 : i32, i32
  }
}

</mosaic_0001>

<bundles_post_ra>
// kernel: tpu_custom_call.1
= control target key start
LH: loop header
LB: loop body
LE: loop exit
PB: predicated region body
PF: predicated region fallthrough
CT: control target
= control target key end

     0   :  { %s18802_s0 = inlined_call_operand.<no memory space> [shape: f32[1,1], index: 0, kind: input, shape index: {}]   ;;  %s18803_s1 = inlined_call_operand.vmem [shape: s32[1,2,32,8], index: 1, kind: input, shape index: {}]   ;;  %s18804_s2 = inlined_call_operand.vmem [shape: s32[1,2,32,128], index: 2, kind: input, shape index: {}]   ;;  %s18805_s3 = inlined_call_operand.hbm [shape: bf16[256,256], index: 3, kind: input, shape index: {}]   ;;  %s18806_s4 = inlined_call_operand.hbm [shape: bf16[256,256], index: 4, kind: input, shape index: {}]   ;;  %s18807_s5 = inlined_call_operand.vmem [shape: f32[1,128], index: 5, kind: input, shape index: {}]   ;;  %s18808_s6 = inlined_call_operand.hbm [shape: f32[8,128], index: 6, kind: output, shape index: {}]  }
   0x1   :  { %11 = sst [smem:[#allocation3]] %s18802_s0 }
   0x2   :  { %12 = vsyncpa [#allocation5], 0 }
   0x3   :  { %13 = vsyncpa [#allocation8], 0 }
   0x4   :  { %14 = vsyncpa [#allocation6], 0  ;;  %s13721_s23 = smov 0   ;;  %s13723_s24 = smov 0  }
   0x5   :  { %s13725_s25 = smov 0  }
   0x6 LB: > { %s8587_s0 = sadd.s32 4294967295, %s13674_s25   ;;  %s32_s26 = sadd.s32 1, %s13670_s24  ;;  %s13674_s25 = sphi %s13725_s25, %s20_s25   ;;  %s13670_s24 = sphi %s13723_s24, %s19224_s24   ;;  %s13666_s23 = sphi %s13721_s23, %s19223_s23  }
   0x7   : > { %p33_p0 = scmp.ge.s32.totalorder %s32_s26, 2  ;;  %p8588_p1 = scmp.ge.s32.totalorder %s13674_s25, 1 }
   0x8   : > { %p217_p2 = scmp.lt.s32.totalorder %s13674_s25, 3  ;;  %p13748_p4 = scmp.eq.s32.totalorder %s8587_s0, 0 }
   0x9   : > { %s19226_s26 = smov (%p33_p0, %s32_s26), 0  ;;  %s13676_s29 = smov [#allocation4]  }
   0xa   : > { %p13742_p3 = pnand %p8588_p1, %p217_p2  ;;  %s232_s30 = sshll.u32 %s13676_s29, 4  ;;  %s233_s30 = int_to_ptr.vmem [resolvable:$true] %s232_s30 }
   0xb   : > { %s13677_s8 = smov [#allocation7]   ;;  %s13575_s10 = scalar_lea.vmem %s233_s30, 4096 }
   0xc   : > { %p13421_p5 = pneg %p13742_p3  ;;  %s245_s9 = sshll.u32 %s13677_s8, 4  ;;  %s246_s9 = int_to_ptr.vmem [resolvable:$true] %s245_s9 }
   0xd   : > { %p13576_p8 = scmp.ne.s32.totalorder %s233_s30, %s13575_s10  ;;  %p13583_p11 = scmp.lt.s32.totalorder %s233_s30, %s233_s30 }
   0xe   : > { %p13756_p6 = pnand %p13748_p4, %p13421_p5  ;;  %p13584_p12 = scmp.lt.s32.totalorder %s13575_s10, %s13575_s10 }
  0x10   : > { %p13566_p7 = pneg %p13756_p6  ;;  %p13585_p13 = por %p13584_p12, %p13583_p11 }
  0x12   : > { %p13578_p9 = pnand %p13576_p8, %p13566_p7 }
  0x14   : > { %p13579_p10 = pneg %p13578_p9 }
  0x16   : > { %p13586_p0 = pnand %p13585_p13, %p13579_p10 }
  0x18   : > { %13589 = shalt.err (!%p13586_p0)
}
  0x19   : > { %s13678_s11 = smov 128   ;;  %s13679_s12 = smov 8  }
  0x1a   : > { %13424 = dma.hbm_to_vmem [thread:$0]  (!%p13756_p6), %s18805_s3, 4096, %s233_s30, [#allocation5], %s13678_s11, %s13678_s11, %s13679_s12  }
  0x1b   : > { %s13601_s15 = scalar_lea.vmem %s246_s9, 4096  ;;  %p13609_p8 = scmp.lt.s32.totalorder %s246_s9, %s246_s9 }
  0x1c   : > { %p13602_p1 = scmp.ne.s32.totalorder %s246_s9, %s13601_s15  ;;  %p13610_p9 = scmp.lt.s32.totalorder %s13601_s15, %s13601_s15 }
  0x1e   : > { %p13604_p2 = pnand %p13602_p1, %p13566_p7  ;;  %p13611_p11 = por %p13610_p9, %p13609_p8 }
  0x20   : > { %p13605_p5 = pneg %p13604_p2 }
  0x22   : > { %p13612_p10 = pnand %p13611_p11, %p13605_p5 }
  0x24   : > { %13615 = shalt.err (!%p13612_p10)
}
  0x25   : > { %13427 = dma.hbm_to_vmem [thread:$0]  (!%p13756_p6), %s18806_s4, 4096, %s246_s9, [#allocation8], %s13678_s11, %s13678_s11, %s13679_s12  }
  0x26   : > { %291 = sbr.rel (%p13742_p3) target bundleno = 1612 (0x64c), region = 44 }
  0x2b   : > { %13653 = dma.done.wait (%p13748_p4), [#allocation5], 4096  }
  0x2c   : > { %13655 = vsyncadd (%p13748_p4), [#allocation5], 4294963200 }
  0x2d   : > { %13657 = dma.done.wait (%p13748_p4), [#allocation8], 4096  }
  0x2e   : > { %13659 = vsyncadd (%p13748_p4), [#allocation8], 4294963200  ;;  %p338_p7 = scmp.lt.s32.totalorder %s13666_s23, 1  ;;  %p8600_p3 = scmp.ne.s32.totalorder %s13666_s23, 0 }
  0x30   : > { %s339_s18 = scalar_select %p338_p7, %s13666_s23, 1 }
  0x31   : > { %361 = sbr.rel (%p8600_p3) target bundleno = 56 (0x38), region = 56 }
  0x32   : > { %s11839_s19 = sshll.u32 %s339_s18, 5 }
  0x33   : > { %s13793_s22 = scalar_lea.vmem %s18803_s1, %s11839_s19  ;;  %s13798_s30 = scalar_lea.vmem %s18804_s2, %s11839_s19 }
  0x36   : > { %v13680_v0 = vmov 0.0  }
  0x37   : > { %362 = vst [vmem:[#allocation2] sm:$0xff] %v13680_v0 }
  0x38 PF: > { %v367_v1 = vlaneseq  ;;  %v13802_v2 = vld [vmem:[%s13793_s22] sm:$0xff]  ;;  %v13471_v13 = vld [vmem:[#allocation4 + $0x64] ss:$8 sps:$4 sm:$0xff]   ;;  %v13831_v17 = vld [vmem:[%s13798_s30 + $0x18] sm:$0xff]  ;;  %p11833_p4 = scmp.ne.s32.totalorder %s13666_s23, 1 }
  0x39   : > { %v13465_v4 = vld [vmem:[#allocation4 + $0x74] ss:$8 sps:$4 sm:$0xff]   ;;  %v13469_v6 = vld [vmem:[#allocation4 + $0x70] ss:$8 sps:$4 sm:$0xff]   ;;  %v13825_v15 = vld [vmem:[%s13798_s30 + $0x8] sm:$0xff]  ;;  %s8446_s28 = sld [smem:[#allocation3]] (!%p11833_p4) }
  0x3a   : > { %v13805_v3 = vshrl.u32 %v367_v1, 7  ;;  %v13467_v5 = vld [vmem:[#allocation7 + $0x74] ss:$8 sps:$4 sm:$0xff]   ;;  %1234 = vmatprep.subr.bf16.mxu0 %v13465_v4  ;;  %v13470_v11 = vld [vmem:[#allocation7 + $0x70] ss:$8 sps:$4 sm:$0xff]   ;;  %v13828_v16 = vld [vmem:[%s13798_s30 + $0x10] sm:$0xff] }
  0x3b   : > { %v13811_v8 = vld [vmem:[%s13798_s30] sm:$0xff]  ;;  %1651 = vmatprep.subr.bf16.mxu1 %v13467_v5  ;;  %1235 = vmatpush1.bf16.msra.mxu0 %v13469_v6  ;;  %v13473_v18 = vld [vmem:[#allocation7 + $0x64] ss:$8 sps:$4 sm:$0xff]   ;;  %v13475_v20 = vld [vmem:[#allocation4 + $0x60] ss:$8 sps:$4 sm:$0xff]  }
  0x3c   : > { %v13808_v7 = vsub.s32 0, %v13805_v3  ;;  %v13814_v9 = vsub.s32 1, %v13805_v3  ;;  %v13817_v10 = vsub.s32 2, %v13805_v3  ;;  %v13820_v12 = vsub.s32 3, %v13805_v3  ;;  %1652 = vmatpush1.bf16.msra.mxu1 %v13470_v11  ;;  %1236 = vmatprep.subr.bf16.mxu0 %v13471_v13  ;;  %v13476_v21 = vld [vmem:[#allocation7 + $0x60] ss:$8 sps:$4 sm:$0xff]  }
  0x3d   : > { %v13838_v22 = vsub.s32 5, %v13805_v3  ;;  %v13477_v26 = vld [vmem:[#allocation4 + $0x54] ss:$8 sps:$4 sm:$0xff]   ;;  %v13849_v27 = vsub.s32 4, %v13805_v3  ;;  %1653 = vmatprep.subr.bf16.mxu1 %v13473_v18  ;;  %v13481_v33 = vld [vmem:[#allocation4 + $0x50] ss:$8 sps:$4 sm:$0xff]  }
  0x3e   : > { %18863 = vst [vmem:[#allocation13_spill] sm:$0xff] %v13808_v7  ;;  %18864 = vst [vmem:[#allocation14_spill] sm:$0xff] %v13814_v9  ;;  %v373_v14 = vrot.slane %v13802_v2, %v13808_v7  ;;  %v13835_v19 = vrot.slane %v13811_v8, %v13814_v9  ;;  %v380_v23 = vrot.slane %v13802_v2, %v13814_v9  ;;  %v13479_v32 = vld [vmem:[#allocation7 + $0x54] ss:$8 sps:$4 sm:$0xff]   ;;  %v13482_v38 = vld [vmem:[#allocation7 + $0x50] ss:$8 sps:$4 sm:$0xff]  }
  0x3f   : > { %v387_v24 = vrot.slane %v13802_v2, %v13817_v10  ;;  %v13846_v25 = vrot.slane %v13811_v8, %v13817_v10  ;;  %v13853_v28 = vrot.slane %v13825_v15, %v13817_v10  ;;  %v13857_v29 = vrot.slane %v13828_v16, %v13817_v10  ;;  %1237 = vmatpush1.bf16.msra.mxu0 %v13475_v20  ;;  %v13483_v39 = vld [vmem:[#allocation4 + $0x44] ss:$8 sps:$4 sm:$0xff]   ;;  %v13487_v51 = vld [vmem:[#allocation4 + $0x40] ss:$8 sps:$4 sm:$0xff]   ;;  %v13489_v57 = vld [vmem:[#allocation4 + $0x34] ss:$8 sps:$4 sm:$0xff]  }
  0x40   : > { %375 = vbcast.lane.b32.xlu0 %v373_v14, 256  ;;  %v13861_v30 = vrot.slane %v13831_v17, %v13817_v10  ;;  %v394_v31 = vrot.slane %v13802_v2, %v13820_v12  ;;  %v13867_v34 = vrot.slane %v13811_v8, %v13820_v12  ;;  %v13871_v35 = vrot.slane %v13825_v15, %v13820_v12  ;;  %v13485_v42 = vld [vmem:[#allocation7 + $0x44] ss:$8 sps:$4 sm:$0xff]   ;;  %v13488_v56 = vld [vmem:[#allocation7 + $0x40] ss:$8 sps:$4 sm:$0xff]  }
  0x41   : > { %18865 = vst [vmem:[#allocation15_spill] sm:$0xff] %v13853_v28  ;;  %18866 = vst [vmem:[#allocation16_spill] sm:$0xff] %v13857_v29  ;;  %389 = vbcast.lane.b32.xlu1 %v387_v24, 256  ;;  %v13875_v36 = vrot.slane %v13828_v16, %v13820_v12  ;;  %v13879_v37 = vrot.slane %v13831_v17, %v13820_v12  ;;  %1654 = vmatpush1.bf16.msra.mxu1 %v13476_v21  ;;  %v13900_v46 = vsub.s32 7, %v13805_v3  ;;  %v13491_v60 = vld [vmem:[#allocation7 + $0x34] ss:$8 sps:$4 sm:$0xff]  }
  0x42   : > { %18867 = vst [vmem:[#allocation17_spill] sm:$0xff] %v13861_v30  ;;  %18868 = vst [vmem:[#allocation18_spill] sm:$0xff] %v13871_v35  ;;  %v13883_v40 = vrot.slane %v13811_v8, %v13838_v22  ;;  %v13887_v41 = vrot.slane %v13825_v15, %v13838_v22  ;;  %1238 = vmatprep.subr.bf16.mxu0 %v13477_v26  ;;  %v13891_v43 = vrot.slane %v13828_v16, %v13838_v22  ;;  %v13493_v4 = vld [vmem:[#allocation4 + $0x30] ss:$8 sps:$4 sm:$0xff]   ;;  %v13495_v13 = vld [vmem:[#allocation4 + $0x24] ss:$8 sps:$4 sm:$0xff]  }
  0x43   : > { %18869 = vst [vmem:[#allocation19_spill] sm:$0xff] %v13875_v36  ;;  %18870 = vst [vmem:[#allocation20_spill] sm:$0xff] %v13879_v37  ;;  %v13895_v44 = vrot.slane %v13831_v17, %v13838_v22  ;;  %v401_v45 = vrot.slane %v13802_v2, %v13849_v27  ;;  %1655 = vmatprep.subr.bf16.mxu1 %v13479_v32  ;;  %v13904_v47 = vrot.slane %v13811_v8, %v13849_v27  ;;  %v13494_v11 = vld [vmem:[#allocation7 + $0x30] ss:$8 sps:$4 sm:$0xff]   ;;  %v13497_v14 = vld [vmem:[#allocation7 + $0x24] ss:$8 sps:$4 sm:$0xff]  }
  0x44   : > { %18871 = vst [vmem:[#allocation21_spill] sm:$0xff] %v13887_v41  ;;  %382 = vbcast.lane.b32.xlu0 %v380_v23, 256  ;;  %18872 = vst [vmem:[#allocation22_spill] sm:$0xff] %v13891_v43  ;;  %v13908_v48 = vrot.slane %v13825_v15, %v13849_v27  ;;  %v13912_v49 = vrot.slane %v13828_v16, %v13849_v27  ;;  %v13916_v50 = vrot.slane %v13831_v17, %v13849_v27  ;;  %v13501_v18 = vld [vmem:[#allocation4 + $0x14] ss:$8 sps:$4 sm:$0xff]  }
  0x45   : > { %18873 = vst [vmem:[#allocation23_spill] sm:$0xff] %v13895_v44  ;;  %396 = vbcast.lane.b32.xlu1 %v394_v31, 256  ;;  %v408_v52 = vrot.slane %v13802_v2, %v13838_v22  ;;  %v13922_v53 = vrot.slane %v13811_v8, %v13900_v46  ;;  %v13926_v54 = vrot.slane %v13825_v15, %v13900_v46  ;;  %v13937_v59 = vsub.s32 6, %v13805_v3  ;;  %v13505_v20 = vld [vmem:[#allocation4 + $0x10] ss:$8 sps:$4 sm:$0xff]  }
  0x46   : > { %18874 = vst [vmem:[#allocation24_spill] sm:$0xff] %v13908_v48  ;;  %18875 = vst [vmem:[#allocation25_spill] sm:$0xff] %v13912_v49  ;;  %v13930_v55 = vrot.slane %v13828_v16, %v13900_v46  ;;  %1239 = vmatpush1.bf16.msra.mxu0 %v13481_v33  ;;  %1656 = vmatpush1.bf16.msra.mxu1 %v13482_v38  ;;  %v13934_v58 = vrot.slane %v13831_v17, %v13900_v46  ;;  %v13507_v21 = vld [vmem:[#allocation4 + $0x4] ss:$8 sps:$4 sm:$0xff]   ;;  %v13511_v24 = vld [vmem:[#allocation4] ss:$8 sps:$4 sm:$0xff]  }
  0x47   : > { %18876 = vst [vmem:[#allocation26_spill] sm:$0xff] %v13916_v50  ;;  %18877 = vst [vmem:[#allocation27_spill] sm:$0xff] %v13922_v53  ;;  %1240 = vmatprep.subr.bf16.mxu0 %v13483_v39  ;;  %1657 = vmatprep.subr.bf16.mxu1 %v13485_v42  ;;  %v415_v61 = vrot.slane %v13802_v2, %v13937_v59  ;;  %v13943_v62 = vrot.slane %v13811_v8, %v13937_v59  ;;  %v13509_v23 = vld [vmem:[#allocation7 + $0x4] ss:$8 sps:$4 sm:$0xff]   ;;  %v13512_v26 = vld [vmem:[#allocation7] ss:$8 sps:$4 sm:$0xff]  }
  0x48   : > { %18878 = vst [vmem:[#allocation28_spill] sm:$0xff] %v13926_v54  ;;  %18879 = vst [vmem:[#allocation29_spill] sm:$0xff] %v13930_v55  ;;  %403 = vbcast.lane.b32.xlu0 %v401_v45, 256  ;;  %v13947_v63 = vrot.slane %v13825_v15, %v13937_v59  ;;  %v13951_v0 = vrot.slane %v13828_v16, %v13937_v59  ;;  %v422_v5 = vrot.slane %v13802_v2, %v13900_v46  ;;  %v13499_v15 = vld [vmem:[#allocation4 + $0x20] ss:$8 sps:$4 sm:$0xff]  }
  0x49   : > { %18880 = vst [vmem:[#allocation30_spill] sm:$0xff] %v13934_v58  ;;  %18881 = vst [vmem:[#allocation31_spill] sm:$0xff] %v13943_v62  ;;  %410 = vbcast.lane.b32.xlu1 %v408_v52, 256  ;;  %v13957_v6 = vrot.slane %v13831_v17, %v13937_v59  ;;  %v13500_v16 = vld [vmem:[#allocation7 + $0x20] ss:$8 sps:$4 sm:$0xff]   ;;  %v14273_v58 = vadd.s32 128, %v13805_v3 }
  0x4a   : > { %18882 = vst [vmem:[#allocation32_spill] sm:$0xff] %v13947_v63  ;;  %18883 = vst [vmem:[#allocation33_spill] sm:$0xff] %v13951_v0  ;;  %1241 = vmatpush1.bf16.msra.mxu0 %v13487_v51  ;;  %1658 = vmatpush1.bf16.msra.mxu1 %v13488_v56  ;;  %v13503_v2 = vld [vmem:[#allocation7 + $0x14] ss:$8 sps:$4 sm:$0xff]   ;;  %v13506_v17 = vld [vmem:[#allocation7 + $0x10] ss:$8 sps:$4 sm:$0xff]  }
  0x4b   : > { %18884 = vst [vmem:[#allocation34_spill] sm:$0xff] %v13957_v6  ;;  %1242 = vmatprep.subr.bf16.mxu0 %v13489_v57  ;;  %1659 = vmatprep.subr.bf16.mxu1 %v13491_v60  ;;  %v13513_v31 = vld [vmem:[#allocation4 + $0xf4] ss:$8 sps:$4 sm:$0xff]   ;;  %v13517_v33 = vld [vmem:[#allocation4 + $0xf0] ss:$8 sps:$4 sm:$0xff]   ;;  %v364_v38 = vld [vmem:[%s13793_s22 + $0x8] sm:$0xff] }
  0x4c   : > { %417 = vbcast.lane.b32.xlu0 %v415_v61, 256  ;;  %v13515_v32 = vld [vmem:[#allocation7 + $0xf4] ss:$8 sps:$4 sm:$0xff]   ;;  %v13518_v39 = vld [vmem:[#allocation7 + $0xf0] ss:$8 sps:$4 sm:$0xff]   ;;  %v436_v42 = vrot.slane %v364_v38, %v13814_v9  ;;  %v429_v45 = vrot.slane %v364_v38, %v13808_v7  ;;  %v450_v56 = vrot.slane %v364_v38, %v13820_v12  ;;  %v443_v57 = vrot.slane %v364_v38, %v13817_v10 }
  0x4d   : > { %424 = vbcast.lane.b32.xlu1 %v422_v5, 256  ;;  %v13519_v51 = vld [vmem:[#allocation4 + $0xe4] ss:$8 sps:$4 sm:$0xff]   ;;  %v13523_v60 = vld [vmem:[#allocation4 + $0xe0] ss:$8 sps:$4 sm:$0xff]   ;;  %v14276_v6 = vadd.s32 136, %v13805_v3 }
  0x4e   : > { %1243 = vmatpush1.bf16.msra.mxu0 %v13493_v4  ;;  %1660 = vmatpush1.bf16.msra.mxu1 %v13494_v11  ;;  %v13521_v52 = vld [vmem:[#allocation7 + $0xe4] ss:$8 sps:$4 sm:$0xff]   ;;  %v13524_v61 = vld [vmem:[#allocation7 + $0xe0] ss:$8 sps:$4 sm:$0xff]   ;;  %v13525_v4 = vld [vmem:[#allocation4 + $0xd4] ss:$8 sps:$4 sm:$0xff]   ;;  %v464_v11 = vrot.slane %v364_v38, %v13838_v22 }
  0x4f   : > { %1244 = vmatprep.subr.bf16.mxu0 %v13495_v13  ;;  %1661 = vmatprep.subr.bf16.mxu1 %v13497_v14  ;;  %v13527_v5 = vld [vmem:[#allocation7 + $0xd4] ss:$8 sps:$4 sm:$0xff]   ;;  %v457_v13 = vrot.slane %v364_v38, %v13849_v27  ;;  %v13529_v14 = vld [vmem:[#allocation4 + $0xd0] ss:$8 sps:$4 sm:$0xff]  }
  0x50   : > { %431 = vbcast.lane.b32.xlu0 %v429_v45, 256 }
  0x51   : > { %438 = vbcast.lane.b32.xlu1 %v436_v42, 256  ;;  %v13545_v42 = vld [vmem:[#allocation7 + $0xa4] ss:$8 sps:$4 sm:$0xff]  }
  0x52   : > { %1245 = vmatpush1.bf16.msra.mxu0 %v13499_v15  ;;  %1662 = vmatpush1.bf16.msra.mxu1 %v13500_v16  ;;  %v13530_v15 = vld [vmem:[#allocation7 + $0xd0] ss:$8 sps:$4 sm:$0xff]   ;;  %v13531_v16 = vld [vmem:[#allocation4 + $0xc4] ss:$8 sps:$4 sm:$0xff]  }
  0x53   : > { %1246 = vmatprep.subr.bf16.mxu0 %v13501_v18  ;;  %1663 = vmatprep.subr.bf16.mxu1 %v13503_v2  ;;  %v13533_v18 = vld [vmem:[#allocation7 + $0xc4] ss:$8 sps:$4 sm:$0xff]   ;;  %v478_v2 = vrot.slane %v364_v38, %v13900_v46 }
  0x54   : > { %445 = vbcast.lane.b32.xlu0 %v443_v57, 256  ;;  %v13549_v57 = vld [vmem:[#allocation4 + $0x94] ss:$8 sps:$4 sm:$0xff]  }
  0x55   : > { %452 = vbcast.lane.b32.xlu1 %v450_v56, 256  ;;  %v13548_v56 = vld [vmem:[#allocation7 + $0xa0] ss:$8 sps:$4 sm:$0xff]  }
  0x56   : > { %1247 = vmatpush1.bf16.msra.mxu0 %v13505_v20  ;;  %1664 = vmatpush1.bf16.msra.mxu1 %v13506_v17  ;;  %v471_v20 = vrot.slane %v364_v38, %v13937_v59  ;;  %v365_v17 = vld [vmem:[%s13793_s22 + $0x10] sm:$0xff] }
  0x57   : > { %1248 = vmatprep.subr.bf16.mxu0 %v13507_v21  ;;  %1665 = vmatprep.subr.bf16.mxu1 %v13509_v23  ;;  %v13535_v21 = vld [vmem:[#allocation4 + $0xc0] ss:$8 sps:$4 sm:$0xff]   ;;  %v13543_v38 = vld [vmem:[#allocation4 + $0xa4] ss:$8 sps:$4 sm:$0xff]   ;;  %v506_v45 = vrot.slane %v365_v17, %v13820_v12 }
  0x58   : > { %459 = vbcast.lane.b32.xlu0 %v457_v13, 256  ;;  %v13536_v23 = vld [vmem:[#allocation7 + $0xc0] ss:$8 sps:$4 sm:$0xff]   ;;  %v13983_v13 = vadd.s32 248, %v13805_v3 }
  0x59   : > { %466 = vbcast.lane.b32.xlu1 %v464_v11, 256  ;;  %v13980_v11 = vadd.s32 240, %v13805_v3 }
  0x5a   : > { %1249 = vmatpush1.bf16.msra.mxu0 %v13511_v24  ;;  %1666 = vmatpush1.bf16.msra.mxu1 %v13512_v26  ;;  %v13537_v24 = vld [vmem:[#allocation4 + $0xb4] ss:$8 sps:$4 sm:$0xff]  }
  0x5b   : > { %1250 = vmatprep.subr.bf16.mxu0 %v13513_v31  ;;  %1667 = vmatprep.subr.bf16.mxu1 %v13515_v32  ;;  %v13539_v26 = vld [vmem:[#allocation7 + $0xb4] ss:$8 sps:$4 sm:$0xff]   ;;  %v492_v31 = vrot.slane %v365_v17, %v13814_v9  ;;  %v485_v32 = vrot.slane %v365_v17, %v13808_v7 }
  0x5c   : > { %473 = vbcast.lane.b32.xlu0 %v471_v20, 256  ;;  %v366_v20 = vld [vmem:[%s13793_s22 + $0x18] sm:$0xff] }
  0x5d   : > { %480 = vbcast.lane.b32.xlu1 %v478_v2, 256  ;;  %v534_v2 = vrot.slane %v365_v17, %v13900_v46 }
  0x5e   : > { %1251 = vmatpush2.bf16.msra.mxu0 %v13517_v33  ;;  %1668 = vmatpush2.bf16.msra.mxu1 %v13518_v39  ;;  %v13541_v33 = vld [vmem:[#allocation4 + $0xb0] ss:$8 sps:$4 sm:$0xff]  }
  0x5f   : > { %1252 = vmatprep.subr.bf16.mxu0 %v13519_v51  ;;  %1669 = vmatprep.subr.bf16.mxu1 %v13521_v52  ;;  %v13542_v39 = vld [vmem:[#allocation7 + $0xb0] ss:$8 sps:$4 sm:$0xff]   ;;  %v499_v51 = vrot.slane %v365_v17, %v13817_v10  ;;  %v13547_v52 = vld [vmem:[#allocation4 + $0xa0] ss:$8 sps:$4 sm:$0xff]  }
  0x60   : > { %487 = vbcast.lane.b32.xlu0 %v485_v32, 256  ;;  %v555_v32 = vrot.slane %v366_v20, %v13817_v10  ;;  %v14009_v10 = vadd.s32 120, %v13805_v3 }
  0x61   : > { %494 = vbcast.lane.b32.xlu1 %v492_v31, 256  ;;  %v562_v31 = vrot.slane %v366_v20, %v13820_v12  ;;  %v14006_v12 = vadd.s32 112, %v13805_v3 }
  0x62   : > { %1253 = vmatpush2.bf16.msra.mxu0 %v13523_v60  ;;  %1670 = vmatpush2.bf16.msra.mxu1 %v13524_v61  ;;  %v13551_v60 = vld [vmem:[#allocation7 + $0x94] ss:$8 sps:$4 sm:$0xff]   ;;  %v520_v61 = vrot.slane %v365_v17, %v13838_v22 }
  0x63   : > { %1254 = vmatprep.subr.bf16.mxu0 %v13525_v4  ;;  %1671 = vmatprep.subr.bf16.mxu1 %v13527_v5  ;;  %v513_v4 = vrot.slane %v365_v17, %v13849_v27  ;;  %v13977_v5 = vrot.slane %v13811_v8, %v13808_v7  ;;  %v527_v8 = vrot.slane %v365_v17, %v13937_v59  ;;  %v18815_v17 = vmov 1.0|1.0  }
  0x64   : > { %501 = vbcast.lane.b32.xlu0 %v499_v51, 256 }
  0x65   : > { %508 = vbcast.lane.b32.xlu1 %v506_v45, 256  ;;  %vm1947_vm0 = vcmp.eq.s32.totalorder %v13980_v11, %v13977_v5  ;;  %vm1948_vm1 = vcmp.eq.s32.totalorder %v13983_v13, %v13977_v5  ;;  %v14003_v45 = vand.u32 127, %v367_v1  ;;  %vm1931_vm3 = vcmp.eq.s32.totalorder %v14006_v12, %v13977_v5 }
  0x66   : > { %1255 = vmatpush2.bf16.msra.mxu0 %v13529_v14  ;;  %1672 = vmatpush2.bf16.msra.mxu1 %v13530_v15  ;;  %v13553_v14 = vld [vmem:[#allocation4 + $0x90] ss:$8 sps:$4 sm:$0xff]   ;;  %vm8809_vm2 = vmpackc.low %vm1948_vm1, %vm1947_vm0  ;;  %vm1932_vm4 = vcmp.eq.s32.totalorder %v14009_v10, %v13977_v5  ;;  %v14022_v1 = vadd.s32 232, %v13805_v3 }
  0x67   : > { %1256 = vmatprep.subr.bf16.mxu0 %v13531_v16  ;;  %1673 = vmatprep.subr.bf16.mxu1 %v13533_v18  ;;  %v13554_v15 = vld [vmem:[#allocation7 + $0x90] ss:$8 sps:$4 sm:$0xff]   ;;  %v13555_v16 = vld [vmem:[#allocation4 + $0x84] ss:$8 sps:$4 sm:$0xff]   ;;  %v14015_v51 = vadd.s32 128, %v14003_v45  ;;  %vm14036_vm10 = vmpackc.low %vm1932_vm4, %vm1931_vm3 }
  0x68   : > { %v13557_v18 = vld [vmem:[#allocation7 + $0x84] ss:$8 sps:$4 sm:$0xff]   ;;  %515 = vbcast.lane.b32.xlu0 %v513_v4, 256  ;;  %vm1946_vm13 = vcmp.eq.s32.totalorder %v14022_v1, %v13977_v5  ;;  %v14047_v4 = vadd.s32 216, %v13805_v3 }
  0x69   : > { %522 = vbcast.lane.b32.xlu1 %v520_v61, 256  ;;  %v14044_v61 = vadd.s32 208, %v13805_v3 }
  0x6a   : > { %1257 = vmatpush2.bf16.msra.mxu0 %v13535_v21  ;;  %1674 = vmatpush2.bf16.msra.mxu1 %v13536_v23  ;;  %v13559_v21 = vld [vmem:[#allocation4 + $0x80] ss:$8 sps:$4 sm:$0xff]  }
  0x6b   : > { %1258 = vmatprep.subr.bf16.mxu0 %v13537_v24  ;;  %1675 = vmatprep.subr.bf16.mxu1 %v13539_v26  ;;  %v13560_v23 = vld [vmem:[#allocation7 + $0x80] ss:$8 sps:$4 sm:$0xff]   ;;  %v548_v24 = vrot.slane %v366_v20, %v13814_v9  ;;  %v541_v26 = vrot.slane %v366_v20, %v13808_v7  ;;  %vm1943_vm4 = vcmp.eq.s32.totalorder %v14044_v61, %v13977_v5 }
  0x6c   : > { %529 = vbcast.lane.b32.xlu0 %v527_v8, 256  ;;  %v14080_v8 = vadd.s32 192, %v13805_v3 }
  0x6d   : > { %536 = vbcast.lane.b32.xlu1 %v534_v2, 256 }
  0x6e   : > { %1259 = vmatpush2.bf16.msra.mxu0 %v13541_v33  ;;  %1676 = vmatpush2.bf16.msra.mxu1 %v13542_v39  ;;  %v576_v33 = vrot.slane %v366_v20, %v13838_v22  ;;  %v569_v39 = vrot.slane %v366_v20, %v13849_v27  ;;  %v14012_v27 = vadd.s32 224, %v13805_v3 }
  0x6f   : > { %1260 = vmatprep.subr.bf16.mxu0 %v13543_v38  ;;  %1677 = vmatprep.subr.bf16.mxu1 %v13545_v42  ;;  %v590_v38 = vrot.slane %v366_v20, %v13900_v46  ;;  %v583_v42 = vrot.slane %v366_v20, %v13937_v59  ;;  %v14083_v20 = vadd.s32 200, %v13805_v3 }
  0x70   : > { %543 = vbcast.lane.b32.xlu0 %v541_v26, 256  ;;  %vm1945_vm5 = vcmp.eq.s32.totalorder %v14012_v27, %v13977_v5  ;;  %v14127_v26 = vadd.s32 176, %v13805_v3 }
  0x71   : > { %550 = vbcast.lane.b32.xlu1 %v548_v24, 256  ;;  %vm14059_vm1 = vmpackc.low %vm1946_vm13, %vm1945_vm5  ;;  %vm1944_vm5 = vcmp.eq.s32.totalorder %v14047_v4, %v13977_v5  ;;  %v14120_v24 = vadd.s32 72, %v13805_v3 }
  0x72   : > { %1261 = vmatpush2.bf16.msra.mxu0 %v13547_v52  ;;  %1678 = vmatpush2.bf16.msra.mxu1 %v13548_v56  ;;  %v14027_v52 = vadd.s32 96, %v13805_v3  ;;  %v14030_v56 = vadd.s32 104, %v13805_v3 }
  0x73   : > { %1262 = vmatprep.subr.bf16.mxu0 %v13549_v57  ;;  %1679 = vmatprep.subr.bf16.mxu1 %v13551_v60  ;;  %v14184_v57 = vadd.s32 168, %v13805_v3 }
  0x74   : > { %557 = vbcast.lane.b32.xlu0 %v555_v32, 256  ;;  %vm1930_vm3 = vcmp.eq.s32.totalorder %v14030_v56, %v13977_v5  ;;  %v14302_v32 = vadd.s32 8, %v13805_v3 }
  0x75   : > { %564 = vbcast.lane.b32.xlu1 %v562_v31, 256  ;;  %v14130_v31 = vadd.s32 184, %v13805_v3 }
  0x76   : > { %1263 = vmatpush2.bf16.msra.mxu0 %v13553_v14  ;;  %1680 = vmatpush2.bf16.msra.mxu1 %v13554_v15  ;;  %v14223_v15 = vadd.s32 40, %v13805_v3 }
  0x77   : > { %1264 = vmatprep.subr.bf16.mxu0 %v13555_v16  ;;  %1681 = vmatprep.subr.bf16.mxu1 %v13557_v18  ;;  %v14068_v16 = vadd.s32 80, %v13805_v3  ;;  %v14071_v18 = vadd.s32 88, %v13805_v3 }
  0x78   : > { %571 = vbcast.lane.b32.xlu0 %v569_v39, 256 }
  0x79   : > { %578 = vbcast.lane.b32.xlu1 %v576_v33, 256  ;;  %vm1928_vm13 = vcmp.eq.s32.totalorder %v14071_v18, %v13977_v5 }
  0x7a   : > { %1265 = vmatpush2.bf16.msra.mxu0 %v13559_v21  ;;  %1682 = vmatpush2.bf16.msra.mxu1 %v13560_v23  ;;  %v14117_v23 = vadd.s32 64, %v13805_v3  ;;  %v14233_v21 = vadd.s32 152, %v13805_v3 }
  0x7b   : > { %12001 = vmatprep.subr.msk.bf16.mxu0 %vm8809_vm2, %v18815_v17  ;;  %12023 = vmatprep.subr.msk.bf16.mxu1 %vm8809_vm2, %v18815_v17  ;;  %vm1929_vm2 = vcmp.eq.s32.totalorder %v14027_v52, %v13977_v5 }
  0x7c   : > { %585 = vbcast.lane.b32.xlu0 %v583_v42, 256  ;;  %v14261_v42 = vadd.s32 16, %v13805_v3 }
  0x7d   : > { %592 = vbcast.lane.b32.xlu1 %v590_v38, 256 }
  0xb2   : > { %v376_v22 = vpop.permute.xlu0 %375 }
  0xb3   : > { %v390_v46 = vpop.permute.xlu1 %389  ;;  %vm594_vm6 = vcmp.eq.s32.totalorder %v376_v22, %v14003_v45  ;;  %vm595_vm12 = vcmp.eq.s32.totalorder %v376_v22, %v14015_v51  ;;  %v14165_v22 = vadd.s32 48, %v13805_v3 }
  0xb4   : > { %vm599_vm9 = vcmp.eq.s32.totalorder %v390_v46, %v14015_v51 }
  0xb6   : > { %v383_v59 = vpop.permute.xlu0 %382 }
  0xb7   : > { %vm596_vm7 = vcmp.eq.s32.totalorder %v383_v59, %v14003_v45  ;;  %vm597_vm8 = vcmp.eq.s32.totalorder %v383_v59, %v14015_v51  ;;  %v397_v60 = vpop.permute.xlu1 %396  ;;  %v14181_v59 = vadd.s32 160, %v13805_v3 }
  0xb8   : > { %vm11875_vm11 = vmpackc.low %vm596_vm7, %vm594_vm6  ;;  %vm601_vm15 = vcmp.eq.s32.totalorder %v397_v60, %v14015_v51  ;;  %vm598_vm6 = vcmp.eq.s32.totalorder %v390_v46, %v14003_v45  ;;  %vm600_vm7 = vcmp.eq.s32.totalorder %v397_v60, %v14003_v45  ;;  %v14168_v46 = vadd.s32 56, %v13805_v3 }
  0xb9   : > { %vm11873_vm14 = vmpackc.low %vm597_vm8, %vm595_vm12  ;;  %vm1927_vm12 = vcmp.eq.s32.totalorder %v14068_v16, %v13977_v5  ;;  %v14264_v60 = vadd.s32 24, %v13805_v3 }
  0xba   : > { %11874 = vmatprep.mubr.msk.bf16.mxu0 %vm11873_vm14, %v18815_v17  ;;  %11938 = vmatprep.mubr.msk.bf16.mxu1 %vm11873_vm14, %v18815_v17  ;;  %vm11877_vm0 = vmpackc.low %vm601_vm15, %vm599_vm9  ;;  %v14054_v14 = vpop.permute.xlu0 %403  ;;  %vm1941_vm15 = vcmp.eq.s32.totalorder %v14080_v8, %v13977_v5 }
  0xbb   : > { %11876 = vmatmul.mubr.msk.bf16.vlgmr.msra.gmra.mxu0 %vm11875_vm11, %v18815_v17  ;;  %11940 = vmatmul.mubr.msk.bf16.vlgmr.msra.gmra.mxu1 %vm11875_vm11, %v18815_v17  ;;  %v411_v2 = vpop.permute.xlu1 %410  ;;  %vm603_vm9 = vcmp.eq.s32.totalorder %v14054_v14, %v14015_v51  ;;  %vm8795_vm11 = vmpackc.low %vm1930_vm3, %vm1929_vm2 }
  0xbc   : > { %11878 = vmatprep.mubr.msk.bf16.mxu0 %vm11877_vm0, %v18815_v17  ;;  %11942 = vmatprep.mubr.msk.bf16.mxu1 %vm11877_vm0, %v18815_v17  ;;  %vm605_vm8 = vcmp.eq.s32.totalorder %v411_v2, %v14015_v51  ;;  %vm11879_vm14 = vmpackc.low %vm600_vm7, %vm598_vm6  ;;  %vm1942_vm0 = vcmp.eq.s32.totalorder %v14083_v20, %v13977_v5  ;;  %vm1939_vm6 = vcmp.eq.s32.totalorder %v14127_v26, %v13977_v5 }
  0xbd   : > { %12002 = vmatpush3.bf16.msk.msra.mxu0 %vm14036_vm10, %v18815_v17  ;;  %12024 = vmatpush3.bf16.msk.msra.mxu1 %vm14036_vm10, %v18815_v17  ;;  %vm14108_vm10 = vmpackc.low %vm1944_vm5, %vm1943_vm4  ;;  %vm1925_vm4 = vcmp.eq.s32.totalorder %v14117_v23, %v13977_v5  ;;  %vm1926_vm5 = vcmp.eq.s32.totalorder %v14120_v24, %v13977_v5  ;;  %vm1940_vm7 = vcmp.eq.s32.totalorder %v14130_v31, %v13977_v5 }
  0xbe   : > { %12003 = vmatprep.subr.msk.bf16.mxu0 %vm14059_vm1, %v18815_v17  ;;  %12025 = vmatprep.subr.msk.bf16.mxu1 %vm14059_vm1, %v18815_v17  ;;  %vm14134_vm1 = vmpackc.low %vm605_vm8, %vm603_vm9  ;;  %v14154_v38 = vpop.permute.xlu0 %417  ;;  %vm604_vm8 = vcmp.eq.s32.totalorder %v411_v2, %v14003_v45  ;;  %vm602_vm9 = vcmp.eq.s32.totalorder %v14054_v14, %v14003_v45  ;;  %v14220_v14 = vadd.s32 32, %v13805_v3  ;;  %v14230_v2 = vadd.s32 144, %v13805_v3 }
  0xbf   : > { %vm14143_vm2 = vmpackc.low %vm1928_vm13, %vm1927_vm12  ;;  %v14152_v39 = vpop.permute.xlu1 %424 }
  0xc0   : > { %vm14156_vm3 = vmpackc.low %vm1942_vm0, %vm1941_vm15  ;;  %vm1924_vm15 = vcmp.eq.s32.totalorder %v14168_v46, %v13977_v5 }
  0xc1   : > { %12004 = vmatpush3.bf16.msk.msra.mxu0 %vm8795_vm11, %v18815_v17  ;;  %12026 = vmatpush3.bf16.msk.msra.mxu1 %vm8795_vm11, %v18815_v17  ;;  %vm609_vm11 = vcmp.eq.s32.totalorder %v14152_v39, %v14015_v51  ;;  %vm8799_vm12 = vmpackc.low %vm1926_vm5, %vm1925_vm4 }
  0xc2   : > { %12005 = vmatprep.subr.msk.bf16.mxu0 %vm14108_vm10, %v18815_v17  ;;  %12027 = vmatprep.subr.msk.bf16.mxu1 %vm14108_vm10, %v18815_v17  ;;  %vm607_vm10 = vcmp.eq.s32.totalorder %v14154_v38, %v14015_v51  ;;  %vm14211_vm13 = vmpackc.low %vm1940_vm7, %vm1939_vm6  ;;  %vm1921_vm6 = vcmp.eq.s32.totalorder %v14220_v14, %v13977_v5  ;;  %vm1922_vm7 = vcmp.eq.s32.totalorder %v14223_v15, %v13977_v5 }
  0xc3   : > { %11880 = vmatmul.mubr.msk.bf16.gmra.mxu0 %vm11879_vm14, %v18815_v17  ;;  %11944 = vmatmul.mubr.msk.bf16.gmra.mxu1 %vm11879_vm14, %v18815_v17  ;;  %vm1923_vm14 = vcmp.eq.s32.totalorder %v14165_v22, %v13977_v5  ;;  %vm11883_vm0 = vmpackc.low %vm604_vm8, %vm602_vm9  ;;  %vm1935_vm8 = vcmp.eq.s32.totalorder %v14230_v2, %v13977_v5  ;;  %vm1936_vm9 = vcmp.eq.s32.totalorder %v14233_v21, %v13977_v5 }
  0xc4   : > { %11882 = vmatprep.mubr.msk.bf16.mxu0 %vm14134_vm1, %v18815_v17  ;;  %11946 = vmatprep.mubr.msk.bf16.mxu1 %vm14134_vm1, %v18815_v17  ;;  %vm1937_vm1 = vcmp.eq.s32.totalorder %v14181_v59, %v13977_v5  ;;  %vm14243_vm4 = vmpackc.low %vm1924_vm15, %vm1923_vm14  ;;  %vm1919_vm14 = vcmp.eq.s32.totalorder %v14261_v42, %v13977_v5  ;;  %vm1920_vm15 = vcmp.eq.s32.totalorder %v14264_v60, %v13977_v5 }
  0xc5   : > { %12006 = vmatpush3.bf16.msk.msra.mxu0 %vm14143_vm2, %v18815_v17  ;;  %12028 = vmatpush3.bf16.msk.msra.mxu1 %vm14143_vm2, %v18815_v17  ;;  %vm1938_vm2 = vcmp.eq.s32.totalorder %v14184_v57, %v13977_v5 }
  0xc6   : > { %12007 = vmatprep.subr.msk.bf16.mxu0 %vm14156_vm3, %v18815_v17  ;;  %12029 = vmatprep.subr.msk.bf16.mxu1 %vm14156_vm3, %v18815_v17  ;;  %vm11885_vm3 = vmpackc.low %vm609_vm11, %vm607_vm10  ;;  %vm608_vm11 = vcmp.eq.s32.totalorder %v14152_v39, %v14003_v45  ;;  %vm606_vm10 = vcmp.eq.s32.totalorder %v14154_v38, %v14003_v45  ;;  %v439_v39 = vpop.permute.xlu1 %438  ;;  %v432_v38 = vpop.permute.xlu0 %431 }
  0xc7   : > { %vm14252_vm5 = vmpackc.low %vm1938_vm2, %vm1937_vm1  ;;  %vm613_vm1 = vcmp.eq.s32.totalorder %v439_v39, %v14015_v51  ;;  %vm611_vm2 = vcmp.eq.s32.totalorder %v432_v38, %v14015_v51 }
  0xc9   : > { %12008 = vmatpush3.bf16.msk.msra.mxu0 %vm8799_vm12, %v18815_v17  ;;  %12030 = vmatpush3.bf16.msk.msra.mxu1 %vm8799_vm12, %v18815_v17  ;;  %vm8803_vm12 = vmpackc.low %vm1922_vm7, %vm1921_vm6 }
  0xca   : > { %12009 = vmatprep.subr.msk.bf16.mxu0 %vm14211_vm13, %v18815_v17  ;;  %12031 = vmatprep.subr.msk.bf16.mxu1 %vm14211_vm13, %v18815_v17  ;;  %vm8821_vm13 = vmpackc.low %vm1936_vm9, %vm1935_vm8  ;;  %v453_v33 = vpop.permute.xlu1 %452  ;;  %v446_v44 = vpop.permute.xlu0 %445  ;;  %vm1917_vm8 = vcmp.eq.s32.totalorder %v13805_v3, %v13977_v5  ;;  %vm1918_vm9 = vcmp.eq.s32.totalorder %v14302_v32, %v13977_v5 }
  0xcb   : > { %11884 = vmatmul.mubr.msk.bf16.gmra.mxu0 %vm11883_vm0, %v18815_v17  ;;  %11948 = vmatmul.mubr.msk.bf16.gmra.mxu1 %vm11883_vm0, %v18815_v17  ;;  %vm11887_vm0 = vmpackc.low %vm608_vm11, %vm606_vm10  ;;  %vm612_vm11 = vcmp.eq.s32.totalorder %v439_v39, %v14003_v45  ;;  %vm610_vm10 = vcmp.eq.s32.totalorder %v432_v38, %v14003_v45 }
  0xcc   : > { %11886 = vmatprep.mubr.msk.bf16.mxu0 %vm11885_vm3, %v18815_v17  ;;  %11950 = vmatprep.mubr.msk.bf16.mxu1 %vm11885_vm3, %v18815_v17  ;;  %vm1933_vm3 = vcmp.eq.s32.totalorder %v14273_v58, %v13977_v5  ;;  %vm8805_vm6 = vmpackc.low %vm1920_vm15, %vm1919_vm14 }
  0xcd   : > { %12010 = vmatpush3.bf16.msk.msra.mxu0 %vm14243_vm4, %v18815_v17  ;;  %12032 = vmatpush3.bf16.msk.msra.mxu1 %vm14243_vm4, %v18815_v17  ;;  %vm1934_vm4 = vcmp.eq.s32.totalorder %v14276_v6, %v13977_v5  ;;  %vm8807_vm14 = vmpackc.low %vm1918_vm9, %vm1917_vm8 }
  0xce   : > { %12011 = vmatprep.subr.msk.bf16.mxu0 %vm14252_vm5, %v18815_v17  ;;  %12033 = vmatprep.subr.msk.bf16.mxu1 %vm14252_vm5, %v18815_v17  ;;  %vm11889_vm5 = vmpackc.low %vm613_vm1, %vm611_vm2  ;;  %v467_v5 = vpop.permute.xlu1 %466  ;;  %v460_v39 = vpop.permute.xlu0 %459  ;;  %vm616_vm1 = vcmp.eq.s32.totalorder %v453_v33, %v14003_v45  ;;  %vm614_vm2 = vcmp.eq.s32.totalorder %v446_v44, %v14003_v45 }
  0xcf   : > { %vm8823_vm7 = vmpackc.low %vm1934_vm4, %vm1933_vm3  ;;  %vm621_vm3 = vcmp.eq.s32.totalorder %v467_v5, %v14015_v51  ;;  %vm619_vm4 = vcmp.eq.s32.totalorder %v460_v39, %v14015_v51  ;;  %vm618_vm8 = vcmp.eq.s32.totalorder %v460_v39, %v14003_v45 }
  0xd0   : > { %vm11891_vm15 = vmpackc.low %vm612_vm11, %vm610_vm10 }
  0xd1   : > { %12012 = vmatpush3.bf16.msk.msra.mxu0 %vm8803_vm12, %v18815_v17  ;;  %12034 = vmatpush3.bf16.msk.msra.mxu1 %vm8803_vm12, %v18815_v17  ;;  %vm617_vm12 = vcmp.eq.s32.totalorder %v453_v33, %v14015_v51 }
  0xd2   : > { %12013 = vmatprep.subr.msk.bf16.mxu0 %vm8821_vm13, %v18815_v17  ;;  %12035 = vmatprep.subr.msk.bf16.mxu1 %vm8821_vm13, %v18815_v17  ;;  %vm615_vm13 = vcmp.eq.s32.totalorder %v446_v44, %v14015_v51  ;;  %v481_v38 = vpop.permute.xlu1 %480  ;;  %v474_v50 = vpop.permute.xlu0 %473 }
  0xd3   : > { %11888 = vmatmul.mubr.msk.bf16.gmra.mxu0 %vm11887_vm0, %v18815_v17  ;;  %11952 = vmatmul.mubr.msk.bf16.gmra.mxu1 %vm11887_vm0, %v18815_v17  ;;  %vm11893_vm0 = vmpackc.low %vm617_vm12, %vm615_vm13  ;;  %vm625_vm9 = vcmp.eq.s32.totalorder %v481_v38, %v14015_v51  ;;  %vm623_vm11 = vcmp.eq.s32.totalorder %v474_v50, %v14015_v51  ;;  %vm624_vm13 = vcmp.eq.s32.totalorder %v481_v38, %v14003_v45 }
  0xd4   : > { %11890 = vmatprep.mubr.msk.bf16.mxu0 %vm11889_vm5, %v18815_v17  ;;  %11954 = vmatprep.mubr.msk.bf16.mxu1 %vm11889_vm5, %v18815_v17  ;;  %vm11895_vm5 = vmpackc.low %vm616_vm1, %vm614_vm2 }
  0xd5   : > { %12014 = vmatpush3.bf16.msk.msra.mxu0 %vm8805_vm6, %v18815_v17  ;;  %12036 = vmatpush3.bf16.msk.msra.mxu1 %vm8805_vm6, %v18815_v17  ;;  %vm11897_vm6 = vmpackc.low %vm621_vm3, %vm619_vm4 }
  0xd6   : > { %12015 = vmatprep.subr.msk.bf16.mxu0 %vm8823_vm7, %v18815_v17  ;;  %12037 = vmatprep.subr.msk.bf16.mxu1 %vm8823_vm7, %v18815_v17  ;;  %vm620_vm7 = vcmp.eq.s32.totalorder %v467_v5, %v14003_v45  ;;  %vm11901_vm12 = vmpackc.low %vm625_vm9, %vm623_vm11  ;;  %v495_v44 = vpop.permute.xlu1 %494  ;;  %v488_v33 = vpop.permute.xlu0 %487 }
  0xd7   : > { %vm11899_vm10 = vmpackc.low %vm620_vm7, %vm618_vm8  ;;  %vm628_vm3 = vcmp.eq.s32.totalorder %v495_v44, %v14003_v45  ;;  %vm626_vm4 = vcmp.eq.s32.totalorder %v488_v33, %v14003_v45 }
  0xd8   : > { %vm11907_vm7 = vmpackc.low %vm628_vm3, %vm626_vm4 }
  0xd9   : > { %12016 = vmatpush3.bf16.msk.msra.mxu0 %vm8807_vm14, %v18815_v17  ;;  %12038 = vmatpush3.bf16.msk.msra.mxu1 %vm8807_vm14, %v18815_v17  ;;  %vm622_vm14 = vcmp.eq.s32.totalorder %v474_v50, %v14003_v45 }
  0xda   : > { %vm11903_vm1 = vmpackc.low %vm624_vm13, %vm622_vm14  ;;  %v509_v5 = vpop.permute.xlu1 %508  ;;  %v502_v39 = vpop.permute.xlu0 %501 }
  0xdb   : > { %11892 = vmatmul.mubr.msk.bf16.gmra.mxu0 %vm11891_vm15, %v18815_v17  ;;  %11956 = vmatmul.mubr.msk.bf16.gmra.mxu1 %vm11891_vm15, %v18815_v17  ;;  %vm629_vm15 = vcmp.eq.s32.totalorder %v495_v44, %v14015_v51  ;;  %vm632_vm9 = vcmp.eq.s32.totalorder %v509_v5, %v14003_v45  ;;  %vm630_vm11 = vcmp.eq.s32.totalorder %v502_v39, %v14003_v45 }
  0xdc   : > { %11894 = vmatprep.mubr.msk.bf16.mxu0 %vm11893_vm0, %v18815_v17  ;;  %11958 = vmatprep.mubr.msk.bf16.mxu1 %vm11893_vm0, %v18815_v17  ;;  %vm627_vm0 = vcmp.eq.s32.totalorder %v488_v33, %v14015_v51  ;;  %vm11911_vm13 = vmpackc.low %vm632_vm9, %vm630_vm11 }
  0xdd   : > { %vm11905_vm2 = vmpackc.low %vm629_vm15, %vm627_vm0  ;;  %vm2143_vm15 = vcmp.eq.s32.totalorder %v13980_v11, %v13835_v19  ;;  %vm2144_vm0 = vcmp.eq.s32.totalorder %v13983_v13, %v13835_v19 }
  0xde   : > { %v523_v50 = vpop.permute.xlu1 %522  ;;  %v516_v38 = vpop.permute.xlu0 %515 }
  0xdf   : > { %vm634_vm3 = vcmp.eq.s32.totalorder %v516_v38, %v14003_v45 }
  0xe2   : > { %v537_v44 = vpop.permute.xlu1 %536  ;;  %v530_v33 = vpop.permute.xlu0 %529 }
  0xe3   : > { %11896 = vmatmul.mubr.msk.bf16.gmra.mxu0 %vm11895_vm5, %v18815_v17  ;;  %11960 = vmatmul.mubr.msk.bf16.gmra.mxu1 %vm11895_vm5, %v18815_v17  ;;  %vm633_vm5 = vcmp.eq.s32.totalorder %v509_v5, %v14015_v51  ;;  %vm641_vm4 = vcmp.eq.s32.totalorder %v537_v44, %v14015_v51  ;;  %vm638_vm9 = vcmp.eq.s32.totalorder %v530_v33, %v14003_v45 }
  0xe4   : > { %11898 = vmatprep.mubr.msk.bf16.mxu0 %vm11897_vm6, %v18815_v17  ;;  %11962 = vmatprep.mubr.msk.bf16.mxu1 %vm11897_vm6, %v18815_v17  ;;  %vm631_vm6 = vcmp.eq.s32.totalorder %v502_v39, %v14015_v51 }
  0xe5   : > { %vm11909_vm8 = vmpackc.low %vm633_vm5, %vm631_vm6  ;;  %vm639_vm5 = vcmp.eq.s32.totalorder %v530_v33, %v14015_v51 }
  0xe6   : > { %v551_v5 = vpop.permute.xlu1 %550  ;;  %v544_v39 = vpop.permute.xlu0 %543 }
  0xe7   : > { %vm645_vm11 = vcmp.eq.s32.totalorder %v551_v5, %v14015_v51 }
  0xeb   : > { %11900 = vmatmul.mubr.msk.bf16.gmra.mxu0 %vm11899_vm10, %v18815_v17  ;;  %11964 = vmatmul.mubr.msk.bf16.gmra.mxu1 %vm11899_vm10, %v18815_v17  ;;  %vm637_vm10 = vcmp.eq.s32.totalorder %v523_v50, %v14015_v51 }
  0xec   : > { %11902 = vmatprep.mubr.msk.bf16.mxu0 %vm11901_vm12, %v18815_v17  ;;  %11966 = vmatprep.mubr.msk.bf16.mxu1 %vm11901_vm12, %v18815_v17  ;;  %vm635_vm12 = vcmp.eq.s32.totalorder %v516_v38, %v14015_v51  ;;  %v558_v38 = vpop.permute.xlu0 %557 }
  0xed   : > { %vm11913_vm14 = vmpackc.low %vm637_vm10, %vm635_vm12  ;;  %vm643_vm10 = vcmp.eq.s32.totalorder %v544_v39, %v14015_v51 }
  0xf0   : > { %v572_v33 = vpop.permute.xlu0 %571 }
  0xf3   : > { %11904 = vmatmul.mubr.msk.bf16.gmra.mxu0 %vm11903_vm1, %v18815_v17  ;;  %11968 = vmatmul.mubr.msk.bf16.gmra.mxu1 %vm11903_vm1, %v18815_v17  ;;  %vm8905_vm1 = vmpackc.low %vm2144_vm0, %vm2143_vm15  ;;  %vm642_vm15 = vcmp.eq.s32.totalorder %v544_v39, %v14003_v45 }
  0xf4   : > { %11906 = vmatprep.mubr.msk.bf16.mxu0 %vm11905_vm2, %v18815_v17  ;;  %11970 = vmatprep.mubr.msk.bf16.mxu1 %vm11905_vm2, %v18815_v17  ;;  %vm636_vm2 = vcmp.eq.s32.totalorder %v523_v50, %v14003_v45  ;;  %v565_v50 = vpop.permute.xlu1 %564  ;;  %v586_v39 = vpop.permute.xlu0 %585 }
  0xf5   : > { %12045 = vmatprep.subr.msk.bf16.mxu0 %vm8905_vm1, %v18815_v17  ;;  %12067 = vmatprep.subr.msk.bf16.mxu1 %vm8905_vm1, %v18815_v17  ;;  %vm11915_vm6 = vmpackc.low %vm636_vm2, %vm634_vm3  ;;  %vm649_vm0 = vcmp.eq.s32.totalorder %v565_v50, %v14015_v51  ;;  %vm647_vm1 = vcmp.eq.s32.totalorder %v558_v38, %v14015_v51 }
  0xf6   : > { %vm11925_vm3 = vmpackc.low %vm649_vm0, %vm647_vm1  ;;  %vm654_vm1 = vcmp.eq.s32.totalorder %v586_v39, %v14003_v45 }
  0xfb   : > { %11908 = vmatmul.mubr.msk.bf16.gmra.mxu0 %vm11907_vm7, %v18815_v17  ;;  %11972 = vmatmul.mubr.msk.bf16.gmra.mxu1 %vm11907_vm7, %v18815_v17  ;;  %vm11917_vm7 = vmpackc.low %vm641_vm4, %vm639_vm5  ;;  %vm648_vm4 = vcmp.eq.s32.totalorder %v565_v50, %v14003_v45  ;;  %vm646_vm5 = vcmp.eq.s32.totalorder %v558_v38, %v14003_v45 }
  0xfc   : > { %11910 = vmatprep.mubr.msk.bf16.mxu0 %vm11909_vm8, %v18815_v17  ;;  %11974 = vmatprep.mubr.msk.bf16.mxu1 %vm11909_vm8, %v18815_v17  ;;  %vm640_vm8 = vcmp.eq.s32.totalorder %v537_v44, %v14003_v45  ;;  %v579_v44 = vpop.permute.xlu1 %578 }
  0xfd   : > { %vm11919_vm12 = vmpackc.low %vm640_vm8, %vm638_vm9 }
  0xfe   : > { %vm11927_vm8 = vmpackc.low %vm648_vm4, %vm646_vm5  ;;  %vm2128_vm4 = vcmp.eq.s32.totalorder %v14009_v10, %v13835_v19  ;;  %vm2141_vm5 = vcmp.eq.s32.totalorder %v14012_v27, %v13835_v19 }
 0x103   : > { %11912 = vmatmul.mubr.msk.bf16.gmra.mxu0 %vm11911_vm13, %v18815_v17  ;;  %11976 = vmatmul.mubr.msk.bf16.gmra.mxu1 %vm11911_vm13, %v18815_v17  ;;  %vm11921_vm13 = vmpackc.low %vm645_vm11, %vm643_vm10  ;;  %vm652_vm11 = vcmp.eq.s32.totalorder %v579_v44, %v14003_v45  ;;  %vm650_vm10 = vcmp.eq.s32.totalorder %v572_v33, %v14003_v45 }
 0x104   : > { %11914 = vmatprep.mubr.msk.bf16.mxu0 %vm11913_vm14, %v18815_v17  ;;  %11978 = vmatprep.mubr.msk.bf16.mxu1 %vm11913_vm14, %v18815_v17  ;;  %vm644_vm14 = vcmp.eq.s32.totalorder %v551_v5, %v14003_v45  ;;  %v593_v5 = vpop.permute.xlu1 %592 }
 0x105   : > { %vm11923_vm2 = vmpackc.low %vm644_vm14, %vm642_vm15  ;;  %vm656_vm0 = vcmp.eq.s32.totalorder %v593_v5, %v14003_v45 }
 0x106   : > { %vm11931_vm14 = vmpackc.low %vm652_vm11, %vm650_vm10  ;;  %vm2139_vm10 = vcmp.eq.s32.totalorder %v14044_v61, %v13835_v19 }
 0x10b   : > { %11916 = vmatmul.mubr.msk.bf16.gmra.mxu0 %vm11915_vm6, %v18815_v17  ;;  %11980 = vmatmul.mubr.msk.bf16.gmra.mxu1 %vm11915_vm6, %v18815_v17  ;;  %vm653_vm6 = vcmp.eq.s32.totalorder %v579_v44, %v14015_v51 }
 0x10c   : > { %11918 = vmatprep.mubr.msk.bf16.mxu0 %vm11917_vm7, %v18815_v17  ;;  %11982 = vmatprep.mubr.msk.bf16.mxu1 %vm11917_vm7, %v18815_v17  ;;  %vm651_vm7 = vcmp.eq.s32.totalorder %v572_v33, %v14015_v51 }
 0x10d   : > { %vm11929_vm9 = vmpackc.low %vm653_vm6, %vm651_vm7  ;;  %vm2142_vm6 = vcmp.eq.s32.totalorder %v14022_v1, %v13835_v19 }
 0x10e   : > { %vm8907_vm11 = vmpackc.low %vm2142_vm6, %vm2141_vm5  ;;  %vm2121_vm5 = vcmp.eq.s32.totalorder %v14117_v23, %v13835_v19  ;;  %vm2122_vm6 = vcmp.eq.s32.totalorder %v14120_v24, %v13835_v19 }
 0x113   : > { %11920 = vmatmul.mubr.msk.bf16.gmra.mxu0 %vm11919_vm12, %v18815_v17  ;;  %11984 = vmatmul.mubr.msk.bf16.gmra.mxu1 %vm11919_vm12, %v18815_v17  ;;  %vm657_vm12 = vcmp.eq.s32.totalorder %v593_v5, %v14015_v51 }
 0x114   : > { %11922 = vmatprep.mubr.msk.bf16.mxu0 %vm11921_vm13, %v18815_v17  ;;  %11986 = vmatprep.mubr.msk.bf16.mxu1 %vm11921_vm13, %v18815_v17  ;;  %vm655_vm13 = vcmp.eq.s32.totalorder %v586_v39, %v14015_v51 }
 0x115   : > { %vm11933_vm15 = vmpackc.low %vm657_vm12, %vm655_vm13  ;;  %vm2140_vm12 = vcmp.eq.s32.totalorder %v14047_v4, %v13835_v19 }
 0x11b   : > { %11924 = vmatmul.mubr.msk.bf16.gmra.mxu0 %vm11923_vm2, %v18815_v17  ;;  %11988 = vmatmul.mubr.msk.bf16.gmra.mxu1 %vm11923_vm2, %v18815_v17  ;;  %vm11935_vm2 = vmpackc.low %vm656_vm0, %vm654_vm1  ;;  %vm2124_vm0 = vcmp.eq.s32.totalorder %v14071_v18, %v13835_v19  ;;  %vm2137_vm1 = vcmp.eq.s32.totalorder %v14080_v8, %v13835_v19 }
 0x11c   : > { %11926 = vmatprep.mubr.msk.bf16.mxu0 %vm11925_vm3, %v18815_v17  ;;  %11990 = vmatprep.mubr.msk.bf16.mxu1 %vm11925_vm3, %v18815_v17  ;;  %vm2127_vm3 = vcmp.eq.s32.totalorder %v14006_v12, %v13835_v19 }
 0x11d   : > { %vm14438_vm7 = vmpackc.low %vm2128_vm4, %vm2127_vm3 }
 0x123   : > { %11928 = vmatmul.mubr.msk.bf16.gmra.mxu0 %vm11927_vm8, %v18815_v17  ;;  %11992 = vmatmul.mubr.msk.bf16.gmra.mxu1 %vm11927_vm8, %v18815_v17  ;;  %vm2125_vm8 = vcmp.eq.s32.totalorder %v14027_v52, %v13835_v19 }
 0x124   : > { %11930 = vmatprep.mubr.msk.bf16.mxu0 %vm11929_vm9, %v18815_v17  ;;  %11994 = vmatprep.mubr.msk.bf16.mxu1 %vm11929_vm9, %v18815_v17  ;;  %vm2126_vm9 = vcmp.eq.s32.totalorder %v14030_v56, %v13835_v19 }
 0x125   : > { %vm8891_vm13 = vmpackc.low %vm2126_vm9, %vm2125_vm8  ;;  %vm2136_vm8 = vcmp.eq.s32.totalorder %v14130_v31, %v13835_v19 }
 0x126   : > { %vm8895_vm9 = vmpackc.low %vm2122_vm6, %vm2121_vm5 }
 0x12b   : > { %11932 = vmatmul.mubr.msk.bf16.gmra.mxu0 %vm11931_vm14, %v18815_v17  ;;  %11996 = vmatmul.mubr.msk.bf16.gmra.mxu1 %vm11931_vm14, %v18815_v17  ;;  %vm8909_vm14 = vmpackc.low %vm2140_vm12, %vm2139_vm10  ;;  %vm2119_vm10 = vcmp.eq.s32.totalorder %v14165_v22, %v13835_v19  ;;  %vm2120_vm12 = vcmp.eq.s32.totalorder %v14168_v46, %v13835_v19 }
 0x12c   : > { %11934 = vmatprep.mubr.msk.bf16.mxu0 %vm11933_vm15, %v18815_v17  ;;  %11998 = vmatprep.mubr.msk.bf16.mxu1 %vm11933_vm15, %v18815_v17  ;;  %vm2123_vm15 = vcmp.eq.s32.totalorder %v14068_v16, %v13835_v19 }
 0x12d   : > { %vm8893_vm3 = vmpackc.low %vm2124_vm0, %vm2123_vm15 }
 0x12e   : > { %vm8897_vm15 = vmpackc.low %vm2120_vm12, %vm2119_vm10 }
 0x133   : > { %11936 = vmatmul.mubr.msk.bf16.gmra.mxu0 %vm11935_vm2, %v18815_v17  ;;  %12000 = vmatmul.mubr.msk.bf16.gmra.mxu1 %vm11935_vm2, %v18815_v17  ;;  %vm2138_vm2 = vcmp.eq.s32.totalorder %v14083_v20, %v13835_v19 }
 0x134   : > { %vm8911_vm4 = vmpackc.low %vm2138_vm2, %vm2137_vm1  ;;  %vm2117_vm1 = vcmp.eq.s32.totalorder %v14220_v14, %v13835_v19  ;;  %vm2118_vm2 = vcmp.eq.s32.totalorder %v14223_v15, %v13835_v19 }
 0x135   : > { %vm8899_vm5 = vmpackc.low %vm2118_vm2, %vm2117_vm1 }
 0x17b   : > { %v1268_v51 = vpop.f32.mrf.mxu0  ;;  %v1685_v50 = vpop.f32.mrf.mxu1 }
 0x17d   : > { %v1270_v38 = vpop.f32.mrf.mxu0  ;;  %v1687_v44 = vpop.f32.mrf.mxu1 }
 0x17f   : > { %v1272_v33 = vpop.f32.mrf.mxu0  ;;  %v1689_v37 = vpop.f32.mrf.mxu1 }
 0x180   : > { %v14434_v17 = vpack.c.bf16 %v1272_v33, %v1268_v51  ;;  %v14436_v55 = vpack.c.bf16 %v1689_v37, %v1685_v50  ;;  %v18905_v50 = vmov 1.0|1.0  }
 0x181   : > { %v1274_v5 = vpop.f32.mrf.mxu0  ;;  %v1691_v30 = vpop.f32.mrf.mxu1 }
 0x182   : > { %v1428_v45 = vpack.c.bf16 %v1274_v5, %v1270_v38  ;;  %v1845_v39 = vpack.c.bf16 %v1691_v30, %v1687_v44 }
 0x183   : > { %v14442_v43 = vpop.f32.mrf.mxu0  ;;  %v14444_v49 = vpop.f32.mrf.mxu1 }
 0x184   : > { %v2228_v38 = vrot.slane %v1428_v45, 4  ;;  %v2275_v30 = vrot.slane %v1845_v39, 4  ;;  %2061 = vmatprep.mubr.bf16.mxu0 %v1845_v39  ;;  %2101 = vmatprep.mubr.bf16.mxu1 %v1428_v45 }
 0x185   : > { %2062 = vmatmul.mubr.bf16.vlgmr.msra.gmra.mxu0 %v14436_v55  ;;  %2102 = vmatmul.mubr.bf16.vlgmr.msra.gmra.mxu1 %v14434_v17  ;;  %v14459_v37 = vpop.f32.mrf.mxu0  ;;  %v14461_v51 = vpop.f32.mrf.mxu1 }
 0x186   : > { %12046 = vmatpush3.bf16.msk.msra.mxu0 %vm14438_vm7, %v18905_v50  ;;  %12068 = vmatpush3.bf16.msk.msra.mxu1 %vm14438_vm7, %v18905_v50  ;;  %vm2135_vm7 = vcmp.eq.s32.totalorder %v14127_v26, %v13835_v19 }
 0x187   : > { %2263 = vmatprep.mubr.bf16.mxu0 %v2228_v38  ;;  %2310 = vmatprep.mubr.bf16.mxu1 %v2275_v30  ;;  %v14469_v44 = vpop.f32.mrf.mxu0  ;;  %v14471_v33 = vpop.f32.mrf.mxu1 }
 0x188   : > { %12047 = vmatprep.subr.msk.bf16.mxu0 %vm8907_vm11, %v18905_v50  ;;  %12069 = vmatprep.subr.msk.bf16.mxu1 %vm8907_vm11, %v18905_v50  ;;  %vm8913_vm11 = vmpackc.low %vm2136_vm8, %vm2135_vm7  ;;  %vm2115_vm7 = vcmp.eq.s32.totalorder %v14261_v42, %v13835_v19  ;;  %vm2116_vm8 = vcmp.eq.s32.totalorder %v14264_v60, %v13835_v19 }
 0x189   : > { %v14483_v0 = vpop.f32.mrf.mxu0  ;;  %v14485_v5 = vpop.f32.mrf.mxu1  ;;  %vm8901_vm10 = vmpackc.low %vm2116_vm8, %vm2115_vm7 }
 0x18a   : > { %12048 = vmatpush3.bf16.msk.msra.mxu0 %vm8891_vm13, %v18905_v50  ;;  %12070 = vmatpush3.bf16.msk.msra.mxu1 %vm8891_vm13, %v18905_v50  ;;  %vm2133_vm13 = vcmp.eq.s32.totalorder %v14181_v59, %v13835_v19 }
 0x18b   : > { %12049 = vmatprep.subr.msk.bf16.mxu0 %vm8909_vm14, %v18905_v50  ;;  %12071 = vmatprep.subr.msk.bf16.mxu1 %vm8909_vm14, %v18905_v50  ;;  %v14491_v45 = vpop.f32.mrf.mxu0  ;;  %v14493_v39 = vpop.f32.mrf.mxu1  ;;  %vm2134_vm14 = vcmp.eq.s32.totalorder %v14184_v57, %v13835_v19 }
 0x18c   : > { %vm8915_vm0 = vmpackc.low %vm2134_vm14, %vm2133_vm13  ;;  %vm2113_vm13 = vcmp.eq.s32.totalorder %v13805_v3, %v13835_v19  ;;  %vm2114_vm14 = vcmp.eq.s32.totalorder %v14302_v32, %v13835_v19 }
 0x18d   : > { %v14503_v38 = vpop.f32.mrf.mxu0  ;;  %v14505_v30 = vpop.f32.mrf.mxu1  ;;  %vm8903_vm1 = vmpackc.low %vm2114_vm14, %vm2113_vm13  ;;  %vm2333_vm14 = vcmp.eq.s32.totalorder %v14068_v16, %v13846_v25 }
 0x18e   : > { %12050 = vmatpush3.bf16.msk.msra.mxu0 %vm8893_vm3, %v18905_v50  ;;  %12072 = vmatpush3.bf16.msk.msra.mxu1 %vm8893_vm3, %v18905_v50  ;;  %vm2131_vm3 = vcmp.eq.s32.totalorder %v14230_v2, %v13835_v19 }
 0x18f   : > { %12051 = vmatprep.subr.msk.bf16.mxu0 %vm8911_vm4, %v18905_v50  ;;  %12073 = vmatprep.subr.msk.bf16.mxu1 %vm8911_vm4, %v18905_v50  ;;  %v14511_v36 = vpop.f32.mrf.mxu0  ;;  %v14513_v29 = vpop.f32.mrf.mxu1  ;;  %vm2132_vm4 = vcmp.eq.s32.totalorder %v14233_v21, %v13835_v19 }
 0x190   : > { %vm8917_vm6 = vmpackc.low %vm2132_vm4, %vm2131_vm3  ;;  %vm2337_vm3 = vcmp.eq.s32.totalorder %v14006_v12, %v13846_v25  ;;  %vm2338_vm4 = vcmp.eq.s32.totalorder %v14009_v10, %v13846_v25 }
 0x191   : > { %v14523_v54 = vpop.f32.mrf.mxu0  ;;  %v14525_v63 = vpop.f32.mrf.mxu1  ;;  %vm8985_vm7 = vmpackc.low %vm2338_vm4, %vm2337_vm3 }
 0x192   : > { %12052 = vmatpush3.bf16.msk.msra.mxu0 %vm8895_vm9, %v18905_v50  ;;  %12074 = vmatpush3.bf16.msk.msra.mxu1 %vm8895_vm9, %v18905_v50  ;;  %vm2129_vm9 = vcmp.eq.s32.totalorder %v14273_v58, %v13835_v19 }
 0x193   : > { %12053 = vmatprep.subr.msk.bf16.mxu0 %vm8913_vm11, %v18905_v50  ;;  %12075 = vmatprep.subr.msk.bf16.mxu1 %vm8913_vm11, %v18905_v50  ;;  %v1298_v41 = vpop.f32.mrf.mxu0  ;;  %v1715_v48 = vpop.f32.mrf.mxu1  ;;  %vm2130_vm11 = vcmp.eq.s32.totalorder %v14276_v6, %v13835_v19 }
 0x194   : > { %vm8919_vm12 = vmpackc.low %vm2130_vm11, %vm2129_vm9  ;;  %vm2335_vm9 = vcmp.eq.s32.totalorder %v14027_v52, %v13846_v25  ;;  %vm2336_vm11 = vcmp.eq.s32.totalorder %v14030_v56, %v13846_v25 }
 0x195   : > { %v14539_v35 = vpop.f32.mrf.mxu0  ;;  %v14541_v28 = vpop.f32.mrf.mxu1  ;;  %vm8987_vm13 = vmpackc.low %vm2336_vm11, %vm2335_vm9 }
 0x196   : > { %18906 = vst [vmem:[#allocation35_spill] sm:$0xff] %v14539_v35  ;;  %18907 = vst [vmem:[#allocation36_spill] sm:$0xff] %v14541_v28  ;;  %12054 = vmatpush3.bf16.msk.msra.mxu0 %vm8897_vm15, %v18905_v50  ;;  %12076 = vmatpush3.bf16.msk.msra.mxu1 %vm8897_vm15, %v18905_v50  ;;  %vm2353_vm15 = vcmp.eq.s32.totalorder %v13980_v11, %v13846_v25 }
 0x197   : > { %12055 = vmatprep.subr.msk.bf16.mxu0 %vm8915_vm0, %v18905_v50  ;;  %12077 = vmatprep.subr.msk.bf16.mxu1 %vm8915_vm0, %v18905_v50  ;;  %v1302_v9 = vpop.f32.mrf.mxu0  ;;  %v1719_v7 = vpop.f32.mrf.mxu1  ;;  %vm2354_vm0 = vcmp.eq.s32.totalorder %v13983_v13, %v13846_v25 }
 0x198   : > { %v14551_v53 = vpack.c.bf16 %v1302_v9, %v1298_v41  ;;  %v14553_v28 = vpack.c.bf16 %v1719_v7, %v1715_v48  ;;  %vm9001_vm2 = vmpackc.low %vm2354_vm0, %vm2353_vm15  ;;  %vm2334_vm0 = vcmp.eq.s32.totalorder %v14071_v18, %v13846_v25 }
 0x199   : > { %v14559_v35 = vpop.f32.mrf.mxu0  ;;  %v14561_v62 = vpop.f32.mrf.mxu1  ;;  %vm8989_vm3 = vmpackc.low %vm2334_vm0, %vm2333_vm14  ;;  %vm2344_vm14 = vcmp.eq.s32.totalorder %v14184_v57, %v13846_v25 }
 0x19a   : > { %18908 = vst [vmem:[#allocation37_spill] sm:$0xff] %v14551_v53  ;;  %18909 = vst [vmem:[#allocation38_spill] sm:$0xff] %v14553_v28  ;;  %12056 = vmatpush3.bf16.msk.msra.mxu0 %vm8899_vm5, %v18905_v50  ;;  %12078 = vmatpush3.bf16.msk.msra.mxu1 %vm8899_vm5, %v18905_v50  ;;  %vm2351_vm5 = vcmp.eq.s32.totalorder %v14012_v27, %v13846_v25 }
 0x19b   : > { %18910 = vst [vmem:[#allocation39_spill] sm:$0xff] %v14559_v35  ;;  %18911 = vst [vmem:[#allocation40_spill] sm:$0xff] %v14561_v62  ;;  %12057 = vmatprep.subr.msk.bf16.mxu0 %vm8917_vm6, %v18905_v50  ;;  %12079 = vmatprep.subr.msk.bf16.mxu1 %vm8917_vm6, %v18905_v50  ;;  %v1308_v7 = vpop.f32.mrf.mxu0  ;;  %v1725_v9 = vpop.f32.mrf.mxu1  ;;  %vm2352_vm6 = vcmp.eq.s32.totalorder %v14022_v1, %v13846_v25  ;;  %v2227_v35 = vrot.slane %v14434_v17, 4 }
 0x19c   : > { %vm9003_vm8 = vmpackc.low %vm2352_vm6, %vm2351_vm5  ;;  %vm2331_vm5 = vcmp.eq.s32.totalorder %v14117_v23, %v13846_v25  ;;  %vm2332_vm6 = vcmp.eq.s32.totalorder %v14120_v24, %v13846_v25 }
 0x19d   : > { %v14575_v41 = vpop.f32.mrf.mxu0  ;;  %v14577_v48 = vpop.f32.mrf.mxu1  ;;  %vm8991_vm9 = vmpackc.low %vm2332_vm6, %vm2331_vm5 }
 0x19e   : > { %18912 = vst [vmem:[#allocation41_spill] sm:$0xff] %v14575_v41  ;;  %18913 = vst [vmem:[#allocation42_spill] sm:$0xff] %v14577_v48  ;;  %12058 = vmatpush3.bf16.msk.msra.mxu0 %vm8901_vm10, %v18905_v50  ;;  %12080 = vmatpush3.bf16.msk.msra.mxu1 %vm8901_vm10, %v18905_v50  ;;  %vm2349_vm10 = vcmp.eq.s32.totalorder %v14044_v61, %v13846_v25 }
 0x19f   : > { %12059 = vmatprep.subr.msk.bf16.mxu0 %vm8919_vm12, %v18905_v50  ;;  %12081 = vmatprep.subr.msk.bf16.mxu1 %vm8919_vm12, %v18905_v50  ;;  %v1312_v19 = vpop.f32.mrf.mxu0  ;;  %v1729_v28 = vpop.f32.mrf.mxu1  ;;  %vm2350_vm12 = vcmp.eq.s32.totalorder %v14047_v4, %v13846_v25 }
 0x1a0   : > { %v14587_v41 = vpack.c.bf16 %v1312_v19, %v1308_v7  ;;  %v14589_v48 = vpack.c.bf16 %v1729_v28, %v1725_v9  ;;  %v2274_v7 = vrot.slane %v14436_v55, 4  ;;  %v14611_v19 = vpack.c.bf16 %v14483_v0, %v14459_v37  ;;  %vm9005_vm15 = vmpackc.low %vm2350_vm12, %vm2349_vm10 }
 0x1a1   : > { %v14595_v53 = vpop.f32.mrf.mxu0  ;;  %v14597_v62 = vpop.f32.mrf.mxu1  ;;  %v14615_v55 = vpack.c.bf16 %v14485_v5, %v14461_v51  ;;  %vm2329_vm10 = vcmp.eq.s32.totalorder %v14165_v22, %v13846_v25  ;;  %vm2330_vm12 = vcmp.eq.s32.totalorder %v14168_v46, %v13846_v25 }
 0x1a2   : > { %18914 = vst [vmem:[#allocation43_spill] sm:$0xff] %v14589_v48  ;;  %12060 = vmatpush3.bf16.msk.msra.mxu0 %vm8903_vm1, %v18905_v50  ;;  %12082 = vmatpush3.bf16.msk.msra.mxu1 %vm8903_vm1, %v18905_v50  ;;  %vm2347_vm1 = vcmp.eq.s32.totalorder %v14080_v8, %v13846_v25 }
 0x1a3   : > { %12089 = vmatprep.subr.msk.bf16.mxu0 %vm9001_vm2, %v18905_v50  ;;  %12111 = vmatprep.subr.msk.bf16.mxu1 %vm9001_vm2, %v18905_v50  ;;  %v1318_v28 = vpop.f32.mrf.mxu0  ;;  %v1735_v9 = vpop.f32.mrf.mxu1  ;;  %vm2348_vm2 = vcmp.eq.s32.totalorder %v14083_v20, %v13846_v25 }
 0x1a4   : > { %vm9007_vm4 = vmpackc.low %vm2348_vm2, %vm2347_vm1  ;;  %vm2327_vm1 = vcmp.eq.s32.totalorder %v14220_v14, %v13846_v25  ;;  %vm2328_vm2 = vcmp.eq.s32.totalorder %v14223_v15, %v13846_v25 }
 0x1a5   : > { %2264 = vmatmul.mubr.bf16.vlgmr.msra.gmra.mxu0 %v2227_v35  ;;  %2311 = vmatmul.mubr.bf16.vlgmr.msra.gmra.mxu1 %v2274_v7  ;;  %v14621_v17 = vpop.f32.mrf.mxu0  ;;  %v14623_v48 = vpop.f32.mrf.mxu1  ;;  %vm8995_vm5 = vmpackc.low %vm2328_vm2, %vm2327_vm1 }
 0x1a6   : > { %18915 = vst [vmem:[#allocation44_spill] sm:$0xff] %v14623_v48  ;;  %12090 = vmatpush3.bf16.msk.msra.mxu0 %vm8985_vm7, %v18905_v50  ;;  %12112 = vmatpush3.bf16.msk.msra.mxu1 %vm8985_vm7, %v18905_v50  ;;  %vm2345_vm7 = vcmp.eq.s32.totalorder %v14127_v26, %v13846_v25 }
 0x1a7   : > { %12091 = vmatprep.subr.msk.bf16.mxu0 %vm9003_vm8, %v18905_v50  ;;  %12113 = vmatprep.subr.msk.bf16.mxu1 %vm9003_vm8, %v18905_v50  ;;  %v1322_v35 = vpop.f32.mrf.mxu0  ;;  %v1739_v37 = vpop.f32.mrf.mxu1  ;;  %vm2346_vm8 = vcmp.eq.s32.totalorder %v14130_v31, %v13846_v25 }
 0x1a8   : > { %2467 = vmatprep.mubr.bf16.mxu0 %v14611_v19  ;;  %2508 = vmatprep.mubr.bf16.mxu1 %v14615_v55  ;;  %v14635_v51 = vpack.c.bf16 %v1322_v35, %v1318_v28  ;;  %v14637_v0 = vpack.c.bf16 %v1739_v37, %v1735_v9  ;;  %vm9009_vm11 = vmpackc.low %vm2346_vm8, %vm2345_vm7  ;;  %vm2325_vm7 = vcmp.eq.s32.totalorder %v14261_v42, %v13846_v25 }
 0x1a9   : > { %v14643_v5 = vpop.f32.mrf.mxu0  ;;  %v14645_v7 = vpop.f32.mrf.mxu1  ;;  %vm2326_vm8 = vcmp.eq.s32.totalorder %v14264_v60, %v13846_v25 }
 0x1aa   : > { %18916 = vst [vmem:[#allocation45_spill] sm:$0xff] %v14635_v51  ;;  %18917 = vst [vmem:[#allocation46_spill] sm:$0xff] %v14637_v0  ;;  %12092 = vmatpush3.bf16.msk.msra.mxu0 %vm8987_vm13, %v18905_v50  ;;  %12114 = vmatpush3.bf16.msk.msra.mxu1 %vm8987_vm13, %v18905_v50  ;;  %vm2343_vm13 = vcmp.eq.s32.totalorder %v14181_v59, %v13846_v25 }
 0x1ab   : > { %18918 = vst [vmem:[#allocation47_spill] sm:$0xff] %v14645_v7  ;;  %12093 = vmatprep.subr.msk.bf16.mxu0 %vm9005_vm15, %v18905_v50  ;;  %12115 = vmatprep.subr.msk.bf16.mxu1 %vm9005_vm15, %v18905_v50  ;;  %v1328_v28 = vpop.f32.mrf.mxu0  ;;  %v1745_v9 = vpop.f32.mrf.mxu1  ;;  %vm8993_vm15 = vmpackc.low %vm2330_vm12, %vm2329_vm10 }
 0x1ac   : > { %vm9011_vm0 = vmpackc.low %vm2344_vm14, %vm2343_vm13  ;;  %vm2323_vm13 = vcmp.eq.s32.totalorder %v13805_v3, %v13846_v25  ;;  %vm2324_vm14 = vcmp.eq.s32.totalorder %v14302_v32, %v13846_v25 }
 0x1ad   : > { %v14662_v35 = vpop.f32.mrf.mxu0  ;;  %v14664_v37 = vpop.f32.mrf.mxu1  ;;  %vm8997_vm10 = vmpackc.low %vm2326_vm8, %vm2325_vm7  ;;  %vm2533_vm8 = vcmp.eq.s32.totalorder %v14027_v52, %v13867_v34 }
 0x1ae   : > { %18919 = vst [vmem:[#allocation48_spill] sm:$0xff] %v14662_v35  ;;  %18920 = vst [vmem:[#allocation49_spill] sm:$0xff] %v14664_v37  ;;  %12094 = vmatpush3.bf16.msk.msra.mxu0 %vm8989_vm3, %v18905_v50  ;;  %12116 = vmatpush3.bf16.msk.msra.mxu1 %vm8989_vm3, %v18905_v50  ;;  %vm2341_vm3 = vcmp.eq.s32.totalorder %v14230_v2, %v13846_v25 }
 0x1af   : > { %12095 = vmatprep.subr.msk.bf16.mxu0 %vm9007_vm4, %v18905_v50  ;;  %12117 = vmatprep.subr.msk.bf16.mxu1 %vm9007_vm4, %v18905_v50  ;;  %v1332_v0 = vpop.f32.mrf.mxu0  ;;  %v1749_v51 = vpop.f32.mrf.mxu1  ;;  %vm2342_vm4 = vcmp.eq.s32.totalorder %v14233_v21, %v13846_v25  ;;  %vm8999_vm1 = vmpackc.low %vm2324_vm14, %vm2323_vm13  ;;  %vm2531_vm14 = vcmp.eq.s32.totalorder %v14068_v16, %v13867_v34 }
 0x1b0   : > { %v14674_v35 = vpack.c.bf16 %v1332_v0, %v1328_v28  ;;  %v14676_v37 = vpack.c.bf16 %v1749_v51, %v1745_v9  ;;  %vm9013_vm6 = vmpackc.low %vm2342_vm4, %vm2341_vm3  ;;  %vm2535_vm3 = vcmp.eq.s32.totalorder %v14006_v12, %v13867_v34  ;;  %vm2536_vm4 = vcmp.eq.s32.totalorder %v14009_v10, %v13867_v34 }
 0x1b1   : > { %v14682_v7 = vpop.f32.mrf.mxu0  ;;  %v14684_v48 = vpop.f32.mrf.mxu1  ;;  %vm14770_vm7 = vmpackc.low %vm2536_vm4, %vm2535_vm3 }
 0x1b2   : > { %18921 = vst [vmem:[#allocation50_spill] sm:$0xff] %v14674_v35  ;;  %18922 = vst [vmem:[#allocation51_spill] sm:$0xff] %v14676_v37  ;;  %12096 = vmatpush3.bf16.msk.msra.mxu0 %vm8991_vm9, %v18905_v50  ;;  %12118 = vmatpush3.bf16.msk.msra.mxu1 %vm8991_vm9, %v18905_v50  ;;  %vm2339_vm9 = vcmp.eq.s32.totalorder %v14273_v58, %v13846_v25 }
 0x1b3   : > { %18923 = vst [vmem:[#allocation52_spill] sm:$0xff] %v14682_v7  ;;  %18924 = vst [vmem:[#allocation53_spill] sm:$0xff] %v14684_v48  ;;  %12097 = vmatprep.subr.msk.bf16.mxu0 %vm9009_vm11, %v18905_v50  ;;  %12119 = vmatprep.subr.msk.bf16.mxu1 %vm9009_vm11, %v18905_v50  ;;  %v1338_v51 = vpop.f32.mrf.mxu0  ;;  %v1755_v0 = vpop.f32.mrf.mxu1  ;;  %vm2340_vm11 = vcmp.eq.s32.totalorder %v14276_v6, %v13846_v25 }
 0x1b4   : > { %vm9015_vm12 = vmpackc.low %vm2340_vm11, %vm2339_vm9  ;;  %vm2534_vm9 = vcmp.eq.s32.totalorder %v14030_v56, %v13867_v34 }
 0x1b5   : > { %v14698_v28 = vpop.f32.mrf.mxu0  ;;  %v14700_v9 = vpop.f32.mrf.mxu1  ;;  %vm9083_vm13 = vmpackc.low %vm2534_vm9, %vm2533_vm8  ;;  %vm2544_vm8 = vcmp.eq.s32.totalorder %v14130_v31, %v13867_v34 }
 0x1b6   : > { %18925 = vst [vmem:[#allocation54_spill] sm:$0xff] %v14698_v28  ;;  %18926 = vst [vmem:[#allocation55_spill] sm:$0xff] %v14700_v9  ;;  %12098 = vmatpush3.bf16.msk.msra.mxu0 %vm8993_vm15, %v18905_v50  ;;  %12120 = vmatpush3.bf16.msk.msra.mxu1 %vm8993_vm15, %v18905_v50  ;;  %vm2551_vm15 = vcmp.eq.s32.totalorder %v13980_v11, %v13867_v34 }
 0x1b7   : > { %12099 = vmatprep.subr.msk.bf16.mxu0 %vm9011_vm0, %v18905_v50  ;;  %12121 = vmatprep.subr.msk.bf16.mxu1 %vm9011_vm0, %v18905_v50  ;;  %v1342_v37 = vpop.f32.mrf.mxu0  ;;  %v1759_v35 = vpop.f32.mrf.mxu1  ;;  %vm2552_vm0 = vcmp.eq.s32.totalorder %v13983_v13, %v13867_v34 }
 0x1b8   : > { %v14710_v28 = vpack.c.bf16 %v1342_v37, %v1338_v51  ;;  %v14712_v9 = vpack.c.bf16 %v1759_v35, %v1755_v0  ;;  %vm9097_vm2 = vmpackc.low %vm2552_vm0, %vm2551_vm15  ;;  %vm2532_vm0 = vcmp.eq.s32.totalorder %v14071_v18, %v13867_v34 }
 0x1b9   : > { %v14718_v48 = vpop.f32.mrf.mxu0  ;;  %v14720_v7 = vpop.f32.mrf.mxu1  ;;  %vm9085_vm3 = vmpackc.low %vm2532_vm0, %vm2531_vm14  ;;  %vm2542_vm14 = vcmp.eq.s32.totalorder %v14184_v57, %v13867_v34 }
 0x1ba   : > { %18927 = vst [vmem:[#allocation56_spill] sm:$0xff] %v14710_v28  ;;  %18928 = vst [vmem:[#allocation57_spill] sm:$0xff] %v14712_v9  ;;  %12100 = vmatpush3.bf16.msk.msra.mxu0 %vm8995_vm5, %v18905_v50  ;;  %12122 = vmatpush3.bf16.msk.msra.mxu1 %vm8995_vm5, %v18905_v50  ;;  %vm2549_vm5 = vcmp.eq.s32.totalorder %v14012_v27, %v13867_v34 }
 0x1bb   : > { %18929 = vst [vmem:[#allocation58_spill] sm:$0xff] %v14720_v7  ;;  %12101 = vmatprep.subr.msk.bf16.mxu0 %vm9013_vm6, %v18905_v50  ;;  %12123 = vmatprep.subr.msk.bf16.mxu1 %vm9013_vm6, %v18905_v50  ;;  %v1348_v35 = vpop.f32.mrf.mxu0  ;;  %v1765_v37 = vpop.f32.mrf.mxu1  ;;  %vm2550_vm6 = vcmp.eq.s32.totalorder %v14022_v1, %v13867_v34 }
 0x1bc   : > { %vm9099_vm11 = vmpackc.low %vm2550_vm6, %vm2549_vm5  ;;  %vm2529_vm5 = vcmp.eq.s32.totalorder %v14117_v23, %v13867_v34  ;;  %vm2530_vm6 = vcmp.eq.s32.totalorder %v14120_v24, %v13867_v34 }
 0x1bd   : > { %v14734_v51 = vpop.f32.mrf.mxu0  ;;  %v14736_v0 = vpop.f32.mrf.mxu1  ;;  %vm9087_vm9 = vmpackc.low %vm2530_vm6, %vm2529_vm5 }
 0x1be   : > { %18930 = vst [vmem:[#allocation59_spill] sm:$0xff] %v14734_v51  ;;  %18931 = vst [vmem:[#allocation60_spill] sm:$0xff] %v14736_v0  ;;  %12102 = vmatpush3.bf16.msk.msra.mxu0 %vm8997_vm10, %v18905_v50  ;;  %12124 = vmatpush3.bf16.msk.msra.mxu1 %vm8997_vm10, %v18905_v50  ;;  %vm2547_vm10 = vcmp.eq.s32.totalorder %v14044_v61, %v13867_v34 }
 0x1bf   : > { %12103 = vmatprep.subr.msk.bf16.mxu0 %vm9015_vm12, %v18905_v50  ;;  %12125 = vmatprep.subr.msk.bf16.mxu1 %vm9015_vm12, %v18905_v50  ;;  %v1352_v25 = vpop.f32.mrf.mxu0  ;;  %v1769_v9 = vpop.f32.mrf.mxu1  ;;  %vm2548_vm12 = vcmp.eq.s32.totalorder %v14047_v4, %v13867_v34 }
 0x1c0   : > { %v14746_v51 = vpack.c.bf16 %v1352_v25, %v1348_v35  ;;  %v14748_v0 = vpack.c.bf16 %v1769_v9, %v1765_v37  ;;  %v14762_v35 = vpack.c.bf16 %v14469_v44, %v14442_v43  ;;  %v14766_v9 = vpack.c.bf16 %v14471_v33, %v14444_v49  ;;  %vm9101_vm15 = vmpackc.low %vm2548_vm12, %vm2547_vm10 }
 0x1c1   : > { %v14750_v28 = vpop.f32.mrf.mxu0  ;;  %v14752_v7 = vpop.f32.mrf.mxu1  ;;  %v2683_v43 = vrot.slane %v14615_v55, 4  ;;  %vm2527_vm10 = vcmp.eq.s32.totalorder %v14165_v22, %v13867_v34  ;;  %vm2528_vm12 = vcmp.eq.s32.totalorder %v14168_v46, %v13867_v34 }
 0x1c2   : > { %18932 = vst [vmem:[#allocation61_spill] sm:$0xff] %v14746_v51  ;;  %18933 = vst [vmem:[#allocation62_spill] sm:$0xff] %v14748_v0  ;;  %12104 = vmatpush3.bf16.msk.msra.mxu0 %vm8999_vm1, %v18905_v50  ;;  %12126 = vmatpush3.bf16.msk.msra.mxu1 %vm8999_vm1, %v18905_v50  ;;  %v2636_v51 = vrot.slane %v14611_v19, 4  ;;  %vm2545_vm1 = vcmp.eq.s32.totalorder %v14080_v8, %v13867_v34 }
 0x1c3   : > { %12133 = vmatprep.subr.msk.bf16.mxu0 %vm9097_vm2, %v18905_v50  ;;  %12155 = vmatprep.subr.msk.bf16.mxu1 %vm9097_vm2, %v18905_v50  ;;  %v1358_v25 = vpop.f32.mrf.mxu0  ;;  %v1775_v0 = vpop.f32.mrf.mxu1  ;;  %vm2546_vm2 = vcmp.eq.s32.totalorder %v14083_v20, %v13867_v34 }
 0x1c4   : > { %vm9103_vm4 = vmpackc.low %vm2546_vm2, %vm2545_vm1  ;;  %vm2525_vm1 = vcmp.eq.s32.totalorder %v14220_v14, %v13867_v34  ;;  %vm2526_vm2 = vcmp.eq.s32.totalorder %v14223_v15, %v13867_v34 }
 0x1c5   : > { %2468 = vmatmul.mubr.bf16.vlgmr.msra.gmra.mxu0 %v14762_v35  ;;  %2509 = vmatmul.mubr.bf16.vlgmr.msra.gmra.mxu1 %v14766_v9  ;;  %v14789_v49 = vpop.f32.mrf.mxu0  ;;  %v14791_v44 = vpop.f32.mrf.mxu1  ;;  %vm9091_vm5 = vmpackc.low %vm2526_vm2, %vm2525_vm1 }
 0x1c6   : > { %18936 = vst [vmem:[#allocation63_spill] sm:$0xff] %v14791_v44  ;;  %12134 = vmatpush3.bf16.msk.msra.mxu0 %vm14770_vm7, %v18905_v50  ;;  %2671 = vmatprep.mubr.bf16.mxu0 %v2636_v51 }
 0x1c7   : > { %12156 = vmatpush3.bf16.msk.msra.mxu1 %vm14770_vm7, %v18905_v50  ;;  %2718 = vmatprep.mubr.bf16.mxu1 %v2683_v43  ;;  %v1362_v33 = vpop.f32.mrf.mxu0  ;;  %v1779_v19 = vpop.f32.mrf.mxu1  ;;  %vm2543_vm7 = vcmp.eq.s32.totalorder %v14127_v26, %v13867_v34 }
 0x1c8   : > { %12135 = vmatprep.subr.msk.bf16.mxu0 %vm9099_vm11, %v18905_v50  ;;  %12157 = vmatprep.subr.msk.bf16.mxu1 %vm9099_vm11, %v18905_v50  ;;  %v14805_v55 = vpack.c.bf16 %v1362_v33, %v1358_v25  ;;  %v14807_v51 = vpack.c.bf16 %v1779_v19, %v1775_v0  ;;  %vm9105_vm11 = vmpackc.low %vm2544_vm8, %vm2543_vm7  ;;  %vm2523_vm7 = vcmp.eq.s32.totalorder %v14261_v42, %v13867_v34 }
 0x1c9   : > { %v14813_v37 = vpop.f32.mrf.mxu0  ;;  %v14815_v43 = vpop.f32.mrf.mxu1  ;;  %vm2524_vm8 = vcmp.eq.s32.totalorder %v14264_v60, %v13867_v34 }
 0x1ca   : > { %18937 = vst [vmem:[#allocation64_spill] sm:$0xff] %v14805_v55  ;;  %18938 = vst [vmem:[#allocation65_spill] sm:$0xff] %v14807_v51  ;;  %12136 = vmatpush3.bf16.msk.msra.mxu0 %vm9083_vm13, %v18905_v50 }
 0x1cb   : > { %18939 = vst [vmem:[#allocation66_spill] sm:$0xff] %v14813_v37  ;;  %18940 = vst [vmem:[#allocation67_spill] sm:$0xff] %v14815_v43  ;;  %12158 = vmatpush3.bf16.msk.msra.mxu1 %vm9083_vm13, %v18905_v50  ;;  %12137 = vmatprep.subr.msk.bf16.mxu0 %vm9101_vm15, %v18905_v50  ;;  %v1368_v0 = vpop.f32.mrf.mxu0  ;;  %v1785_v25 = vpop.f32.mrf.mxu1  ;;  %vm2541_vm13 = vcmp.eq.s32.totalorder %v14181_v59, %v13867_v34  ;;  %v2635_v37 = vrot.slane %v14762_v35, 4  ;;  %v14952_v35 = vpack.c.bf16 %v14523_v54, %v14503_v38 }
 0x1cc   : > { %12159 = vmatprep.subr.msk.bf16.mxu1 %vm9101_vm15, %v18905_v50  ;;  %vm9089_vm15 = vmpackc.low %vm2528_vm12, %vm2527_vm10 }
 0x1cd   : > { %v14832_v33 = vpop.f32.mrf.mxu0  ;;  %v14834_v19 = vpop.f32.mrf.mxu1  ;;  %vm9107_vm0 = vmpackc.low %vm2542_vm14, %vm2541_vm13  ;;  %vm2521_vm13 = vcmp.eq.s32.totalorder %v13805_v3, %v13867_v34  ;;  %vm2522_vm14 = vcmp.eq.s32.totalorder %v14302_v32, %v13867_v34 }
 0x1ce   : > { %18941 = vst [vmem:[#allocation68_spill] sm:$0xff] %v14832_v33  ;;  %18942 = vst [vmem:[#allocation69_spill] sm:$0xff] %v14834_v19  ;;  %12138 = vmatpush3.bf16.msk.msra.mxu0 %vm9085_vm3, %v18905_v50 }
 0x1cf   : > { %12160 = vmatpush3.bf16.msk.msra.mxu1 %vm9085_vm3, %v18905_v50  ;;  %12139 = vmatprep.subr.msk.bf16.mxu0 %vm9103_vm4, %v18905_v50  ;;  %v1372_v51 = vpop.f32.mrf.mxu0  ;;  %v1789_v55 = vpop.f32.mrf.mxu1  ;;  %vm2539_vm3 = vcmp.eq.s32.totalorder %v14230_v2, %v13867_v34  ;;  %vm9093_vm10 = vmpackc.low %vm2524_vm8, %vm2523_vm7  ;;  %vm2743_vm8 = vcmp.eq.s32.totalorder %v14027_v52, %v13904_v47 }
 0x1d0   : > { %12161 = vmatprep.subr.msk.bf16.mxu1 %vm9103_vm4, %v18905_v50  ;;  %v14844_v33 = vpack.c.bf16 %v1372_v51, %v1368_v0  ;;  %v14846_v19 = vpack.c.bf16 %v1789_v55, %v1785_v25  ;;  %vm2540_vm4 = vcmp.eq.s32.totalorder %v14233_v21, %v13867_v34  ;;  %vm9095_vm1 = vmpackc.low %vm2522_vm14, %vm2521_vm13  ;;  %vm2741_vm14 = vcmp.eq.s32.totalorder %v14068_v16, %v13904_v47 }
 0x1d1   : > { %v14852_v43 = vpop.f32.mrf.mxu0  ;;  %v14854_v44 = vpop.f32.mrf.mxu1  ;;  %vm9109_vm6 = vmpackc.low %vm2540_vm4, %vm2539_vm3  ;;  %vm2745_vm3 = vcmp.eq.s32.totalorder %v14006_v12, %v13904_v47  ;;  %vm2746_vm4 = vcmp.eq.s32.totalorder %v14009_v10, %v13904_v47 }
 0x1d2   : > { %18943 = vst [vmem:[#allocation70_spill] sm:$0xff] %v14844_v33  ;;  %18944 = vst [vmem:[#allocation71_spill] sm:$0xff] %v14846_v19  ;;  %12140 = vmatpush3.bf16.msk.msra.mxu0 %vm9087_vm9, %v18905_v50 }
 0x1d3   : > { %18945 = vst [vmem:[#allocation72_spill] sm:$0xff] %v14852_v43  ;;  %18946 = vst [vmem:[#allocation73_spill] sm:$0xff] %v14854_v44  ;;  %12162 = vmatpush3.bf16.msk.msra.mxu1 %vm9087_vm9, %v18905_v50  ;;  %12141 = vmatprep.subr.msk.bf16.mxu0 %vm9105_vm11, %v18905_v50  ;;  %v1378_v51 = vpop.f32.mrf.mxu0  ;;  %v1795_v55 = vpop.f32.mrf.mxu1  ;;  %vm2537_vm9 = vcmp.eq.s32.totalorder %v14273_v58, %v13867_v34 }
 0x1d4   : > { %12163 = vmatprep.subr.msk.bf16.mxu1 %vm9105_vm11, %v18905_v50  ;;  %vm2538_vm11 = vcmp.eq.s32.totalorder %v14276_v6, %v13867_v34  ;;  %vm14938_vm7 = vmpackc.low %vm2746_vm4, %vm2745_vm3 }
 0x1d5   : > { %v14868_v0 = vpop.f32.mrf.mxu0  ;;  %v14870_v25 = vpop.f32.mrf.mxu1  ;;  %vm9111_vm12 = vmpackc.low %vm2538_vm11, %vm2537_vm9  ;;  %vm2744_vm9 = vcmp.eq.s32.totalorder %v14030_v56, %v13904_v47 }
 0x1d6   : > { %18947 = vst [vmem:[#allocation74_spill] sm:$0xff] %v14868_v0  ;;  %18948 = vst [vmem:[#allocation75_spill] sm:$0xff] %v14870_v25  ;;  %12142 = vmatpush3.bf16.msk.msra.mxu0 %vm9089_vm15, %v18905_v50 }
 0x1d7   : > { %12164 = vmatpush3.bf16.msk.msra.mxu1 %vm9089_vm15, %v18905_v50  ;;  %12143 = vmatprep.subr.msk.bf16.mxu0 %vm9107_vm0, %v18905_v50  ;;  %v1382_v19 = vpop.f32.mrf.mxu0  ;;  %v1799_v33 = vpop.f32.mrf.mxu1  ;;  %vm2761_vm15 = vcmp.eq.s32.totalorder %v13980_v11, %v13904_v47  ;;  %vm14977_vm13 = vmpackc.low %vm2744_vm9, %vm2743_vm8  ;;  %vm2754_vm8 = vcmp.eq.s32.totalorder %v14130_v31, %v13904_v47 }
 0x1d8   : > { %12165 = vmatprep.subr.msk.bf16.mxu1 %vm9107_vm0, %v18905_v50  ;;  %v14880_v0 = vpack.c.bf16 %v1382_v19, %v1378_v51  ;;  %v14882_v25 = vpack.c.bf16 %v1799_v33, %v1795_v55  ;;  %vm2762_vm0 = vcmp.eq.s32.totalorder %v13983_v13, %v13904_v47 }
 0x1d9   : > { %v14888_v44 = vpop.f32.mrf.mxu0  ;;  %v14890_v43 = vpop.f32.mrf.mxu1  ;;  %vm14912_vm2 = vmpackc.low %vm2762_vm0, %vm2761_vm15  ;;  %vm2742_vm0 = vcmp.eq.s32.totalorder %v14071_v18, %v13904_v47 }
 0x1da   : > { %18949 = vst [vmem:[#allocation76_spill] sm:$0xff] %v14880_v0  ;;  %18950 = vst [vmem:[#allocation77_spill] sm:$0xff] %v14882_v25  ;;  %12144 = vmatpush3.bf16.msk.msra.mxu0 %vm9091_vm5, %v18905_v50 }
 0x1db   : > { %18951 = vst [vmem:[#allocation78_spill] sm:$0xff] %v14888_v44  ;;  %18952 = vst [vmem:[#allocation79_spill] sm:$0xff] %v14890_v43  ;;  %12166 = vmatpush3.bf16.msk.msra.mxu1 %vm9091_vm5, %v18905_v50  ;;  %12145 = vmatprep.subr.msk.bf16.mxu0 %vm9109_vm6, %v18905_v50  ;;  %v1388_v19 = vpop.f32.mrf.mxu0  ;;  %v1805_v33 = vpop.f32.mrf.mxu1  ;;  %vm2759_vm5 = vcmp.eq.s32.totalorder %v14012_v27, %v13904_v47 }
 0x1dc   : > { %12167 = vmatprep.subr.msk.bf16.mxu1 %vm9109_vm6, %v18905_v50  ;;  %vm2760_vm6 = vcmp.eq.s32.totalorder %v14022_v1, %v13904_v47  ;;  %vm9181_vm3 = vmpackc.low %vm2742_vm0, %vm2741_vm14  ;;  %vm2752_vm14 = vcmp.eq.s32.totalorder %v14184_v57, %v13904_v47 }
 0x1dd   : > { %v14904_v51 = vpop.f32.mrf.mxu0  ;;  %v14906_v55 = vpop.f32.mrf.mxu1  ;;  %vm14954_vm11 = vmpackc.low %vm2760_vm6, %vm2759_vm5  ;;  %vm2739_vm5 = vcmp.eq.s32.totalorder %v14117_v23, %v13904_v47  ;;  %vm2740_vm6 = vcmp.eq.s32.totalorder %v14120_v24, %v13904_v47 }
 0x1de   : > { %18953 = vst [vmem:[#allocation80_spill] sm:$0xff] %v14904_v51  ;;  %18954 = vst [vmem:[#allocation81_spill] sm:$0xff] %v14906_v55  ;;  %12146 = vmatpush3.bf16.msk.msra.mxu0 %vm9093_vm10, %v18905_v50 }
 0x1df   : > { %12168 = vmatpush3.bf16.msk.msra.mxu1 %vm9093_vm10, %v18905_v50  ;;  %12147 = vmatprep.subr.msk.bf16.mxu0 %vm9111_vm12, %v18905_v50  ;;  %v1392_v25 = vpop.f32.mrf.mxu0  ;;  %v1809_v0 = vpop.f32.mrf.mxu1  ;;  %vm2757_vm10 = vcmp.eq.s32.totalorder %v14044_v61, %v13904_v47  ;;  %vm9183_vm9 = vmpackc.low %vm2740_vm6, %vm2739_vm5 }
 0x1e0   : > { %12169 = vmatprep.subr.msk.bf16.mxu1 %vm9111_vm12, %v18905_v50  ;;  %v14920_v55 = vpack.c.bf16 %v1392_v25, %v1388_v19  ;;  %v14922_v51 = vpack.c.bf16 %v1809_v0, %v1805_v33  ;;  %v2682_v33 = vrot.slane %v14766_v9, 4  ;;  %vm2758_vm12 = vcmp.eq.s32.totalorder %v14047_v4, %v13904_v47 }
 0x1e1   : > { %v14924_v43 = vpop.f32.mrf.mxu0  ;;  %v14926_v44 = vpop.f32.mrf.mxu1  ;;  %vm9197_vm15 = vmpackc.low %vm2758_vm12, %vm2757_vm10  ;;  %vm2737_vm10 = vcmp.eq.s32.totalorder %v14165_v22, %v13904_v47  ;;  %vm2738_vm12 = vcmp.eq.s32.totalorder %v14168_v46, %v13904_v47 }
 0x1e2   : > { %18957 = vst [vmem:[#allocation82_spill] sm:$0xff] %v14920_v55  ;;  %18958 = vst [vmem:[#allocation83_spill] sm:$0xff] %v14922_v51  ;;  %12148 = vmatpush3.bf16.msk.msra.mxu0 %vm9095_vm1, %v18905_v50  ;;  %v14968_v55 = vpack.c.bf16 %v14525_v63, %v14505_v30 }
 0x1e3   : > { %12170 = vmatpush3.bf16.msk.msra.mxu1 %vm9095_vm1, %v18905_v50  ;;  %12177 = vmatprep.subr.msk.bf16.mxu0 %vm14912_vm2, %v18905_v50  ;;  %v1398_v25 = vpop.f32.mrf.mxu0  ;;  %v1815_v19 = vpop.f32.mrf.mxu1  ;;  %vm2755_vm1 = vcmp.eq.s32.totalorder %v14080_v8, %v13904_v47 }
 0x1e4   : > { %12199 = vmatprep.subr.msk.bf16.mxu1 %vm14912_vm2, %v18905_v50  ;;  %vm2756_vm2 = vcmp.eq.s32.totalorder %v14083_v20, %v13904_v47 }
 0x1e5   : > { %2672 = vmatmul.mubr.bf16.vlgmr.msra.gmra.mxu0 %v2635_v37  ;;  %v14962_v9 = vpop.f32.mrf.mxu0  ;;  %v14964_v34 = vpop.f32.mrf.mxu1  ;;  %vm9199_vm4 = vmpackc.low %vm2756_vm2, %vm2755_vm1  ;;  %vm2735_vm1 = vcmp.eq.s32.totalorder %v14220_v14, %v13904_v47  ;;  %vm2736_vm2 = vcmp.eq.s32.totalorder %v14223_v15, %v13904_v47 }
 0x1e6   : > { %2719 = vmatmul.mubr.bf16.vlgmr.msra.gmra.mxu1 %v2682_v33  ;;  %12178 = vmatpush3.bf16.msk.msra.mxu0 %vm14938_vm7, %v18905_v50  ;;  %vm9187_vm5 = vmpackc.low %vm2736_vm2, %vm2735_vm1 }
 0x1e7   : > { %2875 = vmatprep.mubr.bf16.mxu0 %v14952_v35  ;;  %12200 = vmatpush3.bf16.msk.msra.mxu1 %vm14938_vm7, %v18905_v50  ;;  %v1402_v63 = vpop.f32.mrf.mxu0  ;;  %v1819_v38 = vpop.f32.mrf.mxu1  ;;  %vm2753_vm7 = vcmp.eq.s32.totalorder %v14127_v26, %v13904_v47 }
 0x1e8   : > { %2916 = vmatprep.mubr.bf16.mxu1 %v14968_v55  ;;  %12179 = vmatprep.subr.msk.bf16.mxu0 %vm14954_vm11, %v18905_v50  ;;  %v14992_v30 = vpack.c.bf16 %v1402_v63, %v1398_v25  ;;  %v14994_v37 = vpack.c.bf16 %v1819_v38, %v1815_v19 }
 0x1e9   : > { %12201 = vmatprep.subr.msk.bf16.mxu1 %vm14954_vm11, %v18905_v50  ;;  %v15003_v0 = vpop.f32.mrf.mxu0  ;;  %v15005_v33 = vpop.f32.mrf.mxu1  ;;  %vm9201_vm11 = vmpackc.low %vm2754_vm8, %vm2753_vm7  ;;  %vm2733_vm7 = vcmp.eq.s32.totalorder %v14261_v42, %v13904_v47  ;;  %vm2734_vm8 = vcmp.eq.s32.totalorder %v14264_v60, %v13904_v47 }
 0x1ea   : > { %18965 = vst [vmem:[#allocation84_spill] sm:$0xff] %v14992_v30  ;;  %18966 = vst [vmem:[#allocation85_spill] sm:$0xff] %v14994_v37  ;;  %12180 = vmatpush3.bf16.msk.msra.mxu0 %vm14977_vm13, %v18905_v50 }
 0x1eb   : > { %12202 = vmatpush3.bf16.msk.msra.mxu1 %vm14977_vm13, %v18905_v50  ;;  %12181 = vmatprep.subr.msk.bf16.mxu0 %vm9197_vm15, %v18905_v50  ;;  %v1408_v51 = vpop.f32.mrf.mxu0  ;;  %v1825_v25 = vpop.f32.mrf.mxu1  ;;  %vm2751_vm13 = vcmp.eq.s32.totalorder %v14181_v59, %v13904_v47 }
 0x1ec   : > { %12203 = vmatprep.subr.msk.bf16.mxu1 %vm9197_vm15, %v18905_v50  ;;  %vm9185_vm15 = vmpackc.low %vm2738_vm12, %vm2737_vm10 }
 0x1ed   : > { %v15026_v19 = vpop.f32.mrf.mxu0  ;;  %v15028_v54 = vpop.f32.mrf.mxu1  ;;  %vm9203_vm0 = vmpackc.low %vm2752_vm14, %vm2751_vm13  ;;  %vm2731_vm13 = vcmp.eq.s32.totalorder %v13805_v3, %v13904_v47  ;;  %vm2732_vm14 = vcmp.eq.s32.totalorder %v14302_v32, %v13904_v47 }
 0x1ee   : > { %18967 = vst [vmem:[#allocation86_spill] sm:$0xff] %v15026_v19  ;;  %18968 = vst [vmem:[#allocation87_spill] sm:$0xff] %v15028_v54  ;;  %12182 = vmatpush3.bf16.msk.msra.mxu0 %vm9181_vm3, %v18905_v50 }
 0x1ef   : > { %12204 = vmatpush3.bf16.msk.msra.mxu1 %vm9181_vm3, %v18905_v50  ;;  %12183 = vmatprep.subr.msk.bf16.mxu0 %vm9199_vm4, %v18905_v50  ;;  %v1412_v63 = vpop.f32.mrf.mxu0  ;;  %v1829_v38 = vpop.f32.mrf.mxu1  ;;  %vm2749_vm3 = vcmp.eq.s32.totalorder %v14230_v2, %v13904_v47  ;;  %vm9189_vm10 = vmpackc.low %vm2734_vm8, %vm2733_vm7  ;;  %vm2941_vm8 = vcmp.eq.s32.totalorder %v14027_v52, %v13883_v40 }
 0x1f0   : > { %12205 = vmatprep.subr.msk.bf16.mxu1 %vm9199_vm4, %v18905_v50  ;;  %v15038_v19 = vpack.c.bf16 %v1412_v63, %v1408_v51  ;;  %v15040_v54 = vpack.c.bf16 %v1829_v38, %v1825_v25  ;;  %vm2750_vm4 = vcmp.eq.s32.totalorder %v14233_v21, %v13904_v47  ;;  %vm9191_vm1 = vmpackc.low %vm2732_vm14, %vm2731_vm13 }
 0x1f1   : > { %v15046_v37 = vpop.f32.mrf.mxu0  ;;  %v15048_v30 = vpop.f32.mrf.mxu1  ;;  %vm9205_vm6 = vmpackc.low %vm2750_vm4, %vm2749_vm3  ;;  %vm2943_vm3 = vcmp.eq.s32.totalorder %v14006_v12, %v13883_v40  ;;  %vm2944_vm4 = vcmp.eq.s32.totalorder %v14009_v10, %v13883_v40 }
 0x1f2   : > { %18969 = vst [vmem:[#allocation88_spill] sm:$0xff] %v15038_v19  ;;  %18970 = vst [vmem:[#allocation89_spill] sm:$0xff] %v15040_v54  ;;  %12184 = vmatpush3.bf16.msk.msra.mxu0 %vm9183_vm9, %v18905_v50 }
 0x1f3   : > { %12206 = vmatpush3.bf16.msk.msra.mxu1 %vm9183_vm9, %v18905_v50  ;;  %12185 = vmatprep.subr.msk.bf16.mxu0 %vm9201_vm11, %v18905_v50  ;;  %v1418_v51 = vpop.f32.mrf.mxu0  ;;  %v1835_v25 = vpop.f32.mrf.mxu1  ;;  %vm2747_vm9 = vcmp.eq.s32.totalorder %v14273_v58, %v13904_v47  ;;  %vm9273_vm7 = vmpackc.low %vm2944_vm4, %vm2943_vm3 }
 0x1f4   : > { %12207 = vmatprep.subr.msk.bf16.mxu1 %vm9201_vm11, %v18905_v50  ;;  %vm2748_vm11 = vcmp.eq.s32.totalorder %v14276_v6, %v13904_v47  ;;  %v15109_v47 = vpack.c.bf16 %v14511_v36, %v14491_v45  ;;  %v3044_v36 = vrot.slane %v14952_v35, 4  ;;  %v18975_v45 = vld [vmem:[#allocation31_spill] sm:$0xff] }
 0x1f5   : > { %v15062_v63 = vpop.f32.mrf.mxu0  ;;  %v15064_v38 = vpop.f32.mrf.mxu1  ;;  %vm9207_vm12 = vmpackc.low %vm2748_vm11, %vm2747_vm9  ;;  %vm2942_vm9 = vcmp.eq.s32.totalorder %v14030_v56, %v13883_v40  ;;  %v18977_v35 = vld [vmem:[#allocation39_spill] sm:$0xff] }
 0x1f6   : > { %18971 = vst [vmem:[#allocation90_spill] sm:$0xff] %v15062_v63  ;;  %18972 = vst [vmem:[#allocation91_spill] sm:$0xff] %v15064_v38  ;;  %12186 = vmatpush3.bf16.msk.msra.mxu0 %vm9185_vm15, %v18905_v50 }
 0x1f7   : > { %12208 = vmatpush3.bf16.msk.msra.mxu1 %vm9185_vm15, %v18905_v50  ;;  %12187 = vmatprep.subr.msk.bf16.mxu0 %vm9203_vm0, %v18905_v50  ;;  %v1422_v54 = vpop.f32.mrf.mxu0  ;;  %v1839_v19 = vpop.f32.mrf.mxu1  ;;  %vm2959_vm15 = vcmp.eq.s32.totalorder %v13980_v11, %v13883_v40  ;;  %vm9275_vm13 = vmpackc.low %vm2942_vm9, %vm2941_vm8  ;;  %vm2952_vm8 = vcmp.eq.s32.totalorder %v14130_v31, %v13883_v40 }
 0x1f8   : > { %12209 = vmatprep.subr.msk.bf16.mxu1 %vm9203_vm0, %v18905_v50  ;;  %v15074_v63 = vpack.c.bf16 %v1422_v54, %v1418_v51  ;;  %v15076_v38 = vpack.c.bf16 %v1839_v19, %v1835_v25  ;;  %vm2960_vm0 = vcmp.eq.s32.totalorder %v13983_v13, %v13883_v40  ;;  %v15115_v19 = vpack.c.bf16 %v14513_v29, %v14493_v39  ;;  %v18978_v51 = vld [vmem:[#allocation36_spill] sm:$0xff] }
 0x1f9   : > { %vm9289_vm2 = vmpackc.low %vm2960_vm0, %vm2959_vm15  ;;  %v3091_v29 = vrot.slane %v14968_v55, 4  ;;  %vm2939_vm15 = vcmp.eq.s32.totalorder %v14068_v16, %v13883_v40  ;;  %vm2940_vm0 = vcmp.eq.s32.totalorder %v14071_v18, %v13883_v40  ;;  %v18976_v55 = vld [vmem:[#allocation35_spill] sm:$0xff]  ;;  %v18979_v25 = vld [vmem:[#allocation40_spill] sm:$0xff] }
 0x1fa   : > { %18973 = vst [vmem:[#allocation92_spill] sm:$0xff] %v15074_v63  ;;  %18974 = vst [vmem:[#allocation93_spill] sm:$0xff] %v15076_v38  ;;  %12188 = vmatpush3.bf16.msk.msra.mxu0 %vm9187_vm5, %v18905_v50  ;;  %v3090_v39 = vrot.slane %v15115_v19, 4  ;;  %v15226_v54 = vpack.c.bf16 %v18977_v35, %v18976_v55 }
 0x1fb   : > { %12210 = vmatpush3.bf16.msk.msra.mxu1 %vm9187_vm5, %v18905_v50  ;;  %12189 = vmatprep.subr.msk.bf16.mxu0 %vm9205_vm6, %v18905_v50  ;;  %vm2957_vm5 = vcmp.eq.s32.totalorder %v14012_v27, %v13883_v40  ;;  %vm9277_vm3 = vmpackc.low %vm2940_vm0, %vm2939_vm15 }
 0x1fc   : > { %12211 = vmatprep.subr.msk.bf16.mxu1 %vm9205_vm6, %v18905_v50  ;;  %vm2958_vm6 = vcmp.eq.s32.totalorder %v14022_v1, %v13883_v40 }
 0x1fd   : > { %vm9291_vm11 = vmpackc.low %vm2958_vm6, %vm2957_vm5  ;;  %vm2937_vm5 = vcmp.eq.s32.totalorder %v14117_v23, %v13883_v40  ;;  %vm2938_vm6 = vcmp.eq.s32.totalorder %v14120_v24, %v13883_v40 }
 0x1fe   : > { %12190 = vmatpush3.bf16.msk.msra.mxu0 %vm9189_vm10, %v18905_v50  ;;  %vm9279_vm9 = vmpackc.low %vm2938_vm6, %vm2937_vm5 }
 0x1ff   : > { %12212 = vmatpush3.bf16.msk.msra.mxu1 %vm9189_vm10, %v18905_v50  ;;  %12191 = vmatprep.subr.msk.bf16.mxu0 %vm9207_vm12, %v18905_v50  ;;  %vm2955_vm10 = vcmp.eq.s32.totalorder %v14044_v61, %v13883_v40 }
 0x200   : > { %12213 = vmatprep.subr.msk.bf16.mxu1 %vm9207_vm12, %v18905_v50  ;;  %vm2956_vm12 = vcmp.eq.s32.totalorder %v14047_v4, %v13883_v40 }
 0x201   : > { %vm9293_vm14 = vmpackc.low %vm2956_vm12, %vm2955_vm10  ;;  %vm2935_vm10 = vcmp.eq.s32.totalorder %v14165_v22, %v13883_v40  ;;  %vm2936_vm12 = vcmp.eq.s32.totalorder %v14168_v46, %v13883_v40 }
 0x202   : > { %12192 = vmatpush3.bf16.msk.msra.mxu0 %vm9191_vm1, %v18905_v50  ;;  %vm9281_vm15 = vmpackc.low %vm2936_vm12, %vm2935_vm10 }
 0x203   : > { %12214 = vmatpush3.bf16.msk.msra.mxu1 %vm9191_vm1, %v18905_v50  ;;  %12221 = vmatprep.subr.msk.bf16.mxu0 %vm9289_vm2, %v18905_v50  ;;  %vm2953_vm1 = vcmp.eq.s32.totalorder %v14080_v8, %v13883_v40 }
 0x204   : > { %12243 = vmatprep.subr.msk.bf16.mxu1 %vm9289_vm2, %v18905_v50  ;;  %vm2954_vm2 = vcmp.eq.s32.totalorder %v14083_v20, %v13883_v40 }
 0x205   : > { %2876 = vmatmul.mubr.bf16.vlgmr.msra.gmra.mxu0 %v15109_v47  ;;  %vm9295_vm4 = vmpackc.low %vm2954_vm2, %vm2953_vm1  ;;  %vm2933_vm1 = vcmp.eq.s32.totalorder %v14220_v14, %v13883_v40  ;;  %vm2934_vm2 = vcmp.eq.s32.totalorder %v14223_v15, %v13883_v40 }
 0x206   : > { %2917 = vmatmul.mubr.bf16.vlgmr.msra.gmra.mxu1 %v15115_v19  ;;  %12222 = vmatpush3.bf16.msk.msra.mxu0 %vm9273_vm7, %v18905_v50  ;;  %vm9283_vm5 = vmpackc.low %vm2934_vm2, %vm2933_vm1  ;;  %v18980_v19 = vld [vmem:[#allocation27_spill] sm:$0xff] }
 0x207   : > { %3079 = vmatprep.mubr.bf16.mxu0 %v3044_v36  ;;  %12244 = vmatpush3.bf16.msk.msra.mxu1 %vm9273_vm7, %v18905_v50  ;;  %vm2951_vm7 = vcmp.eq.s32.totalorder %v14127_v26, %v13883_v40  ;;  %v15323_v36 = vpop.f32.mrf.mxu0 }
 0x208   : > { %3126 = vmatprep.mubr.bf16.mxu1 %v3091_v29  ;;  %12223 = vmatprep.subr.msk.bf16.mxu0 %vm9291_vm11, %v18905_v50  ;;  %18981 = vst [vmem:[#allocation31_spill] sm:$0xff] %v15323_v36  ;;  %v15325_v29 = vpop.f32.mrf.mxu1 }
 0x209   : > { %12245 = vmatprep.subr.msk.bf16.mxu1 %vm9291_vm11, %v18905_v50  ;;  %vm9297_vm11 = vmpackc.low %vm2952_vm8, %vm2951_vm7  ;;  %vm2931_vm7 = vcmp.eq.s32.totalorder %v14261_v42, %v13883_v40  ;;  %vm2932_vm8 = vcmp.eq.s32.totalorder %v14264_v60, %v13883_v40  ;;  %18982 = vst [vmem:[#allocation35_spill] sm:$0xff] %v15325_v29 }
 0x20a   : > { %12224 = vmatpush3.bf16.msk.msra.mxu0 %vm9275_vm13, %v18905_v50  ;;  %vm9285_vm10 = vmpackc.low %vm2932_vm8, %vm2931_vm7  ;;  %vm3151_vm8 = vcmp.eq.s32.totalorder %v14027_v52, %v18975_v45 }
 0x20b   : > { %12246 = vmatpush3.bf16.msk.msra.mxu1 %vm9275_vm13, %v18905_v50  ;;  %12225 = vmatprep.subr.msk.bf16.mxu0 %vm9293_vm14, %v18905_v50  ;;  %vm2949_vm13 = vcmp.eq.s32.totalorder %v14181_v59, %v13883_v40 }
 0x20c   : > { %12247 = vmatprep.subr.msk.bf16.mxu1 %vm9293_vm14, %v18905_v50  ;;  %vm2950_vm14 = vcmp.eq.s32.totalorder %v14184_v57, %v13883_v40 }
 0x20d   : > { %vm9299_vm0 = vmpackc.low %vm2950_vm14, %vm2949_vm13  ;;  %vm2929_vm13 = vcmp.eq.s32.totalorder %v13805_v3, %v13883_v40  ;;  %vm2930_vm14 = vcmp.eq.s32.totalorder %v14302_v32, %v13883_v40 }
 0x20e   : > { %12226 = vmatpush3.bf16.msk.msra.mxu0 %vm9277_vm3, %v18905_v50  ;;  %vm9287_vm1 = vmpackc.low %vm2930_vm14, %vm2929_vm13 }
 0x20f   : > { %12248 = vmatpush3.bf16.msk.msra.mxu1 %vm9277_vm3, %v18905_v50  ;;  %12227 = vmatprep.subr.msk.bf16.mxu0 %vm9295_vm4, %v18905_v50  ;;  %vm2947_vm3 = vcmp.eq.s32.totalorder %v14230_v2, %v13883_v40 }
 0x210   : > { %12249 = vmatprep.subr.msk.bf16.mxu1 %vm9295_vm4, %v18905_v50  ;;  %vm2948_vm4 = vcmp.eq.s32.totalorder %v14233_v21, %v13883_v40 }
 0x211   : > { %vm9301_vm6 = vmpackc.low %vm2948_vm4, %vm2947_vm3  ;;  %vm3153_vm3 = vcmp.eq.s32.totalorder %v14006_v12, %v18975_v45  ;;  %vm3154_vm4 = vcmp.eq.s32.totalorder %v14009_v10, %v18975_v45 }
 0x212   : > { %12228 = vmatpush3.bf16.msk.msra.mxu0 %vm9279_vm9, %v18905_v50  ;;  %vm9369_vm7 = vmpackc.low %vm3154_vm4, %vm3153_vm3 }
 0x213   : > { %12250 = vmatpush3.bf16.msk.msra.mxu1 %vm9279_vm9, %v18905_v50  ;;  %12229 = vmatprep.subr.msk.bf16.mxu0 %vm9297_vm11, %v18905_v50  ;;  %vm2945_vm9 = vcmp.eq.s32.totalorder %v14273_v58, %v13883_v40 }
 0x214   : > { %12251 = vmatprep.subr.msk.bf16.mxu1 %vm9297_vm11, %v18905_v50  ;;  %vm2946_vm11 = vcmp.eq.s32.totalorder %v14276_v6, %v13883_v40  ;;  %v3043_v40 = vrot.slane %v15109_v47, 4  ;;  %v15234_v47 = vpack.c.bf16 %v18979_v25, %v18978_v51  ;;  %v18986_v25 = vld [vmem:[#allocation38_spill] sm:$0xff] }
 0x215   : > { %vm9303_vm12 = vmpackc.low %vm2946_vm11, %vm2945_vm9  ;;  %vm3152_vm9 = vcmp.eq.s32.totalorder %v14030_v56, %v18975_v45 }
 0x216   : > { %12230 = vmatpush3.bf16.msk.msra.mxu0 %vm9281_vm15, %v18905_v50  ;;  %vm9371_vm13 = vmpackc.low %vm3152_vm9, %vm3151_vm8  ;;  %vm3162_vm8 = vcmp.eq.s32.totalorder %v14130_v31, %v18975_v45  ;;  %v3499_v51 = vrot.slane %v15234_v47, 4 }
 0x217   : > { %12252 = vmatpush3.bf16.msk.msra.mxu1 %vm9281_vm15, %v18905_v50  ;;  %12231 = vmatprep.subr.msk.bf16.mxu0 %vm9299_vm0, %v18905_v50  ;;  %vm3169_vm15 = vcmp.eq.s32.totalorder %v13980_v11, %v18975_v45 }
 0x218   : > { %12253 = vmatprep.subr.msk.bf16.mxu1 %vm9299_vm0, %v18905_v50  ;;  %vm3170_vm0 = vcmp.eq.s32.totalorder %v13983_v13, %v18975_v45 }
 0x219   : > { %vm9385_vm2 = vmpackc.low %vm3170_vm0, %vm3169_vm15  ;;  %vm3149_vm15 = vcmp.eq.s32.totalorder %v14068_v16, %v18975_v45  ;;  %vm3150_vm0 = vcmp.eq.s32.totalorder %v14071_v18, %v18975_v45 }
 0x21a   : > { %12232 = vmatpush3.bf16.msk.msra.mxu0 %vm9283_vm5, %v18905_v50  ;;  %vm9373_vm3 = vmpackc.low %vm3150_vm0, %vm3149_vm15 }
 0x21b   : > { %12254 = vmatpush3.bf16.msk.msra.mxu1 %vm9283_vm5, %v18905_v50  ;;  %12233 = vmatprep.subr.msk.bf16.mxu0 %vm9301_vm6, %v18905_v50  ;;  %vm3167_vm5 = vcmp.eq.s32.totalorder %v14012_v27, %v18975_v45 }
 0x21c   : > { %12255 = vmatprep.subr.msk.bf16.mxu1 %vm9301_vm6, %v18905_v50  ;;  %vm3168_vm6 = vcmp.eq.s32.totalorder %v14022_v1, %v18975_v45 }
 0x21d   : > { %vm9387_vm11 = vmpackc.low %vm3168_vm6, %vm3167_vm5  ;;  %vm3147_vm5 = vcmp.eq.s32.totalorder %v14117_v23, %v18975_v45  ;;  %vm3148_vm6 = vcmp.eq.s32.totalorder %v14120_v24, %v18975_v45 }
 0x21e   : > { %12234 = vmatpush3.bf16.msk.msra.mxu0 %vm9285_vm10, %v18905_v50  ;;  %vm9375_vm9 = vmpackc.low %vm3148_vm6, %vm3147_vm5 }
 0x21f   : > { %12256 = vmatpush3.bf16.msk.msra.mxu1 %vm9285_vm10, %v18905_v50  ;;  %12235 = vmatprep.subr.msk.bf16.mxu0 %vm9303_vm12, %v18905_v50  ;;  %vm3165_vm10 = vcmp.eq.s32.totalorder %v14044_v61, %v18975_v45 }
 0x220   : > { %12257 = vmatprep.subr.msk.bf16.mxu1 %vm9303_vm12, %v18905_v50  ;;  %vm3166_vm12 = vcmp.eq.s32.totalorder %v14047_v4, %v18975_v45 }
 0x221   : > { %vm9389_vm14 = vmpackc.low %vm3166_vm12, %vm3165_vm10  ;;  %vm3145_vm10 = vcmp.eq.s32.totalorder %v14165_v22, %v18975_v45  ;;  %vm3146_vm12 = vcmp.eq.s32.totalorder %v14168_v46, %v18975_v45 }
 0x222   : > { %12236 = vmatpush3.bf16.msk.msra.mxu0 %vm9287_vm1, %v18905_v50  ;;  %vm9377_vm15 = vmpackc.low %vm3146_vm12, %vm3145_vm10 }
 0x223   : > { %12258 = vmatpush3.bf16.msk.msra.mxu1 %vm9287_vm1, %v18905_v50  ;;  %12265 = vmatprep.subr.msk.bf16.mxu0 %vm9385_vm2, %v18905_v50  ;;  %vm3163_vm1 = vcmp.eq.s32.totalorder %v14080_v8, %v18975_v45 }
 0x224   : > { %12287 = vmatprep.subr.msk.bf16.mxu1 %vm9385_vm2, %v18905_v50  ;;  %vm3164_vm2 = vcmp.eq.s32.totalorder %v14083_v20, %v18975_v45 }
 0x225   : > { %3080 = vmatmul.mubr.bf16.vlgmr.msra.gmra.mxu0 %v3043_v40  ;;  %vm9391_vm4 = vmpackc.low %vm3164_vm2, %vm3163_vm1  ;;  %vm3143_vm1 = vcmp.eq.s32.totalorder %v14220_v14, %v18975_v45  ;;  %vm3144_vm2 = vcmp.eq.s32.totalorder %v14223_v15, %v18975_v45  ;;  %v18983_v40 = vld [vmem:[#allocation37_spill] sm:$0xff] }
 0x226   : > { %3127 = vmatmul.mubr.bf16.vlgmr.msra.gmra.mxu1 %v3090_v39  ;;  %12266 = vmatpush3.bf16.msk.msra.mxu0 %vm9369_vm7, %v18905_v50  ;;  %vm9379_vm5 = vmpackc.low %vm3144_vm2, %vm3143_vm1 }
 0x227   : > { %3283 = vmatprep.mubr.bf16.mxu0 %v15226_v54  ;;  %12288 = vmatpush3.bf16.msk.msra.mxu1 %vm9369_vm7, %v18905_v50  ;;  %vm3161_vm7 = vcmp.eq.s32.totalorder %v14127_v26, %v18975_v45 }
 0x228   : > { %3324 = vmatprep.mubr.bf16.mxu1 %v15234_v47  ;;  %12267 = vmatprep.subr.msk.bf16.mxu0 %vm9387_vm11, %v18905_v50 }
 0x229   : > { %12289 = vmatprep.subr.msk.bf16.mxu1 %vm9387_vm11, %v18905_v50  ;;  %vm9393_vm11 = vmpackc.low %vm3162_vm8, %vm3161_vm7  ;;  %vm3141_vm7 = vcmp.eq.s32.totalorder %v14261_v42, %v18975_v45  ;;  %vm3142_vm8 = vcmp.eq.s32.totalorder %v14264_v60, %v18975_v45 }
 0x22a   : > { %12268 = vmatpush3.bf16.msk.msra.mxu0 %vm9371_vm13, %v18905_v50  ;;  %vm9381_vm10 = vmpackc.low %vm3142_vm8, %vm3141_vm7  ;;  %vm3349_vm8 = vcmp.eq.s32.totalorder %v14027_v52, %v18980_v19 }
 0x22b   : > { %12290 = vmatpush3.bf16.msk.msra.mxu1 %vm9371_vm13, %v18905_v50  ;;  %12269 = vmatprep.subr.msk.bf16.mxu0 %vm9389_vm14, %v18905_v50  ;;  %vm3159_vm13 = vcmp.eq.s32.totalorder %v14181_v59, %v18975_v45 }
 0x22c   : > { %12291 = vmatprep.subr.msk.bf16.mxu1 %vm9389_vm14, %v18905_v50  ;;  %vm3160_vm14 = vcmp.eq.s32.totalorder %v14184_v57, %v18975_v45 }
 0x22d   : > { %vm9395_vm0 = vmpackc.low %vm3160_vm14, %vm3159_vm13  ;;  %vm3139_vm13 = vcmp.eq.s32.totalorder %v13805_v3, %v18975_v45  ;;  %vm3140_vm14 = vcmp.eq.s32.totalorder %v14302_v32, %v18975_v45 }
 0x22e   : > { %12270 = vmatpush3.bf16.msk.msra.mxu0 %vm9373_vm3, %v18905_v50  ;;  %vm9383_vm1 = vmpackc.low %vm3140_vm14, %vm3139_vm13  ;;  %vm3347_vm14 = vcmp.eq.s32.totalorder %v14068_v16, %v18980_v19 }
 0x22f   : > { %12292 = vmatpush3.bf16.msk.msra.mxu1 %vm9373_vm3, %v18905_v50  ;;  %12271 = vmatprep.subr.msk.bf16.mxu0 %vm9391_vm4, %v18905_v50  ;;  %vm3157_vm3 = vcmp.eq.s32.totalorder %v14230_v2, %v18975_v45 }
 0x230   : > { %12293 = vmatprep.subr.msk.bf16.mxu1 %vm9391_vm4, %v18905_v50  ;;  %vm3158_vm4 = vcmp.eq.s32.totalorder %v14233_v21, %v18975_v45 }
 0x231   : > { %vm9397_vm6 = vmpackc.low %vm3158_vm4, %vm3157_vm3  ;;  %vm3351_vm3 = vcmp.eq.s32.totalorder %v14006_v12, %v18980_v19  ;;  %vm3352_vm4 = vcmp.eq.s32.totalorder %v14009_v10, %v18980_v19 }
 0x232   : > { %12272 = vmatpush3.bf16.msk.msra.mxu0 %vm9375_vm9, %v18905_v50  ;;  %vm9465_vm7 = vmpackc.low %vm3352_vm4, %vm3351_vm3 }
 0x233   : > { %12294 = vmatpush3.bf16.msk.msra.mxu1 %vm9375_vm9, %v18905_v50  ;;  %12273 = vmatprep.subr.msk.bf16.mxu0 %vm9393_vm11, %v18905_v50  ;;  %vm3155_vm9 = vcmp.eq.s32.totalorder %v14273_v58, %v18975_v45 }
 0x234   : > { %12295 = vmatprep.subr.msk.bf16.mxu1 %vm9393_vm11, %v18905_v50  ;;  %vm3156_vm11 = vcmp.eq.s32.totalorder %v14276_v6, %v18975_v45  ;;  %v3452_v45 = vrot.slane %v15226_v54, 4 }
 0x235   : > { %vm9399_vm12 = vmpackc.low %vm3156_vm11, %vm3155_vm9  ;;  %vm3350_vm9 = vcmp.eq.s32.totalorder %v14030_v56, %v18980_v19 }
 0x236   : > { %12274 = vmatpush3.bf16.msk.msra.mxu0 %vm9377_vm15, %v18905_v50  ;;  %vm9467_vm13 = vmpackc.low %vm3350_vm9, %vm3349_vm8  ;;  %vm3360_vm8 = vcmp.eq.s32.totalorder %v14130_v31, %v18980_v19 }
 0x237   : > { %12296 = vmatpush3.bf16.msk.msra.mxu1 %vm9377_vm15, %v18905_v50  ;;  %12275 = vmatprep.subr.msk.bf16.mxu0 %vm9395_vm0, %v18905_v50  ;;  %vm3367_vm15 = vcmp.eq.s32.totalorder %v13980_v11, %v18980_v19 }
 0x238   : > { %12297 = vmatprep.subr.msk.bf16.mxu1 %vm9395_vm0, %v18905_v50  ;;  %vm3368_vm0 = vcmp.eq.s32.totalorder %v13983_v13, %v18980_v19 }
 0x239   : > { %vm9481_vm2 = vmpackc.low %vm3368_vm0, %vm3367_vm15  ;;  %vm3348_vm0 = vcmp.eq.s32.totalorder %v14071_v18, %v18980_v19 }
 0x23a   : > { %12276 = vmatpush3.bf16.msk.msra.mxu0 %vm9379_vm5, %v18905_v50  ;;  %vm9469_vm3 = vmpackc.low %vm3348_vm0, %vm3347_vm14  ;;  %vm3358_vm14 = vcmp.eq.s32.totalorder %v14184_v57, %v18980_v19 }
 0x23b   : > { %12298 = vmatpush3.bf16.msk.msra.mxu1 %vm9379_vm5, %v18905_v50  ;;  %12277 = vmatprep.subr.msk.bf16.mxu0 %vm9397_vm6, %v18905_v50  ;;  %vm3365_vm5 = vcmp.eq.s32.totalorder %v14012_v27, %v18980_v19 }
 0x23c   : > { %12299 = vmatprep.subr.msk.bf16.mxu1 %vm9397_vm6, %v18905_v50  ;;  %vm3366_vm6 = vcmp.eq.s32.totalorder %v14022_v1, %v18980_v19 }
 0x23d   : > { %vm15336_vm11 = vmpackc.low %vm3366_vm6, %vm3365_vm5  ;;  %vm3345_vm5 = vcmp.eq.s32.totalorder %v14117_v23, %v18980_v19  ;;  %vm3346_vm6 = vcmp.eq.s32.totalorder %v14120_v24, %v18980_v19 }
 0x23e   : > { %12278 = vmatpush3.bf16.msk.msra.mxu0 %vm9381_vm10, %v18905_v50  ;;  %vm9471_vm9 = vmpackc.low %vm3346_vm6, %vm3345_vm5 }
 0x23f   : > { %12300 = vmatpush3.bf16.msk.msra.mxu1 %vm9381_vm10, %v18905_v50  ;;  %12279 = vmatprep.subr.msk.bf16.mxu0 %vm9399_vm12, %v18905_v50  ;;  %vm3363_vm10 = vcmp.eq.s32.totalorder %v14044_v61, %v18980_v19 }
 0x240   : > { %12301 = vmatprep.subr.msk.bf16.mxu1 %vm9399_vm12, %v18905_v50  ;;  %vm3364_vm12 = vcmp.eq.s32.totalorder %v14047_v4, %v18980_v19 }
 0x241   : > { %vm9485_vm15 = vmpackc.low %vm3364_vm12, %vm3363_vm10  ;;  %vm3343_vm10 = vcmp.eq.s32.totalorder %v14165_v22, %v18980_v19  ;;  %vm3344_vm12 = vcmp.eq.s32.totalorder %v14168_v46, %v18980_v19 }
 0x242   : > { %12280 = vmatpush3.bf16.msk.msra.mxu0 %vm9383_vm1, %v18905_v50 }
 0x243   : > { %12302 = vmatpush3.bf16.msk.msra.mxu1 %vm9383_vm1, %v18905_v50  ;;  %12309 = vmatprep.subr.msk.bf16.mxu0 %vm9481_vm2, %v18905_v50  ;;  %vm3361_vm1 = vcmp.eq.s32.totalorder %v14080_v8, %v18980_v19 }
 0x244   : > { %12331 = vmatprep.subr.msk.bf16.mxu1 %vm9481_vm2, %v18905_v50  ;;  %vm3362_vm2 = vcmp.eq.s32.totalorder %v14083_v20, %v18980_v19 }
 0x245   : > { %3284 = vmatmul.mubr.bf16.vlgmr.msra.gmra.mxu0 %v18983_v40  ;;  %v12017_v39 = vpop.f32.mrf.mxu0  ;;  %v12039_v55 = vpop.f32.mrf.mxu1  ;;  %vm9487_vm4 = vmpackc.low %vm3362_vm2, %vm3361_vm1  ;;  %vm3341_vm1 = vcmp.eq.s32.totalorder %v14220_v14, %v18980_v19  ;;  %vm3342_vm2 = vcmp.eq.s32.totalorder %v14223_v15, %v18980_v19 }
 0x246   : > { %3325 = vmatmul.mubr.bf16.vlgmr.msra.gmra.mxu1 %v18986_v25  ;;  %12310 = vmatpush3.bf16.msk.msra.mxu0 %vm9465_vm7, %v18905_v50  ;;  %vm9475_vm5 = vmpackc.low %vm3342_vm2, %vm3341_vm1 }
 0x247   : > { %3487 = vmatprep.mubr.bf16.mxu0 %v3452_v45  ;;  %12332 = vmatpush3.bf16.msk.msra.mxu1 %vm9465_vm7, %v18905_v50  ;;  %v12018_v54 = vpop.f32.mrf.mxu0  ;;  %v12040_v38 = vpop.f32.mrf.mxu1  ;;  %vm3359_vm7 = vcmp.eq.s32.totalorder %v14127_v26, %v18980_v19 }
 0x248   : > { %3534 = vmatprep.mubr.bf16.mxu1 %v3499_v51  ;;  %v12019_v47 = vadd.f32 %v12018_v54, %v12017_v39  ;;  %v12041_v63 = vadd.f32 %v12040_v38, %v12039_v55  ;;  %12311 = vmatprep.subr.msk.bf16.mxu0 %vm15336_vm11, %v18905_v50  ;;  %v3498_v54 = vrot.slane %v18986_v25, 4  ;;  %v18993_v25 = vld [vmem:[#allocation42_spill] sm:$0xff] }
 0x249   : > { %12333 = vmatprep.subr.msk.bf16.mxu1 %vm15336_vm11, %v18905_v50  ;;  %v12020_v45 = vpop.f32.mrf.mxu0  ;;  %v12042_v29 = vpop.f32.mrf.mxu1  ;;  %vm9489_vm11 = vmpackc.low %vm3360_vm8, %vm3359_vm7  ;;  %vm3339_vm7 = vcmp.eq.s32.totalorder %v14261_v42, %v18980_v19  ;;  %vm3340_vm8 = vcmp.eq.s32.totalorder %v14264_v60, %v18980_v19  ;;  %v15483_v36 = vpack.c.bf16 %v14597_v62, %v18993_v25 }
 0x24a   : > { %v15371_v38 = vadd.f32 %v12041_v63, %v12019_v47  ;;  %12312 = vmatpush3.bf16.msk.msra.mxu0 %vm9467_vm13, %v18905_v50  ;;  %v15421_v63 = vld [vmem:[%s13798_s30 + $0x8] sm:$0xff]  ;;  %v18987_v29 = vld [vmem:[#allocation13_spill] sm:$0xff] }
 0x24b   : > { %12334 = vmatpush3.bf16.msk.msra.mxu1 %vm9467_vm13, %v18905_v50  ;;  %v12021_v39 = vpop.f32.mrf.mxu0  ;;  %v12043_v55 = vpop.f32.mrf.mxu1  ;;  %12313 = vmatprep.subr.msk.bf16.mxu0 %vm9485_vm15, %v18905_v50  ;;  %vm3357_vm13 = vcmp.eq.s32.totalorder %v14181_v59, %v18980_v19  ;;  %v15425_v35 = vrot.slane %v15421_v63, %v18987_v29  ;;  %v18990_v47 = vld [vmem:[#allocation41_spill] sm:$0xff] }
 0x24c   : > { %12335 = vmatprep.subr.msk.bf16.mxu1 %vm9485_vm15, %v18905_v50  ;;  %vm9473_vm15 = vmpackc.low %vm3344_vm12, %vm3343_vm10 }
 0x24d   : > { %vm9491_vm0 = vmpackc.low %vm3358_vm14, %vm3357_vm13  ;;  %vm3337_vm13 = vcmp.eq.s32.totalorder %v13805_v3, %v18980_v19  ;;  %vm3338_vm14 = vcmp.eq.s32.totalorder %v14302_v32, %v18980_v19 }
 0x24e   : > { %12314 = vmatpush3.bf16.msk.msra.mxu0 %vm9469_vm3, %v18905_v50  ;;  %vm9477_vm10 = vmpackc.low %vm3340_vm8, %vm3339_vm7  ;;  %vm3559_vm8 = vcmp.eq.s32.totalorder %v14027_v52, %v15425_v35 }
 0x24f   : > { %12336 = vmatpush3.bf16.msk.msra.mxu1 %vm9469_vm3, %v18905_v50  ;;  %12315 = vmatprep.subr.msk.bf16.mxu0 %vm9487_vm4, %v18905_v50  ;;  %vm3355_vm3 = vcmp.eq.s32.totalorder %v14230_v2, %v18980_v19  ;;  %vm9479_vm1 = vmpackc.low %vm3338_vm14, %vm3337_vm13  ;;  %vm3557_vm14 = vcmp.eq.s32.totalorder %v14068_v16, %v15425_v35 }
 0x250   : > { %12337 = vmatprep.subr.msk.bf16.mxu1 %vm9487_vm4, %v18905_v50  ;;  %vm3356_vm4 = vcmp.eq.s32.totalorder %v14233_v21, %v18980_v19 }
 0x251   : > { %vm9493_vm6 = vmpackc.low %vm3356_vm4, %vm3355_vm3  ;;  %vm3561_vm3 = vcmp.eq.s32.totalorder %v14006_v12, %v15425_v35  ;;  %vm3562_vm4 = vcmp.eq.s32.totalorder %v14009_v10, %v15425_v35 }
 0x252   : > { %12316 = vmatpush3.bf16.msk.msra.mxu0 %vm9471_vm9, %v18905_v50  ;;  %vm15459_vm7 = vmpackc.low %vm3562_vm4, %vm3561_vm3 }
 0x253   : > { %12338 = vmatpush3.bf16.msk.msra.mxu1 %vm9471_vm9, %v18905_v50  ;;  %12317 = vmatprep.subr.msk.bf16.mxu0 %vm9489_vm11, %v18905_v50  ;;  %vm3353_vm9 = vcmp.eq.s32.totalorder %v14273_v58, %v18980_v19 }
 0x254   : > { %12339 = vmatprep.subr.msk.bf16.mxu1 %vm9489_vm11, %v18905_v50  ;;  %vm3354_vm11 = vcmp.eq.s32.totalorder %v14276_v6, %v18980_v19  ;;  %v3451_v19 = vrot.slane %v18983_v40, 4  ;;  %v15471_v40 = vpack.c.bf16 %v14595_v53, %v18990_v47 }
 0x255   : > { %vm9495_vm12 = vmpackc.low %vm3354_vm11, %vm3353_vm9  ;;  %vm3560_vm9 = vcmp.eq.s32.totalorder %v14030_v56, %v15425_v35 }
 0x256   : > { %12318 = vmatpush3.bf16.msk.msra.mxu0 %vm9473_vm15, %v18905_v50  ;;  %vm9563_vm13 = vmpackc.low %vm3560_vm9, %vm3559_vm8  ;;  %vm3570_vm8 = vcmp.eq.s32.totalorder %v14130_v31, %v15425_v35 }
 0x257   : > { %12340 = vmatpush3.bf16.msk.msra.mxu1 %vm9473_vm15, %v18905_v50  ;;  %12319 = vmatprep.subr.msk.bf16.mxu0 %vm9491_vm0, %v18905_v50  ;;  %vm3577_vm15 = vcmp.eq.s32.totalorder %v13980_v11, %v15425_v35 }
 0x258   : > { %12341 = vmatprep.subr.msk.bf16.mxu1 %vm9491_vm0, %v18905_v50  ;;  %vm3578_vm0 = vcmp.eq.s32.totalorder %v13983_v13, %v15425_v35 }
 0x259   : > { %vm9577_vm2 = vmpackc.low %vm3578_vm0, %vm3577_vm15  ;;  %vm3558_vm0 = vcmp.eq.s32.totalorder %v14071_v18, %v15425_v35 }
 0x25a   : > { %12320 = vmatpush3.bf16.msk.msra.mxu0 %vm9475_vm5, %v18905_v50  ;;  %vm9565_vm3 = vmpackc.low %vm3558_vm0, %vm3557_vm14  ;;  %vm3568_vm14 = vcmp.eq.s32.totalorder %v14184_v57, %v15425_v35 }
 0x25b   : > { %12342 = vmatpush3.bf16.msk.msra.mxu1 %vm9475_vm5, %v18905_v50  ;;  %12321 = vmatprep.subr.msk.bf16.mxu0 %vm9493_vm6, %v18905_v50  ;;  %vm3575_vm5 = vcmp.eq.s32.totalorder %v14012_v27, %v15425_v35 }
 0x25c   : > { %12343 = vmatprep.subr.msk.bf16.mxu1 %vm9493_vm6, %v18905_v50  ;;  %vm3576_vm6 = vcmp.eq.s32.totalorder %v14022_v1, %v15425_v35 }
 0x25d   : > { %vm15473_vm11 = vmpackc.low %vm3576_vm6, %vm3575_vm5  ;;  %vm3555_vm5 = vcmp.eq.s32.totalorder %v14117_v23, %v15425_v35  ;;  %vm3556_vm6 = vcmp.eq.s32.totalorder %v14120_v24, %v15425_v35 }
 0x25e   : > { %12322 = vmatpush3.bf16.msk.msra.mxu0 %vm9477_vm10, %v18905_v50  ;;  %vm9567_vm9 = vmpackc.low %vm3556_vm6, %vm3555_vm5 }
 0x25f   : > { %12344 = vmatpush3.bf16.msk.msra.mxu1 %vm9477_vm10, %v18905_v50  ;;  %12323 = vmatprep.subr.msk.bf16.mxu0 %vm9495_vm12, %v18905_v50  ;;  %vm3573_vm10 = vcmp.eq.s32.totalorder %v14044_v61, %v15425_v35 }
 0x260   : > { %12345 = vmatprep.subr.msk.bf16.mxu1 %vm9495_vm12, %v18905_v50  ;;  %vm3574_vm12 = vcmp.eq.s32.totalorder %v14047_v4, %v15425_v35 }
 0x261   : > { %vm9581_vm15 = vmpackc.low %vm3574_vm12, %vm3573_vm10  ;;  %vm3553_vm10 = vcmp.eq.s32.totalorder %v14165_v22, %v15425_v35  ;;  %vm3554_vm12 = vcmp.eq.s32.totalorder %v14168_v46, %v15425_v35 }
 0x262   : > { %12324 = vmatpush3.bf16.msk.msra.mxu0 %vm9479_vm1, %v18905_v50 }
 0x263   : > { %12346 = vmatpush3.bf16.msk.msra.mxu1 %vm9479_vm1, %v18905_v50  ;;  %12353 = vmatprep.subr.msk.bf16.mxu0 %vm9577_vm2, %v18905_v50  ;;  %vm3571_vm1 = vcmp.eq.s32.totalorder %v14080_v8, %v15425_v35 }
 0x264   : > { %12375 = vmatprep.subr.msk.bf16.mxu1 %vm9577_vm2, %v18905_v50  ;;  %vm3572_vm2 = vcmp.eq.s32.totalorder %v14083_v20, %v15425_v35 }
 0x265   : > { %v12061_v45 = vpop.f32.mrf.mxu0  ;;  %v12083_v39 = vpop.f32.mrf.mxu1  ;;  %3488 = vmatmul.mubr.bf16.vlgmr.msra.gmra.mxu0 %v3451_v19  ;;  %vm9583_vm4 = vmpackc.low %vm3572_vm2, %vm3571_vm1  ;;  %vm3551_vm1 = vcmp.eq.s32.totalorder %v14220_v14, %v15425_v35  ;;  %vm3552_vm2 = vcmp.eq.s32.totalorder %v14223_v15, %v15425_v35 }
 0x266   : > { %3535 = vmatmul.mubr.bf16.vlgmr.msra.gmra.mxu1 %v3498_v54  ;;  %12354 = vmatpush3.bf16.msk.msra.mxu0 %vm15459_vm7, %v18905_v50  ;;  %vm9571_vm5 = vmpackc.low %vm3552_vm2, %vm3551_vm1 }
 0x267   : > { %3691 = vmatprep.mubr.bf16.mxu0 %v15471_v40  ;;  %12376 = vmatpush3.bf16.msk.msra.mxu1 %vm15459_vm7, %v18905_v50  ;;  %v12062_v53 = vpop.f32.mrf.mxu0  ;;  %v12084_v19 = vpop.f32.mrf.mxu1  ;;  %vm3569_vm7 = vcmp.eq.s32.totalorder %v14127_v26, %v15425_v35 }
 0x268   : > { %3732 = vmatprep.mubr.bf16.mxu1 %v15483_v36  ;;  %v12063_v62 = vadd.f32 %v12062_v53, %v12061_v45  ;;  %v12085_v54 = vadd.f32 %v12084_v19, %v12083_v39  ;;  %12355 = vmatprep.subr.msk.bf16.mxu0 %vm15473_vm11, %v18905_v50 }
 0x269   : > { %v12064_v51 = vpop.f32.mrf.mxu0  ;;  %v12086_v47 = vpop.f32.mrf.mxu1  ;;  %12377 = vmatprep.subr.msk.bf16.mxu1 %vm15473_vm11, %v18905_v50  ;;  %vm9585_vm11 = vmpackc.low %vm3570_vm8, %vm3569_vm7  ;;  %vm3549_vm7 = vcmp.eq.s32.totalorder %v14261_v42, %v15425_v35  ;;  %vm3550_vm8 = vcmp.eq.s32.totalorder %v14264_v60, %v15425_v35 }
 0x26a   : > { %v2271_v45 = vadd.f32 %v12063_v62, %v15371_v38  ;;  %12356 = vmatpush3.bf16.msk.msra.mxu0 %vm9563_vm13, %v18905_v50  ;;  %v18994_v38 = vld [vmem:[#allocation14_spill] sm:$0xff]  ;;  %v18997_v51 = vld [vmem:[#allocation43_spill] sm:$0xff] }
 0x26b   : > { %12378 = vmatpush3.bf16.msk.msra.mxu1 %vm9563_vm13, %v18905_v50  ;;  %v12065_v39 = vpop.f32.mrf.mxu0  ;;  %v12087_v25 = vpop.f32.mrf.mxu1  ;;  %12357 = vmatprep.subr.msk.bf16.mxu0 %vm9581_vm15, %v18905_v50  ;;  %vm3567_vm13 = vcmp.eq.s32.totalorder %v14181_v59, %v15425_v35  ;;  %v15568_v53 = vrot.slane %v15421_v63, %v18994_v38  ;;  %v3860_v63 = vrot.slane %v15471_v40, 4 }
 0x26c   : > { %v15523_v55 = vadd.f32 %v12085_v54, %v2271_v45  ;;  %12379 = vmatprep.subr.msk.bf16.mxu1 %vm9581_vm15, %v18905_v50  ;;  %vm9569_vm15 = vmpackc.low %vm3554_vm12, %vm3553_vm10  ;;  %v3907_v54 = vrot.slane %v15483_v36, 4 }
 0x26d   : > { %vm9587_vm0 = vmpackc.low %vm3568_vm14, %vm3567_vm13  ;;  %vm3547_vm13 = vcmp.eq.s32.totalorder %v13805_v3, %v15425_v35  ;;  %vm3548_vm14 = vcmp.eq.s32.totalorder %v14302_v32, %v15425_v35 }
 0x26e   : > { %12358 = vmatpush3.bf16.msk.msra.mxu0 %vm9565_vm3, %v18905_v50  ;;  %vm9573_vm10 = vmpackc.low %vm3550_vm8, %vm3549_vm7  ;;  %vm3757_vm8 = vcmp.eq.s32.totalorder %v14027_v52, %v15568_v53 }
 0x26f   : > { %12380 = vmatpush3.bf16.msk.msra.mxu1 %vm9565_vm3, %v18905_v50  ;;  %12359 = vmatprep.subr.msk.bf16.mxu0 %vm9583_vm4, %v18905_v50  ;;  %vm3565_vm3 = vcmp.eq.s32.totalorder %v14230_v2, %v15425_v35  ;;  %vm9575_vm1 = vmpackc.low %vm3548_vm14, %vm3547_vm13  ;;  %vm3755_vm14 = vcmp.eq.s32.totalorder %v14068_v16, %v15568_v53 }
 0x270   : > { %12381 = vmatprep.subr.msk.bf16.mxu1 %vm9583_vm4, %v18905_v50  ;;  %vm3566_vm4 = vcmp.eq.s32.totalorder %v14233_v21, %v15425_v35 }
 0x271   : > { %vm9589_vm6 = vmpackc.low %vm3566_vm4, %vm3565_vm3  ;;  %vm3759_vm3 = vcmp.eq.s32.totalorder %v14006_v12, %v15568_v53  ;;  %vm3760_vm4 = vcmp.eq.s32.totalorder %v14009_v10, %v15568_v53 }
 0x272   : > { %12360 = vmatpush3.bf16.msk.msra.mxu0 %vm9567_vm9, %v18905_v50  ;;  %vm9657_vm7 = vmpackc.low %vm3760_vm4, %vm3759_vm3 }
 0x273   : > { %12382 = vmatpush3.bf16.msk.msra.mxu1 %vm9567_vm9, %v18905_v50  ;;  %12361 = vmatprep.subr.msk.bf16.mxu0 %vm9585_vm11, %v18905_v50  ;;  %vm3563_vm9 = vcmp.eq.s32.totalorder %v14273_v58, %v15425_v35 }
 0x274   : > { %12383 = vmatprep.subr.msk.bf16.mxu1 %vm9585_vm11, %v18905_v50  ;;  %vm3564_vm11 = vcmp.eq.s32.totalorder %v14276_v6, %v15425_v35 }
 0x275   : > { %vm9591_vm12 = vmpackc.low %vm3564_vm11, %vm3563_vm9  ;;  %vm3758_vm9 = vcmp.eq.s32.totalorder %v14030_v56, %v15568_v53 }
 0x276   : > { %12362 = vmatpush3.bf16.msk.msra.mxu0 %vm9569_vm15, %v18905_v50  ;;  %vm9659_vm13 = vmpackc.low %vm3758_vm9, %vm3757_vm8  ;;  %vm3768_vm8 = vcmp.eq.s32.totalorder %v14130_v31, %v15568_v53 }
 0x277   : > { %12384 = vmatpush3.bf16.msk.msra.mxu1 %vm9569_vm15, %v18905_v50  ;;  %12363 = vmatprep.subr.msk.bf16.mxu0 %vm9587_vm0, %v18905_v50  ;;  %vm3775_vm15 = vcmp.eq.s32.totalorder %v13980_v11, %v15568_v53 }
 0x278   : > { %12385 = vmatprep.subr.msk.bf16.mxu1 %vm9587_vm0, %v18905_v50  ;;  %vm3776_vm0 = vcmp.eq.s32.totalorder %v13983_v13, %v15568_v53 }
 0x279   : > { %vm9673_vm2 = vmpackc.low %vm3776_vm0, %vm3775_vm15  ;;  %vm3756_vm0 = vcmp.eq.s32.totalorder %v14071_v18, %v15568_v53 }
 0x27a   : > { %12364 = vmatpush3.bf16.msk.msra.mxu0 %vm9571_vm5, %v18905_v50  ;;  %vm9661_vm3 = vmpackc.low %vm3756_vm0, %vm3755_vm14  ;;  %vm3766_vm14 = vcmp.eq.s32.totalorder %v14184_v57, %v15568_v53 }
 0x27b   : > { %12386 = vmatpush3.bf16.msk.msra.mxu1 %vm9571_vm5, %v18905_v50  ;;  %12365 = vmatprep.subr.msk.bf16.mxu0 %vm9589_vm6, %v18905_v50  ;;  %vm3773_vm5 = vcmp.eq.s32.totalorder %v14012_v27, %v15568_v53 }
 0x27c   : > { %12387 = vmatprep.subr.msk.bf16.mxu1 %vm9589_vm6, %v18905_v50  ;;  %vm3774_vm6 = vcmp.eq.s32.totalorder %v14022_v1, %v15568_v53 }
 0x27d   : > { %vm15608_vm11 = vmpackc.low %vm3774_vm6, %vm3773_vm5  ;;  %vm3753_vm5 = vcmp.eq.s32.totalorder %v14117_v23, %v15568_v53  ;;  %vm3754_vm6 = vcmp.eq.s32.totalorder %v14120_v24, %v15568_v53 }
 0x27e   : > { %12366 = vmatpush3.bf16.msk.msra.mxu0 %vm9573_vm10, %v18905_v50  ;;  %vm9663_vm9 = vmpackc.low %vm3754_vm6, %vm3753_vm5 }
 0x27f   : > { %12388 = vmatpush3.bf16.msk.msra.mxu1 %vm9573_vm10, %v18905_v50  ;;  %12367 = vmatprep.subr.msk.bf16.mxu0 %vm9591_vm12, %v18905_v50  ;;  %vm3771_vm10 = vcmp.eq.s32.totalorder %v14044_v61, %v15568_v53 }
 0x280   : > { %12389 = vmatprep.subr.msk.bf16.mxu1 %vm9591_vm12, %v18905_v50  ;;  %vm3772_vm12 = vcmp.eq.s32.totalorder %v14047_v4, %v15568_v53 }
 0x281   : > { %vm9677_vm15 = vmpackc.low %vm3772_vm12, %vm3771_vm10  ;;  %vm3751_vm10 = vcmp.eq.s32.totalorder %v14165_v22, %v15568_v53  ;;  %vm3752_vm12 = vcmp.eq.s32.totalorder %v14168_v46, %v15568_v53 }
 0x282   : > { %12368 = vmatpush3.bf16.msk.msra.mxu0 %vm9575_vm1, %v18905_v50 }
 0x283   : > { %12390 = vmatpush3.bf16.msk.msra.mxu1 %vm9575_vm1, %v18905_v50  ;;  %12397 = vmatprep.subr.msk.bf16.mxu0 %vm9673_vm2, %v18905_v50  ;;  %vm3769_vm1 = vcmp.eq.s32.totalorder %v14080_v8, %v15568_v53 }
 0x284   : > { %12419 = vmatprep.subr.msk.bf16.mxu1 %vm9673_vm2, %v18905_v50  ;;  %vm3770_vm2 = vcmp.eq.s32.totalorder %v14083_v20, %v15568_v53 }
 0x285   : > { %v12105_v35 = vpop.f32.mrf.mxu0  ;;  %v12127_v19 = vpop.f32.mrf.mxu1  ;;  %3692 = vmatmul.mubr.bf16.vlgmr.msra.gmra.mxu0 %v14587_v41  ;;  %vm9679_vm4 = vmpackc.low %vm3770_vm2, %vm3769_vm1  ;;  %vm3749_vm1 = vcmp.eq.s32.totalorder %v14220_v14, %v15568_v53  ;;  %vm3750_vm2 = vcmp.eq.s32.totalorder %v14223_v15, %v15568_v53 }
 0x286   : > { %3733 = vmatmul.mubr.bf16.vlgmr.msra.gmra.mxu1 %v18997_v51  ;;  %12398 = vmatpush3.bf16.msk.msra.mxu0 %vm9657_vm7, %v18905_v50  ;;  %vm9667_vm5 = vmpackc.low %vm3750_vm2, %vm3749_vm1 }
 0x287   : > { %3895 = vmatprep.mubr.bf16.mxu0 %v3860_v63  ;;  %12420 = vmatpush3.bf16.msk.msra.mxu1 %vm9657_vm7, %v18905_v50  ;;  %v12106_v40 = vpop.f32.mrf.mxu0  ;;  %v12128_v47 = vpop.f32.mrf.mxu1  ;;  %vm3767_vm7 = vcmp.eq.s32.totalorder %v14127_v26, %v15568_v53 }
 0x288   : > { %3942 = vmatprep.mubr.bf16.mxu1 %v3907_v54  ;;  %v12107_v36 = vadd.f32 %v12106_v40, %v12105_v35  ;;  %v12129_v45 = vadd.f32 %v12128_v47, %v12127_v19  ;;  %12399 = vmatprep.subr.msk.bf16.mxu0 %vm15608_vm11, %v18905_v50  ;;  %v3906_v40 = vrot.slane %v18997_v51, 4  ;;  %v19003_v51 = vld [vmem:[#allocation44_spill] sm:$0xff] }
 0x289   : > { %v12108_v39 = vpop.f32.mrf.mxu0  ;;  %v12130_v25 = vpop.f32.mrf.mxu1  ;;  %12421 = vmatprep.subr.msk.bf16.mxu1 %vm15608_vm11, %v18905_v50  ;;  %vm9681_vm11 = vmpackc.low %vm3768_vm8, %vm3767_vm7  ;;  %vm3747_vm7 = vcmp.eq.s32.totalorder %v14261_v42, %v15568_v53  ;;  %vm3748_vm8 = vcmp.eq.s32.totalorder %v14264_v60, %v15568_v53 }
 0x28a   : > { %v2475_v63 = vadd.f32 %v12107_v36, %v15523_v55  ;;  %12400 = vmatpush3.bf16.msk.msra.mxu0 %vm9659_vm13, %v18905_v50  ;;  %v18998_v55 = vld [vmem:[#allocation15_spill] sm:$0xff] }
 0x28b   : > { %12422 = vmatpush3.bf16.msk.msra.mxu1 %vm9659_vm13, %v18905_v50  ;;  %v12109_v35 = vpop.f32.mrf.mxu0  ;;  %v12131_v19 = vpop.f32.mrf.mxu1  ;;  %12401 = vmatprep.subr.msk.bf16.mxu0 %vm9677_vm15, %v18905_v50  ;;  %vm3765_vm13 = vcmp.eq.s32.totalorder %v14181_v59, %v15568_v53 }
 0x28c   : > { %v15650_v62 = vadd.f32 %v12129_v45, %v2475_v63  ;;  %12423 = vmatprep.subr.msk.bf16.mxu1 %vm9677_vm15, %v18905_v50  ;;  %vm9665_vm15 = vmpackc.low %vm3752_vm12, %vm3751_vm10  ;;  %v19004_v45 = vld [vmem:[#allocation47_spill] sm:$0xff]  ;;  %v19013_v19 = vld [vmem:[#allocation46_spill] sm:$0xff] }
 0x28d   : > { %vm9683_vm0 = vmpackc.low %vm3766_vm14, %vm3765_vm13  ;;  %vm3745_vm13 = vcmp.eq.s32.totalorder %v13805_v3, %v15568_v53  ;;  %vm3746_vm14 = vcmp.eq.s32.totalorder %v14302_v32, %v15568_v53  ;;  %v15749_v39 = vpack.c.bf16 %v19004_v45, %v19003_v51 }
 0x28e   : > { %12402 = vmatpush3.bf16.msk.msra.mxu0 %vm9661_vm3, %v18905_v50  ;;  %vm9669_vm10 = vmpackc.low %vm3748_vm8, %vm3747_vm7  ;;  %vm3967_vm8 = vcmp.eq.s32.totalorder %v14027_v52, %v18998_v55 }
 0x28f   : > { %12424 = vmatpush3.bf16.msk.msra.mxu1 %vm9661_vm3, %v18905_v50  ;;  %12403 = vmatprep.subr.msk.bf16.mxu0 %vm9679_vm4, %v18905_v50  ;;  %vm3763_vm3 = vcmp.eq.s32.totalorder %v14230_v2, %v15568_v53  ;;  %vm9671_vm1 = vmpackc.low %vm3746_vm14, %vm3745_vm13 }
 0x290   : > { %12425 = vmatprep.subr.msk.bf16.mxu1 %vm9679_vm4, %v18905_v50  ;;  %vm3764_vm4 = vcmp.eq.s32.totalorder %v14233_v21, %v15568_v53 }
 0x291   : > { %vm9685_vm6 = vmpackc.low %vm3764_vm4, %vm3763_vm3  ;;  %vm3969_vm3 = vcmp.eq.s32.totalorder %v14006_v12, %v18998_v55  ;;  %vm3970_vm4 = vcmp.eq.s32.totalorder %v14009_v10, %v18998_v55 }
 0x292   : > { %12404 = vmatpush3.bf16.msk.msra.mxu0 %vm9663_vm9, %v18905_v50  ;;  %vm15725_vm7 = vmpackc.low %vm3970_vm4, %vm3969_vm3 }
 0x293   : > { %12426 = vmatpush3.bf16.msk.msra.mxu1 %vm9663_vm9, %v18905_v50  ;;  %12405 = vmatprep.subr.msk.bf16.mxu0 %vm9681_vm11, %v18905_v50  ;;  %vm3761_vm9 = vcmp.eq.s32.totalorder %v14273_v58, %v15568_v53 }
 0x294   : > { %12427 = vmatprep.subr.msk.bf16.mxu1 %vm9681_vm11, %v18905_v50  ;;  %vm3762_vm11 = vcmp.eq.s32.totalorder %v14276_v6, %v15568_v53  ;;  %v3859_v53 = vrot.slane %v14587_v41, 4  ;;  %v15737_v41 = vpack.c.bf16 %v14643_v5, %v14621_v17 }
 0x295   : > { %vm9687_vm12 = vmpackc.low %vm3762_vm11, %vm3761_vm9  ;;  %vm3968_vm9 = vcmp.eq.s32.totalorder %v14030_v56, %v18998_v55 }
 0x296   : > { %12406 = vmatpush3.bf16.msk.msra.mxu0 %vm9665_vm15, %v18905_v50  ;;  %vm15761_vm13 = vmpackc.low %vm3968_vm9, %vm3967_vm8  ;;  %vm3978_vm8 = vcmp.eq.s32.totalorder %v14130_v31, %v18998_v55 }
 0x297   : > { %12428 = vmatpush3.bf16.msk.msra.mxu1 %vm9665_vm15, %v18905_v50  ;;  %12407 = vmatprep.subr.msk.bf16.mxu0 %vm9683_vm0, %v18905_v50  ;;  %vm3985_vm15 = vcmp.eq.s32.totalorder %v13980_v11, %v18998_v55 }
 0x298   : > { %12429 = vmatprep.subr.msk.bf16.mxu1 %vm9683_vm0, %v18905_v50  ;;  %vm3986_vm0 = vcmp.eq.s32.totalorder %v13983_v13, %v18998_v55 }
 0x299   : > { %vm9769_vm2 = vmpackc.low %vm3986_vm0, %vm3985_vm15  ;;  %vm3965_vm15 = vcmp.eq.s32.totalorder %v14068_v16, %v18998_v55  ;;  %vm3966_vm0 = vcmp.eq.s32.totalorder %v14071_v18, %v18998_v55 }
 0x29a   : > { %12408 = vmatpush3.bf16.msk.msra.mxu0 %vm9667_vm5, %v18905_v50  ;;  %vm9757_vm3 = vmpackc.low %vm3966_vm0, %vm3965_vm15 }
 0x29b   : > { %12430 = vmatpush3.bf16.msk.msra.mxu1 %vm9667_vm5, %v18905_v50  ;;  %12409 = vmatprep.subr.msk.bf16.mxu0 %vm9685_vm6, %v18905_v50  ;;  %vm3983_vm5 = vcmp.eq.s32.totalorder %v14012_v27, %v18998_v55 }
 0x29c   : > { %12431 = vmatprep.subr.msk.bf16.mxu1 %vm9685_vm6, %v18905_v50  ;;  %vm3984_vm6 = vcmp.eq.s32.totalorder %v14022_v1, %v18998_v55 }
 0x29d   : > { %vm15739_vm11 = vmpackc.low %vm3984_vm6, %vm3983_vm5  ;;  %vm3963_vm5 = vcmp.eq.s32.totalorder %v14117_v23, %v18998_v55  ;;  %vm3964_vm6 = vcmp.eq.s32.totalorder %v14120_v24, %v18998_v55 }
 0x29e   : > { %12410 = vmatpush3.bf16.msk.msra.mxu0 %vm9669_vm10, %v18905_v50  ;;  %vm9759_vm9 = vmpackc.low %vm3964_vm6, %vm3963_vm5 }
 0x29f   : > { %12432 = vmatpush3.bf16.msk.msra.mxu1 %vm9669_vm10, %v18905_v50  ;;  %12411 = vmatprep.subr.msk.bf16.mxu0 %vm9687_vm12, %v18905_v50  ;;  %vm3981_vm10 = vcmp.eq.s32.totalorder %v14044_v61, %v18998_v55 }
 0x2a0   : > { %12433 = vmatprep.subr.msk.bf16.mxu1 %vm9687_vm12, %v18905_v50  ;;  %vm3982_vm12 = vcmp.eq.s32.totalorder %v14047_v4, %v18998_v55 }
 0x2a1   : > { %vm15769_vm14 = vmpackc.low %vm3982_vm12, %vm3981_vm10  ;;  %vm3961_vm10 = vcmp.eq.s32.totalorder %v14165_v22, %v18998_v55  ;;  %vm3962_vm12 = vcmp.eq.s32.totalorder %v14168_v46, %v18998_v55 }
 0x2a2   : > { %12412 = vmatpush3.bf16.msk.msra.mxu0 %vm9671_vm1, %v18905_v50  ;;  %vm9761_vm15 = vmpackc.low %vm3962_vm12, %vm3961_vm10 }
 0x2a3   : > { %12434 = vmatpush3.bf16.msk.msra.mxu1 %vm9671_vm1, %v18905_v50  ;;  %12441 = vmatprep.subr.msk.bf16.mxu0 %vm9769_vm2, %v18905_v50  ;;  %vm3979_vm1 = vcmp.eq.s32.totalorder %v14080_v8, %v18998_v55 }
 0x2a4   : > { %12463 = vmatprep.subr.msk.bf16.mxu1 %vm9769_vm2, %v18905_v50  ;;  %vm3980_vm2 = vcmp.eq.s32.totalorder %v14083_v20, %v18998_v55 }
 0x2a5   : > { %v12149_v47 = vpop.f32.mrf.mxu0  ;;  %3896 = vmatmul.mubr.bf16.vlgmr.msra.gmra.mxu0 %v3859_v53  ;;  %vm9775_vm4 = vmpackc.low %vm3980_vm2, %vm3979_vm1  ;;  %vm3959_vm1 = vcmp.eq.s32.totalorder %v14220_v14, %v18998_v55  ;;  %vm3960_vm2 = vcmp.eq.s32.totalorder %v14223_v15, %v18998_v55 }
 0x2a6   : > { %v12171_v25 = vpop.f32.mrf.mxu1  ;;  %3943 = vmatmul.mubr.bf16.vlgmr.msra.gmra.mxu1 %v3906_v40  ;;  %12442 = vmatpush3.bf16.msk.msra.mxu0 %vm15725_vm7, %v18905_v50  ;;  %vm9763_vm5 = vmpackc.low %vm3960_vm2, %vm3959_vm1 }
 0x2a7   : > { %4099 = vmatprep.mubr.bf16.mxu0 %v15737_v41  ;;  %12464 = vmatpush3.bf16.msk.msra.mxu1 %vm15725_vm7, %v18905_v50  ;;  %v12150_v17 = vpop.f32.mrf.mxu0  ;;  %vm3977_vm7 = vcmp.eq.s32.totalorder %v14127_v26, %v18998_v55 }
 0x2a8   : > { %4140 = vmatprep.mubr.bf16.mxu1 %v15749_v39  ;;  %v12151_v63 = vadd.f32 %v12150_v17, %v12149_v47  ;;  %v12172_v35 = vpop.f32.mrf.mxu1  ;;  %12443 = vmatprep.subr.msk.bf16.mxu0 %vm15739_vm11, %v18905_v50  ;;  %v19010_v17 = vld [vmem:[#allocation45_spill] sm:$0xff] }
 0x2a9   : > { %v12173_v53 = vadd.f32 %v12172_v35, %v12171_v25  ;;  %v12152_v54 = vpop.f32.mrf.mxu0  ;;  %12465 = vmatprep.subr.msk.bf16.mxu1 %vm15739_vm11, %v18905_v50  ;;  %vm9777_vm11 = vmpackc.low %vm3978_vm8, %vm3977_vm7  ;;  %vm3957_vm7 = vcmp.eq.s32.totalorder %v14261_v42, %v18998_v55  ;;  %vm3958_vm8 = vcmp.eq.s32.totalorder %v14264_v60, %v18998_v55 }
 0x2aa   : > { %v2679_v40 = vadd.f32 %v12151_v63, %v15650_v62  ;;  %v12174_v47 = vpop.f32.mrf.mxu1  ;;  %12444 = vmatpush3.bf16.msk.msra.mxu0 %vm15761_vm13, %v18905_v50  ;;  %vm9765_vm10 = vmpackc.low %vm3958_vm8, %vm3957_vm7  ;;  %v19009_v62 = vld [vmem:[#allocation18_spill] sm:$0xff]  ;;  %v4315_v63 = vrot.slane %v15749_v39, 4 }
 0x2ab   : > { %12466 = vmatpush3.bf16.msk.msra.mxu1 %vm15761_vm13, %v18905_v50  ;;  %v12153_v51 = vpop.f32.mrf.mxu0  ;;  %12445 = vmatprep.subr.msk.bf16.mxu0 %vm15769_vm14, %v18905_v50  ;;  %vm3975_vm13 = vcmp.eq.s32.totalorder %v14181_v59, %v18998_v55  ;;  %vm4165_vm8 = vcmp.eq.s32.totalorder %v14027_v52, %v19009_v62 }
 0x2ac   : > { %v15794_v36 = vadd.f32 %v12173_v53, %v2679_v40  ;;  %v12175_v45 = vpop.f32.mrf.mxu1  ;;  %12467 = vmatprep.subr.msk.bf16.mxu1 %vm15769_vm14, %v18905_v50  ;;  %vm3976_vm14 = vcmp.eq.s32.totalorder %v14184_v57, %v18998_v55  ;;  %v19021_v53 = vld [vmem:[#allocation48_spill] sm:$0xff] }
 0x2ad   : > { %vm9779_vm0 = vmpackc.low %vm3976_vm14, %vm3975_vm13  ;;  %vm3955_vm13 = vcmp.eq.s32.totalorder %v13805_v3, %v18998_v55  ;;  %vm3956_vm14 = vcmp.eq.s32.totalorder %v14302_v32, %v18998_v55 }
 0x2ae   : > { %12446 = vmatpush3.bf16.msk.msra.mxu0 %vm9757_vm3, %v18905_v50  ;;  %vm9767_vm1 = vmpackc.low %vm3956_vm14, %vm3955_vm13 }
 0x2af   : > { %12468 = vmatpush3.bf16.msk.msra.mxu1 %vm9757_vm3, %v18905_v50  ;;  %12447 = vmatprep.subr.msk.bf16.mxu0 %vm9775_vm4, %v18905_v50  ;;  %vm3973_vm3 = vcmp.eq.s32.totalorder %v14230_v2, %v18998_v55 }
 0x2b0   : > { %12469 = vmatprep.subr.msk.bf16.mxu1 %vm9775_vm4, %v18905_v50  ;;  %vm3974_vm4 = vcmp.eq.s32.totalorder %v14233_v21, %v18998_v55 }
 0x2b1   : > { %vm9781_vm6 = vmpackc.low %vm3974_vm4, %vm3973_vm3  ;;  %vm4167_vm3 = vcmp.eq.s32.totalorder %v14006_v12, %v19009_v62  ;;  %vm4168_vm4 = vcmp.eq.s32.totalorder %v14009_v10, %v19009_v62 }
 0x2b2   : > { %12448 = vmatpush3.bf16.msk.msra.mxu0 %vm9759_vm9, %v18905_v50  ;;  %vm9849_vm7 = vmpackc.low %vm4168_vm4, %vm4167_vm3 }
 0x2b3   : > { %12470 = vmatpush3.bf16.msk.msra.mxu1 %vm9759_vm9, %v18905_v50  ;;  %12449 = vmatprep.subr.msk.bf16.mxu0 %vm9777_vm11, %v18905_v50  ;;  %vm3971_vm9 = vcmp.eq.s32.totalorder %v14273_v58, %v18998_v55 }
 0x2b4   : > { %12471 = vmatprep.subr.msk.bf16.mxu1 %vm9777_vm11, %v18905_v50  ;;  %vm3972_vm11 = vcmp.eq.s32.totalorder %v14276_v6, %v18998_v55  ;;  %v4268_v55 = vrot.slane %v15737_v41, 4 }
 0x2b5   : > { %vm9783_vm12 = vmpackc.low %vm3972_vm11, %vm3971_vm9  ;;  %vm4166_vm9 = vcmp.eq.s32.totalorder %v14030_v56, %v19009_v62 }
 0x2b6   : > { %12450 = vmatpush3.bf16.msk.msra.mxu0 %vm9761_vm15, %v18905_v50  ;;  %vm15892_vm13 = vmpackc.low %vm4166_vm9, %vm4165_vm8  ;;  %vm4176_vm8 = vcmp.eq.s32.totalorder %v14130_v31, %v19009_v62 }
 0x2b7   : > { %12472 = vmatpush3.bf16.msk.msra.mxu1 %vm9761_vm15, %v18905_v50  ;;  %12451 = vmatprep.subr.msk.bf16.mxu0 %vm9779_vm0, %v18905_v50  ;;  %vm4183_vm15 = vcmp.eq.s32.totalorder %v13980_v11, %v19009_v62 }
 0x2b8   : > { %12473 = vmatprep.subr.msk.bf16.mxu1 %vm9779_vm0, %v18905_v50  ;;  %vm4184_vm0 = vcmp.eq.s32.totalorder %v13983_v13, %v19009_v62 }
 0x2b9   : > { %vm9865_vm2 = vmpackc.low %vm4184_vm0, %vm4183_vm15  ;;  %vm4163_vm15 = vcmp.eq.s32.totalorder %v14068_v16, %v19009_v62  ;;  %vm4164_vm0 = vcmp.eq.s32.totalorder %v14071_v18, %v19009_v62 }
 0x2ba   : > { %12452 = vmatpush3.bf16.msk.msra.mxu0 %vm9763_vm5, %v18905_v50  ;;  %vm9853_vm3 = vmpackc.low %vm4164_vm0, %vm4163_vm15 }
 0x2bb   : > { %12474 = vmatpush3.bf16.msk.msra.mxu1 %vm9763_vm5, %v18905_v50  ;;  %12453 = vmatprep.subr.msk.bf16.mxu0 %vm9781_vm6, %v18905_v50  ;;  %vm4181_vm5 = vcmp.eq.s32.totalorder %v14012_v27, %v19009_v62 }
 0x2bc   : > { %12475 = vmatprep.subr.msk.bf16.mxu1 %vm9781_vm6, %v18905_v50  ;;  %vm4182_vm6 = vcmp.eq.s32.totalorder %v14022_v1, %v19009_v62 }
 0x2bd   : > { %vm15877_vm11 = vmpackc.low %vm4182_vm6, %vm4181_vm5  ;;  %vm4161_vm5 = vcmp.eq.s32.totalorder %v14117_v23, %v19009_v62  ;;  %vm4162_vm6 = vcmp.eq.s32.totalorder %v14120_v24, %v19009_v62 }
 0x2be   : > { %12454 = vmatpush3.bf16.msk.msra.mxu0 %vm9765_vm10, %v18905_v50  ;;  %vm9855_vm9 = vmpackc.low %vm4162_vm6, %vm4161_vm5 }
 0x2bf   : > { %12476 = vmatpush3.bf16.msk.msra.mxu1 %vm9765_vm10, %v18905_v50  ;;  %12455 = vmatprep.subr.msk.bf16.mxu0 %vm9783_vm12, %v18905_v50  ;;  %vm4179_vm10 = vcmp.eq.s32.totalorder %v14044_v61, %v19009_v62 }
 0x2c0   : > { %12477 = vmatprep.subr.msk.bf16.mxu1 %vm9783_vm12, %v18905_v50  ;;  %vm4180_vm12 = vcmp.eq.s32.totalorder %v14047_v4, %v19009_v62 }
 0x2c1   : > { %vm15899_vm14 = vmpackc.low %vm4180_vm12, %vm4179_vm10  ;;  %vm4159_vm10 = vcmp.eq.s32.totalorder %v14165_v22, %v19009_v62  ;;  %vm4160_vm12 = vcmp.eq.s32.totalorder %v14168_v46, %v19009_v62 }
 0x2c2   : > { %12456 = vmatpush3.bf16.msk.msra.mxu0 %vm9767_vm1, %v18905_v50  ;;  %vm9857_vm15 = vmpackc.low %vm4160_vm12, %vm4159_vm10 }
 0x2c3   : > { %12478 = vmatpush3.bf16.msk.msra.mxu1 %vm9767_vm1, %v18905_v50  ;;  %12485 = vmatprep.subr.msk.bf16.mxu0 %vm9865_vm2, %v18905_v50  ;;  %vm4177_vm1 = vcmp.eq.s32.totalorder %v14080_v8, %v19009_v62 }
 0x2c4   : > { %12507 = vmatprep.subr.msk.bf16.mxu1 %vm9865_vm2, %v18905_v50  ;;  %vm4178_vm2 = vcmp.eq.s32.totalorder %v14083_v20, %v19009_v62 }
 0x2c5   : > { %v12193_v25 = vpop.f32.mrf.mxu0  ;;  %4100 = vmatmul.mubr.bf16.vlgmr.msra.gmra.mxu0 %v19010_v17  ;;  %vm9871_vm4 = vmpackc.low %vm4178_vm2, %vm4177_vm1  ;;  %vm4157_vm1 = vcmp.eq.s32.totalorder %v14220_v14, %v19009_v62  ;;  %vm4158_vm2 = vcmp.eq.s32.totalorder %v14223_v15, %v19009_v62 }
 0x2c6   : > { %v12215_v35 = vpop.f32.mrf.mxu1  ;;  %4141 = vmatmul.mubr.bf16.vlgmr.msra.gmra.mxu1 %v19013_v19  ;;  %12486 = vmatpush3.bf16.msk.msra.mxu0 %vm9849_vm7, %v18905_v50  ;;  %vm9859_vm5 = vmpackc.low %vm4158_vm2, %vm4157_vm1 }
 0x2c7   : > { %4303 = vmatprep.mubr.bf16.mxu0 %v4268_v55  ;;  %12508 = vmatpush3.bf16.msk.msra.mxu1 %vm9849_vm7, %v18905_v50  ;;  %v12194_v41 = vpop.f32.mrf.mxu0  ;;  %vm4175_vm7 = vcmp.eq.s32.totalorder %v14127_v26, %v19009_v62 }
 0x2c8   : > { %4350 = vmatprep.mubr.bf16.mxu1 %v4315_v63  ;;  %v12195_v54 = vadd.f32 %v12194_v41, %v12193_v25  ;;  %v12216_v40 = vpop.f32.mrf.mxu1  ;;  %12487 = vmatprep.subr.msk.bf16.mxu0 %vm15877_vm11, %v18905_v50  ;;  %v4314_v41 = vrot.slane %v19013_v19, 4  ;;  %v19025_v19 = vld [vmem:[#allocation49_spill] sm:$0xff] }
 0x2c9   : > { %v12217_v47 = vadd.f32 %v12216_v40, %v12215_v35  ;;  %v12196_v51 = vpop.f32.mrf.mxu0  ;;  %12509 = vmatprep.subr.msk.bf16.mxu1 %vm15877_vm11, %v18905_v50  ;;  %vm9873_vm11 = vmpackc.low %vm4176_vm8, %vm4175_vm7  ;;  %vm4155_vm7 = vcmp.eq.s32.totalorder %v14261_v42, %v19009_v62  ;;  %vm4156_vm8 = vcmp.eq.s32.totalorder %v14264_v60, %v19009_v62 }
 0x2ca   : > { %v2883_v45 = vadd.f32 %v12195_v54, %v15794_v36  ;;  %v12218_v55 = vpop.f32.mrf.mxu1  ;;  %12488 = vmatpush3.bf16.msk.msra.mxu0 %vm15892_vm13, %v18905_v50  ;;  %vm9861_vm10 = vmpackc.low %vm4156_vm8, %vm4155_vm7  ;;  %v19018_v36 = vld [vmem:[#allocation24_spill] sm:$0xff] }
 0x2cb   : > { %12510 = vmatpush3.bf16.msk.msra.mxu1 %vm15892_vm13, %v18905_v50  ;;  %v12197_v25 = vpop.f32.mrf.mxu0  ;;  %12489 = vmatprep.subr.msk.bf16.mxu0 %vm15899_vm14, %v18905_v50  ;;  %vm4173_vm13 = vcmp.eq.s32.totalorder %v14181_v59, %v19009_v62  ;;  %vm4375_vm8 = vcmp.eq.s32.totalorder %v14027_v52, %v19018_v36 }
 0x2cc   : > { %v15924_v5 = vadd.f32 %v12217_v47, %v2883_v45  ;;  %v12219_v63 = vpop.f32.mrf.mxu1  ;;  %12511 = vmatprep.subr.msk.bf16.mxu1 %vm15899_vm14, %v18905_v50  ;;  %vm4174_vm14 = vcmp.eq.s32.totalorder %v14184_v57, %v19009_v62  ;;  %v19026_v47 = vld [vmem:[#allocation53_spill] sm:$0xff] }
 0x2cd   : > { %vm9875_vm0 = vmpackc.low %vm4174_vm14, %vm4173_vm13  ;;  %vm4153_vm13 = vcmp.eq.s32.totalorder %v13805_v3, %v19009_v62  ;;  %vm4154_vm14 = vcmp.eq.s32.totalorder %v14302_v32, %v19009_v62  ;;  %v16025_v51 = vpack.c.bf16 %v19026_v47, %v19025_v19 }
 0x2ce   : > { %12490 = vmatpush3.bf16.msk.msra.mxu0 %vm9853_vm3, %v18905_v50  ;;  %vm9863_vm1 = vmpackc.low %vm4154_vm14, %vm4153_vm13 }
 0x2cf   : > { %12512 = vmatpush3.bf16.msk.msra.mxu1 %vm9853_vm3, %v18905_v50  ;;  %12491 = vmatprep.subr.msk.bf16.mxu0 %vm9871_vm4, %v18905_v50  ;;  %vm4171_vm3 = vcmp.eq.s32.totalorder %v14230_v2, %v19009_v62 }
 0x2d0   : > { %12513 = vmatprep.subr.msk.bf16.mxu1 %vm9871_vm4, %v18905_v50  ;;  %vm4172_vm4 = vcmp.eq.s32.totalorder %v14233_v21, %v19009_v62 }
 0x2d1   : > { %vm9877_vm6 = vmpackc.low %vm4172_vm4, %vm4171_vm3  ;;  %vm4377_vm3 = vcmp.eq.s32.totalorder %v14006_v12, %v19018_v36  ;;  %vm4378_vm4 = vcmp.eq.s32.totalorder %v14009_v10, %v19018_v36 }
 0x2d2   : > { %12492 = vmatpush3.bf16.msk.msra.mxu0 %vm9855_vm9, %v18905_v50  ;;  %vm16001_vm7 = vmpackc.low %vm4378_vm4, %vm4377_vm3 }
 0x2d3   : > { %12514 = vmatpush3.bf16.msk.msra.mxu1 %vm9855_vm9, %v18905_v50  ;;  %12493 = vmatprep.subr.msk.bf16.mxu0 %vm9873_vm11, %v18905_v50  ;;  %vm4169_vm9 = vcmp.eq.s32.totalorder %v14273_v58, %v19009_v62 }
 0x2d4   : > { %12515 = vmatprep.subr.msk.bf16.mxu1 %vm9873_vm11, %v18905_v50  ;;  %vm4170_vm11 = vcmp.eq.s32.totalorder %v14276_v6, %v19009_v62  ;;  %v4267_v62 = vrot.slane %v19010_v17, 4  ;;  %v19022_v17 = vld [vmem:[#allocation52_spill] sm:$0xff] }
 0x2d5   : > { %vm9879_vm12 = vmpackc.low %vm4170_vm11, %vm4169_vm9  ;;  %vm4376_vm9 = vcmp.eq.s32.totalorder %v14030_v56, %v19018_v36  ;;  %v16013_v54 = vpack.c.bf16 %v19022_v17, %v19021_v53 }
 0x2d6   : > { %12494 = vmatpush3.bf16.msk.msra.mxu0 %vm9857_vm15, %v18905_v50  ;;  %vm16037_vm13 = vmpackc.low %vm4376_vm9, %vm4375_vm8  ;;  %vm4386_vm8 = vcmp.eq.s32.totalorder %v14130_v31, %v19018_v36 }
 0x2d7   : > { %12516 = vmatpush3.bf16.msk.msra.mxu1 %vm9857_vm15, %v18905_v50  ;;  %12495 = vmatprep.subr.msk.bf16.mxu0 %vm9875_vm0, %v18905_v50  ;;  %vm4393_vm15 = vcmp.eq.s32.totalorder %v13980_v11, %v19018_v36 }
 0x2d8   : > { %12517 = vmatprep.subr.msk.bf16.mxu1 %vm9875_vm0, %v18905_v50  ;;  %vm4394_vm0 = vcmp.eq.s32.totalorder %v13983_v13, %v19018_v36 }
 0x2d9   : > { %vm9961_vm2 = vmpackc.low %vm4394_vm0, %vm4393_vm15  ;;  %vm4373_vm15 = vcmp.eq.s32.totalorder %v14068_v16, %v19018_v36  ;;  %vm4374_vm0 = vcmp.eq.s32.totalorder %v14071_v18, %v19018_v36 }
 0x2da   : > { %12496 = vmatpush3.bf16.msk.msra.mxu0 %vm9859_vm5, %v18905_v50  ;;  %vm9949_vm3 = vmpackc.low %vm4374_vm0, %vm4373_vm15 }
 0x2db   : > { %12518 = vmatpush3.bf16.msk.msra.mxu1 %vm9859_vm5, %v18905_v50  ;;  %12497 = vmatprep.subr.msk.bf16.mxu0 %vm9877_vm6, %v18905_v50  ;;  %vm4391_vm5 = vcmp.eq.s32.totalorder %v14012_v27, %v19018_v36 }
 0x2dc   : > { %12519 = vmatprep.subr.msk.bf16.mxu1 %vm9877_vm6, %v18905_v50  ;;  %vm4392_vm6 = vcmp.eq.s32.totalorder %v14022_v1, %v19018_v36 }
 0x2dd   : > { %vm16015_vm11 = vmpackc.low %vm4392_vm6, %vm4391_vm5  ;;  %vm4371_vm5 = vcmp.eq.s32.totalorder %v14117_v23, %v19018_v36  ;;  %vm4372_vm6 = vcmp.eq.s32.totalorder %v14120_v24, %v19018_v36 }
 0x2de   : > { %12498 = vmatpush3.bf16.msk.msra.mxu0 %vm9861_vm10, %v18905_v50  ;;  %vm9951_vm9 = vmpackc.low %vm4372_vm6, %vm4371_vm5 }
 0x2df   : > { %12520 = vmatpush3.bf16.msk.msra.mxu1 %vm9861_vm10, %v18905_v50  ;;  %12499 = vmatprep.subr.msk.bf16.mxu0 %vm9879_vm12, %v18905_v50  ;;  %vm4389_vm10 = vcmp.eq.s32.totalorder %v14044_v61, %v19018_v36 }
 0x2e0   : > { %12521 = vmatprep.subr.msk.bf16.mxu1 %vm9879_vm12, %v18905_v50  ;;  %vm4390_vm12 = vcmp.eq.s32.totalorder %v14047_v4, %v19018_v36 }
 0x2e1   : > { %vm16045_vm14 = vmpackc.low %vm4390_vm12, %vm4389_vm10  ;;  %vm4369_vm10 = vcmp.eq.s32.totalorder %v14165_v22, %v19018_v36  ;;  %vm4370_vm12 = vcmp.eq.s32.totalorder %v14168_v46, %v19018_v36 }
 0x2e2   : > { %12500 = vmatpush3.bf16.msk.msra.mxu0 %vm9863_vm1, %v18905_v50  ;;  %vm9953_vm15 = vmpackc.low %vm4370_vm12, %vm4369_vm10 }
 0x2e3   : > { %12522 = vmatpush3.bf16.msk.msra.mxu1 %vm9863_vm1, %v18905_v50  ;;  %12529 = vmatprep.subr.msk.bf16.mxu0 %vm9961_vm2, %v18905_v50  ;;  %vm4387_vm1 = vcmp.eq.s32.totalorder %v14080_v8, %v19018_v36 }
 0x2e4   : > { %12551 = vmatprep.subr.msk.bf16.mxu1 %vm9961_vm2, %v18905_v50  ;;  %vm4388_vm2 = vcmp.eq.s32.totalorder %v14083_v20, %v19018_v36 }
 0x2e5   : > { %v12237_v40 = vpop.f32.mrf.mxu0  ;;  %4304 = vmatmul.mubr.bf16.vlgmr.msra.gmra.mxu0 %v4267_v62  ;;  %vm9967_vm4 = vmpackc.low %vm4388_vm2, %vm4387_vm1  ;;  %vm4367_vm1 = vcmp.eq.s32.totalorder %v14220_v14, %v19018_v36  ;;  %vm4368_vm2 = vcmp.eq.s32.totalorder %v14223_v15, %v19018_v36 }
 0x2e6   : > { %v12259_v45 = vpop.f32.mrf.mxu1  ;;  %4351 = vmatmul.mubr.bf16.vlgmr.msra.gmra.mxu1 %v4314_v41  ;;  %12530 = vmatpush3.bf16.msk.msra.mxu0 %vm16001_vm7, %v18905_v50  ;;  %vm9955_vm5 = vmpackc.low %vm4368_vm2, %vm4367_vm1  ;;  %v19035_v41 = vld [vmem:[#allocation51_spill] sm:$0xff] }
 0x2e7   : > { %4507 = vmatprep.mubr.bf16.mxu0 %v16013_v54  ;;  %12552 = vmatpush3.bf16.msk.msra.mxu1 %vm16001_vm7, %v18905_v50  ;;  %v12238_v55 = vpop.f32.mrf.mxu0  ;;  %vm4385_vm7 = vcmp.eq.s32.totalorder %v14127_v26, %v19018_v36 }
 0x2e8   : > { %4548 = vmatprep.mubr.bf16.mxu1 %v16025_v51  ;;  %v12239_v63 = vadd.f32 %v12238_v55, %v12237_v40  ;;  %v12260_v62 = vpop.f32.mrf.mxu1  ;;  %12531 = vmatprep.subr.msk.bf16.mxu0 %vm16015_vm11, %v18905_v50  ;;  %v19032_v55 = vld [vmem:[#allocation50_spill] sm:$0xff] }
 0x2e9   : > { %v12261_v35 = vadd.f32 %v12260_v62, %v12259_v45  ;;  %v12240_v53 = vpop.f32.mrf.mxu0  ;;  %12553 = vmatprep.subr.msk.bf16.mxu1 %vm16015_vm11, %v18905_v50  ;;  %vm9969_vm11 = vmpackc.low %vm4386_vm8, %vm4385_vm7  ;;  %vm4365_vm7 = vcmp.eq.s32.totalorder %v14261_v42, %v19018_v36  ;;  %vm4366_vm8 = vcmp.eq.s32.totalorder %v14264_v60, %v19018_v36 }
 0x2ea   : > { %v3087_v17 = vadd.f32 %v12239_v63, %v15924_v5  ;;  %v12262_v40 = vpop.f32.mrf.mxu1  ;;  %12532 = vmatpush3.bf16.msk.msra.mxu0 %vm16037_vm13, %v18905_v50  ;;  %vm9957_vm10 = vmpackc.low %vm4366_vm8, %vm4365_vm7  ;;  %v19031_v5 = vld [vmem:[#allocation21_spill] sm:$0xff]  ;;  %v4723_v63 = vrot.slane %v16025_v51, 4  ;;  %v19047_v51 = vld [vmem:[#allocation58_spill] sm:$0xff] }
 0x2eb   : > { %12554 = vmatpush3.bf16.msk.msra.mxu1 %vm16037_vm13, %v18905_v50  ;;  %v12241_v19 = vpop.f32.mrf.mxu0  ;;  %12533 = vmatprep.subr.msk.bf16.mxu0 %vm16045_vm14, %v18905_v50  ;;  %vm4383_vm13 = vcmp.eq.s32.totalorder %v14181_v59, %v19018_v36  ;;  %vm4573_vm8 = vcmp.eq.s32.totalorder %v14027_v52, %v19031_v5 }
 0x2ec   : > { %v16070_v39 = vadd.f32 %v12261_v35, %v3087_v17  ;;  %v12263_v47 = vpop.f32.mrf.mxu1  ;;  %12555 = vmatprep.subr.msk.bf16.mxu1 %vm16045_vm14, %v18905_v50  ;;  %vm4384_vm14 = vcmp.eq.s32.totalorder %v14184_v57, %v19018_v36  ;;  %v19043_v35 = vld [vmem:[#allocation54_spill] sm:$0xff] }
 0x2ed   : > { %vm9971_vm0 = vmpackc.low %vm4384_vm14, %vm4383_vm13  ;;  %vm4363_vm13 = vcmp.eq.s32.totalorder %v13805_v3, %v19018_v36  ;;  %vm4364_vm14 = vcmp.eq.s32.totalorder %v14302_v32, %v19018_v36 }
 0x2ee   : > { %12534 = vmatpush3.bf16.msk.msra.mxu0 %vm9949_vm3, %v18905_v50  ;;  %vm9959_vm1 = vmpackc.low %vm4364_vm14, %vm4363_vm13 }
 0x2ef   : > { %12556 = vmatpush3.bf16.msk.msra.mxu1 %vm9949_vm3, %v18905_v50  ;;  %12535 = vmatprep.subr.msk.bf16.mxu0 %vm9967_vm4, %v18905_v50  ;;  %vm4381_vm3 = vcmp.eq.s32.totalorder %v14230_v2, %v19018_v36 }
 0x2f0   : > { %12557 = vmatprep.subr.msk.bf16.mxu1 %vm9967_vm4, %v18905_v50  ;;  %vm4382_vm4 = vcmp.eq.s32.totalorder %v14233_v21, %v19018_v36 }
 0x2f1   : > { %vm9973_vm6 = vmpackc.low %vm4382_vm4, %vm4381_vm3  ;;  %vm4575_vm3 = vcmp.eq.s32.totalorder %v14006_v12, %v19031_v5  ;;  %vm4576_vm4 = vcmp.eq.s32.totalorder %v14009_v10, %v19031_v5 }
 0x2f2   : > { %12536 = vmatpush3.bf16.msk.msra.mxu0 %vm9951_vm9, %v18905_v50  ;;  %vm10041_vm7 = vmpackc.low %vm4576_vm4, %vm4575_vm3 }
 0x2f3   : > { %12558 = vmatpush3.bf16.msk.msra.mxu1 %vm9951_vm9, %v18905_v50  ;;  %12537 = vmatprep.subr.msk.bf16.mxu0 %vm9969_vm11, %v18905_v50  ;;  %vm4379_vm9 = vcmp.eq.s32.totalorder %v14273_v58, %v19018_v36 }
 0x2f4   : > { %12559 = vmatprep.subr.msk.bf16.mxu1 %vm9969_vm11, %v18905_v50  ;;  %vm4380_vm11 = vcmp.eq.s32.totalorder %v14276_v6, %v19018_v36  ;;  %v4676_v36 = vrot.slane %v16013_v54, 4 }
 0x2f5   : > { %vm9975_vm12 = vmpackc.low %vm4380_vm11, %vm4379_vm9  ;;  %vm4574_vm9 = vcmp.eq.s32.totalorder %v14030_v56, %v19031_v5 }
 0x2f6   : > { %12538 = vmatpush3.bf16.msk.msra.mxu0 %vm9953_vm15, %v18905_v50  ;;  %vm16168_vm13 = vmpackc.low %vm4574_vm9, %vm4573_vm8  ;;  %vm4584_vm8 = vcmp.eq.s32.totalorder %v14130_v31, %v19031_v5 }
 0x2f7   : > { %12560 = vmatpush3.bf16.msk.msra.mxu1 %vm9953_vm15, %v18905_v50  ;;  %12539 = vmatprep.subr.msk.bf16.mxu0 %vm9971_vm0, %v18905_v50  ;;  %vm4591_vm15 = vcmp.eq.s32.totalorder %v13980_v11, %v19031_v5 }
 0x2f8   : > { %12561 = vmatprep.subr.msk.bf16.mxu1 %vm9971_vm0, %v18905_v50  ;;  %vm4592_vm0 = vcmp.eq.s32.totalorder %v13983_v13, %v19031_v5 }
 0x2f9   : > { %vm10057_vm2 = vmpackc.low %vm4592_vm0, %vm4591_vm15  ;;  %vm4571_vm15 = vcmp.eq.s32.totalorder %v14068_v16, %v19031_v5  ;;  %vm4572_vm0 = vcmp.eq.s32.totalorder %v14071_v18, %v19031_v5 }
 0x2fa   : > { %12540 = vmatpush3.bf16.msk.msra.mxu0 %vm9955_vm5, %v18905_v50  ;;  %vm10045_vm3 = vmpackc.low %vm4572_vm0, %vm4571_vm15 }
 0x2fb   : > { %12562 = vmatpush3.bf16.msk.msra.mxu1 %vm9955_vm5, %v18905_v50  ;;  %12541 = vmatprep.subr.msk.bf16.mxu0 %vm9973_vm6, %v18905_v50  ;;  %vm4589_vm5 = vcmp.eq.s32.totalorder %v14012_v27, %v19031_v5 }
 0x2fc   : > { %12563 = vmatprep.subr.msk.bf16.mxu1 %vm9973_vm6, %v18905_v50  ;;  %vm4590_vm6 = vcmp.eq.s32.totalorder %v14022_v1, %v19031_v5 }
 0x2fd   : > { %vm16153_vm11 = vmpackc.low %vm4590_vm6, %vm4589_vm5  ;;  %vm4569_vm5 = vcmp.eq.s32.totalorder %v14117_v23, %v19031_v5  ;;  %vm4570_vm6 = vcmp.eq.s32.totalorder %v14120_v24, %v19031_v5 }
 0x2fe   : > { %12542 = vmatpush3.bf16.msk.msra.mxu0 %vm9957_vm10, %v18905_v50  ;;  %vm10047_vm9 = vmpackc.low %vm4570_vm6, %vm4569_vm5 }
 0x2ff   : > { %12564 = vmatpush3.bf16.msk.msra.mxu1 %vm9957_vm10, %v18905_v50  ;;  %12543 = vmatprep.subr.msk.bf16.mxu0 %vm9975_vm12, %v18905_v50  ;;  %vm4587_vm10 = vcmp.eq.s32.totalorder %v14044_v61, %v19031_v5 }
 0x300   : > { %12565 = vmatprep.subr.msk.bf16.mxu1 %vm9975_vm12, %v18905_v50  ;;  %vm4588_vm12 = vcmp.eq.s32.totalorder %v14047_v4, %v19031_v5 }
 0x301   : > { %vm16175_vm14 = vmpackc.low %vm4588_vm12, %vm4587_vm10  ;;  %vm4567_vm10 = vcmp.eq.s32.totalorder %v14165_v22, %v19031_v5  ;;  %vm4568_vm12 = vcmp.eq.s32.totalorder %v14168_v46, %v19031_v5 }
 0x302   : > { %12544 = vmatpush3.bf16.msk.msra.mxu0 %vm9959_vm1, %v18905_v50  ;;  %vm10049_vm15 = vmpackc.low %vm4568_vm12, %vm4567_vm10 }
 0x303   : > { %12566 = vmatpush3.bf16.msk.msra.mxu1 %vm9959_vm1, %v18905_v50  ;;  %12573 = vmatprep.subr.msk.bf16.mxu0 %vm10057_vm2, %v18905_v50  ;;  %vm4585_vm1 = vcmp.eq.s32.totalorder %v14080_v8, %v19031_v5 }
 0x304   : > { %12595 = vmatprep.subr.msk.bf16.mxu1 %vm10057_vm2, %v18905_v50  ;;  %vm4586_vm2 = vcmp.eq.s32.totalorder %v14083_v20, %v19031_v5 }
 0x305   : > { %v12281_v45 = vpop.f32.mrf.mxu0  ;;  %4508 = vmatmul.mubr.bf16.vlgmr.msra.gmra.mxu0 %v19032_v55  ;;  %vm10063_vm4 = vmpackc.low %vm4586_vm2, %vm4585_vm1  ;;  %vm4565_vm1 = vcmp.eq.s32.totalorder %v14220_v14, %v19031_v5  ;;  %vm4566_vm2 = vcmp.eq.s32.totalorder %v14223_v15, %v19031_v5 }
 0x306   : > { %v12303_v62 = vpop.f32.mrf.mxu1  ;;  %4549 = vmatmul.mubr.bf16.vlgmr.msra.gmra.mxu1 %v19035_v41  ;;  %12574 = vmatpush3.bf16.msk.msra.mxu0 %vm10041_vm7, %v18905_v50  ;;  %vm10051_vm5 = vmpackc.low %vm4566_vm2, %vm4565_vm1 }
 0x307   : > { %4711 = vmatprep.mubr.bf16.mxu0 %v4676_v36  ;;  %12596 = vmatpush3.bf16.msk.msra.mxu1 %vm10041_vm7, %v18905_v50  ;;  %v12282_v54 = vpop.f32.mrf.mxu0  ;;  %vm4583_vm7 = vcmp.eq.s32.totalorder %v14127_v26, %v19031_v5 }
 0x308   : > { %4758 = vmatprep.mubr.bf16.mxu1 %v4723_v63  ;;  %v12283_v53 = vadd.f32 %v12282_v54, %v12281_v45  ;;  %v12304_v17 = vpop.f32.mrf.mxu1  ;;  %12575 = vmatprep.subr.msk.bf16.mxu0 %vm16153_vm11, %v18905_v50  ;;  %v4722_v54 = vrot.slane %v19035_v41, 4  ;;  %v19046_v41 = vld [vmem:[#allocation55_spill] sm:$0xff] }
 0x309   : > { %v12305_v40 = vadd.f32 %v12304_v17, %v12303_v62  ;;  %v12284_v19 = vpop.f32.mrf.mxu0  ;;  %12597 = vmatprep.subr.msk.bf16.mxu1 %vm16153_vm11, %v18905_v50  ;;  %vm10065_vm11 = vmpackc.low %vm4584_vm8, %vm4583_vm7  ;;  %vm4563_vm7 = vcmp.eq.s32.totalorder %v14261_v42, %v19031_v5  ;;  %vm4564_vm8 = vcmp.eq.s32.totalorder %v14264_v60, %v19031_v5 }
 0x30a   : > { %v3291_v47 = vadd.f32 %v12283_v53, %v16070_v39  ;;  %v12306_v36 = vpop.f32.mrf.mxu1  ;;  %12576 = vmatpush3.bf16.msk.msra.mxu0 %vm16168_vm13, %v18905_v50  ;;  %vm10053_vm10 = vmpackc.low %vm4564_vm8, %vm4563_vm7  ;;  %v19040_v39 = vld [vmem:[#allocation32_spill] sm:$0xff] }
 0x30b   : > { %12598 = vmatpush3.bf16.msk.msra.mxu1 %vm16168_vm13, %v18905_v50  ;;  %v12285_v45 = vpop.f32.mrf.mxu0  ;;  %12577 = vmatprep.subr.msk.bf16.mxu0 %vm16175_vm14, %v18905_v50  ;;  %vm4581_vm13 = vcmp.eq.s32.totalorder %v14181_v59, %v19031_v5  ;;  %vm4783_vm8 = vcmp.eq.s32.totalorder %v14027_v52, %v19040_v39 }
 0x30c   : > { %v16200_v25 = vadd.f32 %v12305_v40, %v3291_v47  ;;  %v12307_v63 = vpop.f32.mrf.mxu1  ;;  %12599 = vmatprep.subr.msk.bf16.mxu1 %vm16175_vm14, %v18905_v50  ;;  %vm4582_vm14 = vcmp.eq.s32.totalorder %v14184_v57, %v19031_v5  ;;  %v16301_v40 = vpack.c.bf16 %v19047_v51, %v19046_v41 }
 0x30d   : > { %vm10067_vm0 = vmpackc.low %vm4582_vm14, %vm4581_vm13  ;;  %vm4561_vm13 = vcmp.eq.s32.totalorder %v13805_v3, %v19031_v5  ;;  %vm4562_vm14 = vcmp.eq.s32.totalorder %v14302_v32, %v19031_v5  ;;  %v19063_v63 = vld [vmem:[#allocation59_spill] sm:$0xff] }
 0x30e   : > { %12578 = vmatpush3.bf16.msk.msra.mxu0 %vm10045_vm3, %v18905_v50  ;;  %vm10055_vm1 = vmpackc.low %vm4562_vm14, %vm4561_vm13  ;;  %v5131_v47 = vrot.slane %v16301_v40, 4 }
 0x30f   : > { %12600 = vmatpush3.bf16.msk.msra.mxu1 %vm10045_vm3, %v18905_v50  ;;  %12579 = vmatprep.subr.msk.bf16.mxu0 %vm10063_vm4, %v18905_v50  ;;  %vm4579_vm3 = vcmp.eq.s32.totalorder %v14230_v2, %v19031_v5 }
 0x310   : > { %12601 = vmatprep.subr.msk.bf16.mxu1 %vm10063_vm4, %v18905_v50  ;;  %vm4580_vm4 = vcmp.eq.s32.totalorder %v14233_v21, %v19031_v5 }
 0x311   : > { %vm10069_vm6 = vmpackc.low %vm4580_vm4, %vm4579_vm3  ;;  %vm4785_vm3 = vcmp.eq.s32.totalorder %v14006_v12, %v19040_v39  ;;  %vm4786_vm4 = vcmp.eq.s32.totalorder %v14009_v10, %v19040_v39 }
 0x312   : > { %12580 = vmatpush3.bf16.msk.msra.mxu0 %vm10047_vm9, %v18905_v50  ;;  %vm16277_vm7 = vmpackc.low %vm4786_vm4, %vm4785_vm3 }
 0x313   : > { %12602 = vmatpush3.bf16.msk.msra.mxu1 %vm10047_vm9, %v18905_v50  ;;  %12581 = vmatprep.subr.msk.bf16.mxu0 %vm10065_vm11, %v18905_v50  ;;  %vm4577_vm9 = vcmp.eq.s32.totalorder %v14273_v58, %v19031_v5 }
 0x314   : > { %12603 = vmatprep.subr.msk.bf16.mxu1 %vm10065_vm11, %v18905_v50  ;;  %vm4578_vm11 = vcmp.eq.s32.totalorder %v14276_v6, %v19031_v5  ;;  %v4675_v5 = vrot.slane %v19032_v55, 4  ;;  %v16289_v55 = vpack.c.bf16 %v14718_v48, %v19043_v35 }
 0x315   : > { %vm10071_vm12 = vmpackc.low %vm4578_vm11, %vm4577_vm9  ;;  %vm4784_vm9 = vcmp.eq.s32.totalorder %v14030_v56, %v19040_v39 }
 0x316   : > { %12582 = vmatpush3.bf16.msk.msra.mxu0 %vm10049_vm15, %v18905_v50  ;;  %vm16313_vm13 = vmpackc.low %vm4784_vm9, %vm4783_vm8  ;;  %vm4794_vm8 = vcmp.eq.s32.totalorder %v14130_v31, %v19040_v39 }
 0x317   : > { %12604 = vmatpush3.bf16.msk.msra.mxu1 %vm10049_vm15, %v18905_v50  ;;  %12583 = vmatprep.subr.msk.bf16.mxu0 %vm10067_vm0, %v18905_v50  ;;  %vm4801_vm15 = vcmp.eq.s32.totalorder %v13980_v11, %v19040_v39 }
 0x318   : > { %12605 = vmatprep.subr.msk.bf16.mxu1 %vm10067_vm0, %v18905_v50  ;;  %vm4802_vm0 = vcmp.eq.s32.totalorder %v13983_v13, %v19040_v39 }
 0x319   : > { %vm10153_vm2 = vmpackc.low %vm4802_vm0, %vm4801_vm15  ;;  %vm4781_vm15 = vcmp.eq.s32.totalorder %v14068_v16, %v19040_v39  ;;  %vm4782_vm0 = vcmp.eq.s32.totalorder %v14071_v18, %v19040_v39 }
 0x31a   : > { %12584 = vmatpush3.bf16.msk.msra.mxu0 %vm10051_vm5, %v18905_v50  ;;  %vm10141_vm3 = vmpackc.low %vm4782_vm0, %vm4781_vm15 }
 0x31b   : > { %12606 = vmatpush3.bf16.msk.msra.mxu1 %vm10051_vm5, %v18905_v50  ;;  %12585 = vmatprep.subr.msk.bf16.mxu0 %vm10069_vm6, %v18905_v50  ;;  %vm4799_vm5 = vcmp.eq.s32.totalorder %v14012_v27, %v19040_v39 }
 0x31c   : > { %12607 = vmatprep.subr.msk.bf16.mxu1 %vm10069_vm6, %v18905_v50  ;;  %vm4800_vm6 = vcmp.eq.s32.totalorder %v14022_v1, %v19040_v39 }
 0x31d   : > { %vm16291_vm11 = vmpackc.low %vm4800_vm6, %vm4799_vm5  ;;  %vm4779_vm5 = vcmp.eq.s32.totalorder %v14117_v23, %v19040_v39  ;;  %vm4780_vm6 = vcmp.eq.s32.totalorder %v14120_v24, %v19040_v39 }
 0x31e   : > { %12586 = vmatpush3.bf16.msk.msra.mxu0 %vm10053_vm10, %v18905_v50  ;;  %vm10143_vm9 = vmpackc.low %vm4780_vm6, %vm4779_vm5 }
 0x31f   : > { %12608 = vmatpush3.bf16.msk.msra.mxu1 %vm10053_vm10, %v18905_v50  ;;  %12587 = vmatprep.subr.msk.bf16.mxu0 %vm10071_vm12, %v18905_v50  ;;  %vm4797_vm10 = vcmp.eq.s32.totalorder %v14044_v61, %v19040_v39 }
 0x320   : > { %12609 = vmatprep.subr.msk.bf16.mxu1 %vm10071_vm12, %v18905_v50  ;;  %vm4798_vm12 = vcmp.eq.s32.totalorder %v14047_v4, %v19040_v39 }
 0x321   : > { %vm16321_vm14 = vmpackc.low %vm4798_vm12, %vm4797_vm10  ;;  %vm4777_vm10 = vcmp.eq.s32.totalorder %v14165_v22, %v19040_v39  ;;  %vm4778_vm12 = vcmp.eq.s32.totalorder %v14168_v46, %v19040_v39 }
 0x322   : > { %12588 = vmatpush3.bf16.msk.msra.mxu0 %vm10055_vm1, %v18905_v50  ;;  %vm10145_vm15 = vmpackc.low %vm4778_vm12, %vm4777_vm10 }
 0x323   : > { %12610 = vmatpush3.bf16.msk.msra.mxu1 %vm10055_vm1, %v18905_v50  ;;  %12617 = vmatprep.subr.msk.bf16.mxu0 %vm10153_vm2, %v18905_v50  ;;  %vm4795_vm1 = vcmp.eq.s32.totalorder %v14080_v8, %v19040_v39 }
 0x324   : > { %12639 = vmatprep.subr.msk.bf16.mxu1 %vm10153_vm2, %v18905_v50  ;;  %vm4796_vm2 = vcmp.eq.s32.totalorder %v14083_v20, %v19040_v39 }
 0x325   : > { %v12325_v53 = vpop.f32.mrf.mxu0  ;;  %4712 = vmatmul.mubr.bf16.vlgmr.msra.gmra.mxu0 %v4675_v5  ;;  %vm10159_vm4 = vmpackc.low %vm4796_vm2, %vm4795_vm1  ;;  %vm4775_vm1 = vcmp.eq.s32.totalorder %v14220_v14, %v19040_v39  ;;  %vm4776_vm2 = vcmp.eq.s32.totalorder %v14223_v15, %v19040_v39 }
 0x326   : > { %v12347_v19 = vpop.f32.mrf.mxu1  ;;  %4759 = vmatmul.mubr.bf16.vlgmr.msra.gmra.mxu1 %v4722_v54  ;;  %12618 = vmatpush3.bf16.msk.msra.mxu0 %vm16277_vm7, %v18905_v50  ;;  %vm10147_vm5 = vmpackc.low %vm4776_vm2, %vm4775_vm1 }
 0x327   : > { %4915 = vmatprep.mubr.bf16.mxu0 %v16289_v55  ;;  %12640 = vmatpush3.bf16.msk.msra.mxu1 %vm16277_vm7, %v18905_v50  ;;  %v12326_v48 = vpop.f32.mrf.mxu0  ;;  %vm4793_vm7 = vcmp.eq.s32.totalorder %v14127_v26, %v19040_v39 }
 0x328   : > { %4956 = vmatprep.mubr.bf16.mxu1 %v16301_v40  ;;  %v12327_v36 = vadd.f32 %v12326_v48, %v12325_v53  ;;  %v12348_v45 = vpop.f32.mrf.mxu1  ;;  %12619 = vmatprep.subr.msk.bf16.mxu0 %vm16291_vm11, %v18905_v50 }
 0x329   : > { %v12349_v5 = vadd.f32 %v12348_v45, %v12347_v19  ;;  %v12328_v62 = vpop.f32.mrf.mxu0  ;;  %12641 = vmatprep.subr.msk.bf16.mxu1 %vm16291_vm11, %v18905_v50  ;;  %vm10161_vm11 = vmpackc.low %vm4794_vm8, %vm4793_vm7  ;;  %vm4773_vm7 = vcmp.eq.s32.totalorder %v14261_v42, %v19040_v39  ;;  %vm4774_vm8 = vcmp.eq.s32.totalorder %v14264_v60, %v19040_v39  ;;  %v19053_v19 = vld [vmem:[#allocation56_spill] sm:$0xff]  ;;  %v19056_v45 = vld [vmem:[#allocation57_spill] sm:$0xff] }
 0x32a   : > { %v3495_v54 = vadd.f32 %v12327_v36, %v16200_v25  ;;  %v12350_v35 = vpop.f32.mrf.mxu1  ;;  %12620 = vmatpush3.bf16.msk.msra.mxu0 %vm16313_vm13, %v18905_v50  ;;  %vm10149_vm10 = vmpackc.low %vm4774_vm8, %vm4773_vm7  ;;  %v19052_v25 = vld [vmem:[#allocation28_spill] sm:$0xff] }
 0x32b   : > { %12642 = vmatpush3.bf16.msk.msra.mxu1 %vm16313_vm13, %v18905_v50  ;;  %v12329_v53 = vpop.f32.mrf.mxu0  ;;  %12621 = vmatprep.subr.msk.bf16.mxu0 %vm16321_vm14, %v18905_v50  ;;  %vm4791_vm13 = vcmp.eq.s32.totalorder %v14181_v59, %v19040_v39  ;;  %vm4981_vm8 = vcmp.eq.s32.totalorder %v14027_v52, %v19052_v25 }
 0x32c   : > { %v16346_v17 = vadd.f32 %v12349_v5, %v3495_v54  ;;  %v12351_v41 = vpop.f32.mrf.mxu1  ;;  %12643 = vmatprep.subr.msk.bf16.mxu1 %vm16321_vm14, %v18905_v50  ;;  %vm4792_vm14 = vcmp.eq.s32.totalorder %v14184_v57, %v19040_v39 }
 0x32d   : > { %vm10163_vm0 = vmpackc.low %vm4792_vm14, %vm4791_vm13  ;;  %vm4771_vm13 = vcmp.eq.s32.totalorder %v13805_v3, %v19040_v39  ;;  %vm4772_vm14 = vcmp.eq.s32.totalorder %v14302_v32, %v19040_v39 }
 0x32e   : > { %12622 = vmatpush3.bf16.msk.msra.mxu0 %vm10141_vm3, %v18905_v50  ;;  %vm10151_vm1 = vmpackc.low %vm4772_vm14, %vm4771_vm13 }
 0x32f   : > { %12644 = vmatpush3.bf16.msk.msra.mxu1 %vm10141_vm3, %v18905_v50  ;;  %12623 = vmatprep.subr.msk.bf16.mxu0 %vm10159_vm4, %v18905_v50  ;;  %vm4789_vm3 = vcmp.eq.s32.totalorder %v14230_v2, %v19040_v39 }
 0x330   : > { %12645 = vmatprep.subr.msk.bf16.mxu1 %vm10159_vm4, %v18905_v50  ;;  %vm4790_vm4 = vcmp.eq.s32.totalorder %v14233_v21, %v19040_v39 }
 0x331   : > { %vm10165_vm6 = vmpackc.low %vm4790_vm4, %vm4789_vm3  ;;  %vm4983_vm3 = vcmp.eq.s32.totalorder %v14006_v12, %v19052_v25  ;;  %vm4984_vm4 = vcmp.eq.s32.totalorder %v14009_v10, %v19052_v25 }
 0x332   : > { %12624 = vmatpush3.bf16.msk.msra.mxu0 %vm10143_vm9, %v18905_v50  ;;  %vm10233_vm7 = vmpackc.low %vm4984_vm4, %vm4983_vm3 }
 0x333   : > { %12646 = vmatpush3.bf16.msk.msra.mxu1 %vm10143_vm9, %v18905_v50  ;;  %12625 = vmatprep.subr.msk.bf16.mxu0 %vm10161_vm11, %v18905_v50  ;;  %vm4787_vm9 = vcmp.eq.s32.totalorder %v14273_v58, %v19040_v39 }
 0x334   : > { %12647 = vmatprep.subr.msk.bf16.mxu1 %vm10161_vm11, %v18905_v50  ;;  %vm4788_vm11 = vcmp.eq.s32.totalorder %v14276_v6, %v19040_v39  ;;  %v5084_v39 = vrot.slane %v16289_v55, 4 }
 0x335   : > { %vm10167_vm12 = vmpackc.low %vm4788_vm11, %vm4787_vm9  ;;  %vm4982_vm9 = vcmp.eq.s32.totalorder %v14030_v56, %v19052_v25 }
 0x336   : > { %12626 = vmatpush3.bf16.msk.msra.mxu0 %vm10145_vm15, %v18905_v50  ;;  %vm16444_vm13 = vmpackc.low %vm4982_vm9, %vm4981_vm8  ;;  %vm4992_vm8 = vcmp.eq.s32.totalorder %v14130_v31, %v19052_v25 }
 0x337   : > { %12648 = vmatpush3.bf16.msk.msra.mxu1 %vm10145_vm15, %v18905_v50  ;;  %12627 = vmatprep.subr.msk.bf16.mxu0 %vm10163_vm0, %v18905_v50  ;;  %vm4999_vm15 = vcmp.eq.s32.totalorder %v13980_v11, %v19052_v25 }
 0x338   : > { %12649 = vmatprep.subr.msk.bf16.mxu1 %vm10163_vm0, %v18905_v50  ;;  %vm5000_vm0 = vcmp.eq.s32.totalorder %v13983_v13, %v19052_v25 }
 0x339   : > { %vm10249_vm2 = vmpackc.low %vm5000_vm0, %vm4999_vm15  ;;  %vm4979_vm15 = vcmp.eq.s32.totalorder %v14068_v16, %v19052_v25  ;;  %vm4980_vm0 = vcmp.eq.s32.totalorder %v14071_v18, %v19052_v25 }
 0x33a   : > { %12628 = vmatpush3.bf16.msk.msra.mxu0 %vm10147_vm5, %v18905_v50  ;;  %vm10237_vm3 = vmpackc.low %vm4980_vm0, %vm4979_vm15 }
 0x33b   : > { %12650 = vmatpush3.bf16.msk.msra.mxu1 %vm10147_vm5, %v18905_v50  ;;  %12629 = vmatprep.subr.msk.bf16.mxu0 %vm10165_vm6, %v18905_v50  ;;  %vm4997_vm5 = vcmp.eq.s32.totalorder %v14012_v27, %v19052_v25 }
 0x33c   : > { %12651 = vmatprep.subr.msk.bf16.mxu1 %vm10165_vm6, %v18905_v50  ;;  %vm4998_vm6 = vcmp.eq.s32.totalorder %v14022_v1, %v19052_v25 }
 0x33d   : > { %vm16429_vm11 = vmpackc.low %vm4998_vm6, %vm4997_vm5  ;;  %vm4977_vm5 = vcmp.eq.s32.totalorder %v14117_v23, %v19052_v25  ;;  %vm4978_vm6 = vcmp.eq.s32.totalorder %v14120_v24, %v19052_v25 }
 0x33e   : > { %12630 = vmatpush3.bf16.msk.msra.mxu0 %vm10149_vm10, %v18905_v50  ;;  %vm10239_vm9 = vmpackc.low %vm4978_vm6, %vm4977_vm5 }
 0x33f   : > { %12652 = vmatpush3.bf16.msk.msra.mxu1 %vm10149_vm10, %v18905_v50  ;;  %12631 = vmatprep.subr.msk.bf16.mxu0 %vm10167_vm12, %v18905_v50  ;;  %vm4995_vm10 = vcmp.eq.s32.totalorder %v14044_v61, %v19052_v25 }
 0x340   : > { %12653 = vmatprep.subr.msk.bf16.mxu1 %vm10167_vm12, %v18905_v50  ;;  %vm4996_vm12 = vcmp.eq.s32.totalorder %v14047_v4, %v19052_v25 }
 0x341   : > { %vm16451_vm14 = vmpackc.low %vm4996_vm12, %vm4995_vm10  ;;  %vm4975_vm10 = vcmp.eq.s32.totalorder %v14165_v22, %v19052_v25  ;;  %vm4976_vm12 = vcmp.eq.s32.totalorder %v14168_v46, %v19052_v25 }
 0x342   : > { %12632 = vmatpush3.bf16.msk.msra.mxu0 %vm10151_vm1, %v18905_v50  ;;  %vm10241_vm15 = vmpackc.low %vm4976_vm12, %vm4975_vm10 }
 0x343   : > { %12654 = vmatpush3.bf16.msk.msra.mxu1 %vm10151_vm1, %v18905_v50  ;;  %12661 = vmatprep.subr.msk.bf16.mxu0 %vm10249_vm2, %v18905_v50  ;;  %vm4993_vm1 = vcmp.eq.s32.totalorder %v14080_v8, %v19052_v25 }
 0x344   : > { %12683 = vmatprep.subr.msk.bf16.mxu1 %vm10249_vm2, %v18905_v50  ;;  %vm4994_vm2 = vcmp.eq.s32.totalorder %v14083_v20, %v19052_v25 }
 0x345   : > { %v12369_v51 = vpop.f32.mrf.mxu0  ;;  %4916 = vmatmul.mubr.bf16.vlgmr.msra.gmra.mxu0 %v19053_v19  ;;  %vm10255_vm4 = vmpackc.low %vm4994_vm2, %vm4993_vm1  ;;  %vm4973_vm1 = vcmp.eq.s32.totalorder %v14220_v14, %v19052_v25  ;;  %vm4974_vm2 = vcmp.eq.s32.totalorder %v14223_v15, %v19052_v25 }
 0x346   : > { %v12391_v36 = vpop.f32.mrf.mxu1  ;;  %4957 = vmatmul.mubr.bf16.vlgmr.msra.gmra.mxu1 %v19056_v45  ;;  %12662 = vmatpush3.bf16.msk.msra.mxu0 %vm10233_vm7, %v18905_v50  ;;  %vm10243_vm5 = vmpackc.low %vm4974_vm2, %vm4973_vm1 }
 0x347   : > { %5119 = vmatprep.mubr.bf16.mxu0 %v5084_v39  ;;  %12684 = vmatpush3.bf16.msk.msra.mxu1 %vm10233_vm7, %v18905_v50  ;;  %v12370_v55 = vpop.f32.mrf.mxu0  ;;  %vm4991_vm7 = vcmp.eq.s32.totalorder %v14127_v26, %v19052_v25 }
 0x348   : > { %5166 = vmatprep.mubr.bf16.mxu1 %v5131_v47  ;;  %v12371_v5 = vadd.f32 %v12370_v55, %v12369_v51  ;;  %v12392_v62 = vpop.f32.mrf.mxu1  ;;  %12663 = vmatprep.subr.msk.bf16.mxu0 %vm16429_vm11, %v18905_v50  ;;  %v5130_v55 = vrot.slane %v19056_v45, 4  ;;  %v19066_v45 = vld [vmem:[#allocation60_spill] sm:$0xff] }
 0x349   : > { %v12393_v54 = vadd.f32 %v12392_v62, %v12391_v36  ;;  %v12372_v35 = vpop.f32.mrf.mxu0  ;;  %12685 = vmatprep.subr.msk.bf16.mxu1 %vm16429_vm11, %v18905_v50  ;;  %vm10257_vm11 = vmpackc.low %vm4992_vm8, %vm4991_vm7  ;;  %vm4971_vm7 = vcmp.eq.s32.totalorder %v14261_v42, %v19052_v25  ;;  %vm4972_vm8 = vcmp.eq.s32.totalorder %v14264_v60, %v19052_v25  ;;  %v16584_v40 = vpack.c.bf16 %v14752_v7, %v19066_v45  ;;  %v19071_v62 = vld [vmem:[#allocation61_spill] sm:$0xff] }
 0x34a   : > { %v3699_v53 = vadd.f32 %v12371_v5, %v16346_v17  ;;  %v12394_v41 = vpop.f32.mrf.mxu1  ;;  %12664 = vmatpush3.bf16.msk.msra.mxu0 %vm16444_vm13, %v18905_v50  ;;  %v16522_v17 = vld [vmem:[%s13798_s30 + $0x10] sm:$0xff]  ;;  %vm10245_vm10 = vmpackc.low %vm4972_vm8, %vm4971_vm7  ;;  %v19074_v35 = vld [vmem:[#allocation62_spill] sm:$0xff] }
 0x34b   : > { %12686 = vmatpush3.bf16.msk.msra.mxu1 %vm16444_vm13, %v18905_v50  ;;  %v12373_v39 = vpop.f32.mrf.mxu0  ;;  %12665 = vmatprep.subr.msk.bf16.mxu0 %vm16451_vm14, %v18905_v50  ;;  %vm4989_vm13 = vcmp.eq.s32.totalorder %v14181_v59, %v19052_v25  ;;  %v16526_v47 = vrot.slane %v16522_v17, %v18987_v29  ;;  %v5538_v45 = vrot.slane %v19074_v35, 4 }
 0x34c   : > { %v16476_v51 = vadd.f32 %v12393_v54, %v3699_v53  ;;  %v12395_v48 = vpop.f32.mrf.mxu1  ;;  %12687 = vmatprep.subr.msk.bf16.mxu1 %vm16451_vm14, %v18905_v50  ;;  %vm4990_vm14 = vcmp.eq.s32.totalorder %v14184_v57, %v19052_v25 }
 0x34d   : > { %vm10259_vm0 = vmpackc.low %vm4990_vm14, %vm4989_vm13  ;;  %vm4969_vm13 = vcmp.eq.s32.totalorder %v13805_v3, %v19052_v25  ;;  %vm4970_vm14 = vcmp.eq.s32.totalorder %v14302_v32, %v19052_v25  ;;  %vm5191_vm8 = vcmp.eq.s32.totalorder %v14027_v52, %v16526_v47 }
 0x34e   : > { %12666 = vmatpush3.bf16.msk.msra.mxu0 %vm10237_vm3, %v18905_v50  ;;  %vm10247_vm1 = vmpackc.low %vm4970_vm14, %vm4969_vm13 }
 0x34f   : > { %12688 = vmatpush3.bf16.msk.msra.mxu1 %vm10237_vm3, %v18905_v50  ;;  %12667 = vmatprep.subr.msk.bf16.mxu0 %vm10255_vm4, %v18905_v50  ;;  %vm4987_vm3 = vcmp.eq.s32.totalorder %v14230_v2, %v19052_v25 }
 0x350   : > { %12689 = vmatprep.subr.msk.bf16.mxu1 %vm10255_vm4, %v18905_v50  ;;  %vm4988_vm4 = vcmp.eq.s32.totalorder %v14233_v21, %v19052_v25 }
 0x351   : > { %vm10261_vm6 = vmpackc.low %vm4988_vm4, %vm4987_vm3  ;;  %vm5193_vm3 = vcmp.eq.s32.totalorder %v14006_v12, %v16526_v47  ;;  %vm5194_vm4 = vcmp.eq.s32.totalorder %v14009_v10, %v16526_v47 }
 0x352   : > { %12668 = vmatpush3.bf16.msk.msra.mxu0 %vm10239_vm9, %v18905_v50  ;;  %vm16560_vm7 = vmpackc.low %vm5194_vm4, %vm5193_vm3 }
 0x353   : > { %12690 = vmatpush3.bf16.msk.msra.mxu1 %vm10239_vm9, %v18905_v50  ;;  %12669 = vmatprep.subr.msk.bf16.mxu0 %vm10257_vm11, %v18905_v50  ;;  %vm4985_vm9 = vcmp.eq.s32.totalorder %v14273_v58, %v19052_v25 }
 0x354   : > { %12691 = vmatprep.subr.msk.bf16.mxu1 %vm10257_vm11, %v18905_v50  ;;  %vm4986_vm11 = vcmp.eq.s32.totalorder %v14276_v6, %v19052_v25  ;;  %v5083_v25 = vrot.slane %v19053_v19, 4  ;;  %v16572_v19 = vpack.c.bf16 %v14750_v28, %v19063_v63 }
 0x355   : > { %vm10263_vm12 = vmpackc.low %vm4986_vm11, %vm4985_vm9  ;;  %vm5192_vm9 = vcmp.eq.s32.totalorder %v14030_v56, %v16526_v47 }
 0x356   : > { %12670 = vmatpush3.bf16.msk.msra.mxu0 %vm10241_vm15, %v18905_v50  ;;  %vm16596_vm13 = vmpackc.low %vm5192_vm9, %vm5191_vm8  ;;  %vm5202_vm8 = vcmp.eq.s32.totalorder %v14130_v31, %v16526_v47 }
 0x357   : > { %12692 = vmatpush3.bf16.msk.msra.mxu1 %vm10241_vm15, %v18905_v50  ;;  %12671 = vmatprep.subr.msk.bf16.mxu0 %vm10259_vm0, %v18905_v50  ;;  %vm5209_vm15 = vcmp.eq.s32.totalorder %v13980_v11, %v16526_v47 }
 0x358   : > { %12693 = vmatprep.subr.msk.bf16.mxu1 %vm10259_vm0, %v18905_v50  ;;  %vm5210_vm0 = vcmp.eq.s32.totalorder %v13983_v13, %v16526_v47 }
 0x359   : > { %vm10345_vm2 = vmpackc.low %vm5210_vm0, %vm5209_vm15  ;;  %vm5189_vm15 = vcmp.eq.s32.totalorder %v14068_v16, %v16526_v47  ;;  %vm5190_vm0 = vcmp.eq.s32.totalorder %v14071_v18, %v16526_v47 }
 0x35a   : > { %12672 = vmatpush3.bf16.msk.msra.mxu0 %vm10243_vm5, %v18905_v50  ;;  %vm10333_vm3 = vmpackc.low %vm5190_vm0, %vm5189_vm15 }
 0x35b   : > { %12694 = vmatpush3.bf16.msk.msra.mxu1 %vm10243_vm5, %v18905_v50  ;;  %12673 = vmatprep.subr.msk.bf16.mxu0 %vm10261_vm6, %v18905_v50  ;;  %vm5207_vm5 = vcmp.eq.s32.totalorder %v14012_v27, %v16526_v47 }
 0x35c   : > { %12695 = vmatprep.subr.msk.bf16.mxu1 %vm10261_vm6, %v18905_v50  ;;  %vm5208_vm6 = vcmp.eq.s32.totalorder %v14022_v1, %v16526_v47 }
 0x35d   : > { %vm16574_vm11 = vmpackc.low %vm5208_vm6, %vm5207_vm5  ;;  %vm5187_vm5 = vcmp.eq.s32.totalorder %v14117_v23, %v16526_v47  ;;  %vm5188_vm6 = vcmp.eq.s32.totalorder %v14120_v24, %v16526_v47 }
 0x35e   : > { %12674 = vmatpush3.bf16.msk.msra.mxu0 %vm10245_vm10, %v18905_v50  ;;  %vm10335_vm9 = vmpackc.low %vm5188_vm6, %vm5187_vm5 }
 0x35f   : > { %12696 = vmatpush3.bf16.msk.msra.mxu1 %vm10245_vm10, %v18905_v50  ;;  %12675 = vmatprep.subr.msk.bf16.mxu0 %vm10263_vm12, %v18905_v50  ;;  %vm5205_vm10 = vcmp.eq.s32.totalorder %v14044_v61, %v16526_v47 }
 0x360   : > { %12697 = vmatprep.subr.msk.bf16.mxu1 %vm10263_vm12, %v18905_v50  ;;  %vm5206_vm12 = vcmp.eq.s32.totalorder %v14047_v4, %v16526_v47 }
 0x361   : > { %vm16604_vm14 = vmpackc.low %vm5206_vm12, %vm5205_vm10  ;;  %vm5185_vm10 = vcmp.eq.s32.totalorder %v14165_v22, %v16526_v47  ;;  %vm5186_vm12 = vcmp.eq.s32.totalorder %v14168_v46, %v16526_v47 }
 0x362   : > { %12676 = vmatpush3.bf16.msk.msra.mxu0 %vm10247_vm1, %v18905_v50  ;;  %vm10337_vm15 = vmpackc.low %vm5186_vm12, %vm5185_vm10 }
 0x363   : > { %12698 = vmatpush3.bf16.msk.msra.mxu1 %vm10247_vm1, %v18905_v50  ;;  %12705 = vmatprep.subr.msk.bf16.mxu0 %vm10345_vm2, %v18905_v50  ;;  %vm5203_vm1 = vcmp.eq.s32.totalorder %v14080_v8, %v16526_v47 }
 0x364   : > { %12727 = vmatprep.subr.msk.bf16.mxu1 %vm10345_vm2, %v18905_v50  ;;  %vm5204_vm2 = vcmp.eq.s32.totalorder %v14083_v20, %v16526_v47 }
 0x365   : > { %v12413_v5 = vpop.f32.mrf.mxu0  ;;  %5120 = vmatmul.mubr.bf16.vlgmr.msra.gmra.mxu0 %v5083_v25  ;;  %vm10351_vm4 = vmpackc.low %vm5204_vm2, %vm5203_vm1  ;;  %vm5183_vm1 = vcmp.eq.s32.totalorder %v14220_v14, %v16526_v47  ;;  %vm5184_vm2 = vcmp.eq.s32.totalorder %v14223_v15, %v16526_v47 }
 0x366   : > { %v12435_v54 = vpop.f32.mrf.mxu1  ;;  %5167 = vmatmul.mubr.bf16.vlgmr.msra.gmra.mxu1 %v5130_v55  ;;  %12706 = vmatpush3.bf16.msk.msra.mxu0 %vm16560_vm7, %v18905_v50  ;;  %vm10339_vm5 = vmpackc.low %vm5184_vm2, %vm5183_vm1 }
 0x367   : > { %5323 = vmatprep.mubr.bf16.mxu0 %v16572_v19  ;;  %12728 = vmatpush3.bf16.msk.msra.mxu1 %vm16560_vm7, %v18905_v50  ;;  %v12414_v28 = vpop.f32.mrf.mxu0  ;;  %vm5201_vm7 = vcmp.eq.s32.totalorder %v14127_v26, %v16526_v47 }
 0x368   : > { %5364 = vmatprep.mubr.bf16.mxu1 %v16584_v40  ;;  %v12415_v7 = vadd.f32 %v12414_v28, %v12413_v5  ;;  %v12436_v53 = vpop.f32.mrf.mxu1  ;;  %12707 = vmatprep.subr.msk.bf16.mxu0 %vm16574_vm11, %v18905_v50 }
 0x369   : > { %v12437_v39 = vadd.f32 %v12436_v53, %v12435_v54  ;;  %v12416_v48 = vpop.f32.mrf.mxu0  ;;  %12729 = vmatprep.subr.msk.bf16.mxu1 %vm16574_vm11, %v18905_v50  ;;  %vm10353_vm11 = vmpackc.low %vm5202_vm8, %vm5201_vm7  ;;  %vm5181_vm7 = vcmp.eq.s32.totalorder %v14261_v42, %v16526_v47  ;;  %vm5182_vm8 = vcmp.eq.s32.totalorder %v14264_v60, %v16526_v47  ;;  %v5539_v54 = vrot.slane %v16584_v40, 4  ;;  %v19108_v40 = vld [vmem:[#allocation73_spill] sm:$0xff] }
 0x36a   : > { %v3903_v25 = vadd.f32 %v12415_v7, %v16476_v51  ;;  %v12438_v36 = vpop.f32.mrf.mxu1  ;;  %12708 = vmatpush3.bf16.msk.msra.mxu0 %vm16596_vm13, %v18905_v50  ;;  %v16676_v51 = vrot.slane %v16522_v17, %v18994_v38  ;;  %vm10341_vm10 = vmpackc.low %vm5182_vm8, %vm5181_vm7  ;;  %v5492_v17 = vrot.slane %v16572_v19, 4  ;;  %v19086_v7 = vld [vmem:[#allocation67_spill] sm:$0xff] }
 0x36b   : > { %12730 = vmatpush3.bf16.msk.msra.mxu1 %vm16596_vm13, %v18905_v50  ;;  %v12417_v55 = vpop.f32.mrf.mxu0  ;;  %12709 = vmatprep.subr.msk.bf16.mxu0 %vm16604_vm14, %v18905_v50  ;;  %vm5199_vm13 = vcmp.eq.s32.totalorder %v14181_v59, %v16526_v47 }
 0x36c   : > { %v16629_v63 = vadd.f32 %v12437_v39, %v3903_v25  ;;  %v12439_v5 = vpop.f32.mrf.mxu1  ;;  %12731 = vmatprep.subr.msk.bf16.mxu1 %vm16604_vm14, %v18905_v50  ;;  %vm5200_vm14 = vcmp.eq.s32.totalorder %v14184_v57, %v16526_v47  ;;  %vm5389_vm8 = vcmp.eq.s32.totalorder %v14027_v52, %v16676_v51 }
 0x36d   : > { %vm10355_vm0 = vmpackc.low %vm5200_vm14, %vm5199_vm13  ;;  %vm5179_vm13 = vcmp.eq.s32.totalorder %v13805_v3, %v16526_v47  ;;  %vm5180_vm14 = vcmp.eq.s32.totalorder %v14302_v32, %v16526_v47 }
 0x36e   : > { %12710 = vmatpush3.bf16.msk.msra.mxu0 %vm10333_vm3, %v18905_v50  ;;  %vm10343_vm1 = vmpackc.low %vm5180_vm14, %vm5179_vm13 }
 0x36f   : > { %12732 = vmatpush3.bf16.msk.msra.mxu1 %vm10333_vm3, %v18905_v50  ;;  %12711 = vmatprep.subr.msk.bf16.mxu0 %vm10351_vm4, %v18905_v50  ;;  %vm5197_vm3 = vcmp.eq.s32.totalorder %v14230_v2, %v16526_v47 }
 0x370   : > { %12733 = vmatprep.subr.msk.bf16.mxu1 %vm10351_vm4, %v18905_v50  ;;  %vm5198_vm4 = vcmp.eq.s32.totalorder %v14233_v21, %v16526_v47 }
 0x371   : > { %vm10357_vm6 = vmpackc.low %vm5198_vm4, %vm5197_vm3  ;;  %vm5391_vm3 = vcmp.eq.s32.totalorder %v14006_v12, %v16676_v51  ;;  %vm5392_vm4 = vcmp.eq.s32.totalorder %v14009_v10, %v16676_v51 }
 0x372   : > { %12712 = vmatpush3.bf16.msk.msra.mxu0 %vm10335_vm9, %v18905_v50  ;;  %vm10425_vm7 = vmpackc.low %vm5392_vm4, %vm5391_vm3 }
 0x373   : > { %12734 = vmatpush3.bf16.msk.msra.mxu1 %vm10335_vm9, %v18905_v50  ;;  %12713 = vmatprep.subr.msk.bf16.mxu0 %vm10353_vm11, %v18905_v50  ;;  %vm5195_vm9 = vcmp.eq.s32.totalorder %v14273_v58, %v16526_v47 }
 0x374   : > { %12735 = vmatprep.subr.msk.bf16.mxu1 %vm10353_vm11, %v18905_v50  ;;  %vm5196_vm11 = vcmp.eq.s32.totalorder %v14276_v6, %v16526_v47 }
 0x375   : > { %vm10359_vm12 = vmpackc.low %vm5196_vm11, %vm5195_vm9  ;;  %vm5390_vm9 = vcmp.eq.s32.totalorder %v14030_v56, %v16676_v51 }
 0x376   : > { %12714 = vmatpush3.bf16.msk.msra.mxu0 %vm10337_vm15, %v18905_v50  ;;  %vm16731_vm13 = vmpackc.low %vm5390_vm9, %vm5389_vm8  ;;  %vm5400_vm8 = vcmp.eq.s32.totalorder %v14130_v31, %v16676_v51 }
 0x377   : > { %12736 = vmatpush3.bf16.msk.msra.mxu1 %vm10337_vm15, %v18905_v50  ;;  %12715 = vmatprep.subr.msk.bf16.mxu0 %vm10355_vm0, %v18905_v50  ;;  %vm5407_vm15 = vcmp.eq.s32.totalorder %v13980_v11, %v16676_v51 }
 0x378   : > { %12737 = vmatprep.subr.msk.bf16.mxu1 %vm10355_vm0, %v18905_v50  ;;  %vm5408_vm0 = vcmp.eq.s32.totalorder %v13983_v13, %v16676_v51 }
 0x379   : > { %vm10441_vm2 = vmpackc.low %vm5408_vm0, %vm5407_vm15  ;;  %vm5387_vm15 = vcmp.eq.s32.totalorder %v14068_v16, %v16676_v51  ;;  %vm5388_vm0 = vcmp.eq.s32.totalorder %v14071_v18, %v16676_v51 }
 0x37a   : > { %12716 = vmatpush3.bf16.msk.msra.mxu0 %vm10339_vm5, %v18905_v50  ;;  %vm10429_vm3 = vmpackc.low %vm5388_vm0, %vm5387_vm15 }
 0x37b   : > { %12738 = vmatpush3.bf16.msk.msra.mxu1 %vm10339_vm5, %v18905_v50  ;;  %12717 = vmatprep.subr.msk.bf16.mxu0 %vm10357_vm6, %v18905_v50  ;;  %vm5405_vm5 = vcmp.eq.s32.totalorder %v14012_v27, %v16676_v51 }
 0x37c   : > { %12739 = vmatprep.subr.msk.bf16.mxu1 %vm10357_vm6, %v18905_v50  ;;  %vm5406_vm6 = vcmp.eq.s32.totalorder %v14022_v1, %v16676_v51 }
 0x37d   : > { %vm16716_vm11 = vmpackc.low %vm5406_vm6, %vm5405_vm5  ;;  %vm5385_vm5 = vcmp.eq.s32.totalorder %v14117_v23, %v16676_v51  ;;  %vm5386_vm6 = vcmp.eq.s32.totalorder %v14120_v24, %v16676_v51 }
 0x37e   : > { %12718 = vmatpush3.bf16.msk.msra.mxu0 %vm10341_vm10, %v18905_v50  ;;  %vm10431_vm9 = vmpackc.low %vm5386_vm6, %vm5385_vm5 }
 0x37f   : > { %12740 = vmatpush3.bf16.msk.msra.mxu1 %vm10341_vm10, %v18905_v50  ;;  %12719 = vmatprep.subr.msk.bf16.mxu0 %vm10359_vm12, %v18905_v50  ;;  %vm5403_vm10 = vcmp.eq.s32.totalorder %v14044_v61, %v16676_v51 }
 0x380   : > { %12741 = vmatprep.subr.msk.bf16.mxu1 %vm10359_vm12, %v18905_v50  ;;  %vm5404_vm12 = vcmp.eq.s32.totalorder %v14047_v4, %v16676_v51 }
 0x381   : > { %vm16738_vm14 = vmpackc.low %vm5404_vm12, %vm5403_vm10  ;;  %vm5383_vm10 = vcmp.eq.s32.totalorder %v14165_v22, %v16676_v51  ;;  %vm5384_vm12 = vcmp.eq.s32.totalorder %v14168_v46, %v16676_v51 }
 0x382   : > { %12720 = vmatpush3.bf16.msk.msra.mxu0 %vm10343_vm1, %v18905_v50  ;;  %vm10433_vm15 = vmpackc.low %vm5384_vm12, %vm5383_vm10 }
 0x383   : > { %12742 = vmatpush3.bf16.msk.msra.mxu1 %vm10343_vm1, %v18905_v50  ;;  %12749 = vmatprep.subr.msk.bf16.mxu0 %vm10441_vm2, %v18905_v50  ;;  %vm5401_vm1 = vcmp.eq.s32.totalorder %v14080_v8, %v16676_v51 }
 0x384   : > { %12771 = vmatprep.subr.msk.bf16.mxu1 %vm10441_vm2, %v18905_v50  ;;  %vm5402_vm2 = vcmp.eq.s32.totalorder %v14083_v20, %v16676_v51 }
 0x385   : > { %v12457_v47 = vpop.f32.mrf.mxu0  ;;  %5324 = vmatmul.mubr.bf16.vlgmr.msra.gmra.mxu0 %v19071_v62  ;;  %vm10447_vm4 = vmpackc.low %vm5402_vm2, %vm5401_vm1  ;;  %vm5381_vm1 = vcmp.eq.s32.totalorder %v14220_v14, %v16676_v51  ;;  %vm5382_vm2 = vcmp.eq.s32.totalorder %v14223_v15, %v16676_v51 }
 0x386   : > { %v12479_v28 = vpop.f32.mrf.mxu1  ;;  %5365 = vmatmul.mubr.bf16.vlgmr.msra.gmra.mxu1 %v19074_v35  ;;  %12750 = vmatpush3.bf16.msk.msra.mxu0 %vm10425_vm7, %v18905_v50  ;;  %vm10435_vm5 = vmpackc.low %vm5382_vm2, %vm5381_vm1  ;;  %v19085_v35 = vld [vmem:[#allocation63_spill] sm:$0xff] }
 0x387   : > { %5527 = vmatprep.mubr.bf16.mxu0 %v5492_v17  ;;  %12772 = vmatpush3.bf16.msk.msra.mxu1 %vm10425_vm7, %v18905_v50  ;;  %v12458_v19 = vpop.f32.mrf.mxu0  ;;  %vm5399_vm7 = vcmp.eq.s32.totalorder %v14127_v26, %v16676_v51 }
 0x388   : > { %5574 = vmatprep.mubr.bf16.mxu1 %v5539_v54  ;;  %v12459_v53 = vadd.f32 %v12458_v19, %v12457_v47  ;;  %v12480_v41 = vpop.f32.mrf.mxu1  ;;  %12751 = vmatprep.subr.msk.bf16.mxu0 %vm16716_vm11, %v18905_v50  ;;  %v19092_v19 = vld [vmem:[#allocation64_spill] sm:$0xff] }
 0x389   : > { %v12481_v39 = vadd.f32 %v12480_v41, %v12479_v28  ;;  %v12460_v48 = vpop.f32.mrf.mxu0  ;;  %12773 = vmatprep.subr.msk.bf16.mxu1 %vm16716_vm11, %v18905_v50  ;;  %vm10449_vm11 = vmpackc.low %vm5400_vm8, %vm5399_vm7  ;;  %vm5379_vm7 = vcmp.eq.s32.totalorder %v14261_v42, %v16676_v51  ;;  %vm5380_vm8 = vcmp.eq.s32.totalorder %v14264_v60, %v16676_v51 }
 0x38a   : > { %v4107_v25 = vadd.f32 %v12459_v53, %v16629_v63  ;;  %v12482_v36 = vpop.f32.mrf.mxu1  ;;  %12752 = vmatpush3.bf16.msk.msra.mxu0 %vm16731_vm13, %v18905_v50  ;;  %vm10437_vm10 = vmpackc.low %vm5380_vm8, %vm5379_vm7  ;;  %v19079_v63 = vld [vmem:[#allocation16_spill] sm:$0xff]  ;;  %v16864_v53 = vpack.c.bf16 %v19086_v7, %v19085_v35 }
 0x38b   : > { %12774 = vmatpush3.bf16.msk.msra.mxu1 %vm16731_vm13, %v18905_v50  ;;  %v12461_v55 = vpop.f32.mrf.mxu0  ;;  %12753 = vmatprep.subr.msk.bf16.mxu0 %vm16738_vm14, %v18905_v50  ;;  %vm5397_vm13 = vcmp.eq.s32.totalorder %v14181_v59, %v16676_v51  ;;  %vm5599_vm8 = vcmp.eq.s32.totalorder %v14027_v52, %v19079_v63  ;;  %v19103_v35 = vld [vmem:[#allocation68_spill] sm:$0xff] }
 0x38c   : > { %v16763_v5 = vadd.f32 %v12481_v39, %v4107_v25  ;;  %v12483_v17 = vpop.f32.mrf.mxu1  ;;  %12775 = vmatprep.subr.msk.bf16.mxu1 %vm16738_vm14, %v18905_v50  ;;  %vm5398_vm14 = vcmp.eq.s32.totalorder %v14184_v57, %v16676_v51  ;;  %v5947_v7 = vrot.slane %v16864_v53, 4 }
 0x38d   : > { %vm10451_vm0 = vmpackc.low %vm5398_vm14, %vm5397_vm13  ;;  %vm5377_vm13 = vcmp.eq.s32.totalorder %v13805_v3, %v16676_v51  ;;  %vm5378_vm14 = vcmp.eq.s32.totalorder %v14302_v32, %v16676_v51 }
 0x38e   : > { %12754 = vmatpush3.bf16.msk.msra.mxu0 %vm10429_vm3, %v18905_v50  ;;  %vm10439_vm1 = vmpackc.low %vm5378_vm14, %vm5377_vm13 }
 0x38f   : > { %12776 = vmatpush3.bf16.msk.msra.mxu1 %vm10429_vm3, %v18905_v50  ;;  %12755 = vmatprep.subr.msk.bf16.mxu0 %vm10447_vm4, %v18905_v50  ;;  %vm5395_vm3 = vcmp.eq.s32.totalorder %v14230_v2, %v16676_v51 }
 0x390   : > { %12777 = vmatprep.subr.msk.bf16.mxu1 %vm10447_vm4, %v18905_v50  ;;  %vm5396_vm4 = vcmp.eq.s32.totalorder %v14233_v21, %v16676_v51 }
 0x391   : > { %vm10453_vm6 = vmpackc.low %vm5396_vm4, %vm5395_vm3  ;;  %vm5601_vm3 = vcmp.eq.s32.totalorder %v14006_v12, %v19079_v63  ;;  %vm5602_vm4 = vcmp.eq.s32.totalorder %v14009_v10, %v19079_v63 }
 0x392   : > { %12756 = vmatpush3.bf16.msk.msra.mxu0 %vm10431_vm9, %v18905_v50  ;;  %vm16840_vm7 = vmpackc.low %vm5602_vm4, %vm5601_vm3 }
 0x393   : > { %12778 = vmatpush3.bf16.msk.msra.mxu1 %vm10431_vm9, %v18905_v50  ;;  %12757 = vmatprep.subr.msk.bf16.mxu0 %vm10449_vm11, %v18905_v50  ;;  %vm5393_vm9 = vcmp.eq.s32.totalorder %v14273_v58, %v16676_v51 }
 0x394   : > { %12779 = vmatprep.subr.msk.bf16.mxu1 %vm10449_vm11, %v18905_v50  ;;  %vm5394_vm11 = vcmp.eq.s32.totalorder %v14276_v6, %v16676_v51  ;;  %v5491_v51 = vrot.slane %v19071_v62, 4  ;;  %v19082_v62 = vld [vmem:[#allocation66_spill] sm:$0xff] }
 0x395   : > { %vm10455_vm12 = vmpackc.low %vm5394_vm11, %vm5393_vm9  ;;  %vm5600_vm9 = vcmp.eq.s32.totalorder %v14030_v56, %v19079_v63  ;;  %v16852_v54 = vpack.c.bf16 %v19082_v62, %v14789_v49 }
 0x396   : > { %12758 = vmatpush3.bf16.msk.msra.mxu0 %vm10433_vm15, %v18905_v50  ;;  %vm16876_vm13 = vmpackc.low %vm5600_vm9, %vm5599_vm8  ;;  %vm5610_vm8 = vcmp.eq.s32.totalorder %v14130_v31, %v19079_v63 }
 0x397   : > { %12780 = vmatpush3.bf16.msk.msra.mxu1 %vm10433_vm15, %v18905_v50  ;;  %12759 = vmatprep.subr.msk.bf16.mxu0 %vm10451_vm0, %v18905_v50  ;;  %vm5617_vm15 = vcmp.eq.s32.totalorder %v13980_v11, %v19079_v63 }
 0x398   : > { %12781 = vmatprep.subr.msk.bf16.mxu1 %vm10451_vm0, %v18905_v50  ;;  %vm5618_vm0 = vcmp.eq.s32.totalorder %v13983_v13, %v19079_v63 }
 0x399   : > { %vm10537_vm2 = vmpackc.low %vm5618_vm0, %vm5617_vm15  ;;  %vm5597_vm15 = vcmp.eq.s32.totalorder %v14068_v16, %v19079_v63  ;;  %vm5598_vm0 = vcmp.eq.s32.totalorder %v14071_v18, %v19079_v63 }
 0x39a   : > { %12760 = vmatpush3.bf16.msk.msra.mxu0 %vm10435_vm5, %v18905_v50  ;;  %vm10525_vm3 = vmpackc.low %vm5598_vm0, %vm5597_vm15 }
 0x39b   : > { %12782 = vmatpush3.bf16.msk.msra.mxu1 %vm10435_vm5, %v18905_v50  ;;  %12761 = vmatprep.subr.msk.bf16.mxu0 %vm10453_vm6, %v18905_v50  ;;  %vm5615_vm5 = vcmp.eq.s32.totalorder %v14012_v27, %v19079_v63 }
 0x39c   : > { %12783 = vmatprep.subr.msk.bf16.mxu1 %vm10453_vm6, %v18905_v50  ;;  %vm5616_vm6 = vcmp.eq.s32.totalorder %v14022_v1, %v19079_v63 }
 0x39d   : > { %vm16854_vm11 = vmpackc.low %vm5616_vm6, %vm5615_vm5  ;;  %vm5595_vm5 = vcmp.eq.s32.totalorder %v14117_v23, %v19079_v63  ;;  %vm5596_vm6 = vcmp.eq.s32.totalorder %v14120_v24, %v19079_v63 }
 0x39e   : > { %12762 = vmatpush3.bf16.msk.msra.mxu0 %vm10437_vm10, %v18905_v50  ;;  %vm10527_vm9 = vmpackc.low %vm5596_vm6, %vm5595_vm5 }
 0x39f   : > { %12784 = vmatpush3.bf16.msk.msra.mxu1 %vm10437_vm10, %v18905_v50  ;;  %12763 = vmatprep.subr.msk.bf16.mxu0 %vm10455_vm12, %v18905_v50  ;;  %vm5613_vm10 = vcmp.eq.s32.totalorder %v14044_v61, %v19079_v63 }
 0x3a0   : > { %12785 = vmatprep.subr.msk.bf16.mxu1 %vm10455_vm12, %v18905_v50  ;;  %vm5614_vm12 = vcmp.eq.s32.totalorder %v14047_v4, %v19079_v63 }
 0x3a1   : > { %vm16884_vm14 = vmpackc.low %vm5614_vm12, %vm5613_vm10  ;;  %vm5593_vm10 = vcmp.eq.s32.totalorder %v14165_v22, %v19079_v63  ;;  %vm5594_vm12 = vcmp.eq.s32.totalorder %v14168_v46, %v19079_v63 }
 0x3a2   : > { %12764 = vmatpush3.bf16.msk.msra.mxu0 %vm10439_vm1, %v18905_v50  ;;  %vm10529_vm15 = vmpackc.low %vm5594_vm12, %vm5593_vm10 }
 0x3a3   : > { %12786 = vmatpush3.bf16.msk.msra.mxu1 %vm10439_vm1, %v18905_v50  ;;  %12793 = vmatprep.subr.msk.bf16.mxu0 %vm10537_vm2, %v18905_v50  ;;  %vm5611_vm1 = vcmp.eq.s32.totalorder %v14080_v8, %v19079_v63 }
 0x3a4   : > { %12815 = vmatprep.subr.msk.bf16.mxu1 %vm10537_vm2, %v18905_v50  ;;  %vm5612_vm2 = vcmp.eq.s32.totalorder %v14083_v20, %v19079_v63 }
 0x3a5   : > { %v12501_v28 = vpop.f32.mrf.mxu0  ;;  %5528 = vmatmul.mubr.bf16.vlgmr.msra.gmra.mxu0 %v5491_v51  ;;  %vm10543_vm4 = vmpackc.low %vm5612_vm2, %vm5611_vm1  ;;  %vm5591_vm1 = vcmp.eq.s32.totalorder %v14220_v14, %v19079_v63  ;;  %vm5592_vm2 = vcmp.eq.s32.totalorder %v14223_v15, %v19079_v63 }
 0x3a6   : > { %v12523_v41 = vpop.f32.mrf.mxu1  ;;  %5575 = vmatmul.mubr.bf16.vlgmr.msra.gmra.mxu1 %v5538_v45  ;;  %12794 = vmatpush3.bf16.msk.msra.mxu0 %vm16840_vm7, %v18905_v50  ;;  %vm10531_vm5 = vmpackc.low %vm5592_vm2, %vm5591_vm1 }
 0x3a7   : > { %5731 = vmatprep.mubr.bf16.mxu0 %v16852_v54  ;;  %12816 = vmatpush3.bf16.msk.msra.mxu1 %vm16840_vm7, %v18905_v50  ;;  %v12502_v49 = vpop.f32.mrf.mxu0  ;;  %vm5609_vm7 = vcmp.eq.s32.totalorder %v14127_v26, %v19079_v63 }
 0x3a8   : > { %5772 = vmatprep.mubr.bf16.mxu1 %v16864_v53  ;;  %v12503_v39 = vadd.f32 %v12502_v49, %v12501_v28  ;;  %v12524_v48 = vpop.f32.mrf.mxu1  ;;  %12795 = vmatprep.subr.msk.bf16.mxu0 %vm16854_vm11, %v18905_v50  ;;  %v19095_v49 = vld [vmem:[#allocation65_spill] sm:$0xff] }
 0x3a9   : > { %v12525_v36 = vadd.f32 %v12524_v48, %v12523_v41  ;;  %v12504_v55 = vpop.f32.mrf.mxu0  ;;  %12817 = vmatprep.subr.msk.bf16.mxu1 %vm16854_vm11, %v18905_v50  ;;  %vm10545_vm11 = vmpackc.low %vm5610_vm8, %vm5609_vm7  ;;  %vm5589_vm7 = vcmp.eq.s32.totalorder %v14261_v42, %v19079_v63  ;;  %vm5590_vm8 = vcmp.eq.s32.totalorder %v14264_v60, %v19079_v63 }
 0x3aa   : > { %v4311_v17 = vadd.f32 %v12503_v39, %v16763_v5  ;;  %v12526_v51 = vpop.f32.mrf.mxu1  ;;  %12796 = vmatpush3.bf16.msk.msra.mxu0 %vm16876_vm13, %v18905_v50  ;;  %vm10533_vm10 = vmpackc.low %vm5590_vm8, %vm5589_vm7  ;;  %v19091_v5 = vld [vmem:[#allocation19_spill] sm:$0xff] }
 0x3ab   : > { %12818 = vmatpush3.bf16.msk.msra.mxu1 %vm16876_vm13, %v18905_v50  ;;  %v12505_v47 = vpop.f32.mrf.mxu0  ;;  %12797 = vmatprep.subr.msk.bf16.mxu0 %vm16884_vm14, %v18905_v50  ;;  %vm5607_vm13 = vcmp.eq.s32.totalorder %v14181_v59, %v19079_v63  ;;  %vm5797_vm8 = vcmp.eq.s32.totalorder %v14027_v52, %v19091_v5 }
 0x3ac   : > { %v16909_v45 = vadd.f32 %v12525_v36, %v4311_v17  ;;  %v12527_v62 = vpop.f32.mrf.mxu1  ;;  %12819 = vmatprep.subr.msk.bf16.mxu1 %vm16884_vm14, %v18905_v50  ;;  %vm5608_vm14 = vcmp.eq.s32.totalorder %v14184_v57, %v19079_v63 }
 0x3ad   : > { %vm10547_vm0 = vmpackc.low %vm5608_vm14, %vm5607_vm13  ;;  %vm5587_vm13 = vcmp.eq.s32.totalorder %v13805_v3, %v19079_v63  ;;  %vm5588_vm14 = vcmp.eq.s32.totalorder %v14302_v32, %v19079_v63 }
 0x3ae   : > { %12798 = vmatpush3.bf16.msk.msra.mxu0 %vm10525_vm3, %v18905_v50  ;;  %vm10535_vm1 = vmpackc.low %vm5588_vm14, %vm5587_vm13 }
 0x3af   : > { %12820 = vmatpush3.bf16.msk.msra.mxu1 %vm10525_vm3, %v18905_v50  ;;  %12799 = vmatprep.subr.msk.bf16.mxu0 %vm10543_vm4, %v18905_v50  ;;  %vm5605_vm3 = vcmp.eq.s32.totalorder %v14230_v2, %v19079_v63 }
 0x3b0   : > { %12821 = vmatprep.subr.msk.bf16.mxu1 %vm10543_vm4, %v18905_v50  ;;  %vm5606_vm4 = vcmp.eq.s32.totalorder %v14233_v21, %v19079_v63 }
 0x3b1   : > { %vm10549_vm6 = vmpackc.low %vm5606_vm4, %vm5605_vm3  ;;  %vm5799_vm3 = vcmp.eq.s32.totalorder %v14006_v12, %v19091_v5  ;;  %vm5800_vm4 = vcmp.eq.s32.totalorder %v14009_v10, %v19091_v5 }
 0x3b2   : > { %12800 = vmatpush3.bf16.msk.msra.mxu0 %vm10527_vm9, %v18905_v50  ;;  %vm10617_vm7 = vmpackc.low %vm5800_vm4, %vm5799_vm3 }
 0x3b3   : > { %12822 = vmatpush3.bf16.msk.msra.mxu1 %vm10527_vm9, %v18905_v50  ;;  %12801 = vmatprep.subr.msk.bf16.mxu0 %vm10545_vm11, %v18905_v50  ;;  %vm5603_vm9 = vcmp.eq.s32.totalorder %v14273_v58, %v19079_v63 }
 0x3b4   : > { %12823 = vmatprep.subr.msk.bf16.mxu1 %vm10545_vm11, %v18905_v50  ;;  %vm5604_vm11 = vcmp.eq.s32.totalorder %v14276_v6, %v19079_v63  ;;  %v5900_v63 = vrot.slane %v16852_v54, 4 }
 0x3b5   : > { %vm10551_vm12 = vmpackc.low %vm5604_vm11, %vm5603_vm9  ;;  %vm5798_vm9 = vcmp.eq.s32.totalorder %v14030_v56, %v19091_v5 }
 0x3b6   : > { %12802 = vmatpush3.bf16.msk.msra.mxu0 %vm10529_vm15, %v18905_v50  ;;  %vm17007_vm13 = vmpackc.low %vm5798_vm9, %vm5797_vm8  ;;  %vm5808_vm8 = vcmp.eq.s32.totalorder %v14130_v31, %v19091_v5 }
 0x3b7   : > { %12824 = vmatpush3.bf16.msk.msra.mxu1 %vm10529_vm15, %v18905_v50  ;;  %12803 = vmatprep.subr.msk.bf16.mxu0 %vm10547_vm0, %v18905_v50  ;;  %vm5815_vm15 = vcmp.eq.s32.totalorder %v13980_v11, %v19091_v5 }
 0x3b8   : > { %12825 = vmatprep.subr.msk.bf16.mxu1 %vm10547_vm0, %v18905_v50  ;;  %vm5816_vm0 = vcmp.eq.s32.totalorder %v13983_v13, %v19091_v5 }
 0x3b9   : > { %vm10633_vm2 = vmpackc.low %vm5816_vm0, %vm5815_vm15  ;;  %vm5795_vm15 = vcmp.eq.s32.totalorder %v14068_v16, %v19091_v5  ;;  %vm5796_vm0 = vcmp.eq.s32.totalorder %v14071_v18, %v19091_v5 }
 0x3ba   : > { %12804 = vmatpush3.bf16.msk.msra.mxu0 %vm10531_vm5, %v18905_v50  ;;  %vm10621_vm3 = vmpackc.low %vm5796_vm0, %vm5795_vm15 }
 0x3bb   : > { %12826 = vmatpush3.bf16.msk.msra.mxu1 %vm10531_vm5, %v18905_v50  ;;  %12805 = vmatprep.subr.msk.bf16.mxu0 %vm10549_vm6, %v18905_v50  ;;  %vm5813_vm5 = vcmp.eq.s32.totalorder %v14012_v27, %v19091_v5 }
 0x3bc   : > { %12827 = vmatprep.subr.msk.bf16.mxu1 %vm10549_vm6, %v18905_v50  ;;  %vm5814_vm6 = vcmp.eq.s32.totalorder %v14022_v1, %v19091_v5 }
 0x3bd   : > { %vm16992_vm11 = vmpackc.low %vm5814_vm6, %vm5813_vm5  ;;  %vm5793_vm5 = vcmp.eq.s32.totalorder %v14117_v23, %v19091_v5  ;;  %vm5794_vm6 = vcmp.eq.s32.totalorder %v14120_v24, %v19091_v5 }
 0x3be   : > { %12806 = vmatpush3.bf16.msk.msra.mxu0 %vm10533_vm10, %v18905_v50  ;;  %vm10623_vm9 = vmpackc.low %vm5794_vm6, %vm5793_vm5 }
 0x3bf   : > { %12828 = vmatpush3.bf16.msk.msra.mxu1 %vm10533_vm10, %v18905_v50  ;;  %12807 = vmatprep.subr.msk.bf16.mxu0 %vm10551_vm12, %v18905_v50  ;;  %vm5811_vm10 = vcmp.eq.s32.totalorder %v14044_v61, %v19091_v5 }
 0x3c0   : > { %12829 = vmatprep.subr.msk.bf16.mxu1 %vm10551_vm12, %v18905_v50  ;;  %vm5812_vm12 = vcmp.eq.s32.totalorder %v14047_v4, %v19091_v5 }
 0x3c1   : > { %vm17014_vm14 = vmpackc.low %vm5812_vm12, %vm5811_vm10  ;;  %vm5791_vm10 = vcmp.eq.s32.totalorder %v14165_v22, %v19091_v5  ;;  %vm5792_vm12 = vcmp.eq.s32.totalorder %v14168_v46, %v19091_v5 }
 0x3c2   : > { %12808 = vmatpush3.bf16.msk.msra.mxu0 %vm10535_vm1, %v18905_v50  ;;  %vm10625_vm15 = vmpackc.low %vm5792_vm12, %vm5791_vm10 }
 0x3c3   : > { %12830 = vmatpush3.bf16.msk.msra.mxu1 %vm10535_vm1, %v18905_v50  ;;  %12837 = vmatprep.subr.msk.bf16.mxu0 %vm10633_vm2, %v18905_v50  ;;  %vm5809_vm1 = vcmp.eq.s32.totalorder %v14080_v8, %v19091_v5 }
 0x3c4   : > { %12859 = vmatprep.subr.msk.bf16.mxu1 %vm10633_vm2, %v18905_v50  ;;  %vm5810_vm2 = vcmp.eq.s32.totalorder %v14083_v20, %v19091_v5 }
 0x3c5   : > { %v12545_v28 = vpop.f32.mrf.mxu0  ;;  %5732 = vmatmul.mubr.bf16.vlgmr.msra.gmra.mxu0 %v19092_v19  ;;  %vm10639_vm4 = vmpackc.low %vm5810_vm2, %vm5809_vm1  ;;  %vm5789_vm1 = vcmp.eq.s32.totalorder %v14220_v14, %v19091_v5  ;;  %vm5790_vm2 = vcmp.eq.s32.totalorder %v14223_v15, %v19091_v5 }
 0x3c6   : > { %v12567_v41 = vpop.f32.mrf.mxu1  ;;  %5773 = vmatmul.mubr.bf16.vlgmr.msra.gmra.mxu1 %v19095_v49  ;;  %12838 = vmatpush3.bf16.msk.msra.mxu0 %vm10617_vm7, %v18905_v50  ;;  %vm10627_vm5 = vmpackc.low %vm5790_vm2, %vm5789_vm1 }
 0x3c7   : > { %5935 = vmatprep.mubr.bf16.mxu0 %v5900_v63  ;;  %12860 = vmatpush3.bf16.msk.msra.mxu1 %vm10617_vm7, %v18905_v50  ;;  %v12546_v54 = vpop.f32.mrf.mxu0  ;;  %vm5807_vm7 = vcmp.eq.s32.totalorder %v14127_v26, %v19091_v5 }
 0x3c8   : > { %5982 = vmatprep.mubr.bf16.mxu1 %v5947_v7  ;;  %v12547_v39 = vadd.f32 %v12546_v54, %v12545_v28  ;;  %v12568_v48 = vpop.f32.mrf.mxu1  ;;  %12839 = vmatprep.subr.msk.bf16.mxu0 %vm16992_vm11, %v18905_v50  ;;  %v5946_v28 = vrot.slane %v19095_v49, 4  ;;  %v19107_v49 = vld [vmem:[#allocation69_spill] sm:$0xff]  ;;  %v19114_v54 = vld [vmem:[#allocation70_spill] sm:$0xff] }
 0x3c9   : > { %v12569_v25 = vadd.f32 %v12568_v48, %v12567_v41  ;;  %v12548_v36 = vpop.f32.mrf.mxu0  ;;  %12861 = vmatprep.subr.msk.bf16.mxu1 %vm16992_vm11, %v18905_v50  ;;  %vm10641_vm11 = vmpackc.low %vm5808_vm8, %vm5807_vm7  ;;  %vm5787_vm7 = vcmp.eq.s32.totalorder %v14261_v42, %v19091_v5  ;;  %vm5788_vm8 = vcmp.eq.s32.totalorder %v14264_v60, %v19091_v5 }
 0x3ca   : > { %v4515_v55 = vadd.f32 %v12547_v39, %v16909_v45  ;;  %v12570_v17 = vpop.f32.mrf.mxu1  ;;  %12840 = vmatpush3.bf16.msk.msra.mxu0 %vm17007_vm13, %v18905_v50  ;;  %vm10629_vm10 = vmpackc.low %vm5788_vm8, %vm5787_vm7  ;;  %v19100_v45 = vld [vmem:[#allocation25_spill] sm:$0xff]  ;;  %v17140_v39 = vpack.c.bf16 %v19108_v40, %v19107_v49  ;;  %v19125_v49 = vld [vmem:[#allocation74_spill] sm:$0xff] }
 0x3cb   : > { %12862 = vmatpush3.bf16.msk.msra.mxu1 %vm17007_vm13, %v18905_v50  ;;  %v12549_v51 = vpop.f32.mrf.mxu0  ;;  %12841 = vmatprep.subr.msk.bf16.mxu0 %vm17014_vm14, %v18905_v50  ;;  %vm5805_vm13 = vcmp.eq.s32.totalorder %v14181_v59, %v19091_v5  ;;  %vm6007_vm8 = vcmp.eq.s32.totalorder %v14027_v52, %v19100_v45 }
 0x3cc   : > { %v17039_v47 = vadd.f32 %v12569_v25, %v4515_v55  ;;  %v12571_v62 = vpop.f32.mrf.mxu1  ;;  %12863 = vmatprep.subr.msk.bf16.mxu1 %vm17014_vm14, %v18905_v50  ;;  %vm5806_vm14 = vcmp.eq.s32.totalorder %v14184_v57, %v19091_v5  ;;  %v6355_v40 = vrot.slane %v17140_v39, 4  ;;  %v19130_v25 = vld [vmem:[#allocation79_spill] sm:$0xff] }
 0x3cd   : > { %vm10643_vm0 = vmpackc.low %vm5806_vm14, %vm5805_vm13  ;;  %vm5785_vm13 = vcmp.eq.s32.totalorder %v13805_v3, %v19091_v5  ;;  %vm5786_vm14 = vcmp.eq.s32.totalorder %v14302_v32, %v19091_v5 }
 0x3ce   : > { %12842 = vmatpush3.bf16.msk.msra.mxu0 %vm10621_vm3, %v18905_v50  ;;  %vm10631_vm1 = vmpackc.low %vm5786_vm14, %vm5785_vm13 }
 0x3cf   : > { %12864 = vmatpush3.bf16.msk.msra.mxu1 %vm10621_vm3, %v18905_v50  ;;  %12843 = vmatprep.subr.msk.bf16.mxu0 %vm10639_vm4, %v18905_v50  ;;  %vm5803_vm3 = vcmp.eq.s32.totalorder %v14230_v2, %v19091_v5 }
 0x3d0   : > { %12865 = vmatprep.subr.msk.bf16.mxu1 %vm10639_vm4, %v18905_v50  ;;  %vm5804_vm4 = vcmp.eq.s32.totalorder %v14233_v21, %v19091_v5 }
 0x3d1   : > { %vm10645_vm6 = vmpackc.low %vm5804_vm4, %vm5803_vm3  ;;  %vm6009_vm3 = vcmp.eq.s32.totalorder %v14006_v12, %v19100_v45  ;;  %vm6010_vm4 = vcmp.eq.s32.totalorder %v14009_v10, %v19100_v45 }
 0x3d2   : > { %12844 = vmatpush3.bf16.msk.msra.mxu0 %vm10623_vm9, %v18905_v50  ;;  %vm17116_vm7 = vmpackc.low %vm6010_vm4, %vm6009_vm3 }
 0x3d3   : > { %12866 = vmatpush3.bf16.msk.msra.mxu1 %vm10623_vm9, %v18905_v50  ;;  %12845 = vmatprep.subr.msk.bf16.mxu0 %vm10641_vm11, %v18905_v50  ;;  %vm5801_vm9 = vcmp.eq.s32.totalorder %v14273_v58, %v19091_v5 }
 0x3d4   : > { %12867 = vmatprep.subr.msk.bf16.mxu1 %vm10641_vm11, %v18905_v50  ;;  %vm5802_vm11 = vcmp.eq.s32.totalorder %v14276_v6, %v19091_v5  ;;  %v5899_v5 = vrot.slane %v19092_v19, 4  ;;  %v19104_v19 = vld [vmem:[#allocation72_spill] sm:$0xff] }
 0x3d5   : > { %vm10647_vm12 = vmpackc.low %vm5802_vm11, %vm5801_vm9  ;;  %vm6008_vm9 = vcmp.eq.s32.totalorder %v14030_v56, %v19100_v45  ;;  %v17128_v7 = vpack.c.bf16 %v19104_v19, %v19103_v35 }
 0x3d6   : > { %12846 = vmatpush3.bf16.msk.msra.mxu0 %vm10625_vm15, %v18905_v50  ;;  %vm17152_vm13 = vmpackc.low %vm6008_vm9, %vm6007_vm8  ;;  %vm6018_vm8 = vcmp.eq.s32.totalorder %v14130_v31, %v19100_v45 }
 0x3d7   : > { %12868 = vmatpush3.bf16.msk.msra.mxu1 %vm10625_vm15, %v18905_v50  ;;  %12847 = vmatprep.subr.msk.bf16.mxu0 %vm10643_vm0, %v18905_v50  ;;  %vm6025_vm15 = vcmp.eq.s32.totalorder %v13980_v11, %v19100_v45 }
 0x3d8   : > { %12869 = vmatprep.subr.msk.bf16.mxu1 %vm10643_vm0, %v18905_v50  ;;  %vm6026_vm0 = vcmp.eq.s32.totalorder %v13983_v13, %v19100_v45 }
 0x3d9   : > { %vm10729_vm2 = vmpackc.low %vm6026_vm0, %vm6025_vm15  ;;  %vm6005_vm15 = vcmp.eq.s32.totalorder %v14068_v16, %v19100_v45  ;;  %vm6006_vm0 = vcmp.eq.s32.totalorder %v14071_v18, %v19100_v45 }
 0x3da   : > { %12848 = vmatpush3.bf16.msk.msra.mxu0 %vm10627_vm5, %v18905_v50  ;;  %vm10717_vm3 = vmpackc.low %vm6006_vm0, %vm6005_vm15 }
 0x3db   : > { %12870 = vmatpush3.bf16.msk.msra.mxu1 %vm10627_vm5, %v18905_v50  ;;  %12849 = vmatprep.subr.msk.bf16.mxu0 %vm10645_vm6, %v18905_v50  ;;  %vm6023_vm5 = vcmp.eq.s32.totalorder %v14012_v27, %v19100_v45 }
 0x3dc   : > { %12871 = vmatprep.subr.msk.bf16.mxu1 %vm10645_vm6, %v18905_v50  ;;  %vm6024_vm6 = vcmp.eq.s32.totalorder %v14022_v1, %v19100_v45 }
 0x3dd   : > { %vm17130_vm11 = vmpackc.low %vm6024_vm6, %vm6023_vm5  ;;  %vm6003_vm5 = vcmp.eq.s32.totalorder %v14117_v23, %v19100_v45  ;;  %vm6004_vm6 = vcmp.eq.s32.totalorder %v14120_v24, %v19100_v45 }
 0x3de   : > { %12850 = vmatpush3.bf16.msk.msra.mxu0 %vm10629_vm10, %v18905_v50  ;;  %vm10719_vm9 = vmpackc.low %vm6004_vm6, %vm6003_vm5 }
 0x3df   : > { %12872 = vmatpush3.bf16.msk.msra.mxu1 %vm10629_vm10, %v18905_v50  ;;  %12851 = vmatprep.subr.msk.bf16.mxu0 %vm10647_vm12, %v18905_v50  ;;  %vm6021_vm10 = vcmp.eq.s32.totalorder %v14044_v61, %v19100_v45 }
 0x3e0   : > { %12873 = vmatprep.subr.msk.bf16.mxu1 %vm10647_vm12, %v18905_v50  ;;  %vm6022_vm12 = vcmp.eq.s32.totalorder %v14047_v4, %v19100_v45 }
 0x3e1   : > { %vm17160_vm14 = vmpackc.low %vm6022_vm12, %vm6021_vm10  ;;  %vm6001_vm10 = vcmp.eq.s32.totalorder %v14165_v22, %v19100_v45  ;;  %vm6002_vm12 = vcmp.eq.s32.totalorder %v14168_v46, %v19100_v45 }
 0x3e2   : > { %12852 = vmatpush3.bf16.msk.msra.mxu0 %vm10631_vm1, %v18905_v50  ;;  %vm10721_vm15 = vmpackc.low %vm6002_vm12, %vm6001_vm10 }
 0x3e3   : > { %12874 = vmatpush3.bf16.msk.msra.mxu1 %vm10631_vm1, %v18905_v50  ;;  %12881 = vmatprep.subr.msk.bf16.mxu0 %vm10729_vm2, %v18905_v50  ;;  %vm6019_vm1 = vcmp.eq.s32.totalorder %v14080_v8, %v19100_v45 }
 0x3e4   : > { %12903 = vmatprep.subr.msk.bf16.mxu1 %vm10729_vm2, %v18905_v50  ;;  %vm6020_vm2 = vcmp.eq.s32.totalorder %v14083_v20, %v19100_v45 }
 0x3e5   : > { %v12589_v41 = vpop.f32.mrf.mxu0  ;;  %5936 = vmatmul.mubr.bf16.vlgmr.msra.gmra.mxu0 %v5899_v5  ;;  %vm10735_vm4 = vmpackc.low %vm6020_vm2, %vm6019_vm1  ;;  %vm5999_vm1 = vcmp.eq.s32.totalorder %v14220_v14, %v19100_v45  ;;  %vm6000_vm2 = vcmp.eq.s32.totalorder %v14223_v15, %v19100_v45 }
 0x3e6   : > { %v12611_v48 = vpop.f32.mrf.mxu1  ;;  %5983 = vmatmul.mubr.bf16.vlgmr.msra.gmra.mxu1 %v5946_v28  ;;  %12882 = vmatpush3.bf16.msk.msra.mxu0 %vm17116_vm7, %v18905_v50  ;;  %vm10723_vm5 = vmpackc.low %vm6000_vm2, %vm5999_vm1 }
 0x3e7   : > { %6139 = vmatprep.mubr.bf16.mxu0 %v17128_v7  ;;  %12904 = vmatpush3.bf16.msk.msra.mxu1 %vm17116_vm7, %v18905_v50  ;;  %v12590_v53 = vpop.f32.mrf.mxu0  ;;  %vm6017_vm7 = vcmp.eq.s32.totalorder %v14127_v26, %v19100_v45 }
 0x3e8   : > { %6180 = vmatprep.mubr.bf16.mxu1 %v17140_v39  ;;  %v12591_v36 = vadd.f32 %v12590_v53, %v12589_v41  ;;  %v12612_v55 = vpop.f32.mrf.mxu1  ;;  %12883 = vmatprep.subr.msk.bf16.mxu0 %vm17130_vm11, %v18905_v50  ;;  %v19117_v53 = vld [vmem:[#allocation71_spill] sm:$0xff] }
 0x3e9   : > { %v12613_v51 = vadd.f32 %v12612_v55, %v12611_v48  ;;  %v12592_v62 = vpop.f32.mrf.mxu0  ;;  %12905 = vmatprep.subr.msk.bf16.mxu1 %vm17130_vm11, %v18905_v50  ;;  %vm10737_vm11 = vmpackc.low %vm6018_vm8, %vm6017_vm7  ;;  %vm5997_vm7 = vcmp.eq.s32.totalorder %v14261_v42, %v19100_v45  ;;  %vm5998_vm8 = vcmp.eq.s32.totalorder %v14264_v60, %v19100_v45 }
 0x3ea   : > { %v4719_v5 = vadd.f32 %v12591_v36, %v17039_v47  ;;  %v12614_v63 = vpop.f32.mrf.mxu1  ;;  %12884 = vmatpush3.bf16.msk.msra.mxu0 %vm17152_vm13, %v18905_v50  ;;  %vm10725_vm10 = vmpackc.low %vm5998_vm8, %vm5997_vm7  ;;  %v19113_v47 = vld [vmem:[#allocation22_spill] sm:$0xff] }
 0x3eb   : > { %12906 = vmatpush3.bf16.msk.msra.mxu1 %vm17152_vm13, %v18905_v50  ;;  %v12593_v28 = vpop.f32.mrf.mxu0  ;;  %12885 = vmatprep.subr.msk.bf16.mxu0 %vm17160_vm14, %v18905_v50  ;;  %vm6015_vm13 = vcmp.eq.s32.totalorder %v14181_v59, %v19100_v45  ;;  %vm6205_vm8 = vcmp.eq.s32.totalorder %v14027_v52, %v19113_v47 }
 0x3ec   : > { %v17185_v35 = vadd.f32 %v12613_v51, %v4719_v5  ;;  %v12615_v19 = vpop.f32.mrf.mxu1  ;;  %12907 = vmatprep.subr.msk.bf16.mxu1 %vm17160_vm14, %v18905_v50  ;;  %vm6016_vm14 = vcmp.eq.s32.totalorder %v14184_v57, %v19100_v45 }
 0x3ed   : > { %vm10739_vm0 = vmpackc.low %vm6016_vm14, %vm6015_vm13  ;;  %vm5995_vm13 = vcmp.eq.s32.totalorder %v13805_v3, %v19100_v45  ;;  %vm5996_vm14 = vcmp.eq.s32.totalorder %v14302_v32, %v19100_v45 }
 0x3ee   : > { %12886 = vmatpush3.bf16.msk.msra.mxu0 %vm10717_vm3, %v18905_v50  ;;  %vm10727_vm1 = vmpackc.low %vm5996_vm14, %vm5995_vm13 }
 0x3ef   : > { %12908 = vmatpush3.bf16.msk.msra.mxu1 %vm10717_vm3, %v18905_v50  ;;  %12887 = vmatprep.subr.msk.bf16.mxu0 %vm10735_vm4, %v18905_v50  ;;  %vm6013_vm3 = vcmp.eq.s32.totalorder %v14230_v2, %v19100_v45 }
 0x3f0   : > { %12909 = vmatprep.subr.msk.bf16.mxu1 %vm10735_vm4, %v18905_v50  ;;  %vm6014_vm4 = vcmp.eq.s32.totalorder %v14233_v21, %v19100_v45 }
 0x3f1   : > { %vm10741_vm6 = vmpackc.low %vm6014_vm4, %vm6013_vm3  ;;  %vm6207_vm3 = vcmp.eq.s32.totalorder %v14006_v12, %v19113_v47  ;;  %vm6208_vm4 = vcmp.eq.s32.totalorder %v14009_v10, %v19113_v47 }
 0x3f2   : > { %12888 = vmatpush3.bf16.msk.msra.mxu0 %vm10719_vm9, %v18905_v50  ;;  %vm10809_vm7 = vmpackc.low %vm6208_vm4, %vm6207_vm3 }
 0x3f3   : > { %12910 = vmatpush3.bf16.msk.msra.mxu1 %vm10719_vm9, %v18905_v50  ;;  %12889 = vmatprep.subr.msk.bf16.mxu0 %vm10737_vm11, %v18905_v50  ;;  %vm6011_vm9 = vcmp.eq.s32.totalorder %v14273_v58, %v19100_v45 }
 0x3f4   : > { %12911 = vmatprep.subr.msk.bf16.mxu1 %vm10737_vm11, %v18905_v50  ;;  %vm6012_vm11 = vcmp.eq.s32.totalorder %v14276_v6, %v19100_v45  ;;  %v6308_v45 = vrot.slane %v17128_v7, 4 }
 0x3f5   : > { %vm10743_vm12 = vmpackc.low %vm6012_vm11, %vm6011_vm9  ;;  %vm6206_vm9 = vcmp.eq.s32.totalorder %v14030_v56, %v19113_v47 }
 0x3f6   : > { %12890 = vmatpush3.bf16.msk.msra.mxu0 %vm10721_vm15, %v18905_v50  ;;  %vm17283_vm13 = vmpackc.low %vm6206_vm9, %vm6205_vm8  ;;  %vm6216_vm8 = vcmp.eq.s32.totalorder %v14130_v31, %v19113_v47 }
 0x3f7   : > { %12912 = vmatpush3.bf16.msk.msra.mxu1 %vm10721_vm15, %v18905_v50  ;;  %12891 = vmatprep.subr.msk.bf16.mxu0 %vm10739_vm0, %v18905_v50  ;;  %vm6223_vm15 = vcmp.eq.s32.totalorder %v13980_v11, %v19113_v47 }
 0x3f8   : > { %12913 = vmatprep.subr.msk.bf16.mxu1 %vm10739_vm0, %v18905_v50  ;;  %vm6224_vm0 = vcmp.eq.s32.totalorder %v13983_v13, %v19113_v47 }
 0x3f9   : > { %vm10825_vm2 = vmpackc.low %vm6224_vm0, %vm6223_vm15  ;;  %vm6203_vm15 = vcmp.eq.s32.totalorder %v14068_v16, %v19113_v47  ;;  %vm6204_vm0 = vcmp.eq.s32.totalorder %v14071_v18, %v19113_v47 }
 0x3fa   : > { %12892 = vmatpush3.bf16.msk.msra.mxu0 %vm10723_vm5, %v18905_v50  ;;  %vm10813_vm3 = vmpackc.low %vm6204_vm0, %vm6203_vm15 }
 0x3fb   : > { %12914 = vmatpush3.bf16.msk.msra.mxu1 %vm10723_vm5, %v18905_v50  ;;  %12893 = vmatprep.subr.msk.bf16.mxu0 %vm10741_vm6, %v18905_v50  ;;  %vm6221_vm5 = vcmp.eq.s32.totalorder %v14012_v27, %v19113_v47 }
 0x3fc   : > { %12915 = vmatprep.subr.msk.bf16.mxu1 %vm10741_vm6, %v18905_v50  ;;  %vm6222_vm6 = vcmp.eq.s32.totalorder %v14022_v1, %v19113_v47 }
 0x3fd   : > { %vm17268_vm11 = vmpackc.low %vm6222_vm6, %vm6221_vm5  ;;  %vm6201_vm5 = vcmp.eq.s32.totalorder %v14117_v23, %v19113_v47  ;;  %vm6202_vm6 = vcmp.eq.s32.totalorder %v14120_v24, %v19113_v47 }
 0x3fe   : > { %12894 = vmatpush3.bf16.msk.msra.mxu0 %vm10725_vm10, %v18905_v50  ;;  %vm10815_vm9 = vmpackc.low %vm6202_vm6, %vm6201_vm5 }
 0x3ff   : > { %12916 = vmatpush3.bf16.msk.msra.mxu1 %vm10725_vm10, %v18905_v50  ;;  %12895 = vmatprep.subr.msk.bf16.mxu0 %vm10743_vm12, %v18905_v50  ;;  %vm6219_vm10 = vcmp.eq.s32.totalorder %v14044_v61, %v19113_v47 }
 0x400   : > { %12917 = vmatprep.subr.msk.bf16.mxu1 %vm10743_vm12, %v18905_v50  ;;  %vm6220_vm12 = vcmp.eq.s32.totalorder %v14047_v4, %v19113_v47 }
 0x401   : > { %vm17290_vm14 = vmpackc.low %vm6220_vm12, %vm6219_vm10  ;;  %vm6199_vm10 = vcmp.eq.s32.totalorder %v14165_v22, %v19113_v47  ;;  %vm6200_vm12 = vcmp.eq.s32.totalorder %v14168_v46, %v19113_v47 }
 0x402   : > { %12896 = vmatpush3.bf16.msk.msra.mxu0 %vm10727_vm1, %v18905_v50  ;;  %vm10817_vm15 = vmpackc.low %vm6200_vm12, %vm6199_vm10 }
 0x403   : > { %12918 = vmatpush3.bf16.msk.msra.mxu1 %vm10727_vm1, %v18905_v50  ;;  %12925 = vmatprep.subr.msk.bf16.mxu0 %vm10825_vm2, %v18905_v50  ;;  %vm6217_vm1 = vcmp.eq.s32.totalorder %v14080_v8, %v19113_v47 }
 0x404   : > { %12947 = vmatprep.subr.msk.bf16.mxu1 %vm10825_vm2, %v18905_v50  ;;  %vm6218_vm2 = vcmp.eq.s32.totalorder %v14083_v20, %v19113_v47 }
 0x405   : > { %v12633_v41 = vpop.f32.mrf.mxu0  ;;  %6140 = vmatmul.mubr.bf16.vlgmr.msra.gmra.mxu0 %v19114_v54  ;;  %vm10831_vm4 = vmpackc.low %vm6218_vm2, %vm6217_vm1  ;;  %vm6197_vm1 = vcmp.eq.s32.totalorder %v14220_v14, %v19113_v47  ;;  %vm6198_vm2 = vcmp.eq.s32.totalorder %v14223_v15, %v19113_v47 }
 0x406   : > { %v12655_v48 = vpop.f32.mrf.mxu1  ;;  %6181 = vmatmul.mubr.bf16.vlgmr.msra.gmra.mxu1 %v19117_v53  ;;  %12926 = vmatpush3.bf16.msk.msra.mxu0 %vm10809_vm7, %v18905_v50  ;;  %vm10819_vm5 = vmpackc.low %vm6198_vm2, %vm6197_vm1 }
 0x407   : > { %6343 = vmatprep.mubr.bf16.mxu0 %v6308_v45  ;;  %12948 = vmatpush3.bf16.msk.msra.mxu1 %vm10809_vm7, %v18905_v50  ;;  %v12634_v7 = vpop.f32.mrf.mxu0  ;;  %vm6215_vm7 = vcmp.eq.s32.totalorder %v14127_v26, %v19113_v47 }
 0x408   : > { %6390 = vmatprep.mubr.bf16.mxu1 %v6355_v40  ;;  %v12635_v36 = vadd.f32 %v12634_v7, %v12633_v41  ;;  %v12656_v55 = vpop.f32.mrf.mxu1  ;;  %12927 = vmatprep.subr.msk.bf16.mxu0 %vm17268_vm11, %v18905_v50  ;;  %v6354_v41 = vrot.slane %v19117_v53, 4  ;;  %v19129_v53 = vld [vmem:[#allocation75_spill] sm:$0xff]  ;;  %v19136_v7 = vld [vmem:[#allocation76_spill] sm:$0xff] }
 0x409   : > { %v12657_v17 = vadd.f32 %v12656_v55, %v12655_v48  ;;  %v12636_v51 = vpop.f32.mrf.mxu0  ;;  %12949 = vmatprep.subr.msk.bf16.mxu1 %vm17268_vm11, %v18905_v50  ;;  %vm10833_vm11 = vmpackc.low %vm6216_vm8, %vm6215_vm7  ;;  %vm6195_vm7 = vcmp.eq.s32.totalorder %v14261_v42, %v19113_v47  ;;  %vm6196_vm8 = vcmp.eq.s32.totalorder %v14264_v60, %v19113_v47 }
 0x40a   : > { %v4923_v62 = vadd.f32 %v12635_v36, %v17185_v35  ;;  %v12658_v5 = vpop.f32.mrf.mxu1  ;;  %12928 = vmatpush3.bf16.msk.msra.mxu0 %vm17283_vm13, %v18905_v50  ;;  %vm10821_vm10 = vmpackc.low %vm6196_vm8, %vm6195_vm7  ;;  %v19122_v35 = vld [vmem:[#allocation33_spill] sm:$0xff]  ;;  %v17416_v36 = vpack.c.bf16 %v19130_v25, %v19129_v53  ;;  %v19146_v53 = vld [vmem:[#allocation80_spill] sm:$0xff] }
 0x40b   : > { %12950 = vmatpush3.bf16.msk.msra.mxu1 %vm17283_vm13, %v18905_v50  ;;  %v12637_v63 = vpop.f32.mrf.mxu0  ;;  %12929 = vmatprep.subr.msk.bf16.mxu0 %vm17290_vm14, %v18905_v50  ;;  %vm6213_vm13 = vcmp.eq.s32.totalorder %v14181_v59, %v19113_v47  ;;  %vm6415_vm8 = vcmp.eq.s32.totalorder %v14027_v52, %v19122_v35 }
 0x40c   : > { %v17315_v28 = vadd.f32 %v12657_v17, %v4923_v62  ;;  %v12659_v19 = vpop.f32.mrf.mxu1  ;;  %12951 = vmatprep.subr.msk.bf16.mxu1 %vm17290_vm14, %v18905_v50  ;;  %vm6214_vm14 = vcmp.eq.s32.totalorder %v14184_v57, %v19113_v47  ;;  %v6763_v25 = vrot.slane %v17416_v36, 4 }
 0x40d   : > { %vm10835_vm0 = vmpackc.low %vm6214_vm14, %vm6213_vm13  ;;  %vm6193_vm13 = vcmp.eq.s32.totalorder %v13805_v3, %v19113_v47  ;;  %vm6194_vm14 = vcmp.eq.s32.totalorder %v14302_v32, %v19113_v47 }
 0x40e   : > { %12930 = vmatpush3.bf16.msk.msra.mxu0 %vm10813_vm3, %v18905_v50  ;;  %vm10823_vm1 = vmpackc.low %vm6194_vm14, %vm6193_vm13 }
 0x40f   : > { %12952 = vmatpush3.bf16.msk.msra.mxu1 %vm10813_vm3, %v18905_v50  ;;  %12931 = vmatprep.subr.msk.bf16.mxu0 %vm10831_vm4, %v18905_v50  ;;  %vm6211_vm3 = vcmp.eq.s32.totalorder %v14230_v2, %v19113_v47 }
 0x410   : > { %12953 = vmatprep.subr.msk.bf16.mxu1 %vm10831_vm4, %v18905_v50  ;;  %vm6212_vm4 = vcmp.eq.s32.totalorder %v14233_v21, %v19113_v47 }
 0x411   : > { %vm10837_vm6 = vmpackc.low %vm6212_vm4, %vm6211_vm3  ;;  %vm6417_vm3 = vcmp.eq.s32.totalorder %v14006_v12, %v19122_v35  ;;  %vm6418_vm4 = vcmp.eq.s32.totalorder %v14009_v10, %v19122_v35 }
 0x412   : > { %12932 = vmatpush3.bf16.msk.msra.mxu0 %vm10815_vm9, %v18905_v50  ;;  %vm17392_vm7 = vmpackc.low %vm6418_vm4, %vm6417_vm3 }
 0x413   : > { %12954 = vmatpush3.bf16.msk.msra.mxu1 %vm10815_vm9, %v18905_v50  ;;  %12933 = vmatprep.subr.msk.bf16.mxu0 %vm10833_vm11, %v18905_v50  ;;  %vm6209_vm9 = vcmp.eq.s32.totalorder %v14273_v58, %v19113_v47 }
 0x414   : > { %12955 = vmatprep.subr.msk.bf16.mxu1 %vm10833_vm11, %v18905_v50  ;;  %vm6210_vm11 = vcmp.eq.s32.totalorder %v14276_v6, %v19113_v47  ;;  %v6307_v47 = vrot.slane %v19114_v54, 4  ;;  %v19126_v54 = vld [vmem:[#allocation78_spill] sm:$0xff] }
 0x415   : > { %vm10839_vm12 = vmpackc.low %vm6210_vm11, %vm6209_vm9  ;;  %vm6416_vm9 = vcmp.eq.s32.totalorder %v14030_v56, %v19122_v35  ;;  %v17404_v40 = vpack.c.bf16 %v19126_v54, %v19125_v49 }
 0x416   : > { %12934 = vmatpush3.bf16.msk.msra.mxu0 %vm10817_vm15, %v18905_v50  ;;  %vm17428_vm13 = vmpackc.low %vm6416_vm9, %vm6415_vm8  ;;  %vm6426_vm8 = vcmp.eq.s32.totalorder %v14130_v31, %v19122_v35 }
 0x417   : > { %12956 = vmatpush3.bf16.msk.msra.mxu1 %vm10817_vm15, %v18905_v50  ;;  %12935 = vmatprep.subr.msk.bf16.mxu0 %vm10835_vm0, %v18905_v50  ;;  %vm6433_vm15 = vcmp.eq.s32.totalorder %v13980_v11, %v19122_v35 }
 0x418   : > { %12957 = vmatprep.subr.msk.bf16.mxu1 %vm10835_vm0, %v18905_v50  ;;  %vm6434_vm0 = vcmp.eq.s32.totalorder %v13983_v13, %v19122_v35 }
 0x419   : > { %vm10921_vm2 = vmpackc.low %vm6434_vm0, %vm6433_vm15  ;;  %vm6413_vm15 = vcmp.eq.s32.totalorder %v14068_v16, %v19122_v35  ;;  %vm6414_vm0 = vcmp.eq.s32.totalorder %v14071_v18, %v19122_v35 }
 0x41a   : > { %12936 = vmatpush3.bf16.msk.msra.mxu0 %vm10819_vm5, %v18905_v50  ;;  %vm10909_vm3 = vmpackc.low %vm6414_vm0, %vm6413_vm15 }
 0x41b   : > { %12958 = vmatpush3.bf16.msk.msra.mxu1 %vm10819_vm5, %v18905_v50  ;;  %12937 = vmatprep.subr.msk.bf16.mxu0 %vm10837_vm6, %v18905_v50  ;;  %vm6431_vm5 = vcmp.eq.s32.totalorder %v14012_v27, %v19122_v35 }
 0x41c   : > { %12959 = vmatprep.subr.msk.bf16.mxu1 %vm10837_vm6, %v18905_v50  ;;  %vm6432_vm6 = vcmp.eq.s32.totalorder %v14022_v1, %v19122_v35 }
 0x41d   : > { %vm17406_vm11 = vmpackc.low %vm6432_vm6, %vm6431_vm5  ;;  %vm6411_vm5 = vcmp.eq.s32.totalorder %v14117_v23, %v19122_v35  ;;  %vm6412_vm6 = vcmp.eq.s32.totalorder %v14120_v24, %v19122_v35 }
 0x41e   : > { %12938 = vmatpush3.bf16.msk.msra.mxu0 %vm10821_vm10, %v18905_v50  ;;  %vm10911_vm9 = vmpackc.low %vm6412_vm6, %vm6411_vm5 }
 0x41f   : > { %12960 = vmatpush3.bf16.msk.msra.mxu1 %vm10821_vm10, %v18905_v50  ;;  %12939 = vmatprep.subr.msk.bf16.mxu0 %vm10839_vm12, %v18905_v50  ;;  %vm6429_vm10 = vcmp.eq.s32.totalorder %v14044_v61, %v19122_v35 }
 0x420   : > { %12961 = vmatprep.subr.msk.bf16.mxu1 %vm10839_vm12, %v18905_v50  ;;  %vm6430_vm12 = vcmp.eq.s32.totalorder %v14047_v4, %v19122_v35 }
 0x421   : > { %vm17436_vm14 = vmpackc.low %vm6430_vm12, %vm6429_vm10  ;;  %vm6409_vm10 = vcmp.eq.s32.totalorder %v14165_v22, %v19122_v35  ;;  %vm6410_vm12 = vcmp.eq.s32.totalorder %v14168_v46, %v19122_v35 }
 0x422   : > { %12940 = vmatpush3.bf16.msk.msra.mxu0 %vm10823_vm1, %v18905_v50  ;;  %vm10913_vm15 = vmpackc.low %vm6410_vm12, %vm6409_vm10 }
 0x423   : > { %12962 = vmatpush3.bf16.msk.msra.mxu1 %vm10823_vm1, %v18905_v50  ;;  %12969 = vmatprep.subr.msk.bf16.mxu0 %vm10921_vm2, %v18905_v50  ;;  %vm6427_vm1 = vcmp.eq.s32.totalorder %v14080_v8, %v19122_v35 }
 0x424   : > { %12991 = vmatprep.subr.msk.bf16.mxu1 %vm10921_vm2, %v18905_v50  ;;  %vm6428_vm2 = vcmp.eq.s32.totalorder %v14083_v20, %v19122_v35 }
 0x425   : > { %v12677_v48 = vpop.f32.mrf.mxu0  ;;  %6344 = vmatmul.mubr.bf16.vlgmr.msra.gmra.mxu0 %v6307_v47  ;;  %vm10927_vm4 = vmpackc.low %vm6428_vm2, %vm6427_vm1  ;;  %vm6407_vm1 = vcmp.eq.s32.totalorder %v14220_v14, %v19122_v35  ;;  %vm6408_vm2 = vcmp.eq.s32.totalorder %v14223_v15, %v19122_v35 }
 0x426   : > { %v12699_v55 = vpop.f32.mrf.mxu1  ;;  %6391 = vmatmul.mubr.bf16.vlgmr.msra.gmra.mxu1 %v6354_v41  ;;  %12970 = vmatpush3.bf16.msk.msra.mxu0 %vm17392_vm7, %v18905_v50  ;;  %vm10915_vm5 = vmpackc.low %vm6408_vm2, %vm6407_vm1 }
 0x427   : > { %6547 = vmatprep.mubr.bf16.mxu0 %v17404_v40  ;;  %12992 = vmatpush3.bf16.msk.msra.mxu1 %vm17392_vm7, %v18905_v50  ;;  %v12678_v39 = vpop.f32.mrf.mxu0  ;;  %vm6425_vm7 = vcmp.eq.s32.totalorder %v14127_v26, %v19122_v35 }
 0x428   : > { %6588 = vmatprep.mubr.bf16.mxu1 %v17416_v36  ;;  %v12679_v51 = vadd.f32 %v12678_v39, %v12677_v48  ;;  %v12700_v62 = vpop.f32.mrf.mxu1  ;;  %12971 = vmatprep.subr.msk.bf16.mxu0 %vm17406_vm11, %v18905_v50  ;;  %v19139_v39 = vld [vmem:[#allocation77_spill] sm:$0xff] }
 0x429   : > { %v12701_v63 = vadd.f32 %v12700_v62, %v12699_v55  ;;  %v12680_v19 = vpop.f32.mrf.mxu0  ;;  %12993 = vmatprep.subr.msk.bf16.mxu1 %vm17406_vm11, %v18905_v50  ;;  %vm10929_vm11 = vmpackc.low %vm6426_vm8, %vm6425_vm7  ;;  %vm6405_vm7 = vcmp.eq.s32.totalorder %v14261_v42, %v19122_v35  ;;  %vm6406_vm8 = vcmp.eq.s32.totalorder %v14264_v60, %v19122_v35 }
 0x42a   : > { %v5127_v47 = vadd.f32 %v12679_v51, %v17315_v28  ;;  %v12702_v45 = vpop.f32.mrf.mxu1  ;;  %12972 = vmatpush3.bf16.msk.msra.mxu0 %vm17428_vm13, %v18905_v50  ;;  %vm10917_vm10 = vmpackc.low %vm6406_vm8, %vm6405_vm7  ;;  %v19135_v28 = vld [vmem:[#allocation29_spill] sm:$0xff] }
 0x42b   : > { %12994 = vmatpush3.bf16.msk.msra.mxu1 %vm17428_vm13, %v18905_v50  ;;  %v12681_v41 = vpop.f32.mrf.mxu0  ;;  %12973 = vmatprep.subr.msk.bf16.mxu0 %vm17436_vm14, %v18905_v50  ;;  %vm6423_vm13 = vcmp.eq.s32.totalorder %v14181_v59, %v19122_v35  ;;  %vm6613_vm8 = vcmp.eq.s32.totalorder %v14027_v52, %v19135_v28 }
 0x42c   : > { %v17461_v49 = vadd.f32 %v12701_v63, %v5127_v47  ;;  %v12703_v54 = vpop.f32.mrf.mxu1  ;;  %12995 = vmatprep.subr.msk.bf16.mxu1 %vm17436_vm14, %v18905_v50  ;;  %vm6424_vm14 = vcmp.eq.s32.totalorder %v14184_v57, %v19122_v35 }
 0x42d   : > { %vm10931_vm0 = vmpackc.low %vm6424_vm14, %vm6423_vm13  ;;  %vm6403_vm13 = vcmp.eq.s32.totalorder %v13805_v3, %v19122_v35  ;;  %vm6404_vm14 = vcmp.eq.s32.totalorder %v14302_v32, %v19122_v35 }
 0x42e   : > { %12974 = vmatpush3.bf16.msk.msra.mxu0 %vm10909_vm3, %v18905_v50  ;;  %vm10919_vm1 = vmpackc.low %vm6404_vm14, %vm6403_vm13 }
 0x42f   : > { %12996 = vmatpush3.bf16.msk.msra.mxu1 %vm10909_vm3, %v18905_v50  ;;  %12975 = vmatprep.subr.msk.bf16.mxu0 %vm10927_vm4, %v18905_v50  ;;  %vm6421_vm3 = vcmp.eq.s32.totalorder %v14230_v2, %v19122_v35 }
 0x430   : > { %12997 = vmatprep.subr.msk.bf16.mxu1 %vm10927_vm4, %v18905_v50  ;;  %vm6422_vm4 = vcmp.eq.s32.totalorder %v14233_v21, %v19122_v35 }
 0x431   : > { %vm10933_vm6 = vmpackc.low %vm6422_vm4, %vm6421_vm3  ;;  %vm6615_vm3 = vcmp.eq.s32.totalorder %v14006_v12, %v19135_v28  ;;  %vm6616_vm4 = vcmp.eq.s32.totalorder %v14009_v10, %v19135_v28 }
 0x432   : > { %12976 = vmatpush3.bf16.msk.msra.mxu0 %vm10911_vm9, %v18905_v50  ;;  %vm11001_vm7 = vmpackc.low %vm6616_vm4, %vm6615_vm3 }
 0x433   : > { %12998 = vmatpush3.bf16.msk.msra.mxu1 %vm10911_vm9, %v18905_v50  ;;  %12977 = vmatprep.subr.msk.bf16.mxu0 %vm10929_vm11, %v18905_v50  ;;  %vm6419_vm9 = vcmp.eq.s32.totalorder %v14273_v58, %v19122_v35 }
 0x434   : > { %12999 = vmatprep.subr.msk.bf16.mxu1 %vm10929_vm11, %v18905_v50  ;;  %vm6420_vm11 = vcmp.eq.s32.totalorder %v14276_v6, %v19122_v35  ;;  %v6716_v35 = vrot.slane %v17404_v40, 4 }
 0x435   : > { %vm10935_vm12 = vmpackc.low %vm6420_vm11, %vm6419_vm9  ;;  %vm6614_vm9 = vcmp.eq.s32.totalorder %v14030_v56, %v19135_v28 }
 0x436   : > { %12978 = vmatpush3.bf16.msk.msra.mxu0 %vm10913_vm15, %v18905_v50  ;;  %vm17559_vm13 = vmpackc.low %vm6614_vm9, %vm6613_vm8  ;;  %vm6624_vm8 = vcmp.eq.s32.totalorder %v14130_v31, %v19135_v28 }
 0x437   : > { %13000 = vmatpush3.bf16.msk.msra.mxu1 %vm10913_vm15, %v18905_v50  ;;  %12979 = vmatprep.subr.msk.bf16.mxu0 %vm10931_vm0, %v18905_v50  ;;  %vm6631_vm15 = vcmp.eq.s32.totalorder %v13980_v11, %v19135_v28 }
 0x438   : > { %13001 = vmatprep.subr.msk.bf16.mxu1 %vm10931_vm0, %v18905_v50  ;;  %vm6632_vm0 = vcmp.eq.s32.totalorder %v13983_v13, %v19135_v28 }
 0x439   : > { %vm11017_vm2 = vmpackc.low %vm6632_vm0, %vm6631_vm15  ;;  %vm6611_vm15 = vcmp.eq.s32.totalorder %v14068_v16, %v19135_v28  ;;  %vm6612_vm0 = vcmp.eq.s32.totalorder %v14071_v18, %v19135_v28 }
 0x43a   : > { %12980 = vmatpush3.bf16.msk.msra.mxu0 %vm10915_vm5, %v18905_v50  ;;  %vm11005_vm3 = vmpackc.low %vm6612_vm0, %vm6611_vm15 }
 0x43b   : > { %13002 = vmatpush3.bf16.msk.msra.mxu1 %vm10915_vm5, %v18905_v50  ;;  %12981 = vmatprep.subr.msk.bf16.mxu0 %vm10933_vm6, %v18905_v50  ;;  %vm6629_vm5 = vcmp.eq.s32.totalorder %v14012_v27, %v19135_v28 }
 0x43c   : > { %13003 = vmatprep.subr.msk.bf16.mxu1 %vm10933_vm6, %v18905_v50  ;;  %vm6630_vm6 = vcmp.eq.s32.totalorder %v14022_v1, %v19135_v28 }
 0x43d   : > { %vm17544_vm11 = vmpackc.low %vm6630_vm6, %vm6629_vm5  ;;  %vm6609_vm5 = vcmp.eq.s32.totalorder %v14117_v23, %v19135_v28  ;;  %vm6610_vm6 = vcmp.eq.s32.totalorder %v14120_v24, %v19135_v28 }
 0x43e   : > { %12982 = vmatpush3.bf16.msk.msra.mxu0 %vm10917_vm10, %v18905_v50  ;;  %vm11007_vm9 = vmpackc.low %vm6610_vm6, %vm6609_vm5 }
 0x43f   : > { %13004 = vmatpush3.bf16.msk.msra.mxu1 %vm10917_vm10, %v18905_v50  ;;  %12983 = vmatprep.subr.msk.bf16.mxu0 %vm10935_vm12, %v18905_v50  ;;  %vm6627_vm10 = vcmp.eq.s32.totalorder %v14044_v61, %v19135_v28 }
 0x440   : > { %13005 = vmatprep.subr.msk.bf16.mxu1 %vm10935_vm12, %v18905_v50  ;;  %vm6628_vm12 = vcmp.eq.s32.totalorder %v14047_v4, %v19135_v28 }
 0x441   : > { %vm17566_vm14 = vmpackc.low %vm6628_vm12, %vm6627_vm10  ;;  %vm6607_vm10 = vcmp.eq.s32.totalorder %v14165_v22, %v19135_v28  ;;  %vm6608_vm12 = vcmp.eq.s32.totalorder %v14168_v46, %v19135_v28 }
 0x442   : > { %12984 = vmatpush3.bf16.msk.msra.mxu0 %vm10919_vm1, %v18905_v50  ;;  %vm11009_vm15 = vmpackc.low %vm6608_vm12, %vm6607_vm10 }
 0x443   : > { %13006 = vmatpush3.bf16.msk.msra.mxu1 %vm10919_vm1, %v18905_v50  ;;  %13013 = vmatprep.subr.msk.bf16.mxu0 %vm11017_vm2, %v18905_v50  ;;  %vm6625_vm1 = vcmp.eq.s32.totalorder %v14080_v8, %v19135_v28 }
 0x444   : > { %13035 = vmatprep.subr.msk.bf16.mxu1 %vm11017_vm2, %v18905_v50  ;;  %vm6626_vm2 = vcmp.eq.s32.totalorder %v14083_v20, %v19135_v28 }
 0x445   : > { %v12721_v48 = vpop.f32.mrf.mxu0  ;;  %6548 = vmatmul.mubr.bf16.vlgmr.msra.gmra.mxu0 %v19136_v7  ;;  %vm11023_vm4 = vmpackc.low %vm6626_vm2, %vm6625_vm1  ;;  %vm6605_vm1 = vcmp.eq.s32.totalorder %v14220_v14, %v19135_v28  ;;  %vm6606_vm2 = vcmp.eq.s32.totalorder %v14223_v15, %v19135_v28 }
 0x446   : > { %v12743_v55 = vpop.f32.mrf.mxu1  ;;  %6589 = vmatmul.mubr.bf16.vlgmr.msra.gmra.mxu1 %v19139_v39  ;;  %13014 = vmatpush3.bf16.msk.msra.mxu0 %vm11001_vm7, %v18905_v50  ;;  %vm11011_vm5 = vmpackc.low %vm6606_vm2, %vm6605_vm1 }
 0x447   : > { %6751 = vmatprep.mubr.bf16.mxu0 %v6716_v35  ;;  %13036 = vmatpush3.bf16.msk.msra.mxu1 %vm11001_vm7, %v18905_v50  ;;  %v12722_v40 = vpop.f32.mrf.mxu0  ;;  %vm6623_vm7 = vcmp.eq.s32.totalorder %v14127_v26, %v19135_v28 }
 0x448   : > { %6798 = vmatprep.mubr.bf16.mxu1 %v6763_v25  ;;  %v12723_v51 = vadd.f32 %v12722_v40, %v12721_v48  ;;  %v12744_v62 = vpop.f32.mrf.mxu1  ;;  %13015 = vmatprep.subr.msk.bf16.mxu0 %vm17544_vm11, %v18905_v50  ;;  %v6762_v48 = vrot.slane %v19139_v39, 4  ;;  %v19149_v39 = vld [vmem:[#allocation81_spill] sm:$0xff] }
 0x449   : > { %v12745_v5 = vadd.f32 %v12744_v62, %v12743_v55  ;;  %v12724_v63 = vpop.f32.mrf.mxu0  ;;  %13037 = vmatprep.subr.msk.bf16.mxu1 %vm17544_vm11, %v18905_v50  ;;  %vm11025_vm11 = vmpackc.low %vm6624_vm8, %vm6623_vm7  ;;  %vm6603_vm7 = vcmp.eq.s32.totalorder %v14261_v42, %v19135_v28  ;;  %vm6604_vm8 = vcmp.eq.s32.totalorder %v14264_v60, %v19135_v28  ;;  %v17699_v40 = vpack.c.bf16 %v14926_v44, %v19149_v39 }
 0x44a   : > { %v5331_v19 = vadd.f32 %v12723_v51, %v17461_v49  ;;  %v12746_v47 = vpop.f32.mrf.mxu1  ;;  %13016 = vmatpush3.bf16.msk.msra.mxu0 %vm17559_vm13, %v18905_v50  ;;  %v17637_v49 = vld [vmem:[%s13798_s30 + $0x18] sm:$0xff]  ;;  %vm11013_vm10 = vmpackc.low %vm6604_vm8, %vm6603_vm7 }
 0x44b   : > { %13038 = vmatpush3.bf16.msk.msra.mxu1 %vm17559_vm13, %v18905_v50  ;;  %v12725_v45 = vpop.f32.mrf.mxu0  ;;  %13017 = vmatprep.subr.msk.bf16.mxu0 %vm17566_vm14, %v18905_v50  ;;  %vm6621_vm13 = vcmp.eq.s32.totalorder %v14181_v59, %v19135_v28  ;;  %v17641_v35 = vrot.slane %v17637_v49, %v18987_v29  ;;  %v6715_v29 = vrot.slane %v19136_v7, 4  ;;  %v17687_v7 = vpack.c.bf16 %v14924_v43, %v19146_v53 }
 0x44c   : > { %v17591_v41 = vadd.f32 %v12745_v5, %v5331_v19  ;;  %v12747_v54 = vpop.f32.mrf.mxu1  ;;  %13039 = vmatprep.subr.msk.bf16.mxu1 %vm17566_vm14, %v18905_v50  ;;  %vm6622_vm14 = vcmp.eq.s32.totalorder %v14184_v57, %v19135_v28 }
 0x44d   : > { %vm11027_vm0 = vmpackc.low %vm6622_vm14, %vm6621_vm13  ;;  %vm6601_vm13 = vcmp.eq.s32.totalorder %v13805_v3, %v19135_v28  ;;  %vm6602_vm14 = vcmp.eq.s32.totalorder %v14302_v32, %v19135_v28  ;;  %vm6823_vm8 = vcmp.eq.s32.totalorder %v14027_v52, %v17641_v35 }
 0x44e   : > { %13018 = vmatpush3.bf16.msk.msra.mxu0 %vm11005_vm3, %v18905_v50  ;;  %vm11015_vm1 = vmpackc.low %vm6602_vm14, %vm6601_vm13 }
 0x44f   : > { %13040 = vmatpush3.bf16.msk.msra.mxu1 %vm11005_vm3, %v18905_v50  ;;  %13019 = vmatprep.subr.msk.bf16.mxu0 %vm11023_vm4, %v18905_v50  ;;  %vm6619_vm3 = vcmp.eq.s32.totalorder %v14230_v2, %v19135_v28 }
 0x450   : > { %13041 = vmatprep.subr.msk.bf16.mxu1 %vm11023_vm4, %v18905_v50  ;;  %vm6620_vm4 = vcmp.eq.s32.totalorder %v14233_v21, %v19135_v28 }
 0x451   : > { %vm11029_vm6 = vmpackc.low %vm6620_vm4, %vm6619_vm3  ;;  %vm6825_vm3 = vcmp.eq.s32.totalorder %v14006_v12, %v17641_v35  ;;  %vm6826_vm4 = vcmp.eq.s32.totalorder %v14009_v10, %v17641_v35 }
 0x452   : > { %13020 = vmatpush3.bf16.msk.msra.mxu0 %vm11007_vm9, %v18905_v50  ;;  %vm17675_vm7 = vmpackc.low %vm6826_vm4, %vm6825_vm3 }
 0x453   : > { %13042 = vmatpush3.bf16.msk.msra.mxu1 %vm11007_vm9, %v18905_v50  ;;  %13021 = vmatprep.subr.msk.bf16.mxu0 %vm11025_vm11, %v18905_v50  ;;  %vm6617_vm9 = vcmp.eq.s32.totalorder %v14273_v58, %v19135_v28 }
 0x454   : > { %13043 = vmatprep.subr.msk.bf16.mxu1 %vm11025_vm11, %v18905_v50  ;;  %vm6618_vm11 = vcmp.eq.s32.totalorder %v14276_v6, %v19135_v28 }
 0x455   : > { %vm11031_vm12 = vmpackc.low %vm6618_vm11, %vm6617_vm9  ;;  %vm6824_vm9 = vcmp.eq.s32.totalorder %v14030_v56, %v17641_v35 }
 0x456   : > { %13022 = vmatpush3.bf16.msk.msra.mxu0 %vm11009_vm15, %v18905_v50  ;;  %vm17711_vm13 = vmpackc.low %vm6824_vm9, %vm6823_vm8  ;;  %vm6834_vm8 = vcmp.eq.s32.totalorder %v14130_v31, %v17641_v35 }
 0x457   : > { %13044 = vmatpush3.bf16.msk.msra.mxu1 %vm11009_vm15, %v18905_v50  ;;  %13023 = vmatprep.subr.msk.bf16.mxu0 %vm11027_vm0, %v18905_v50  ;;  %vm6841_vm15 = vcmp.eq.s32.totalorder %v13980_v11, %v17641_v35 }
 0x458   : > { %13045 = vmatprep.subr.msk.bf16.mxu1 %vm11027_vm0, %v18905_v50  ;;  %vm6842_vm0 = vcmp.eq.s32.totalorder %v13983_v13, %v17641_v35 }
 0x459   : > { %vm11113_vm2 = vmpackc.low %vm6842_vm0, %vm6841_vm15  ;;  %vm6821_vm15 = vcmp.eq.s32.totalorder %v14068_v16, %v17641_v35  ;;  %vm6822_vm0 = vcmp.eq.s32.totalorder %v14071_v18, %v17641_v35 }
 0x45a   : > { %13024 = vmatpush3.bf16.msk.msra.mxu0 %vm11011_vm5, %v18905_v50  ;;  %vm11101_vm3 = vmpackc.low %vm6822_vm0, %vm6821_vm15 }
 0x45b   : > { %13046 = vmatpush3.bf16.msk.msra.mxu1 %vm11011_vm5, %v18905_v50  ;;  %13025 = vmatprep.subr.msk.bf16.mxu0 %vm11029_vm6, %v18905_v50  ;;  %vm6839_vm5 = vcmp.eq.s32.totalorder %v14012_v27, %v17641_v35 }
 0x45c   : > { %13047 = vmatprep.subr.msk.bf16.mxu1 %vm11029_vm6, %v18905_v50  ;;  %vm6840_vm6 = vcmp.eq.s32.totalorder %v14022_v1, %v17641_v35 }
 0x45d   : > { %vm17689_vm11 = vmpackc.low %vm6840_vm6, %vm6839_vm5  ;;  %vm6819_vm5 = vcmp.eq.s32.totalorder %v14117_v23, %v17641_v35  ;;  %vm6820_vm6 = vcmp.eq.s32.totalorder %v14120_v24, %v17641_v35 }
 0x45e   : > { %13026 = vmatpush3.bf16.msk.msra.mxu0 %vm11013_vm10, %v18905_v50  ;;  %vm11103_vm9 = vmpackc.low %vm6820_vm6, %vm6819_vm5 }
 0x45f   : > { %13048 = vmatpush3.bf16.msk.msra.mxu1 %vm11013_vm10, %v18905_v50  ;;  %13027 = vmatprep.subr.msk.bf16.mxu0 %vm11031_vm12, %v18905_v50  ;;  %vm6837_vm10 = vcmp.eq.s32.totalorder %v14044_v61, %v17641_v35 }
 0x460   : > { %13049 = vmatprep.subr.msk.bf16.mxu1 %vm11031_vm12, %v18905_v50  ;;  %vm6838_vm12 = vcmp.eq.s32.totalorder %v14047_v4, %v17641_v35 }
 0x461   : > { %vm17719_vm14 = vmpackc.low %vm6838_vm12, %vm6837_vm10  ;;  %vm6817_vm10 = vcmp.eq.s32.totalorder %v14165_v22, %v17641_v35  ;;  %vm6818_vm12 = vcmp.eq.s32.totalorder %v14168_v46, %v17641_v35 }
 0x462   : > { %13028 = vmatpush3.bf16.msk.msra.mxu0 %vm11015_vm1, %v18905_v50  ;;  %vm11105_vm15 = vmpackc.low %vm6818_vm12, %vm6817_vm10 }
 0x463   : > { %13050 = vmatpush3.bf16.msk.msra.mxu1 %vm11015_vm1, %v18905_v50  ;;  %13057 = vmatprep.subr.msk.bf16.mxu0 %vm11113_vm2, %v18905_v50  ;;  %vm6835_vm1 = vcmp.eq.s32.totalorder %v14080_v8, %v17641_v35 }
 0x464   : > { %13079 = vmatprep.subr.msk.bf16.mxu1 %vm11113_vm2, %v18905_v50  ;;  %vm6836_vm2 = vcmp.eq.s32.totalorder %v14083_v20, %v17641_v35 }
 0x465   : > { %v12765_v25 = vpop.f32.mrf.mxu0  ;;  %6752 = vmatmul.mubr.bf16.vlgmr.msra.gmra.mxu0 %v6715_v29  ;;  %vm11119_vm4 = vmpackc.low %vm6836_vm2, %vm6835_vm1  ;;  %vm6815_vm1 = vcmp.eq.s32.totalorder %v14220_v14, %v17641_v35  ;;  %vm6816_vm2 = vcmp.eq.s32.totalorder %v14223_v15, %v17641_v35 }
 0x466   : > { %v12787_v17 = vpop.f32.mrf.mxu1  ;;  %6799 = vmatmul.mubr.bf16.vlgmr.msra.gmra.mxu1 %v6762_v48  ;;  %13058 = vmatpush3.bf16.msk.msra.mxu0 %vm17675_vm7, %v18905_v50  ;;  %vm11107_vm5 = vmpackc.low %vm6816_vm2, %vm6815_vm1  ;;  %v7171_v48 = vrot.slane %v17699_v40, 4 }
 0x467   : > { %6955 = vmatprep.mubr.bf16.mxu0 %v17687_v7  ;;  %13080 = vmatpush3.bf16.msk.msra.mxu1 %vm17675_vm7, %v18905_v50  ;;  %v12766_v43 = vpop.f32.mrf.mxu0  ;;  %vm6833_vm7 = vcmp.eq.s32.totalorder %v14127_v26, %v17641_v35 }
 0x468   : > { %6996 = vmatprep.mubr.bf16.mxu1 %v17699_v40  ;;  %v12767_v44 = vadd.f32 %v12766_v43, %v12765_v25  ;;  %v12788_v62 = vpop.f32.mrf.mxu1  ;;  %13059 = vmatprep.subr.msk.bf16.mxu0 %vm17689_vm11, %v18905_v50  ;;  %v19157_v25 = vld [vmem:[#allocation83_spill] sm:$0xff]  ;;  %v19171_v40 = vld [vmem:[#allocation20_spill] sm:$0xff] }
 0x469   : > { %v12789_v5 = vadd.f32 %v12788_v62, %v12787_v17  ;;  %v12768_v63 = vpop.f32.mrf.mxu0  ;;  %13081 = vmatprep.subr.msk.bf16.mxu1 %vm17689_vm11, %v18905_v50  ;;  %vm11121_vm11 = vmpackc.low %vm6834_vm8, %vm6833_vm7  ;;  %vm6813_vm7 = vcmp.eq.s32.totalorder %v14261_v42, %v17641_v35  ;;  %vm6814_vm8 = vcmp.eq.s32.totalorder %v14264_v60, %v17641_v35 }
 0x46a   : > { %v5535_v19 = vadd.f32 %v12767_v44, %v17591_v41  ;;  %v12790_v47 = vpop.f32.mrf.mxu1  ;;  %13060 = vmatpush3.bf16.msk.msra.mxu0 %vm17711_vm13, %v18905_v50  ;;  %v17791_v41 = vrot.slane %v17637_v49, %v18994_v38  ;;  %vm11109_vm10 = vmpackc.low %vm6814_vm8, %vm6813_vm7  ;;  %v7124_v38 = vrot.slane %v17687_v7, 4 }
 0x46b   : > { %13082 = vmatpush3.bf16.msk.msra.mxu1 %vm17711_vm13, %v18905_v50  ;;  %v12769_v45 = vpop.f32.mrf.mxu0  ;;  %13061 = vmatprep.subr.msk.bf16.mxu0 %vm17719_vm14, %v18905_v50  ;;  %vm6831_vm13 = vcmp.eq.s32.totalorder %v14181_v59, %v17641_v35 }
 0x46c   : > { %v17744_v54 = vadd.f32 %v12789_v5, %v5535_v19  ;;  %v12791_v29 = vpop.f32.mrf.mxu1  ;;  %13083 = vmatprep.subr.msk.bf16.mxu1 %vm17719_vm14, %v18905_v50  ;;  %vm6832_vm14 = vcmp.eq.s32.totalorder %v14184_v57, %v17641_v35  ;;  %vm7021_vm8 = vcmp.eq.s32.totalorder %v14027_v52, %v17791_v41  ;;  %v19162_v19 = vld [vmem:[#allocation17_spill] sm:$0xff] }
 0x46d   : > { %vm11123_vm0 = vmpackc.low %vm6832_vm14, %vm6831_vm13  ;;  %vm6811_vm13 = vcmp.eq.s32.totalorder %v13805_v3, %v17641_v35  ;;  %vm6812_vm14 = vcmp.eq.s32.totalorder %v14302_v32, %v17641_v35  ;;  %v17967_v29 = vpack.c.bf16 %v15003_v0, %v14962_v9 }
 0x46e   : > { %13062 = vmatpush3.bf16.msk.msra.mxu0 %vm11101_vm3, %v18905_v50  ;;  %vm11111_vm1 = vmpackc.low %vm6812_vm14, %vm6811_vm13 }
 0x46f   : > { %13084 = vmatpush3.bf16.msk.msra.mxu1 %vm11101_vm3, %v18905_v50  ;;  %13063 = vmatprep.subr.msk.bf16.mxu0 %vm11119_vm4, %v18905_v50  ;;  %vm6829_vm3 = vcmp.eq.s32.totalorder %v14230_v2, %v17641_v35 }
 0x470   : > { %13085 = vmatprep.subr.msk.bf16.mxu1 %vm11119_vm4, %v18905_v50  ;;  %vm6830_vm4 = vcmp.eq.s32.totalorder %v14233_v21, %v17641_v35 }
 0x471   : > { %vm11125_vm6 = vmpackc.low %vm6830_vm4, %vm6829_vm3  ;;  %vm7023_vm3 = vcmp.eq.s32.totalorder %v14006_v12, %v17791_v41  ;;  %vm7024_vm4 = vcmp.eq.s32.totalorder %v14009_v10, %v17791_v41 }
 0x472   : > { %13064 = vmatpush3.bf16.msk.msra.mxu0 %vm11103_vm9, %v18905_v50  ;;  %vm11193_vm7 = vmpackc.low %vm7024_vm4, %vm7023_vm3 }
 0x473   : > { %13086 = vmatpush3.bf16.msk.msra.mxu1 %vm11103_vm9, %v18905_v50  ;;  %13065 = vmatprep.subr.msk.bf16.mxu0 %vm11121_vm11, %v18905_v50  ;;  %vm6827_vm9 = vcmp.eq.s32.totalorder %v14273_v58, %v17641_v35 }
 0x474   : > { %13087 = vmatprep.subr.msk.bf16.mxu1 %vm11121_vm11, %v18905_v50  ;;  %vm6828_vm11 = vcmp.eq.s32.totalorder %v14276_v6, %v17641_v35  ;;  %v19154_v35 = vld [vmem:[#allocation82_spill] sm:$0xff] }
 0x475   : > { %vm11127_vm12 = vmpackc.low %vm6828_vm11, %vm6827_vm9  ;;  %vm7022_vm9 = vcmp.eq.s32.totalorder %v14030_v56, %v17791_v41  ;;  %v7123_v47 = vrot.slane %v19154_v35, 4 }
 0x476   : > { %13066 = vmatpush3.bf16.msk.msra.mxu0 %vm11105_vm15, %v18905_v50  ;;  %vm17846_vm13 = vmpackc.low %vm7022_vm9, %vm7021_vm8  ;;  %vm7032_vm8 = vcmp.eq.s32.totalorder %v14130_v31, %v17791_v41 }
 0x477   : > { %13088 = vmatpush3.bf16.msk.msra.mxu1 %vm11105_vm15, %v18905_v50  ;;  %13067 = vmatprep.subr.msk.bf16.mxu0 %vm11123_vm0, %v18905_v50  ;;  %vm7039_vm15 = vcmp.eq.s32.totalorder %v13980_v11, %v17791_v41 }
 0x478   : > { %13089 = vmatprep.subr.msk.bf16.mxu1 %vm11123_vm0, %v18905_v50  ;;  %vm7040_vm0 = vcmp.eq.s32.totalorder %v13983_v13, %v17791_v41 }
 0x479   : > { %vm11209_vm2 = vmpackc.low %vm7040_vm0, %vm7039_vm15  ;;  %vm7019_vm15 = vcmp.eq.s32.totalorder %v14068_v16, %v17791_v41  ;;  %vm7020_vm0 = vcmp.eq.s32.totalorder %v14071_v18, %v17791_v41 }
 0x47a   : > { %13068 = vmatpush3.bf16.msk.msra.mxu0 %vm11107_vm5, %v18905_v50  ;;  %vm11197_vm3 = vmpackc.low %vm7020_vm0, %vm7019_vm15 }
 0x47b   : > { %13090 = vmatpush3.bf16.msk.msra.mxu1 %vm11107_vm5, %v18905_v50  ;;  %13069 = vmatprep.subr.msk.bf16.mxu0 %vm11125_vm6, %v18905_v50  ;;  %vm7037_vm5 = vcmp.eq.s32.totalorder %v14012_v27, %v17791_v41 }
 0x47c   : > { %13091 = vmatprep.subr.msk.bf16.mxu1 %vm11125_vm6, %v18905_v50  ;;  %vm7038_vm6 = vcmp.eq.s32.totalorder %v14022_v1, %v17791_v41 }
 0x47d   : > { %vm17831_vm11 = vmpackc.low %vm7038_vm6, %vm7037_vm5  ;;  %vm7017_vm5 = vcmp.eq.s32.totalorder %v14117_v23, %v17791_v41  ;;  %vm7018_vm6 = vcmp.eq.s32.totalorder %v14120_v24, %v17791_v41 }
 0x47e   : > { %13070 = vmatpush3.bf16.msk.msra.mxu0 %vm11109_vm10, %v18905_v50  ;;  %vm11199_vm9 = vmpackc.low %vm7018_vm6, %vm7017_vm5 }
 0x47f   : > { %13092 = vmatpush3.bf16.msk.msra.mxu1 %vm11109_vm10, %v18905_v50  ;;  %13071 = vmatprep.subr.msk.bf16.mxu0 %vm11127_vm12, %v18905_v50  ;;  %vm7035_vm10 = vcmp.eq.s32.totalorder %v14044_v61, %v17791_v41 }
 0x480   : > { %13093 = vmatprep.subr.msk.bf16.mxu1 %vm11127_vm12, %v18905_v50  ;;  %vm7036_vm12 = vcmp.eq.s32.totalorder %v14047_v4, %v17791_v41 }
 0x481   : > { %vm17853_vm14 = vmpackc.low %vm7036_vm12, %vm7035_vm10  ;;  %vm7015_vm10 = vcmp.eq.s32.totalorder %v14165_v22, %v17791_v41  ;;  %vm7016_vm12 = vcmp.eq.s32.totalorder %v14168_v46, %v17791_v41 }
 0x482   : > { %13072 = vmatpush3.bf16.msk.msra.mxu0 %vm11111_vm1, %v18905_v50  ;;  %vm11201_vm15 = vmpackc.low %vm7016_vm12, %vm7015_vm10 }
 0x483   : > { %13094 = vmatpush3.bf16.msk.msra.mxu1 %vm11111_vm1, %v18905_v50  ;;  %13101 = vmatprep.subr.msk.bf16.mxu0 %vm11209_vm2, %v18905_v50  ;;  %vm7033_vm1 = vcmp.eq.s32.totalorder %v14080_v8, %v17791_v41 }
 0x484   : > { %13123 = vmatprep.subr.msk.bf16.mxu1 %vm11209_vm2, %v18905_v50  ;;  %vm7034_vm2 = vcmp.eq.s32.totalorder %v14083_v20, %v17791_v41 }
 0x485   : > { %v12809_v49 = vpop.f32.mrf.mxu0  ;;  %6956 = vmatmul.mubr.bf16.vlgmr.msra.gmra.mxu0 %v19154_v35  ;;  %vm11215_vm4 = vmpackc.low %vm7034_vm2, %vm7033_vm1  ;;  %vm7013_vm1 = vcmp.eq.s32.totalorder %v14220_v14, %v17791_v41  ;;  %vm7014_vm2 = vcmp.eq.s32.totalorder %v14223_v15, %v17791_v41 }
 0x486   : > { %v12831_v53 = vpop.f32.mrf.mxu1  ;;  %6997 = vmatmul.mubr.bf16.vlgmr.msra.gmra.mxu1 %v19157_v25  ;;  %13102 = vmatpush3.bf16.msk.msra.mxu0 %vm11193_vm7, %v18905_v50  ;;  %vm11203_vm5 = vmpackc.low %vm7014_vm2, %vm7013_vm1 }
 0x487   : > { %7159 = vmatprep.mubr.bf16.mxu0 %v7124_v38  ;;  %13124 = vmatpush3.bf16.msk.msra.mxu1 %vm11193_vm7, %v18905_v50  ;;  %v12810_v7 = vpop.f32.mrf.mxu0  ;;  %vm7031_vm7 = vcmp.eq.s32.totalorder %v14127_v26, %v17791_v41 }
 0x488   : > { %7206 = vmatprep.mubr.bf16.mxu1 %v7171_v48  ;;  %v12811_v39 = vadd.f32 %v12810_v7, %v12809_v49  ;;  %v12832_v17 = vpop.f32.mrf.mxu1  ;;  %13103 = vmatprep.subr.msk.bf16.mxu0 %vm17831_vm11, %v18905_v50  ;;  %v17979_v49 = vpack.c.bf16 %v15005_v33, %v14964_v34 }
 0x489   : > { %v12833_v43 = vadd.f32 %v12832_v17, %v12831_v53  ;;  %v12812_v51 = vpop.f32.mrf.mxu0  ;;  %13125 = vmatprep.subr.msk.bf16.mxu1 %vm17831_vm11, %v18905_v50  ;;  %vm11217_vm11 = vmpackc.low %vm7032_vm8, %vm7031_vm7  ;;  %vm7011_vm7 = vcmp.eq.s32.totalorder %v14261_v42, %v17791_v41  ;;  %vm7012_vm8 = vcmp.eq.s32.totalorder %v14264_v60, %v17791_v41 }
 0x48a   : > { %v5739_v44 = vadd.f32 %v12811_v39, %v17744_v54  ;;  %v12834_v62 = vpop.f32.mrf.mxu1  ;;  %13104 = vmatpush3.bf16.msk.msra.mxu0 %vm17846_vm13, %v18905_v50  ;;  %vm11205_vm10 = vmpackc.low %vm7012_vm8, %vm7011_vm7  ;;  %v7170_v54 = vrot.slane %v19157_v25, 4  ;;  %vm7231_vm8 = vcmp.eq.s32.totalorder %v14027_v52, %v19162_v19 }
 0x48b   : > { %13126 = vmatpush3.bf16.msk.msra.mxu1 %vm17846_vm13, %v18905_v50  ;;  %v12813_v36 = vpop.f32.mrf.mxu0  ;;  %13105 = vmatprep.subr.msk.bf16.mxu0 %vm17853_vm14, %v18905_v50  ;;  %vm7029_vm13 = vcmp.eq.s32.totalorder %v14181_v59, %v17791_v41 }
 0x48c   : > { %v17878_v5 = vadd.f32 %v12833_v43, %v5739_v44  ;;  %v12835_v63 = vpop.f32.mrf.mxu1  ;;  %13127 = vmatprep.subr.msk.bf16.mxu1 %vm17853_vm14, %v18905_v50  ;;  %vm7030_vm14 = vcmp.eq.s32.totalorder %v14184_v57, %v17791_v41  ;;  %v7532_v43 = vrot.slane %v17967_v29, 4  ;;  %v19172_v44 = vld [vmem:[#allocation84_spill] sm:$0xff]  ;;  %v7579_v36 = vrot.slane %v17979_v49, 4 }
 0x48d   : > { %vm11219_vm0 = vmpackc.low %vm7030_vm14, %vm7029_vm13  ;;  %vm7009_vm13 = vcmp.eq.s32.totalorder %v13805_v3, %v17791_v41  ;;  %vm7010_vm14 = vcmp.eq.s32.totalorder %v14302_v32, %v17791_v41  ;;  %v19175_v63 = vld [vmem:[#allocation85_spill] sm:$0xff]  ;;  %v7531_v28 = vrot.slane %v19172_v44, 4 }
 0x48e   : > { %13106 = vmatpush3.bf16.msk.msra.mxu0 %vm11197_vm3, %v18905_v50  ;;  %vm11207_vm1 = vmpackc.low %vm7010_vm14, %vm7009_vm13 }
 0x48f   : > { %13128 = vmatpush3.bf16.msk.msra.mxu1 %vm11197_vm3, %v18905_v50  ;;  %13107 = vmatprep.subr.msk.bf16.mxu0 %vm11215_vm4, %v18905_v50  ;;  %vm7027_vm3 = vcmp.eq.s32.totalorder %v14230_v2, %v17791_v41 }
 0x490   : > { %13129 = vmatprep.subr.msk.bf16.mxu1 %vm11215_vm4, %v18905_v50  ;;  %vm7028_vm4 = vcmp.eq.s32.totalorder %v14233_v21, %v17791_v41 }
 0x491   : > { %vm11221_vm6 = vmpackc.low %vm7028_vm4, %vm7027_vm3  ;;  %vm7233_vm3 = vcmp.eq.s32.totalorder %v14006_v12, %v19162_v19  ;;  %vm7234_vm4 = vcmp.eq.s32.totalorder %v14009_v10, %v19162_v19 }
 0x492   : > { %13108 = vmatpush3.bf16.msk.msra.mxu0 %vm11199_vm9, %v18905_v50  ;;  %vm17955_vm7 = vmpackc.low %vm7234_vm4, %vm7233_vm3 }
 0x493   : > { %13130 = vmatpush3.bf16.msk.msra.mxu1 %vm11199_vm9, %v18905_v50  ;;  %13109 = vmatprep.subr.msk.bf16.mxu0 %vm11217_vm11, %v18905_v50  ;;  %vm7025_vm9 = vcmp.eq.s32.totalorder %v14273_v58, %v17791_v41 }
 0x494   : > { %13131 = vmatprep.subr.msk.bf16.mxu1 %vm11217_vm11, %v18905_v50  ;;  %vm7026_vm11 = vcmp.eq.s32.totalorder %v14276_v6, %v17791_v41 }
 0x495   : > { %vm11223_vm12 = vmpackc.low %vm7026_vm11, %vm7025_vm9  ;;  %vm7232_vm9 = vcmp.eq.s32.totalorder %v14030_v56, %v19162_v19 }
 0x496   : > { %13110 = vmatpush3.bf16.msk.msra.mxu0 %vm11201_vm15, %v18905_v50  ;;  %vm17991_vm13 = vmpackc.low %vm7232_vm9, %vm7231_vm8  ;;  %vm7242_vm8 = vcmp.eq.s32.totalorder %v14130_v31, %v19162_v19 }
 0x497   : > { %13132 = vmatpush3.bf16.msk.msra.mxu1 %vm11201_vm15, %v18905_v50  ;;  %13111 = vmatprep.subr.msk.bf16.mxu0 %vm11219_vm0, %v18905_v50  ;;  %vm7249_vm15 = vcmp.eq.s32.totalorder %v13980_v11, %v19162_v19 }
 0x498   : > { %13133 = vmatprep.subr.msk.bf16.mxu1 %vm11219_vm0, %v18905_v50  ;;  %vm7250_vm0 = vcmp.eq.s32.totalorder %v13983_v13, %v19162_v19 }
 0x499   : > { %vm11305_vm2 = vmpackc.low %vm7250_vm0, %vm7249_vm15  ;;  %vm7229_vm15 = vcmp.eq.s32.totalorder %v14068_v16, %v19162_v19  ;;  %vm7230_vm0 = vcmp.eq.s32.totalorder %v14071_v18, %v19162_v19 }
 0x49a   : > { %13112 = vmatpush3.bf16.msk.msra.mxu0 %vm11203_vm5, %v18905_v50  ;;  %vm11293_vm3 = vmpackc.low %vm7230_vm0, %vm7229_vm15 }
 0x49b   : > { %13134 = vmatpush3.bf16.msk.msra.mxu1 %vm11203_vm5, %v18905_v50  ;;  %13113 = vmatprep.subr.msk.bf16.mxu0 %vm11221_vm6, %v18905_v50  ;;  %vm7247_vm5 = vcmp.eq.s32.totalorder %v14012_v27, %v19162_v19 }
 0x49c   : > { %13135 = vmatprep.subr.msk.bf16.mxu1 %vm11221_vm6, %v18905_v50  ;;  %vm7248_vm6 = vcmp.eq.s32.totalorder %v14022_v1, %v19162_v19 }
 0x49d   : > { %vm17969_vm11 = vmpackc.low %vm7248_vm6, %vm7247_vm5  ;;  %vm7227_vm5 = vcmp.eq.s32.totalorder %v14117_v23, %v19162_v19  ;;  %vm7228_vm6 = vcmp.eq.s32.totalorder %v14120_v24, %v19162_v19 }
 0x49e   : > { %13114 = vmatpush3.bf16.msk.msra.mxu0 %vm11205_vm10, %v18905_v50  ;;  %vm11295_vm9 = vmpackc.low %vm7228_vm6, %vm7227_vm5 }
 0x49f   : > { %13136 = vmatpush3.bf16.msk.msra.mxu1 %vm11205_vm10, %v18905_v50  ;;  %13115 = vmatprep.subr.msk.bf16.mxu0 %vm11223_vm12, %v18905_v50  ;;  %vm7245_vm10 = vcmp.eq.s32.totalorder %v14044_v61, %v19162_v19 }
 0x4a0   : > { %13137 = vmatprep.subr.msk.bf16.mxu1 %vm11223_vm12, %v18905_v50  ;;  %vm7246_vm12 = vcmp.eq.s32.totalorder %v14047_v4, %v19162_v19 }
 0x4a1   : > { %vm17999_vm14 = vmpackc.low %vm7246_vm12, %vm7245_vm10  ;;  %vm7225_vm10 = vcmp.eq.s32.totalorder %v14165_v22, %v19162_v19  ;;  %vm7226_vm12 = vcmp.eq.s32.totalorder %v14168_v46, %v19162_v19 }
 0x4a2   : > { %13116 = vmatpush3.bf16.msk.msra.mxu0 %vm11207_vm1, %v18905_v50  ;;  %vm11297_vm15 = vmpackc.low %vm7226_vm12, %vm7225_vm10 }
 0x4a3   : > { %13138 = vmatpush3.bf16.msk.msra.mxu1 %vm11207_vm1, %v18905_v50  ;;  %13145 = vmatprep.subr.msk.bf16.mxu0 %vm11305_vm2, %v18905_v50  ;;  %vm7243_vm1 = vcmp.eq.s32.totalorder %v14080_v8, %v19162_v19 }
 0x4a4   : > { %13167 = vmatprep.subr.msk.bf16.mxu1 %vm11305_vm2, %v18905_v50  ;;  %vm7244_vm2 = vcmp.eq.s32.totalorder %v14083_v20, %v19162_v19 }
 0x4a5   : > { %v12853_v41 = vpop.f32.mrf.mxu0  ;;  %7160 = vmatmul.mubr.bf16.vlgmr.msra.gmra.mxu0 %v7123_v47  ;;  %vm11311_vm4 = vmpackc.low %vm7244_vm2, %vm7243_vm1  ;;  %vm7223_vm1 = vcmp.eq.s32.totalorder %v14220_v14, %v19162_v19  ;;  %vm7224_vm2 = vcmp.eq.s32.totalorder %v14223_v15, %v19162_v19 }
 0x4a6   : > { %v12875_v35 = vpop.f32.mrf.mxu1  ;;  %7207 = vmatmul.mubr.bf16.vlgmr.msra.gmra.mxu1 %v7170_v54  ;;  %13146 = vmatpush3.bf16.msk.msra.mxu0 %vm17955_vm7, %v18905_v50  ;;  %vm11299_vm5 = vmpackc.low %vm7224_vm2, %vm7223_vm1 }
 0x4a7   : > { %7363 = vmatprep.mubr.bf16.mxu0 %v17967_v29  ;;  %13168 = vmatpush3.bf16.msk.msra.mxu1 %vm17955_vm7, %v18905_v50  ;;  %v12854_v9 = vpop.f32.mrf.mxu0  ;;  %vm7241_vm7 = vcmp.eq.s32.totalorder %v14127_v26, %v19162_v19  ;;  %v19191_v29 = vld [vmem:[#allocation23_spill] sm:$0xff] }
 0x4a8   : > { %7404 = vmatprep.mubr.bf16.mxu1 %v17979_v49  ;;  %v12855_v34 = vadd.f32 %v12854_v9, %v12853_v41  ;;  %v12876_v33 = vpop.f32.mrf.mxu1  ;;  %13147 = vmatprep.subr.msk.bf16.mxu0 %vm17969_vm11, %v18905_v50 }
 0x4a9   : > { %v12877_v48 = vadd.f32 %v12876_v33, %v12875_v35  ;;  %v12856_v53 = vpop.f32.mrf.mxu0  ;;  %13169 = vmatprep.subr.msk.bf16.mxu1 %vm17969_vm11, %v18905_v50  ;;  %vm11313_vm11 = vmpackc.low %vm7242_vm8, %vm7241_vm7  ;;  %vm7221_vm7 = vcmp.eq.s32.totalorder %v14261_v42, %v19162_v19  ;;  %vm7222_vm8 = vcmp.eq.s32.totalorder %v14264_v60, %v19162_v19  ;;  %v19180_v33 = vld [vmem:[#allocation26_spill] sm:$0xff] }
 0x4aa   : > { %v5943_v25 = vadd.f32 %v12855_v34, %v17878_v5  ;;  %v12878_v7 = vpop.f32.mrf.mxu1  ;;  %13148 = vmatpush3.bf16.msk.msra.mxu0 %vm17991_vm13, %v18905_v50  ;;  %vm11301_vm10 = vmpackc.low %vm7222_vm8, %vm7221_vm7  ;;  %vm7429_vm8 = vcmp.eq.s32.totalorder %v14027_v52, %v19171_v40  ;;  %v7578_v53 = vrot.slane %v19175_v63, 4 }
 0x4ab   : > { %13170 = vmatpush3.bf16.msk.msra.mxu1 %vm17991_vm13, %v18905_v50  ;;  %v12857_v55 = vpop.f32.mrf.mxu0  ;;  %13149 = vmatprep.subr.msk.bf16.mxu0 %vm17999_vm14, %v18905_v50  ;;  %vm7239_vm13 = vcmp.eq.s32.totalorder %v14181_v59, %v19162_v19 }
 0x4ac   : > { %v18024_v39 = vadd.f32 %v12877_v48, %v5943_v25  ;;  %v12879_v17 = vpop.f32.mrf.mxu1  ;;  %13171 = vmatprep.subr.msk.bf16.mxu1 %vm17999_vm14, %v18905_v50  ;;  %vm7240_vm14 = vcmp.eq.s32.totalorder %v14184_v57, %v19162_v19  ;;  %v19183_v25 = vld [vmem:[#allocation86_spill] sm:$0xff] }
 0x4ad   : > { %vm11315_vm0 = vmpackc.low %vm7240_vm14, %vm7239_vm13  ;;  %vm7219_vm13 = vcmp.eq.s32.totalorder %v13805_v3, %v19162_v19  ;;  %vm7220_vm14 = vcmp.eq.s32.totalorder %v14302_v32, %v19162_v19  ;;  %v18243_v7 = vpack.c.bf16 %v15046_v37, %v19183_v25  ;;  %v19186_v17 = vld [vmem:[#allocation87_spill] sm:$0xff] }
 0x4ae   : > { %13150 = vmatpush3.bf16.msk.msra.mxu0 %vm11293_vm3, %v18905_v50  ;;  %vm11303_vm1 = vmpackc.low %vm7220_vm14, %vm7219_vm13 }
 0x4af   : > { %13172 = vmatpush3.bf16.msk.msra.mxu1 %vm11293_vm3, %v18905_v50  ;;  %13151 = vmatprep.subr.msk.bf16.mxu0 %vm11311_vm4, %v18905_v50  ;;  %vm7237_vm3 = vcmp.eq.s32.totalorder %v14230_v2, %v19162_v19 }
 0x4b0   : > { %13173 = vmatprep.subr.msk.bf16.mxu1 %vm11311_vm4, %v18905_v50  ;;  %vm7238_vm4 = vcmp.eq.s32.totalorder %v14233_v21, %v19162_v19 }
 0x4b1   : > { %vm11317_vm6 = vmpackc.low %vm7238_vm4, %vm7237_vm3  ;;  %vm7431_vm3 = vcmp.eq.s32.totalorder %v14006_v12, %v19171_v40  ;;  %vm7432_vm4 = vcmp.eq.s32.totalorder %v14009_v10, %v19171_v40 }
 0x4b2   : > { %13152 = vmatpush3.bf16.msk.msra.mxu0 %vm11295_vm9, %v18905_v50  ;;  %vm11385_vm7 = vmpackc.low %vm7432_vm4, %vm7431_vm3 }
 0x4b3   : > { %13174 = vmatpush3.bf16.msk.msra.mxu1 %vm11295_vm9, %v18905_v50  ;;  %13153 = vmatprep.subr.msk.bf16.mxu0 %vm11313_vm11, %v18905_v50  ;;  %vm7235_vm9 = vcmp.eq.s32.totalorder %v14273_v58, %v19162_v19 }
 0x4b4   : > { %13175 = vmatprep.subr.msk.bf16.mxu1 %vm11313_vm11, %v18905_v50  ;;  %vm7236_vm11 = vcmp.eq.s32.totalorder %v14276_v6, %v19162_v19 }
 0x4b5   : > { %vm11319_vm12 = vmpackc.low %vm7236_vm11, %vm7235_vm9  ;;  %vm7430_vm9 = vcmp.eq.s32.totalorder %v14030_v56, %v19171_v40 }
 0x4b6   : > { %13154 = vmatpush3.bf16.msk.msra.mxu0 %vm11297_vm15, %v18905_v50  ;;  %vm18122_vm13 = vmpackc.low %vm7430_vm9, %vm7429_vm8  ;;  %vm7440_vm8 = vcmp.eq.s32.totalorder %v14130_v31, %v19171_v40 }
 0x4b7   : > { %13176 = vmatpush3.bf16.msk.msra.mxu1 %vm11297_vm15, %v18905_v50  ;;  %13155 = vmatprep.subr.msk.bf16.mxu0 %vm11315_vm0, %v18905_v50  ;;  %vm7447_vm15 = vcmp.eq.s32.totalorder %v13980_v11, %v19171_v40 }
 0x4b8   : > { %13177 = vmatprep.subr.msk.bf16.mxu1 %vm11315_vm0, %v18905_v50  ;;  %vm7448_vm0 = vcmp.eq.s32.totalorder %v13983_v13, %v19171_v40 }
 0x4b9   : > { %vm11401_vm2 = vmpackc.low %vm7448_vm0, %vm7447_vm15  ;;  %vm7427_vm15 = vcmp.eq.s32.totalorder %v14068_v16, %v19171_v40  ;;  %vm7428_vm0 = vcmp.eq.s32.totalorder %v14071_v18, %v19171_v40 }
 0x4ba   : > { %13156 = vmatpush3.bf16.msk.msra.mxu0 %vm11299_vm5, %v18905_v50  ;;  %vm11389_vm3 = vmpackc.low %vm7428_vm0, %vm7427_vm15 }
 0x4bb   : > { %13178 = vmatpush3.bf16.msk.msra.mxu1 %vm11299_vm5, %v18905_v50  ;;  %13157 = vmatprep.subr.msk.bf16.mxu0 %vm11317_vm6, %v18905_v50  ;;  %vm7445_vm5 = vcmp.eq.s32.totalorder %v14012_v27, %v19171_v40 }
 0x4bc   : > { %13179 = vmatprep.subr.msk.bf16.mxu1 %vm11317_vm6, %v18905_v50  ;;  %vm7446_vm6 = vcmp.eq.s32.totalorder %v14022_v1, %v19171_v40 }
 0x4bd   : > { %vm18107_vm11 = vmpackc.low %vm7446_vm6, %vm7445_vm5  ;;  %vm7425_vm5 = vcmp.eq.s32.totalorder %v14117_v23, %v19171_v40  ;;  %vm7426_vm6 = vcmp.eq.s32.totalorder %v14120_v24, %v19171_v40 }
 0x4be   : > { %13158 = vmatpush3.bf16.msk.msra.mxu0 %vm11301_vm10, %v18905_v50  ;;  %vm11391_vm9 = vmpackc.low %vm7426_vm6, %vm7425_vm5 }
 0x4bf   : > { %13180 = vmatpush3.bf16.msk.msra.mxu1 %vm11301_vm10, %v18905_v50  ;;  %13159 = vmatprep.subr.msk.bf16.mxu0 %vm11319_vm12, %v18905_v50  ;;  %vm7443_vm10 = vcmp.eq.s32.totalorder %v14044_v61, %v19171_v40 }
 0x4c0   : > { %13181 = vmatprep.subr.msk.bf16.mxu1 %vm11319_vm12, %v18905_v50  ;;  %vm7444_vm12 = vcmp.eq.s32.totalorder %v14047_v4, %v19171_v40 }
 0x4c1   : > { %vm18129_vm14 = vmpackc.low %vm7444_vm12, %vm7443_vm10  ;;  %vm7423_vm10 = vcmp.eq.s32.totalorder %v14165_v22, %v19171_v40  ;;  %vm7424_vm12 = vcmp.eq.s32.totalorder %v14168_v46, %v19171_v40 }
 0x4c2   : > { %13160 = vmatpush3.bf16.msk.msra.mxu0 %vm11303_vm1, %v18905_v50  ;;  %vm11393_vm15 = vmpackc.low %vm7424_vm12, %vm7423_vm10 }
 0x4c3   : > { %13182 = vmatpush3.bf16.msk.msra.mxu1 %vm11303_vm1, %v18905_v50  ;;  %13189 = vmatprep.subr.msk.bf16.mxu0 %vm11401_vm2, %v18905_v50  ;;  %vm7441_vm1 = vcmp.eq.s32.totalorder %v14080_v8, %v19171_v40 }
 0x4c4   : > { %13211 = vmatprep.subr.msk.bf16.mxu1 %vm11401_vm2, %v18905_v50  ;;  %vm7442_vm2 = vcmp.eq.s32.totalorder %v14083_v20, %v19171_v40 }
 0x4c5   : > { %v12897_v51 = vpop.f32.mrf.mxu0  ;;  %7364 = vmatmul.mubr.bf16.vlgmr.msra.gmra.mxu0 %v19172_v44  ;;  %vm11407_vm4 = vmpackc.low %vm7442_vm2, %vm7441_vm1  ;;  %vm7421_vm1 = vcmp.eq.s32.totalorder %v14220_v14, %v19171_v40  ;;  %vm7422_vm2 = vcmp.eq.s32.totalorder %v14223_v15, %v19171_v40 }
 0x4c6   : > { %v12919_v5 = vpop.f32.mrf.mxu1  ;;  %7405 = vmatmul.mubr.bf16.vlgmr.msra.gmra.mxu1 %v19175_v63  ;;  %13190 = vmatpush3.bf16.msk.msra.mxu0 %vm11385_vm7, %v18905_v50  ;;  %vm11395_vm5 = vmpackc.low %vm7422_vm2, %vm7421_vm1 }
 0x4c7   : > { %7567 = vmatprep.mubr.bf16.mxu0 %v7532_v43  ;;  %13212 = vmatpush3.bf16.msk.msra.mxu1 %vm11385_vm7, %v18905_v50  ;;  %v12898_v19 = vpop.f32.mrf.mxu0  ;;  %vm7439_vm7 = vcmp.eq.s32.totalorder %v14127_v26, %v19171_v40 }
 0x4c8   : > { %7614 = vmatprep.mubr.bf16.mxu1 %v7579_v36  ;;  %v12899_v45 = vadd.f32 %v12898_v19, %v12897_v51  ;;  %v12920_v54 = vpop.f32.mrf.mxu1  ;;  %13191 = vmatprep.subr.msk.bf16.mxu0 %vm18107_vm11, %v18905_v50  ;;  %v19200_v51 = vld [vmem:[#allocation34_spill] sm:$0xff] }
 0x4c9   : > { %v12921_v41 = vadd.f32 %v12920_v54, %v12919_v5  ;;  %v12900_v38 = vpop.f32.mrf.mxu0  ;;  %13213 = vmatprep.subr.msk.bf16.mxu1 %vm18107_vm11, %v18905_v50  ;;  %vm11409_vm11 = vmpackc.low %vm7440_vm8, %vm7439_vm7  ;;  %vm7419_vm7 = vcmp.eq.s32.totalorder %v14261_v42, %v19171_v40  ;;  %vm7420_vm8 = vcmp.eq.s32.totalorder %v14264_v60, %v19171_v40 }
 0x4ca   : > { %v6147_v49 = vadd.f32 %v12899_v45, %v18024_v39  ;;  %v12922_v35 = vpop.f32.mrf.mxu1  ;;  %13192 = vmatpush3.bf16.msk.msra.mxu0 %vm18122_vm13, %v18905_v50  ;;  %vm11397_vm10 = vmpackc.low %vm7420_vm8, %vm7419_vm7  ;;  %vm7639_vm8 = vcmp.eq.s32.totalorder %v14027_v52, %v19180_v33 }
 0x4cb   : > { %13214 = vmatpush3.bf16.msk.msra.mxu1 %vm18122_vm13, %v18905_v50  ;;  %v12901_v9 = vpop.f32.mrf.mxu0  ;;  %13193 = vmatprep.subr.msk.bf16.mxu0 %vm18129_vm14, %v18905_v50  ;;  %vm7437_vm13 = vcmp.eq.s32.totalorder %v14181_v59, %v19171_v40 }
 0x4cc   : > { %v18154_v0 = vadd.f32 %v12921_v41, %v6147_v49  ;;  %v12923_v34 = vpop.f32.mrf.mxu1  ;;  %13215 = vmatprep.subr.msk.bf16.mxu1 %vm18129_vm14, %v18905_v50  ;;  %vm7438_vm14 = vcmp.eq.s32.totalorder %v14184_v57, %v19171_v40  ;;  %v7940_v41 = vrot.slane %v18243_v7, 4  ;;  %v19192_v49 = vld [vmem:[#allocation88_spill] sm:$0xff] }
 0x4cd   : > { %vm11411_vm0 = vmpackc.low %vm7438_vm14, %vm7437_vm13  ;;  %vm7417_vm13 = vcmp.eq.s32.totalorder %v13805_v3, %v19171_v40  ;;  %vm7418_vm14 = vcmp.eq.s32.totalorder %v14302_v32, %v19171_v40  ;;  %v19195_v34 = vld [vmem:[#allocation89_spill] sm:$0xff] }
 0x4ce   : > { %13194 = vmatpush3.bf16.msk.msra.mxu0 %vm11389_vm3, %v18905_v50  ;;  %vm11399_vm1 = vmpackc.low %vm7418_vm14, %vm7417_vm13  ;;  %v7986_v62 = vrot.slane %v19195_v34, 4 }
 0x4cf   : > { %13216 = vmatpush3.bf16.msk.msra.mxu1 %vm11389_vm3, %v18905_v50  ;;  %13195 = vmatprep.subr.msk.bf16.mxu0 %vm11407_vm4, %v18905_v50  ;;  %vm7435_vm3 = vcmp.eq.s32.totalorder %v14230_v2, %v19171_v40 }
 0x4d0   : > { %13217 = vmatprep.subr.msk.bf16.mxu1 %vm11407_vm4, %v18905_v50  ;;  %vm7436_vm4 = vcmp.eq.s32.totalorder %v14233_v21, %v19171_v40 }
 0x4d1   : > { %vm11413_vm6 = vmpackc.low %vm7436_vm4, %vm7435_vm3  ;;  %vm7641_vm3 = vcmp.eq.s32.totalorder %v14006_v12, %v19180_v33  ;;  %vm7642_vm4 = vcmp.eq.s32.totalorder %v14009_v10, %v19180_v33 }
 0x4d2   : > { %13196 = vmatpush3.bf16.msk.msra.mxu0 %vm11391_vm9, %v18905_v50  ;;  %vm18231_vm7 = vmpackc.low %vm7642_vm4, %vm7641_vm3 }
 0x4d3   : > { %13218 = vmatpush3.bf16.msk.msra.mxu1 %vm11391_vm9, %v18905_v50  ;;  %13197 = vmatprep.subr.msk.bf16.mxu0 %vm11409_vm11, %v18905_v50  ;;  %vm7433_vm9 = vcmp.eq.s32.totalorder %v14273_v58, %v19171_v40 }
 0x4d4   : > { %13219 = vmatprep.subr.msk.bf16.mxu1 %vm11409_vm11, %v18905_v50  ;;  %vm7434_vm11 = vcmp.eq.s32.totalorder %v14276_v6, %v19171_v40  ;;  %v18255_v40 = vpack.c.bf16 %v15048_v30, %v19186_v17 }
 0x4d5   : > { %vm11415_vm12 = vmpackc.low %vm7434_vm11, %vm7433_vm9  ;;  %vm7640_vm9 = vcmp.eq.s32.totalorder %v14030_v56, %v19180_v33 }
 0x4d6   : > { %13198 = vmatpush3.bf16.msk.msra.mxu0 %vm11393_vm15, %v18905_v50  ;;  %vm18267_vm13 = vmpackc.low %vm7640_vm9, %vm7639_vm8  ;;  %vm7650_vm8 = vcmp.eq.s32.totalorder %v14130_v31, %v19180_v33  ;;  %v7987_v9 = vrot.slane %v18255_v40, 4 }
 0x4d7   : > { %13220 = vmatpush3.bf16.msk.msra.mxu1 %vm11393_vm15, %v18905_v50  ;;  %13199 = vmatprep.subr.msk.bf16.mxu0 %vm11411_vm0, %v18905_v50  ;;  %vm7657_vm15 = vcmp.eq.s32.totalorder %v13980_v11, %v19180_v33 }
 0x4d8   : > { %13221 = vmatprep.subr.msk.bf16.mxu1 %vm11411_vm0, %v18905_v50  ;;  %vm7658_vm0 = vcmp.eq.s32.totalorder %v13983_v13, %v19180_v33 }
 0x4d9   : > { %vm11497_vm2 = vmpackc.low %vm7658_vm0, %vm7657_vm15  ;;  %vm7637_vm15 = vcmp.eq.s32.totalorder %v14068_v16, %v19180_v33  ;;  %vm7638_vm0 = vcmp.eq.s32.totalorder %v14071_v18, %v19180_v33 }
 0x4da   : > { %13200 = vmatpush3.bf16.msk.msra.mxu0 %vm11395_vm5, %v18905_v50  ;;  %vm11485_vm3 = vmpackc.low %vm7638_vm0, %vm7637_vm15 }
 0x4db   : > { %13222 = vmatpush3.bf16.msk.msra.mxu1 %vm11395_vm5, %v18905_v50  ;;  %13201 = vmatprep.subr.msk.bf16.mxu0 %vm11413_vm6, %v18905_v50  ;;  %vm7655_vm5 = vcmp.eq.s32.totalorder %v14012_v27, %v19180_v33 }
 0x4dc   : > { %13223 = vmatprep.subr.msk.bf16.mxu1 %vm11413_vm6, %v18905_v50  ;;  %vm7656_vm6 = vcmp.eq.s32.totalorder %v14022_v1, %v19180_v33 }
 0x4dd   : > { %vm18245_vm11 = vmpackc.low %vm7656_vm6, %vm7655_vm5  ;;  %vm7635_vm5 = vcmp.eq.s32.totalorder %v14117_v23, %v19180_v33  ;;  %vm7636_vm6 = vcmp.eq.s32.totalorder %v14120_v24, %v19180_v33 }
 0x4de   : > { %13202 = vmatpush3.bf16.msk.msra.mxu0 %vm11397_vm10, %v18905_v50  ;;  %vm11487_vm9 = vmpackc.low %vm7636_vm6, %vm7635_vm5 }
 0x4df   : > { %13224 = vmatpush3.bf16.msk.msra.mxu1 %vm11397_vm10, %v18905_v50  ;;  %13203 = vmatprep.subr.msk.bf16.mxu0 %vm11415_vm12, %v18905_v50  ;;  %vm7653_vm10 = vcmp.eq.s32.totalorder %v14044_v61, %v19180_v33 }
 0x4e0   : > { %13225 = vmatprep.subr.msk.bf16.mxu1 %vm11415_vm12, %v18905_v50  ;;  %vm7654_vm12 = vcmp.eq.s32.totalorder %v14047_v4, %v19180_v33 }
 0x4e1   : > { %vm18275_vm14 = vmpackc.low %vm7654_vm12, %vm7653_vm10  ;;  %vm7633_vm10 = vcmp.eq.s32.totalorder %v14165_v22, %v19180_v33  ;;  %vm7634_vm12 = vcmp.eq.s32.totalorder %v14168_v46, %v19180_v33 }
 0x4e2   : > { %13204 = vmatpush3.bf16.msk.msra.mxu0 %vm11399_vm1, %v18905_v50  ;;  %vm11489_vm15 = vmpackc.low %vm7634_vm12, %vm7633_vm10 }
 0x4e3   : > { %13226 = vmatpush3.bf16.msk.msra.mxu1 %vm11399_vm1, %v18905_v50  ;;  %13233 = vmatprep.subr.msk.bf16.mxu0 %vm11497_vm2, %v18905_v50  ;;  %vm7651_vm1 = vcmp.eq.s32.totalorder %v14080_v8, %v19180_v33 }
 0x4e4   : > { %13255 = vmatprep.subr.msk.bf16.mxu1 %vm11497_vm2, %v18905_v50  ;;  %vm7652_vm2 = vcmp.eq.s32.totalorder %v14083_v20, %v19180_v33 }
 0x4e5   : > { %v12941_v55 = vpop.f32.mrf.mxu0  ;;  %7568 = vmatmul.mubr.bf16.vlgmr.msra.gmra.mxu0 %v7531_v28  ;;  %vm11503_vm4 = vmpackc.low %vm7652_vm2, %vm7651_vm1  ;;  %vm7631_vm1 = vcmp.eq.s32.totalorder %v14220_v14, %v19180_v33  ;;  %vm7632_vm2 = vcmp.eq.s32.totalorder %v14223_v15, %v19180_v33 }
 0x4e6   : > { %v12963_v43 = vpop.f32.mrf.mxu1  ;;  %7615 = vmatmul.mubr.bf16.vlgmr.msra.gmra.mxu1 %v7578_v53  ;;  %13234 = vmatpush3.bf16.msk.msra.mxu0 %vm18231_vm7, %v18905_v50  ;;  %vm11491_vm5 = vmpackc.low %vm7632_vm2, %vm7631_vm1 }
 0x4e7   : > { %7771 = vmatprep.mubr.bf16.mxu0 %v18243_v7  ;;  %13256 = vmatpush3.bf16.msk.msra.mxu1 %vm18231_vm7, %v18905_v50  ;;  %v12942_v37 = vpop.f32.mrf.mxu0  ;;  %vm7649_vm7 = vcmp.eq.s32.totalorder %v14127_v26, %v19180_v33 }
 0x4e8   : > { %7812 = vmatprep.mubr.bf16.mxu1 %v18255_v40  ;;  %v12943_v30 = vadd.f32 %v12942_v37, %v12941_v55  ;;  %v12964_v44 = vpop.f32.mrf.mxu1  ;;  %13235 = vmatprep.subr.msk.bf16.mxu0 %vm18245_vm11, %v18905_v50 }
 0x4e9   : > { %v12965_v36 = vadd.f32 %v12964_v44, %v12963_v43  ;;  %v12944_v5 = vpop.f32.mrf.mxu0  ;;  %13257 = vmatprep.subr.msk.bf16.mxu1 %vm18245_vm11, %v18905_v50  ;;  %vm11505_vm11 = vmpackc.low %vm7650_vm8, %vm7649_vm7  ;;  %vm7629_vm7 = vcmp.eq.s32.totalorder %v14261_v42, %v19180_v33  ;;  %vm7630_vm8 = vcmp.eq.s32.totalorder %v14264_v60, %v19180_v33 }
 0x4ea   : > { %v6351_v63 = vadd.f32 %v12943_v30, %v18154_v0  ;;  %v12966_v19 = vpop.f32.mrf.mxu1  ;;  %13236 = vmatpush3.bf16.msk.msra.mxu0 %vm18267_vm13, %v18905_v50  ;;  %vm11493_vm10 = vmpackc.low %vm7630_vm8, %vm7629_vm7  ;;  %vm7837_vm8 = vcmp.eq.s32.totalorder %v14027_v52, %v19191_v29  ;;  %v7939_v30 = vrot.slane %v19192_v49, 4  ;;  %v19204_v5 = vld [vmem:[#allocation31_spill] sm:$0xff] }
 0x4eb   : > { %13258 = vmatpush3.bf16.msk.msra.mxu1 %vm18267_vm13, %v18905_v50  ;;  %v12945_v47 = vpop.f32.mrf.mxu0  ;;  %13237 = vmatprep.subr.msk.bf16.mxu0 %vm18275_vm14, %v18905_v50  ;;  %vm7647_vm13 = vcmp.eq.s32.totalorder %v14181_v59, %v19180_v33 }
 0x4ec   : > { %v18300_v45 = vadd.f32 %v12965_v36, %v6351_v63  ;;  %v12967_v54 = vpop.f32.mrf.mxu1  ;;  %13259 = vmatprep.subr.msk.bf16.mxu1 %vm18275_vm14, %v18905_v50  ;;  %vm7648_vm14 = vcmp.eq.s32.totalorder %v14184_v57, %v19180_v33  ;;  %v19203_v36 = vld [vmem:[#allocation90_spill] sm:$0xff] }
 0x4ed   : > { %vm11507_vm0 = vmpackc.low %vm7648_vm14, %vm7647_vm13  ;;  %vm7627_vm13 = vcmp.eq.s32.totalorder %v13805_v3, %v19180_v33  ;;  %vm7628_vm14 = vcmp.eq.s32.totalorder %v14302_v32, %v19180_v33  ;;  %v18519_v63 = vpack.c.bf16 %v19204_v5, %v19203_v36  ;;  %v19208_v54 = vld [vmem:[#allocation35_spill] sm:$0xff] }
 0x4ee   : > { %13238 = vmatpush3.bf16.msk.msra.mxu0 %vm11485_vm3, %v18905_v50  ;;  %vm11495_vm1 = vmpackc.low %vm7628_vm14, %vm7627_vm13 }
 0x4ef   : > { %13260 = vmatpush3.bf16.msk.msra.mxu1 %vm11485_vm3, %v18905_v50  ;;  %13239 = vmatprep.subr.msk.bf16.mxu0 %vm11503_vm4, %v18905_v50  ;;  %vm7645_vm3 = vcmp.eq.s32.totalorder %v14230_v2, %v19180_v33 }
 0x4f0   : > { %13261 = vmatprep.subr.msk.bf16.mxu1 %vm11503_vm4, %v18905_v50  ;;  %vm7646_vm4 = vcmp.eq.s32.totalorder %v14233_v21, %v19180_v33 }
 0x4f1   : > { %vm11509_vm6 = vmpackc.low %vm7646_vm4, %vm7645_vm3  ;;  %vm7839_vm3 = vcmp.eq.s32.totalorder %v14006_v12, %v19191_v29  ;;  %vm7840_vm4 = vcmp.eq.s32.totalorder %v14009_v10, %v19191_v29 }
 0x4f2   : > { %13240 = vmatpush3.bf16.msk.msra.mxu0 %vm11487_vm9, %v18905_v50  ;;  %vm11577_vm7 = vmpackc.low %vm7840_vm4, %vm7839_vm3 }
 0x4f3   : > { %13262 = vmatpush3.bf16.msk.msra.mxu1 %vm11487_vm9, %v18905_v50  ;;  %13241 = vmatprep.subr.msk.bf16.mxu0 %vm11505_vm11, %v18905_v50  ;;  %vm7643_vm9 = vcmp.eq.s32.totalorder %v14273_v58, %v19180_v33 }
 0x4f4   : > { %13263 = vmatprep.subr.msk.bf16.mxu1 %vm11505_vm11, %v18905_v50  ;;  %vm7644_vm11 = vcmp.eq.s32.totalorder %v14276_v6, %v19180_v33 }
 0x4f5   : > { %vm11511_vm12 = vmpackc.low %vm7644_vm11, %vm7643_vm9  ;;  %vm7838_vm9 = vcmp.eq.s32.totalorder %v14030_v56, %v19191_v29 }
 0x4f6   : > { %13242 = vmatpush3.bf16.msk.msra.mxu0 %vm11489_vm15, %v18905_v50  ;;  %vm18398_vm13 = vmpackc.low %vm7838_vm9, %vm7837_vm8  ;;  %vm7848_vm8 = vcmp.eq.s32.totalorder %v14130_v31, %v19191_v29 }
 0x4f7   : > { %13264 = vmatpush3.bf16.msk.msra.mxu1 %vm11489_vm15, %v18905_v50  ;;  %13243 = vmatprep.subr.msk.bf16.mxu0 %vm11507_vm0, %v18905_v50  ;;  %vm7855_vm15 = vcmp.eq.s32.totalorder %v13980_v11, %v19191_v29 }
 0x4f8   : > { %13265 = vmatprep.subr.msk.bf16.mxu1 %vm11507_vm0, %v18905_v50  ;;  %vm7856_vm0 = vcmp.eq.s32.totalorder %v13983_v13, %v19191_v29 }
 0x4f9   : > { %vm11593_vm2 = vmpackc.low %vm7856_vm0, %vm7855_vm15  ;;  %vm7835_vm15 = vcmp.eq.s32.totalorder %v14068_v16, %v19191_v29  ;;  %vm7836_vm0 = vcmp.eq.s32.totalorder %v14071_v18, %v19191_v29 }
 0x4fa   : > { %13244 = vmatpush3.bf16.msk.msra.mxu0 %vm11491_vm5, %v18905_v50  ;;  %vm11581_vm3 = vmpackc.low %vm7836_vm0, %vm7835_vm15 }
 0x4fb   : > { %13266 = vmatpush3.bf16.msk.msra.mxu1 %vm11491_vm5, %v18905_v50  ;;  %13245 = vmatprep.subr.msk.bf16.mxu0 %vm11509_vm6, %v18905_v50  ;;  %vm7853_vm5 = vcmp.eq.s32.totalorder %v14012_v27, %v19191_v29 }
 0x4fc   : > { %13267 = vmatprep.subr.msk.bf16.mxu1 %vm11509_vm6, %v18905_v50  ;;  %vm7854_vm6 = vcmp.eq.s32.totalorder %v14022_v1, %v19191_v29 }
 0x4fd   : > { %vm18383_vm11 = vmpackc.low %vm7854_vm6, %vm7853_vm5  ;;  %vm7833_vm5 = vcmp.eq.s32.totalorder %v14117_v23, %v19191_v29  ;;  %vm7834_vm6 = vcmp.eq.s32.totalorder %v14120_v24, %v19191_v29 }
 0x4fe   : > { %13246 = vmatpush3.bf16.msk.msra.mxu0 %vm11493_vm10, %v18905_v50  ;;  %vm11583_vm9 = vmpackc.low %vm7834_vm6, %vm7833_vm5 }
 0x4ff   : > { %13268 = vmatpush3.bf16.msk.msra.mxu1 %vm11493_vm10, %v18905_v50  ;;  %13247 = vmatprep.subr.msk.bf16.mxu0 %vm11511_vm12, %v18905_v50  ;;  %vm7851_vm10 = vcmp.eq.s32.totalorder %v14044_v61, %v19191_v29 }
 0x500   : > { %13269 = vmatprep.subr.msk.bf16.mxu1 %vm11511_vm12, %v18905_v50  ;;  %vm7852_vm12 = vcmp.eq.s32.totalorder %v14047_v4, %v19191_v29 }
 0x501   : > { %vm18405_vm14 = vmpackc.low %vm7852_vm12, %vm7851_vm10  ;;  %vm7831_vm10 = vcmp.eq.s32.totalorder %v14165_v22, %v19191_v29  ;;  %vm7832_vm12 = vcmp.eq.s32.totalorder %v14168_v46, %v19191_v29 }
 0x502   : > { %13248 = vmatpush3.bf16.msk.msra.mxu0 %vm11495_vm1, %v18905_v50  ;;  %vm11585_vm15 = vmpackc.low %vm7832_vm12, %vm7831_vm10 }
 0x503   : > { %13270 = vmatpush3.bf16.msk.msra.mxu1 %vm11495_vm1, %v18905_v50  ;;  %13277 = vmatprep.subr.msk.bf16.mxu0 %vm11593_vm2, %v18905_v50  ;;  %vm7849_vm1 = vcmp.eq.s32.totalorder %v14080_v8, %v19191_v29 }
 0x504   : > { %13299 = vmatprep.subr.msk.bf16.mxu1 %vm11593_vm2, %v18905_v50  ;;  %vm7850_vm2 = vcmp.eq.s32.totalorder %v14083_v20, %v19191_v29 }
 0x505   : > { %v12985_v38 = vpop.f32.mrf.mxu0  ;;  %7772 = vmatmul.mubr.bf16.vlgmr.msra.gmra.mxu0 %v19192_v49  ;;  %vm11599_vm4 = vmpackc.low %vm7850_vm2, %vm7849_vm1  ;;  %vm7829_vm1 = vcmp.eq.s32.totalorder %v14220_v14, %v19191_v29  ;;  %vm7830_vm2 = vcmp.eq.s32.totalorder %v14223_v15, %v19191_v29 }
 0x506   : > { %v13007_v0 = vpop.f32.mrf.mxu1  ;;  %7813 = vmatmul.mubr.bf16.vlgmr.msra.gmra.mxu1 %v19195_v34  ;;  %13278 = vmatpush3.bf16.msk.msra.mxu0 %vm11577_vm7, %v18905_v50  ;;  %vm11587_vm5 = vmpackc.low %vm7830_vm2, %vm7829_vm1 }
 0x507   : > { %7975 = vmatprep.mubr.bf16.mxu0 %v7940_v41  ;;  %13300 = vmatpush3.bf16.msk.msra.mxu1 %vm11577_vm7, %v18905_v50  ;;  %v12986_v33 = vpop.f32.mrf.mxu0  ;;  %vm7847_vm7 = vcmp.eq.s32.totalorder %v14127_v26, %v19191_v29 }
 0x508   : > { %8022 = vmatprep.mubr.bf16.mxu1 %v7987_v9  ;;  %v12987_v48 = vadd.f32 %v12986_v33, %v12985_v38  ;;  %v13008_v53 = vpop.f32.mrf.mxu1  ;;  %13279 = vmatprep.subr.msk.bf16.mxu0 %vm18383_vm11, %v18905_v50 }
 0x509   : > { %v13009_v7 = vadd.f32 %v13008_v53, %v13007_v0  ;;  %v12988_v55 = vpop.f32.mrf.mxu0  ;;  %13301 = vmatprep.subr.msk.bf16.mxu1 %vm18383_vm11, %v18905_v50  ;;  %vm11601_vm11 = vmpackc.low %vm7848_vm8, %vm7847_vm7  ;;  %vm7827_vm7 = vcmp.eq.s32.totalorder %v14261_v42, %v19191_v29  ;;  %vm7828_vm8 = vcmp.eq.s32.totalorder %v14264_v60, %v19191_v29 }
 0x50a   : > { %v6555_v39 = vadd.f32 %v12987_v48, %v18300_v45  ;;  %v13010_v17 = vpop.f32.mrf.mxu1  ;;  %13280 = vmatpush3.bf16.msk.msra.mxu0 %vm18398_vm13, %v18905_v50  ;;  %vm11589_vm10 = vmpackc.low %vm7828_vm8, %vm7827_vm7  ;;  %vm8047_vm8 = vcmp.eq.s32.totalorder %v14027_v52, %v19200_v51  ;;  %v19207_v45 = vld [vmem:[#allocation91_spill] sm:$0xff]  ;;  %v19213_v55 = vld [vmem:[#allocation30_spill] sm:$0xff] }
 0x50b   : > { %13302 = vmatpush3.bf16.msk.msra.mxu1 %vm18398_vm13, %v18905_v50  ;;  %v12989_v40 = vpop.f32.mrf.mxu0  ;;  %13281 = vmatprep.subr.msk.bf16.mxu0 %vm18405_vm14, %v18905_v50  ;;  %vm7845_vm13 = vcmp.eq.s32.totalorder %v14181_v59, %v19191_v29 }
 0x50c   : > { %v18430_v43 = vadd.f32 %v13009_v7, %v6555_v39  ;;  %v13011_v37 = vpop.f32.mrf.mxu1  ;;  %13303 = vmatprep.subr.msk.bf16.mxu1 %vm18405_vm14, %v18905_v50  ;;  %vm7846_vm14 = vcmp.eq.s32.totalorder %v14184_v57, %v19191_v29  ;;  %v19217_v39 = vld [vmem:[#allocation93_spill] sm:$0xff] }
 0x50d   : > { %vm11603_vm0 = vmpackc.low %vm7846_vm14, %vm7845_vm13  ;;  %vm7825_vm13 = vcmp.eq.s32.totalorder %v13805_v3, %v19191_v29  ;;  %vm7826_vm14 = vcmp.eq.s32.totalorder %v14302_v32, %v19191_v29 }
 0x50e   : > { %13282 = vmatpush3.bf16.msk.msra.mxu0 %vm11581_vm3, %v18905_v50  ;;  %vm11591_vm1 = vmpackc.low %vm7826_vm14, %vm7825_vm13 }
 0x50f   : > { %13304 = vmatpush3.bf16.msk.msra.mxu1 %vm11581_vm3, %v18905_v50  ;;  %13283 = vmatprep.subr.msk.bf16.mxu0 %vm11599_vm4, %v18905_v50  ;;  %vm7843_vm3 = vcmp.eq.s32.totalorder %v14230_v2, %v19191_v29 }
 0x510   : > { %13305 = vmatprep.subr.msk.bf16.mxu1 %vm11599_vm4, %v18905_v50  ;;  %vm7844_vm4 = vcmp.eq.s32.totalorder %v14233_v21, %v19191_v29 }
 0x511   : > { %vm11605_vm6 = vmpackc.low %vm7844_vm4, %vm7843_vm3  ;;  %vm8049_vm3 = vcmp.eq.s32.totalorder %v14006_v12, %v19200_v51  ;;  %vm8050_vm4 = vcmp.eq.s32.totalorder %v14009_v10, %v19200_v51 }
 0x512   : > { %13284 = vmatpush3.bf16.msk.msra.mxu0 %vm11583_vm9, %v18905_v50  ;;  %vm18507_vm7 = vmpackc.low %vm8050_vm4, %vm8049_vm3 }
 0x513   : > { %13306 = vmatpush3.bf16.msk.msra.mxu1 %vm11583_vm9, %v18905_v50  ;;  %13285 = vmatprep.subr.msk.bf16.mxu0 %vm11601_vm11, %v18905_v50  ;;  %vm7841_vm9 = vcmp.eq.s32.totalorder %v14273_v58, %v19191_v29 }
 0x514   : > { %13307 = vmatprep.subr.msk.bf16.mxu1 %vm11601_vm11, %v18905_v50  ;;  %vm7842_vm11 = vcmp.eq.s32.totalorder %v14276_v6, %v19191_v29  ;;  %v18531_v29 = vpack.c.bf16 %v19208_v54, %v19207_v45 }
 0x515   : > { %vm11607_vm12 = vmpackc.low %vm7842_vm11, %vm7841_vm9  ;;  %vm8048_vm9 = vcmp.eq.s32.totalorder %v14030_v56, %v19200_v51 }
 0x516   : > { %13286 = vmatpush3.bf16.msk.msra.mxu0 %vm11585_vm15, %v18905_v50  ;;  %vm18543_vm13 = vmpackc.low %vm8048_vm9, %vm8047_vm8  ;;  %vm8058_vm8 = vcmp.eq.s32.totalorder %v14130_v31, %v19200_v51 }
 0x517   : > { %13308 = vmatpush3.bf16.msk.msra.mxu1 %vm11585_vm15, %v18905_v50  ;;  %13287 = vmatprep.subr.msk.bf16.mxu0 %vm11603_vm0, %v18905_v50  ;;  %vm8065_vm15 = vcmp.eq.s32.totalorder %v13980_v11, %v19200_v51 }
 0x518   : > { %13309 = vmatprep.subr.msk.bf16.mxu1 %vm11603_vm0, %v18905_v50  ;;  %vm8066_vm0 = vcmp.eq.s32.totalorder %v13983_v13, %v19200_v51 }
 0x519   : > { %vm11689_vm2 = vmpackc.low %vm8066_vm0, %vm8065_vm15  ;;  %vm8045_vm15 = vcmp.eq.s32.totalorder %v14068_v16, %v19200_v51  ;;  %vm8046_vm0 = vcmp.eq.s32.totalorder %v14071_v18, %v19200_v51 }
 0x51a   : > { %13288 = vmatpush3.bf16.msk.msra.mxu0 %vm11587_vm5, %v18905_v50  ;;  %vm11677_vm3 = vmpackc.low %vm8046_vm0, %vm8045_vm15 }
 0x51b   : > { %13310 = vmatpush3.bf16.msk.msra.mxu1 %vm11587_vm5, %v18905_v50  ;;  %13289 = vmatprep.subr.msk.bf16.mxu0 %vm11605_vm6, %v18905_v50  ;;  %vm8063_vm5 = vcmp.eq.s32.totalorder %v14012_v27, %v19200_v51 }
 0x51c   : > { %13311 = vmatprep.subr.msk.bf16.mxu1 %vm11605_vm6, %v18905_v50  ;;  %vm8064_vm6 = vcmp.eq.s32.totalorder %v14022_v1, %v19200_v51 }
 0x51d   : > { %vm18521_vm11 = vmpackc.low %vm8064_vm6, %vm8063_vm5  ;;  %vm8043_vm5 = vcmp.eq.s32.totalorder %v14117_v23, %v19200_v51  ;;  %vm8044_vm6 = vcmp.eq.s32.totalorder %v14120_v24, %v19200_v51 }
 0x51e   : > { %13290 = vmatpush3.bf16.msk.msra.mxu0 %vm11589_vm10, %v18905_v50  ;;  %vm11679_vm9 = vmpackc.low %vm8044_vm6, %vm8043_vm5 }
 0x51f   : > { %13312 = vmatpush3.bf16.msk.msra.mxu1 %vm11589_vm10, %v18905_v50  ;;  %13291 = vmatprep.subr.msk.bf16.mxu0 %vm11607_vm12, %v18905_v50  ;;  %vm8061_vm10 = vcmp.eq.s32.totalorder %v14044_v61, %v19200_v51 }
 0x520   : > { %13313 = vmatprep.subr.msk.bf16.mxu1 %vm11607_vm12, %v18905_v50  ;;  %vm8062_vm12 = vcmp.eq.s32.totalorder %v14047_v4, %v19200_v51 }
 0x521   : > { %vm18551_vm14 = vmpackc.low %vm8062_vm12, %vm8061_vm10  ;;  %vm8041_vm10 = vcmp.eq.s32.totalorder %v14165_v22, %v19200_v51  ;;  %vm8042_vm12 = vcmp.eq.s32.totalorder %v14168_v46, %v19200_v51 }
 0x522   : > { %13292 = vmatpush3.bf16.msk.msra.mxu0 %vm11591_vm1, %v18905_v50  ;;  %vm11681_vm15 = vmpackc.low %vm8042_vm12, %vm8041_vm10 }
 0x523   : > { %13314 = vmatpush3.bf16.msk.msra.mxu1 %vm11591_vm1, %v18905_v50  ;;  %13321 = vmatprep.subr.msk.bf16.mxu0 %vm11689_vm2, %v18905_v50  ;;  %vm8059_vm1 = vcmp.eq.s32.totalorder %v14080_v8, %v19200_v51 }
 0x524   : > { %13343 = vmatprep.subr.msk.bf16.mxu1 %vm11689_vm2, %v18905_v50  ;;  %vm8060_vm2 = vcmp.eq.s32.totalorder %v14083_v20, %v19200_v51 }
 0x525   : > { %v13029_v19 = vpop.f32.mrf.mxu0  ;;  %7976 = vmatmul.mubr.bf16.vlgmr.msra.gmra.mxu0 %v7939_v30  ;;  %vm11695_vm4 = vmpackc.low %vm8060_vm2, %vm8059_vm1  ;;  %vm8039_vm1 = vcmp.eq.s32.totalorder %v14220_v14, %v19200_v51  ;;  %vm8040_vm2 = vcmp.eq.s32.totalorder %v14223_v15, %v19200_v51 }
 0x526   : > { %v13051_v41 = vpop.f32.mrf.mxu1  ;;  %8023 = vmatmul.mubr.bf16.vlgmr.msra.gmra.mxu1 %v7986_v62  ;;  %13322 = vmatpush3.bf16.msk.msra.mxu0 %vm18507_vm7, %v18905_v50  ;;  %vm11683_vm5 = vmpackc.low %vm8040_vm2, %vm8039_vm1 }
 0x527   : > { %8179 = vmatprep.mubr.bf16.mxu0 %v18519_v63  ;;  %13344 = vmatpush3.bf16.msk.msra.mxu1 %vm18507_vm7, %v18905_v50  ;;  %v13030_v38 = vpop.f32.mrf.mxu0  ;;  %vm8057_vm7 = vcmp.eq.s32.totalorder %v14127_v26, %v19200_v51 }
 0x528   : > { %8220 = vmatprep.mubr.bf16.mxu1 %v18531_v29  ;;  %v13031_v35 = vadd.f32 %v13030_v38, %v13029_v19  ;;  %v13052_v9 = vpop.f32.mrf.mxu1  ;;  %13323 = vmatprep.subr.msk.bf16.mxu0 %vm18521_vm11, %v18905_v50 }
 0x529   : > { %v13053_v34 = vadd.f32 %v13052_v9, %v13051_v41  ;;  %v13032_v33 = vpop.f32.mrf.mxu0  ;;  %13345 = vmatprep.subr.msk.bf16.mxu1 %vm18521_vm11, %v18905_v50  ;;  %vm11697_vm11 = vmpackc.low %vm8058_vm8, %vm8057_vm7  ;;  %vm8037_vm7 = vcmp.eq.s32.totalorder %v14261_v42, %v19200_v51  ;;  %vm8038_vm8 = vcmp.eq.s32.totalorder %v14264_v60, %v19200_v51 }
 0x52a   : > { %v6759_v28 = vadd.f32 %v13031_v35, %v18430_v43  ;;  %v13054_v48 = vpop.f32.mrf.mxu1  ;;  %13324 = vmatpush3.bf16.msk.msra.mxu0 %vm18543_vm13, %v18905_v50  ;;  %vm11685_vm10 = vmpackc.low %vm8038_vm8, %vm8037_vm7  ;;  %vm8245_vm8 = vcmp.eq.s32.totalorder %v14027_v52, %v19213_v55 }
 0x52b   : > { %13346 = vmatpush3.bf16.msk.msra.mxu1 %vm18543_vm13, %v18905_v50  ;;  %v13033_v53 = vpop.f32.mrf.mxu0  ;;  %13325 = vmatprep.subr.msk.bf16.mxu0 %vm18551_vm14, %v18905_v50  ;;  %vm8055_vm13 = vcmp.eq.s32.totalorder %v14181_v59, %v19200_v51 }
 0x52c   : > { %v18576_v25 = vadd.f32 %v13053_v34, %v6759_v28  ;;  %v13055_v7 = vpop.f32.mrf.mxu1  ;;  %13347 = vmatprep.subr.msk.bf16.mxu1 %vm18551_vm14, %v18905_v50  ;;  %vm8056_vm14 = vcmp.eq.s32.totalorder %v14184_v57, %v19200_v51 }
 0x52d   : > { %vm11699_vm0 = vmpackc.low %vm8056_vm14, %vm8055_vm13  ;;  %vm8035_vm13 = vcmp.eq.s32.totalorder %v13805_v3, %v19200_v51  ;;  %vm8036_vm14 = vcmp.eq.s32.totalorder %v14302_v32, %v19200_v51 }
 0x52e   : > { %13326 = vmatpush3.bf16.msk.msra.mxu0 %vm11677_vm3, %v18905_v50  ;;  %vm11687_vm1 = vmpackc.low %vm8036_vm14, %vm8035_vm13 }
 0x52f   : > { %13348 = vmatpush3.bf16.msk.msra.mxu1 %vm11677_vm3, %v18905_v50  ;;  %13327 = vmatprep.subr.msk.bf16.mxu0 %vm11695_vm4, %v18905_v50  ;;  %vm8053_vm3 = vcmp.eq.s32.totalorder %v14230_v2, %v19200_v51 }
 0x530   : > { %13349 = vmatprep.subr.msk.bf16.mxu1 %vm11695_vm4, %v18905_v50  ;;  %vm8054_vm4 = vcmp.eq.s32.totalorder %v14233_v21, %v19200_v51 }
 0x531   : > { %vm11701_vm6 = vmpackc.low %vm8054_vm4, %vm8053_vm3  ;;  %vm8247_vm3 = vcmp.eq.s32.totalorder %v14006_v12, %v19213_v55  ;;  %vm8248_vm4 = vcmp.eq.s32.totalorder %v14009_v10, %v19213_v55  ;;  %v19214_v12 = vld [vmem:[#allocation92_spill] sm:$0xff] }
 0x532   : > { %13328 = vmatpush3.bf16.msk.msra.mxu0 %vm11679_vm9, %v18905_v50  ;;  %vm11769_vm7 = vmpackc.low %vm8248_vm4, %vm8247_vm3 }
 0x533   : > { %13350 = vmatpush3.bf16.msk.msra.mxu1 %vm11679_vm9, %v18905_v50  ;;  %13329 = vmatprep.subr.msk.bf16.mxu0 %vm11697_vm11, %v18905_v50  ;;  %vm8051_vm9 = vcmp.eq.s32.totalorder %v14273_v58, %v19200_v51 }
 0x534   : > { %13351 = vmatprep.subr.msk.bf16.mxu1 %vm11697_vm11, %v18905_v50  ;;  %vm8052_vm11 = vcmp.eq.s32.totalorder %v14276_v6, %v19200_v51 }
 0x535   : > { %vm11703_vm12 = vmpackc.low %vm8052_vm11, %vm8051_vm9  ;;  %vm8246_vm9 = vcmp.eq.s32.totalorder %v14030_v56, %v19213_v55 }
 0x536   : > { %13330 = vmatpush3.bf16.msk.msra.mxu0 %vm11681_vm15, %v18905_v50  ;;  %vm18674_vm13 = vmpackc.low %vm8246_vm9, %vm8245_vm8  ;;  %vm8256_vm8 = vcmp.eq.s32.totalorder %v14130_v31, %v19213_v55 }
 0x537   : > { %13352 = vmatpush3.bf16.msk.msra.mxu1 %vm11681_vm15, %v18905_v50  ;;  %13331 = vmatprep.subr.msk.bf16.mxu0 %vm11699_vm0, %v18905_v50  ;;  %vm8263_vm15 = vcmp.eq.s32.totalorder %v13980_v11, %v19213_v55  ;;  %v8348_v11 = vrot.slane %v18519_v63, 4 }
 0x538   : > { %13353 = vmatprep.subr.msk.bf16.mxu1 %vm11699_vm0, %v18905_v50  ;;  %vm8264_vm0 = vcmp.eq.s32.totalorder %v13983_v13, %v19213_v55 }
 0x539   : > { %vm11785_vm2 = vmpackc.low %vm8264_vm0, %vm8263_vm15  ;;  %vm8243_vm15 = vcmp.eq.s32.totalorder %v14068_v16, %v19213_v55  ;;  %vm8244_vm0 = vcmp.eq.s32.totalorder %v14071_v18, %v19213_v55 }
 0x53a   : > { %13332 = vmatpush3.bf16.msk.msra.mxu0 %vm11683_vm5, %v18905_v50  ;;  %vm11773_vm3 = vmpackc.low %vm8244_vm0, %vm8243_vm15 }
 0x53b   : > { %13354 = vmatpush3.bf16.msk.msra.mxu1 %vm11683_vm5, %v18905_v50  ;;  %13333 = vmatprep.subr.msk.bf16.mxu0 %vm11701_vm6, %v18905_v50  ;;  %vm8261_vm5 = vcmp.eq.s32.totalorder %v14012_v27, %v19213_v55  ;;  %v8395_v27 = vrot.slane %v18531_v29, 4 }
 0x53c   : > { %13355 = vmatprep.subr.msk.bf16.mxu1 %vm11701_vm6, %v18905_v50  ;;  %vm8262_vm6 = vcmp.eq.s32.totalorder %v14022_v1, %v19213_v55 }
 0x53d   : > { %vm18659_vm11 = vmpackc.low %vm8262_vm6, %vm8261_vm5  ;;  %vm8241_vm5 = vcmp.eq.s32.totalorder %v14117_v23, %v19213_v55  ;;  %vm8242_vm6 = vcmp.eq.s32.totalorder %v14120_v24, %v19213_v55 }
 0x53e   : > { %13334 = vmatpush3.bf16.msk.msra.mxu0 %vm11685_vm10, %v18905_v50  ;;  %vm11775_vm9 = vmpackc.low %vm8242_vm6, %vm8241_vm5 }
 0x53f   : > { %13356 = vmatpush3.bf16.msk.msra.mxu1 %vm11685_vm10, %v18905_v50  ;;  %13335 = vmatprep.subr.msk.bf16.mxu0 %vm11703_vm12, %v18905_v50  ;;  %vm8259_vm10 = vcmp.eq.s32.totalorder %v14044_v61, %v19213_v55 }
 0x540   : > { %13357 = vmatprep.subr.msk.bf16.mxu1 %vm11703_vm12, %v18905_v50  ;;  %vm8260_vm12 = vcmp.eq.s32.totalorder %v14047_v4, %v19213_v55 }
 0x541   : > { %vm18681_vm14 = vmpackc.low %vm8260_vm12, %vm8259_vm10  ;;  %vm8239_vm10 = vcmp.eq.s32.totalorder %v14165_v22, %v19213_v55  ;;  %vm8240_vm12 = vcmp.eq.s32.totalorder %v14168_v46, %v19213_v55 }
 0x542   : > { %13336 = vmatpush3.bf16.msk.msra.mxu0 %vm11687_vm1, %v18905_v50  ;;  %vm11777_vm15 = vmpackc.low %vm8240_vm12, %vm8239_vm10 }
 0x543   : > { %13358 = vmatpush3.bf16.msk.msra.mxu1 %vm11687_vm1, %v18905_v50  ;;  %13365 = vmatprep.subr.msk.bf16.mxu0 %vm11785_vm2, %v18905_v50  ;;  %vm8257_vm1 = vcmp.eq.s32.totalorder %v14080_v8, %v19213_v55 }
 0x544   : > { %13387 = vmatprep.subr.msk.bf16.mxu1 %vm11785_vm2, %v18905_v50  ;;  %vm8258_vm2 = vcmp.eq.s32.totalorder %v14083_v20, %v19213_v55 }
 0x545   : > { %v13073_v13 = vpop.f32.mrf.mxu0  ;;  %8180 = vmatmul.mubr.bf16.vlgmr.msra.gmra.mxu0 %v19214_v12  ;;  %vm11791_vm4 = vmpackc.low %vm8258_vm2, %vm8257_vm1  ;;  %vm8237_vm1 = vcmp.eq.s32.totalorder %v14220_v14, %v19213_v55  ;;  %vm8238_vm2 = vcmp.eq.s32.totalorder %v14223_v15, %v19213_v55 }
 0x546   : > { %v13095_v1 = vpop.f32.mrf.mxu1  ;;  %8221 = vmatmul.mubr.bf16.vlgmr.msra.gmra.mxu1 %v19217_v39  ;;  %13366 = vmatpush3.bf16.msk.msra.mxu0 %vm11769_vm7, %v18905_v50  ;;  %vm11779_vm5 = vmpackc.low %vm8238_vm2, %vm8237_vm1 }
 0x547   : > { %8383 = vmatprep.mubr.bf16.mxu0 %v8348_v11  ;;  %13388 = vmatpush3.bf16.msk.msra.mxu1 %vm11769_vm7, %v18905_v50  ;;  %v13074_v56 = vpop.f32.mrf.mxu0  ;;  %vm8255_vm7 = vcmp.eq.s32.totalorder %v14127_v26, %v19213_v55 }
 0x548   : > { %8430 = vmatprep.mubr.bf16.mxu1 %v8395_v27  ;;  %v13075_v61 = vadd.f32 %v13074_v56, %v13073_v13  ;;  %v13096_v4 = vpop.f32.mrf.mxu1  ;;  %13367 = vmatprep.subr.msk.bf16.mxu0 %vm18659_vm11, %v18905_v50 }
 0x549   : > { %v13097_v52 = vadd.f32 %v13096_v4, %v13095_v1  ;;  %v13076_v43 = vpop.f32.mrf.mxu0  ;;  %13389 = vmatprep.subr.msk.bf16.mxu1 %vm18659_vm11, %v18905_v50  ;;  %vm11793_vm11 = vmpackc.low %vm8256_vm8, %vm8255_vm7  ;;  %vm8235_vm7 = vcmp.eq.s32.totalorder %v14261_v42, %v19213_v55  ;;  %vm8236_vm8 = vcmp.eq.s32.totalorder %v14264_v60, %v19213_v55 }
 0x54a   : > { %v6963_v37 = vadd.f32 %v13075_v61, %v18576_v25  ;;  %v13098_v51 = vpop.f32.mrf.mxu1  ;;  %13368 = vmatpush3.bf16.msk.msra.mxu0 %vm18674_vm13, %v18905_v50  ;;  %vm11781_vm10 = vmpackc.low %vm8236_vm8, %vm8235_vm7 }
 0x54b   : > { %13390 = vmatpush3.bf16.msk.msra.mxu1 %vm18674_vm13, %v18905_v50  ;;  %v13077_v16 = vpop.f32.mrf.mxu0  ;;  %13369 = vmatprep.subr.msk.bf16.mxu0 %vm18681_vm14, %v18905_v50  ;;  %vm8253_vm13 = vcmp.eq.s32.totalorder %v14181_v59, %v19213_v55 }
 0x54c   : > { %v18706_v18 = vadd.f32 %v13097_v52, %v6963_v37  ;;  %v13099_v8 = vpop.f32.mrf.mxu1  ;;  %13391 = vmatprep.subr.msk.bf16.mxu1 %vm18681_vm14, %v18905_v50  ;;  %vm8254_vm14 = vcmp.eq.s32.totalorder %v14184_v57, %v19213_v55 }
 0x54d   : > { %vm11795_vm0 = vmpackc.low %vm8254_vm14, %vm8253_vm13  ;;  %vm8233_vm13 = vcmp.eq.s32.totalorder %v13805_v3, %v19213_v55  ;;  %vm8234_vm14 = vcmp.eq.s32.totalorder %v14302_v32, %v19213_v55  ;;  %v8394_v3 = vrot.slane %v19217_v39, 4 }
 0x54e   : > { %13370 = vmatpush3.bf16.msk.msra.mxu0 %vm11773_vm3, %v18905_v50 }
 0x54f   : > { %13392 = vmatpush3.bf16.msk.msra.mxu1 %vm11773_vm3, %v18905_v50  ;;  %13371 = vmatprep.subr.msk.bf16.mxu0 %vm11791_vm4, %v18905_v50  ;;  %vm8251_vm3 = vcmp.eq.s32.totalorder %v14230_v2, %v19213_v55 }
 0x550   : > { %13393 = vmatprep.subr.msk.bf16.mxu1 %vm11791_vm4, %v18905_v50  ;;  %vm8252_vm4 = vcmp.eq.s32.totalorder %v14233_v21, %v19213_v55 }
 0x551   : > { %vm11797_vm6 = vmpackc.low %vm8252_vm4, %vm8251_vm3 }
 0x552   : > { %13372 = vmatpush3.bf16.msk.msra.mxu0 %vm11775_vm9, %v18905_v50 }
 0x553   : > { %13394 = vmatpush3.bf16.msk.msra.mxu1 %vm11775_vm9, %v18905_v50  ;;  %13373 = vmatprep.subr.msk.bf16.mxu0 %vm11793_vm11, %v18905_v50  ;;  %vm8249_vm9 = vcmp.eq.s32.totalorder %v14273_v58, %v19213_v55  ;;  %v8347_v58 = vrot.slane %v19214_v12, 4 }
 0x554   : > { %13395 = vmatprep.subr.msk.bf16.mxu1 %vm11793_vm11, %v18905_v50  ;;  %vm8250_vm11 = vcmp.eq.s32.totalorder %v14276_v6, %v19213_v55 }
 0x555   : > { %vm11799_vm12 = vmpackc.low %vm8250_vm11, %vm8249_vm9 }
 0x556   : > { %13374 = vmatpush3.bf16.msk.msra.mxu0 %vm11777_vm15, %v18905_v50 }
 0x557   : > { %13396 = vmatpush3.bf16.msk.msra.mxu1 %vm11777_vm15, %v18905_v50  ;;  %13375 = vmatprep.subr.msk.bf16.mxu0 %vm11795_vm0, %v18905_v50  ;;  %vm11783_vm15 = vmpackc.low %vm8234_vm14, %vm8233_vm13 }
 0x558   : > { %13397 = vmatprep.subr.msk.bf16.mxu1 %vm11795_vm0, %v18905_v50 }
 0x55a   : > { %13376 = vmatpush3.bf16.msk.msra.mxu0 %vm11779_vm5, %v18905_v50 }
 0x55b   : > { %13398 = vmatpush3.bf16.msk.msra.mxu1 %vm11779_vm5, %v18905_v50  ;;  %13377 = vmatprep.subr.msk.bf16.mxu0 %vm11797_vm6, %v18905_v50 }
 0x55c   : > { %13399 = vmatprep.subr.msk.bf16.mxu1 %vm11797_vm6, %v18905_v50 }
 0x55e   : > { %13378 = vmatpush3.bf16.msk.msra.mxu0 %vm11781_vm10, %v18905_v50 }
 0x55f   : > { %13400 = vmatpush3.bf16.msk.msra.mxu1 %vm11781_vm10, %v18905_v50  ;;  %13379 = vmatprep.subr.msk.bf16.mxu0 %vm11799_vm12, %v18905_v50 }
 0x560   : > { %13401 = vmatprep.subr.msk.bf16.mxu1 %vm11799_vm12, %v18905_v50 }
 0x562   : > { %13380 = vmatpush3.bf16.msk.msra.mxu0 %vm11783_vm15, %v18905_v50 }
 0x563   : > { %13402 = vmatpush3.bf16.msk.msra.mxu1 %vm11783_vm15, %v18905_v50 }
 0x565   : > { %v13117_v6 = vpop.f32.mrf.mxu0  ;;  %8384 = vmatmul.mubr.bf16.vlgmr.msra.gmra.mxu0 %v8347_v58 }
 0x566   : > { %v13139_v20 = vpop.f32.mrf.mxu1  ;;  %8431 = vmatmul.mubr.bf16.vlgmr.msra.gmra.mxu1 %v8394_v3 }
 0x567   : > { %v13118_v23 = vpop.f32.mrf.mxu0 }
 0x568   : > { %v13119_v24 = vadd.f32 %v13118_v23, %v13117_v6  ;;  %v13140_v26 = vpop.f32.mrf.mxu1 }
 0x569   : > { %v13141_v31 = vadd.f32 %v13140_v26, %v13139_v20  ;;  %v13120_v22 = vpop.f32.mrf.mxu0 }
 0x56a   : > { %v7167_v46 = vadd.f32 %v13119_v24, %v18706_v18  ;;  %v13142_v59 = vpop.f32.mrf.mxu1 }
 0x56b   : > { %v13121_v57 = vpop.f32.mrf.mxu0 }
 0x56c   : > { %v7214_v14 = vadd.f32 %v13141_v31, %v7167_v46  ;;  %v13143_v15 = vpop.f32.mrf.mxu1 }
 0x585   : > { %v13161_v2 = vpop.f32.mrf.mxu0 }
 0x586   : > { %v13183_v21 = vpop.f32.mrf.mxu1 }
 0x587   : > { %v13162_v42 = vpop.f32.mrf.mxu0 }
 0x588   : > { %v13163_v60 = vadd.f32 %v13162_v42, %v13161_v2  ;;  %v13184_v32 = vpop.f32.mrf.mxu1 }
 0x589   : > { %v13185_v50 = vadd.f32 %v13184_v32, %v13183_v21  ;;  %v13164_v30 = vpop.f32.mrf.mxu0 }
 0x58a   : > { %v7371_v44 = vadd.f32 %v13163_v60, %v7214_v14  ;;  %v13186_v62 = vpop.f32.mrf.mxu1 }
 0x58b   : > { %v13165_v36 = vpop.f32.mrf.mxu0 }
 0x58c   : > { %v7412_v5 = vadd.f32 %v13185_v50, %v7371_v44  ;;  %v13187_v63 = vpop.f32.mrf.mxu1  ;;  %v8439_v50 = vld [vmem:[#allocation2] sm:$0xff] }
 0x5a5   : > { %v13205_v19 = vpop.f32.mrf.mxu0 }
 0x5a6   : > { %v13227_v47 = vpop.f32.mrf.mxu1 }
 0x5a7   : > { %v13206_v45 = vpop.f32.mrf.mxu0 }
 0x5a8   : > { %v13207_v54 = vadd.f32 %v13206_v45, %v13205_v19  ;;  %v13228_v29 = vpop.f32.mrf.mxu1 }
 0x5a9   : > { %v13229_v41 = vadd.f32 %v13228_v29, %v13227_v47  ;;  %v13208_v38 = vpop.f32.mrf.mxu0 }
 0x5aa   : > { %v7575_v49 = vadd.f32 %v13207_v54, %v7412_v5  ;;  %v13230_v35 = vpop.f32.mrf.mxu1 }
 0x5ab   : > { %v13209_v9 = vpop.f32.mrf.mxu0 }
 0x5ac   : > { %v7622_v0 = vadd.f32 %v13229_v41, %v7575_v49  ;;  %v13231_v34 = vpop.f32.mrf.mxu1 }
 0x5c5   : > { %v13249_v33 = vpop.f32.mrf.mxu0 }
 0x5c6   : > { %v13271_v28 = vpop.f32.mrf.mxu1 }
 0x5c7   : > { %v13250_v48 = vpop.f32.mrf.mxu0 }
 0x5c8   : > { %v13251_v53 = vadd.f32 %v13250_v48, %v13249_v33  ;;  %v13272_v25 = vpop.f32.mrf.mxu1 }
 0x5c9   : > { %v13273_v7 = vadd.f32 %v13272_v25, %v13271_v28  ;;  %v13252_v55 = vpop.f32.mrf.mxu0 }
 0x5ca   : > { %v7779_v11 = vadd.f32 %v13251_v53, %v7622_v0  ;;  %v13274_v13 = vpop.f32.mrf.mxu1 }
 0x5cb   : > { %v13253_v12 = vpop.f32.mrf.mxu0 }
 0x5cc   : > { %v7820_v10 = vadd.f32 %v13273_v7, %v7779_v11  ;;  %v13275_v27 = vpop.f32.mrf.mxu1 }
 0x5e5   : > { %v13293_v1 = vpop.f32.mrf.mxu0 }
 0x5e6   : > { %v13315_v39 = vpop.f32.mrf.mxu1 }
 0x5e7   : > { %v13294_v56 = vpop.f32.mrf.mxu0 }
 0x5e8   : > { %v13316_v17 = vpop.f32.mrf.mxu1  ;;  %v13295_v6 = vadd.f32 %v13294_v56, %v13293_v1 }
 0x5e9   : > { %v13296_v61 = vpop.f32.mrf.mxu0  ;;  %v13317_v23 = vadd.f32 %v13316_v17, %v13315_v39 }
 0x5ea   : > { %v13318_v4 = vpop.f32.mrf.mxu1  ;;  %v7983_v20 = vadd.f32 %v13295_v6, %v7820_v10 }
 0x5eb   : > { %v13297_v40 = vpop.f32.mrf.mxu0 }
 0x5ec   : > { %v13319_v52 = vpop.f32.mrf.mxu1  ;;  %v8030_v26 = vadd.f32 %v13317_v23, %v7983_v20 }
 0x605   : > { %v13337_v43 = vpop.f32.mrf.mxu0 }
 0x606   : > { %v13359_v37 = vpop.f32.mrf.mxu1 }
 0x607   : > { %v13338_v51 = vpop.f32.mrf.mxu0 }
 0x608   : > { %v13360_v16 = vpop.f32.mrf.mxu1  ;;  %v13339_v24 = vadd.f32 %v13338_v51, %v13337_v43 }
 0x609   : > { %v13340_v18 = vpop.f32.mrf.mxu0  ;;  %v13361_v46 = vadd.f32 %v13360_v16, %v13359_v37 }
 0x60a   : > { %v13362_v8 = vpop.f32.mrf.mxu1  ;;  %v8187_v31 = vadd.f32 %v13339_v24, %v8030_v26 }
 0x60b   : > { %v13341_v58 = vpop.f32.mrf.mxu0 }
 0x60c   : > { %v13363_v3 = vpop.f32.mrf.mxu1  ;;  %v8228_v14 = vadd.f32 %v13361_v46, %v8187_v31 }
 0x625   : > { %v13381_v22 = vpop.f32.mrf.mxu0 }
 0x626   : > { %v13403_v59 = vpop.f32.mrf.mxu1 }
 0x627   : > { %v13382_v57 = vpop.f32.mrf.mxu0 }
 0x628   : > { %v13383_v15 = vadd.f32 %v13382_v57, %v13381_v22  ;;  %v13404_v2 = vpop.f32.mrf.mxu1 }
 0x629   : > { %v13384_v21 = vpop.f32.mrf.mxu0  ;;  %v13405_v60 = vadd.f32 %v13404_v2, %v13403_v59 }
 0x62a   : > { %v8391_v42 = vadd.f32 %v13383_v15, %v8228_v14  ;;  %v13406_v32 = vpop.f32.mrf.mxu1 }
 0x62b   : > { %v13385_v30 = vpop.f32.mrf.mxu0 }
 0x62c   : > { %v8438_v44 = vadd.f32 %v13405_v60, %v8391_v42  ;;  %v13407_v62 = vpop.f32.mrf.mxu1  ;;  %8445 = sbr.rel (%p11833_p4) target bundleno = 1597 (0x63d), region = 60 }
 0x62e   : > { %v8440_v36 = vadd.f32 %v8439_v50, %v8438_v44 }
 0x630   : > { %8441 = vst [vmem:[#allocation2] sm:$0xff] %v8440_v36 }
 0x631   : > { %v8448_v63 = vstv %s8446_s28  ;;  %v11834_v19 = vld [vmem:[%s18807_s5] ss:$0 sm:$0xff] }
 0x637   : > { %v8447_v5 = vld [vmem:[#allocation2] sm:$0xff] }
 0x638   : > { %v8449_v47 = vmul.f32 %v8448_v63, %v8447_v5 }
 0x63a   : > { %v8457_v45 = vadd.f32 %v11834_v19, %v8449_v47 }
 0x63c   : > { %8458 = vst [vmem:[#allocation9] sm:$0xff] %v8457_v45 }
 0x63d PF: > { %p18778_p6 = scmp.eq.s32.totalorder %s8587_s0, 1  ;;  %s13682_s23 = smov [#allocation9]  }
 0x63e   : > { %s8469_s10 = sshll.u32 %s13682_s23, 4  ;;  %s8470_s10 = int_to_ptr.vmem [resolvable:$true] %s8469_s10 }
 0x63f   : > { %s13616_s11 = scalar_lea.vmem %s8470_s10, 128  ;;  %p13623_p1 = scmp.lt.s32.totalorder %s8470_s10, %s8470_s10 }
 0x640   : > { %p13617_p12 = scmp.ne.s32.totalorder %s8470_s10, %s13616_s11  ;;  %p13624_p2 = scmp.lt.s32.totalorder %s13616_s11, %s13616_s11 }
 0x642   : > { %p13618_p13 = pnand %p13617_p12, %p18778_p6  ;;  %p13625_p5 = por %p13624_p2, %p13623_p1 }
 0x644   : > { %p13619_p0 = pneg %p13618_p13 }
 0x646   : > { %p13626_p8 = pnand %p13625_p5, %p13619_p0 }
 0x648   : > { %13629 = shalt.err (!%p13626_p8)
}
 0x649   : > { %13418 = dma.vmem_to_hbm [thread:$0]  (%p18778_p6), %s8470_s10, 128, %s18808_s6, [#allocation6]  }
 0x64a   : > { %13661 = dma.done.wait (%p18778_p6), [#allocation6], 128  }
 0x64b   : > { %13663 = vsyncadd (%p18778_p6), [#allocation6], 4294967168 }
 0x64c PF: > { %s20_s25 = sadd.s32 1, %s13674_s25   ;;  %s19223_s23 = smov %s13670_s24 }
 0x64d   : > { %p17_p9 = scmp.ge.s32.totalorder %s20_s25, 4   ;;  %s19224_s24 = smov %s19226_s26 }
 0x64f   :  { %19 = sbr.rel (!%p17_p9) target bundleno = 6 (0x6), region = 95 }
 0x654   :  { %8482 = vsyncpa [#allocation5], 1 }
 0x655   :  { %8484 = vsyncpa [#allocation5 + $0x1], 1 }
 0x656   :  { %8485 = vsyncpa [#allocation8], 1 }
 0x657   :  { %8486 = vsyncpa [#allocation6], 1 }
 0x658   :  { %8488 = vsyncpa [#allocation6 + $0x1], 1 }

</bundles_post_ra>
